<compile_context>
chip_gen: v7x
topology: tpu7x:2x2x1
jax: 0.10.0
libtpu: 0.0.40
codegen_flags: <defaults>
</compile_context>

<pallas_src>
import functools

import numpy as np
import jax
import jax.numpy as jnp
from jax.experimental import pallas as pl
from jax.experimental.pallas import tpu as pltpu

NEG_SLOPE = 0.01   # F.leaky_relu default
BN_EPS = 1e-5      # nn.BatchNorm3d default


def _round_up(x, m):
    return (x + m - 1) // m * m


# ----------------------------------------------------------------------------
# Static parity / tap tables for ConvTranspose3d(kernel=4, stride=2, padding=1).
# Output voxel (2d+pd, 2h+ph, 2w+pw) only sees the 2x2x2 input taps at offsets
# (d+pd+td-1, ...) with kernel index (3-pd-2*td, ...).
# ----------------------------------------------------------------------------
_PARITIES = [(pd, ph, pw) for pd in (0, 1) for ph in (0, 1) for pw in (0, 1)]
_TAPS = [(td, th, tw) for td in (0, 1) for th in (0, 1) for tw in (0, 1)]
_OD = np.array([[pd + td for (td, th, tw) in _TAPS] for (pd, ph, pw) in _PARITIES])
_OH = np.array([[ph + th for (td, th, tw) in _TAPS] for (pd, ph, pw) in _PARITIES])
_OW = np.array([[pw + tw for (td, th, tw) in _TAPS] for (pd, ph, pw) in _PARITIES])
_KD = np.array([[(3 - pd) - 2 * td for (td, th, tw) in _TAPS] for (pd, ph, pw) in _PARITIES])
_KH = np.array([[(3 - ph) - 2 * th for (td, th, tw) in _TAPS] for (pd, ph, pw) in _PARITIES])
_KW = np.array([[(3 - pw) - 2 * tw for (td, th, tw) in _TAPS] for (pd, ph, pw) in _PARITIES])


# ----------------------------------------------------------------------------
# Batched FC GEMM:  out[g] = act(x @ W[g] + b[g]),  one pallas_call, grid=(G,)
# ----------------------------------------------------------------------------
def _make_fc_kernel(activation):
    def kernel(x_ref, w_ref, b_ref, o_ref):
        r = jnp.dot(x_ref[...], w_ref[...],
                    preferred_element_type=jnp.float32) + b_ref[...]
        if activation == "lrelu":
            r = jnp.where(r >= 0.0, r, NEG_SLOPE * r)
        elif activation == "tanh":
            r = jnp.tanh(r)
        o_ref[...] = r.astype(o_ref.dtype)
    return kernel


def fc_batched(x, w, b, activation="none", out_dtype=jnp.bfloat16):
    """x: (M, K); w: (G, K, N) bf16; b: (G, 1, N) f32 -> (G, M, N)."""
    M, K = x.shape
    G, _, N = w.shape
    return pl.pallas_call(
        _make_fc_kernel(activation),
        out_shape=jax.ShapeDtypeStruct((G, M, N), out_dtype),
        grid=(G,),
        in_specs=[
            pl.BlockSpec((M, K), lambda g: (0, 0)),
            pl.BlockSpec((None, K, N), lambda g: (g, 0, 0)),
            pl.BlockSpec((None, 1, N), lambda g: (g, 0, 0)),
        ],
        out_specs=pl.BlockSpec((None, M, N), lambda g: (g, 0, 0)),
        compiler_params=pltpu.CompilerParams(
            dimension_semantics=("parallel",)),
    )(x.astype(jnp.bfloat16), w, b)


# ----------------------------------------------------------------------------
# Fused deconv kernels (transposed GEMM: Cout on sublanes, voxels on lanes)
# ----------------------------------------------------------------------------
def _make_deconv_bn_kernel(n_groups, valid_m, count):
    """8 parity GEMMs + BatchNorm3d(train, gamma=1, beta=0) + leaky_relu,
    all in one invocation.  Stats are taken on the f32 pre-activations."""
    inv_count = 1.0 / float(count)

    def kernel(at_ref, wt_ref, b_ref, o_ref, r_ref):
        cp, mp = o_ref.shape[1], o_ref.shape[2]
        if valid_m < mp:
            lane = jax.lax.broadcasted_iota(jnp.int32, (cp, mp), 1)
            mask = (lane < valid_m).astype(jnp.float32)
        else:
            mask = None
        s1 = jnp.zeros((cp, 1), jnp.float32)
        s2 = jnp.zeros((cp, 1), jnp.float32)
        for g in range(n_groups):                       # unrolled at trace time
            r = jnp.dot(wt_ref[g], at_ref[g],
                        preferred_element_type=jnp.float32) + b_ref[...]
            r_ref[g] = r                                # keep f32 pre-act in VMEM
            rm = r if mask is None else r * mask
            s1 = s1 + jnp.sum(rm, axis=1, keepdims=True)
            s2 = s2 + jnp.sum(rm * r, axis=1, keepdims=True)
        mean = s1 * inv_count
        var = jnp.maximum(s2 * inv_count - mean * mean, 0.0)   # biased var
        scale = jax.lax.rsqrt(var + BN_EPS)
        shift = -mean * scale
        for g in range(n_groups):
            y = r_ref[g] * scale + shift
            o_ref[g] = jnp.where(y >= 0.0, y, NEG_SLOPE * y).astype(o_ref.dtype)
    return kernel


def _deconv_tanh_kernel(at_ref, wt_ref, b_ref, o_ref):
    r = jnp.dot(wt_ref[...], at_ref[...],
                preferred_element_type=jnp.float32) + b_ref[...]
    o_ref[...] = jnp.tanh(r).astype(o_ref.dtype)


def _gather_parity_patches(x):
    """x: (B, D, H, W, C) -> A^T: (8, 8*C, Mp) bf16, M = B*D*H*W padded to 128.
    Rows ordered (tap, cin); lanes ordered flattened (b, d, h, w)."""
    B, D, H, W, C = x.shape
    M = B * D * H * W
    xpad = jnp.pad(x.astype(jnp.bfloat16),
                   ((0, 0), (1, 1), (1, 1), (1, 1), (0, 0)))
    # all 27 shifted windows, then one constant-index gather picks the 8x8
    # (parity, tap) combinations -> ~15 XLA ops instead of 64 slices + stacks.
    t = jnp.stack([xpad[:, a:a + D] for a in range(3)], axis=0)
    t = jnp.stack([t[:, :, :, b:b + H] for b in range(3)], axis=1)
    t = jnp.stack([t[:, :, :, :, :, c:c + W] for c in range(3)], axis=2)
    a = t[_OD, _OH, _OW]                                # (8, 8, B, D, H, W, C)
    a = jnp.transpose(a, (0, 1, 6, 2, 3, 4, 5))          # (grp, tap, C, B, D, H, W)
    a = a.reshape(8, 8 * C, M)
    mp = _round_up(M, 128)
    if mp != M:
        a = jnp.pad(a, ((0, 0), (0, 0), (0, mp - M)))
    return a


def _scatter_parity_output(y_t, B, D, H, W, cout):
    """y_t: (8, Cp, Mp) -> (B, 2D, 2H, 2W, cout) channels-last."""
    M = B * D * H * W
    y = y_t[:, :cout, :M].reshape(2, 2, 2, cout, B, D, H, W)
    y = jnp.transpose(y, (4, 5, 0, 6, 1, 7, 2, 3))
    return y.reshape(B, 2 * D, 2 * H, 2 * W, cout)


def deconv_layer(x, wt, b2, cout, mode):
    """ConvTranspose3d(4,2,1) (+BN(train)+leaky_relu or +tanh) as one fused
    Pallas kernel.  x: (B,D,H,W,Cin); wt: (8,Cp,8*Cin) bf16; b2: (Cp,1) f32."""
    B, D, H, W, _ = x.shape
    M = B * D * H * W
    at = _gather_parity_patches(x)                      # (8, K, Mp)
    G, K, Mp = at.shape
    Cp = wt.shape[1]

    if mode == "bn_lrelu":
        y_t = pl.pallas_call(
            _make_deconv_bn_kernel(G, M, G * M),
            out_shape=jax.ShapeDtypeStruct((G, Cp, Mp), jnp.bfloat16),
            grid=(1,),
            in_specs=[
                pl.BlockSpec((G, K, Mp), lambda i: (0, 0, 0)),
                pl.BlockSpec((G, Cp, K), lambda i: (0, 0, 0)),
                pl.BlockSpec((Cp, 1), lambda i: (0, 0)),
            ],
            out_specs=pl.BlockSpec((G, Cp, Mp), lambda i: (0, 0, 0)),
            scratch_shapes=[pltpu.VMEM((G, Cp, Mp), jnp.float32)],
            compiler_params=pltpu.CompilerParams(
                dimension_semantics=("arbitrary",)),
        )(at, wt, b2)
    else:  # "tanh" (no cross-group reduction needed -> parallel grid over G)
        y_t = pl.pallas_call(
            _deconv_tanh_kernel,
            out_shape=jax.ShapeDtypeStruct((G, Cp, Mp), jnp.bfloat16),
            grid=(G,),
            in_specs=[
                pl.BlockSpec((None, K, Mp), lambda g: (g, 0, 0)),
                pl.BlockSpec((None, Cp, K), lambda g: (g, 0, 0)),
                pl.BlockSpec((Cp, 1), lambda g: (0, 0)),
            ],
            out_specs=pl.BlockSpec((None, Cp, Mp), lambda g: (g, 0, 0)),
            compiler_params=pltpu.CompilerParams(
                dimension_semantics=("parallel",)),
        )(at, wt, b2)

    return _scatter_parity_output(y_t, B, D, H, W, cout)


# ----------------------------------------------------------------------------
# Parameters (deterministic synthetic init, PyTorch-style uniform bounds)
# ----------------------------------------------------------------------------
def init_generator_params(key, input_size, output_shape, dim, num_classes, cond):
    def lin(k, fan_in, fan_out):
        k1, k2 = jax.random.split(k)
        bound = 1.0 / (fan_in ** 0.5)
        w = jax.random.uniform(k1, (fan_in, fan_out), jnp.float32, -bound, bound)
        bb = jax.random.uniform(k2, (fan_out,), jnp.float32, -bound, bound)
        return w, bb

    def deconv(k, cin, cout):
        k1, k2 = jax.random.split(k)
        bound = 1.0 / ((cin * 64) ** 0.5)
        w = jax.random.uniform(k1, (cin, cout, 4, 4, 4), jnp.float32, -bound, bound)
        bb = jax.random.uniform(k2, (cout,), jnp.float32, -bound, bound)
        return w, bb

    out_dim = 1
    for s in output_shape:
        out_dim *= s
    ks = jax.random.split(key, 8)
    return {
        "fc_1": lin(ks[0], input_size + num_classes, 2 * 2 * 2 * 4 * dim),
        "fc_labels_1": lin(ks[1], num_classes, 2 * 2 * 2 * cond),
        "deconv_1": deconv(ks[2], 4 * dim + cond, 2 * dim),
        "fc_labels_2": lin(ks[3], num_classes, 4 * 4 * 4 * cond),
        "deconv_2": deconv(ks[4], 2 * dim + cond, dim),
        "fc_labels_3": lin(ks[5], num_classes, 8 * 8 * 8 * cond),
        "deconv_3": deconv(ks[6], dim + cond, 1),
        "fc_2": lin(ks[7], 16 * 16 * 16, out_dim),
    }


def _prep_deconv(w, b):
    """Torch (Cin, Cout, 4,4,4) weight -> per-parity W^T (8, Cp, 8*Cin) bf16
    (rows: Cout padded to >=8, cols: (tap, cin)) and (Cp, 1) f32 bias."""
    cin, cout = w.shape[0], w.shape[1]
    cp = max(8, _round_up(cout, 8))
    wk = w[:, :, _KD, _KH, _KW]                          # (Cin, Cout, 8grp, 8tap)
    wk = jnp.transpose(wk, (2, 1, 3, 0)).reshape(8, cout, 8 * cin)
    if cp > cout:
        wk = jnp.pad(wk, ((0, 0), (0, cp - cout), (0, 0)))
    b2 = jnp.pad(b.astype(jnp.float32), (0, cp - cout)).reshape(cp, 1)
    return wk.astype(jnp.bfloat16), b2


def prepare_params(params, dim, cond):
    """One-time weight preprocessing (gather/transpose/pad/bf16 cast) so the
    jitted forward issues no per-call weight glue ops."""
    fcl_names = ["fc_labels_1", "fc_labels_2", "fc_labels_3"]
    fcl_ns = [8 * cond, 64 * cond, 512 * cond]
    nmax = max(fcl_ns)
    ws, bs = [], []
    for name, n in zip(fcl_names, fcl_ns):
        w, b = params[name]
        ws.append(jnp.pad(w, ((0, 0), (0, nmax - n))))
        bs.append(jnp.pad(b, (0, nmax - n)))
    prep = {
        "fc_1_w": params["fc_1"][0].astype(jnp.bfloat16)[None],
        "fc_1_b": params["fc_1"][1].astype(jnp.float32)[None, None, :],
        "fcl_w": jnp.stack(ws).astype(jnp.bfloat16),
        "fcl_b": jnp.stack(bs).astype(jnp.float32)[:, None, :],
        "fc_2_w": params["fc_2"][0].astype(jnp.bfloat16)[None],
        "fc_2_b": params["fc_2"][1].astype(jnp.float32)[None, None, :],
    }
    for i in (1, 2, 3):
        wk, b2 = _prep_deconv(*params[f"deconv_{i}"])
        prep[f"dc{i}_w"] = wk
        prep[f"dc{i}_b"] = b2
    return prep


# ----------------------------------------------------------------------------
# Generator forward (matches PyTorch Generator.forward, training-mode BN with
# freshly-initialized gamma=1 / beta=0)
# ----------------------------------------------------------------------------
@functools.partial(jax.jit, static_argnums=(3, 4, 5))
def generator_forward(prep, noise, labels, dim, cond, output_shape):
    B = noise.shape[0]
    labels_b = labels.astype(jnp.bfloat16)
    x0 = jnp.concatenate([noise.astype(jnp.bfloat16), labels_b], axis=1)

    # fc_1 -> leaky_relu -> (B, 2, 2, 2, 4*dim)
    out = fc_batched(x0, prep["fc_1_w"], prep["fc_1_b"], "lrelu")[0]
    out = out.reshape(B, 4 * dim, 2, 2, 2).transpose(0, 2, 3, 4, 1)

    # all three label projections (tanh) in ONE batched pallas_call
    labs = fc_batched(labels_b, prep["fcl_w"], prep["fcl_b"], "tanh")

    lab = labs[0, :, :8 * cond].reshape(B, cond, 2, 2, 2).transpose(0, 2, 3, 4, 1)
    out = jnp.concatenate([out, lab], axis=-1)
    out = deconv_layer(out, prep["dc1_w"], prep["dc1_b"], 2 * dim, "bn_lrelu")

    lab = labs[1, :, :64 * cond].reshape(B, cond, 4, 4, 4).transpose(0, 2, 3, 4, 1)
    out = jnp.concatenate([out, lab], axis=-1)
    out = deconv_layer(out, prep["dc2_w"], prep["dc2_b"], dim, "bn_lrelu")

    lab = labs[2, :, :512 * cond].reshape(B, cond, 8, 8, 8).transpose(0, 2, 3, 4, 1)
    out = jnp.concatenate([out, lab], axis=-1)
    out = deconv_layer(out, prep["dc3_w"], prep["dc3_b"], 1, "tanh")

    out = out.reshape(B, 16 * 16 * 16)
    out = fc_batched(out, prep["fc_2_w"], prep["fc_2_b"], "none", jnp.float32)[0]
    return out.reshape((B,) + tuple(output_shape))

# TODO(synk): Generator.train (Adam + backward) is training machinery, not part
# of the forward pass, and is intentionally not ported.  BatchNorm running
# statistics / eval mode are likewise not implemented (training-mode batch
# stats with fresh-init affine params are).


if __name__ == "__main__":
    input_size = 16
    num_classes = 4
    dimensionality = 8
    conditioning_dimensionality = 4
    output_shape = (4, 4, 4)
    B = 2

    key = jax.random.PRNGKey(0)
    kp, kn, kl = jax.random.split(key, 3)
    params = init_generator_params(kp, input_size, output_shape, dimensionality,
                                   num_classes, conditioning_dimensionality)
    prep = prepare_params(params, dimensionality, conditioning_dimensionality)
    noise = jax.random.normal(kn, (B, input_size), jnp.float32)
    label_ids = jax.random.randint(kl, (B,), 0, num_classes)
    labels = jax.nn.one_hot(label_ids, num_classes, dtype=jnp.float32)

    out = generator_forward(prep, noise, labels, dimensionality,
                            conditioning_dimensionality, output_shape)
    out = jax.block_until_ready(out)
    assert out.shape == (B,) + output_shape, out.shape
    assert bool(jnp.all(jnp.isfinite(out)))
    print("KERNEL_OK")
</pallas_src>

<mosaic_0001>
module attributes {stable_mosaic.version = 11 : i64} {
  func.func @kernel(%arg0: i32, %arg1: memref<2x4xbf16, #tpu.memory_space<vmem>>, %arg2: memref<1x4x2048xbf16, #tpu.memory_space<vmem>>, %arg3: memref<1x1x2048xf32, #tpu.memory_space<vmem>>, %arg4: memref<1x2x2048xbf16, #tpu.memory_space<vmem>>) attributes {dimension_semantics = [#tpu.dimension_semantics<parallel>], iteration_bounds = array<i64: 3>, scalar_prefetch = 0 : i64, scratch_operands = 0 : i64, tpu.core_type = #tpu.core_type<tc>, window_params = [{pipeline_mode = #tpu.pipeline_mode<synchronous>, transform_indices = @transform_0, window_bounds = array<i64: 2, 4>}, {transform_indices = @transform_1, window_bounds = array<i64: 1, 4, 2048>}, {transform_indices = @transform_2, window_bounds = array<i64: 1, 1, 2048>}, {transform_indices = @transform_3, window_bounds = array<i64: 1, 2, 2048>}]} {
    %c0 = arith.constant 0 : index
    %c0_0 = arith.constant 0 : index
    %0 = vector.load %arg1[%c0, %c0_0] : memref<2x4xbf16, #tpu.memory_space<vmem>>, vector<2x4xbf16>
    %c0_1 = arith.constant 0 : index
    %c0_2 = arith.constant 0 : index
    %c0_3 = arith.constant 0 : index
    %1 = vector.load %arg2[%c0_1, %c0_2, %c0_3] : memref<1x4x2048xbf16, #tpu.memory_space<vmem>>, vector<1x4x2048xbf16>
    %2 = vector.shape_cast %1 : vector<1x4x2048xbf16> to vector<4x2048xbf16>
    %cst = arith.constant dense<0.000000e+00> : vector<2x2048xf32>
    %3 = tpu.matmul %0, %2, %cst {dimension_numbers = #tpu.dot_dimension_numbers<[1], [0], [0], [1], [0, 0, 1, 1], [], []>} : vector<2x4xbf16>, vector<4x2048xbf16>, vector<2x2048xf32> -> vector<2x2048xf32>
    %c0_4 = arith.constant 0 : index
    %c0_5 = arith.constant 0 : index
    %c0_6 = arith.constant 0 : index
    %4 = vector.load %arg3[%c0_4, %c0_5, %c0_6] : memref<1x1x2048xf32, #tpu.memory_space<vmem>>, vector<1x1x2048xf32>
    %5 = vector.shape_cast %4 : vector<1x1x2048xf32> to vector<1x2048xf32>
    %6 = vector.broadcast %5 : vector<1x2048xf32> to vector<2x2048xf32>
    %7 = arith.addf %3, %6 : vector<2x2048xf32>
    %8 = math.tanh %7 : vector<2x2048xf32>
    %9 = arith.truncf %8 : vector<2x2048xf32> to vector<2x2048xbf16>
    %c0_7 = arith.constant 0 : index
    %c0_8 = arith.constant 0 : index
    %c0_9 = arith.constant 0 : index
    %10 = vector.load %arg4[%c0_7, %c0_8, %c0_9] : memref<1x2x2048xbf16, #tpu.memory_space<vmem>>, vector<1x2x2048xbf16>
    %11 = vector.shape_cast %10 : vector<1x2x2048xbf16> to vector<2x2048xbf16>
    %12 = vector.shape_cast %9 : vector<2x2048xbf16> to vector<1x2x2048xbf16>
    tpu.vector_store %arg4[%c0_7, %c0_8, %c0_9], %12 {strides = array<i32>} : memref<1x2x2048xbf16, #tpu.memory_space<vmem>>, vector<1x2x2048xbf16>,
    return
  }
  func.func @transform_0(%arg0: i32) -> (i32, i32) {
    %c0_i32 = arith.constant 0 : i32
    %c0_i32_0 = arith.constant 0 : i32
    %c0_i32_1 = arith.constant 0 : i32
    return %c0_i32, %c0_i32_0 : i32, i32
  }
  func.func @transform_1(%arg0: i32) -> (i32, i32, i32) {
    %c0_i32 = arith.constant 0 : i32
    %c0_i32_0 = arith.constant 0 : i32
    %c0_i32_1 = arith.constant 0 : i32
    return %arg0, %c0_i32, %c0_i32_0 : i32, i32, i32
  }
  func.func @transform_2(%arg0: i32) -> (i32, i32, i32) {
    %c0_i32 = arith.constant 0 : i32
    %c0_i32_0 = arith.constant 0 : i32
    %c0_i32_1 = arith.constant 0 : i32
    return %arg0, %c0_i32, %c0_i32_0 : i32, i32, i32
  }
  func.func @transform_3(%arg0: i32) -> (i32, i32, i32) {
    %c0_i32 = arith.constant 0 : i32
    %c0_i32_0 = arith.constant 0 : i32
    %c0_i32_1 = arith.constant 0 : i32
    return %arg0, %c0_i32, %c0_i32_0 : i32, i32, i32
  }
}

module attributes {stable_mosaic.version = 11 : i64} {
  func.func @kernel(%arg0: i32, %arg1: memref<2x20xbf16, #tpu.memory_space<vmem>>, %arg2: memref<1x20x256xbf16, #tpu.memory_space<vmem>>, %arg3: memref<1x1x256xf32, #tpu.memory_space<vmem>>, %arg4: memref<1x2x256xbf16, #tpu.memory_space<vmem>>) attributes {dimension_semantics = [#tpu.dimension_semantics<parallel>], iteration_bounds = array<i64: 1>, scalar_prefetch = 0 : i64, scratch_operands = 0 : i64, tpu.core_type = #tpu.core_type<tc>, window_params = [{pipeline_mode = #tpu.pipeline_mode<synchronous>, transform_indices = @transform_0, window_bounds = array<i64: 2, 20>}, {transform_indices = @transform_1, window_bounds = array<i64: 1, 20, 256>}, {transform_indices = @transform_2, window_bounds = array<i64: 1, 1, 256>}, {transform_indices = @transform_3, window_bounds = array<i64: 1, 2, 256>}]} {
    %c0 = arith.constant 0 : index
    %c0_0 = arith.constant 0 : index
    %0 = vector.load %arg1[%c0, %c0_0] : memref<2x20xbf16, #tpu.memory_space<vmem>>, vector<2x20xbf16>
    %c0_1 = arith.constant 0 : index
    %c0_2 = arith.constant 0 : index
    %c0_3 = arith.constant 0 : index
    %1 = vector.load %arg2[%c0_1, %c0_2, %c0_3] : memref<1x20x256xbf16, #tpu.memory_space<vmem>>, vector<1x20x256xbf16>
    %2 = vector.shape_cast %1 : vector<1x20x256xbf16> to vector<20x256xbf16>
    %cst = arith.constant dense<0.000000e+00> : vector<2x256xf32>
    %3 = tpu.matmul %0, %2, %cst {dimension_numbers = #tpu.dot_dimension_numbers<[1], [0], [0], [1], [0, 0, 1, 1], [], []>} : vector<2x20xbf16>, vector<20x256xbf16>, vector<2x256xf32> -> vector<2x256xf32>
    %c0_4 = arith.constant 0 : index
    %c0_5 = arith.constant 0 : index
    %c0_6 = arith.constant 0 : index
    %4 = vector.load %arg3[%c0_4, %c0_5, %c0_6] : memref<1x1x256xf32, #tpu.memory_space<vmem>>, vector<1x1x256xf32>
    %5 = vector.shape_cast %4 : vector<1x1x256xf32> to vector<1x256xf32>
    %6 = vector.broadcast %5 : vector<1x256xf32> to vector<2x256xf32>
    %7 = arith.addf %3, %6 : vector<2x256xf32>
    %cst_7 = arith.constant 0.000000e+00 : f32
    %8 = vector.broadcast %cst_7 : f32 to vector<2x256xf32>
    %9 = arith.cmpf oge, %7, %8 : vector<2x256xf32>
    %cst_8 = arith.constant 0.00999999977 : f32
    %10 = vector.broadcast %cst_8 : f32 to vector<2x256xf32>
    %11 = arith.mulf %10, %7 : vector<2x256xf32>
    %12 = arith.select %9, %7, %11 : vector<2x256xi1>, vector<2x256xf32>
    %13 = arith.truncf %12 : vector<2x256xf32> to vector<2x256xbf16>
    %c0_9 = arith.constant 0 : index
    %c0_10 = arith.constant 0 : index
    %c0_11 = arith.constant 0 : index
    %14 = vector.load %arg4[%c0_9, %c0_10, %c0_11] : memref<1x2x256xbf16, #tpu.memory_space<vmem>>, vector<1x2x256xbf16>
    %15 = vector.shape_cast %14 : vector<1x2x256xbf16> to vector<2x256xbf16>
    %16 = vector.shape_cast %13 : vector<2x256xbf16> to vector<1x2x256xbf16>
    tpu.vector_store %arg4[%c0_9, %c0_10, %c0_11], %16 {strides = array<i32>} : memref<1x2x256xbf16, #tpu.memory_space<vmem>>, vector<1x2x256xbf16>,
    return
  }
  func.func @transform_0(%arg0: i32) -> (i32, i32) {
    %c0_i32 = arith.constant 0 : i32
    %c0_i32_0 = arith.constant 0 : i32
    %c0_i32_1 = arith.constant 0 : i32
    return %c0_i32, %c0_i32_0 : i32, i32
  }
  func.func @transform_1(%arg0: i32) -> (i32, i32, i32) {
    %c0_i32 = arith.constant 0 : i32
    %c0_i32_0 = arith.constant 0 : i32
    %c0_i32_1 = arith.constant 0 : i32
    return %arg0, %c0_i32, %c0_i32_0 : i32, i32, i32
  }
  func.func @transform_2(%arg0: i32) -> (i32, i32, i32) {
    %c0_i32 = arith.constant 0 : i32
    %c0_i32_0 = arith.constant 0 : i32
    %c0_i32_1 = arith.constant 0 : i32
    return %arg0, %c0_i32, %c0_i32_0 : i32, i32, i32
  }
  func.func @transform_3(%arg0: i32) -> (i32, i32, i32) {
    %c0_i32 = arith.constant 0 : i32
    %c0_i32_0 = arith.constant 0 : i32
    %c0_i32_1 = arith.constant 0 : i32
    return %arg0, %c0_i32, %c0_i32_0 : i32, i32, i32
  }
}

module attributes {stable_mosaic.version = 11 : i64} {
  func.func @kernel(%arg0: i32, %arg1: memref<8x288x128xbf16, #tpu.memory_space<vmem>>, %arg2: memref<8x16x288xbf16, #tpu.memory_space<vmem>>, %arg3: memref<16x1xf32, #tpu.memory_space<vmem>>, %arg4: memref<8x16x128xbf16, #tpu.memory_space<vmem>>, %arg5: memref<8x16x128xf32, #tpu.memory_space<vmem>>) attributes {dimension_semantics = [#tpu.dimension_semantics<arbitrary>], iteration_bounds = array<i64: 1>, scalar_prefetch = 0 : i64, scratch_operands = 1 : i64, tpu.core_type = #tpu.core_type<tc>, window_params = [{pipeline_mode = #tpu.pipeline_mode<synchronous>, transform_indices = @transform_0, window_bounds = array<i64: 8, 288, 128>}, {pipeline_mode = #tpu.pipeline_mode<synchronous>, transform_indices = @transform_1, window_bounds = array<i64: 8, 16, 288>}, {pipeline_mode = #tpu.pipeline_mode<synchronous>, transform_indices = @transform_2, window_bounds = array<i64: 16, 1>}, {pipeline_mode = #tpu.pipeline_mode<synchronous>, transform_indices = @transform_3, window_bounds = array<i64: 8, 16, 128>}]} {
    %0 = tpu.iota {dimensions = array<i32: 1>} : vector<16x128xi32>
    %c16_i32 = arith.constant 16 : i32
    %1 = vector.broadcast %c16_i32 : i32 to vector<16x128xi32>
    %2 = arith.cmpi slt, %0, %1 : vector<16x128xi32>
    %3 = arith.extui %2 : vector<16x128xi1> to vector<16x128xi32>
    %4 = arith.sitofp %3 : vector<16x128xi32> to vector<16x128xf32>
    %cst = arith.constant 0.000000e+00 : f32
    %5 = vector.broadcast %cst : f32 to vector<16x1xf32>
    %cst_0 = arith.constant 0.000000e+00 : f32
    %6 = vector.broadcast %cst_0 : f32 to vector<16x1xf32>
    %c0 = arith.constant 0 : index
    %c0_1 = arith.constant 0 : index
    %c0_2 = arith.constant 0 : index
    %7 = vector.load %arg2[%c0, %c0_1, %c0_2] : memref<8x16x288xbf16, #tpu.memory_space<vmem>>, vector<1x16x288xbf16>
    %8 = vector.shape_cast %7 : vector<1x16x288xbf16> to vector<16x288xbf16>
    %c0_3 = arith.constant 0 : index
    %c0_4 = arith.constant 0 : index
    %c0_5 = arith.constant 0 : index
    %9 = vector.load %arg1[%c0_3, %c0_4, %c0_5] : memref<8x288x128xbf16, #tpu.memory_space<vmem>>, vector<1x288x128xbf16>
    %10 = vector.shape_cast %9 : vector<1x288x128xbf16> to vector<288x128xbf16>
    %cst_6 = arith.constant dense<0.000000e+00> : vector<16x128xf32>
    %11 = tpu.matmul %8, %10, %cst_6 {dimension_numbers = #tpu.dot_dimension_numbers<[1], [0], [0], [1], [0, 0, 1, 1], [], []>} : vector<16x288xbf16>, vector<288x128xbf16>, vector<16x128xf32> -> vector<16x128xf32>
    %c0_7 = arith.constant 0 : index
    %c0_8 = arith.constant 0 : index
    %12 = vector.load %arg3[%c0_7, %c0_8] : memref<16x1xf32, #tpu.memory_space<vmem>>, vector<16x1xf32>
    %13 = vector.broadcast %12 : vector<16x1xf32> to vector<16x128xf32>
    %14 = arith.addf %11, %13 : vector<16x128xf32>
    %c0_9 = arith.constant 0 : index
    %c0_10 = arith.constant 0 : index
    %c0_11 = arith.constant 0 : index
    %15 = vector.load %arg5[%c0_9, %c0_10, %c0_11] : memref<8x16x128xf32, #tpu.memory_space<vmem>>, vector<1x16x128xf32>
    %16 = vector.shape_cast %15 : vector<1x16x128xf32> to vector<16x128xf32>
    %17 = vector.shape_cast %14 : vector<16x128xf32> to vector<1x16x128xf32>
    tpu.vector_store %arg5[%c0_9, %c0_10, %c0_11], %17 {strides = array<i32>} : memref<8x16x128xf32, #tpu.memory_space<vmem>>, vector<1x16x128xf32>,
    %18 = arith.mulf %14, %4 : vector<16x128xf32>
    %cst_12 = arith.constant dense<0.000000e+00> : vector<16xf32>
    %19 = vector.multi_reduction <add>, %18, %cst_12 [1] : vector<16x128xf32> to vector<16xf32>
    %20 = vector.shape_cast %19 : vector<16xf32> to vector<16x1xf32>
    %21 = arith.addf %5, %20 : vector<16x1xf32>
    %22 = arith.mulf %18, %14 : vector<16x128xf32>
    %cst_13 = arith.constant dense<0.000000e+00> : vector<16xf32>
    %23 = vector.multi_reduction <add>, %22, %cst_13 [1] : vector<16x128xf32> to vector<16xf32>
    %24 = vector.shape_cast %23 : vector<16xf32> to vector<16x1xf32>
    %25 = arith.addf %6, %24 : vector<16x1xf32>
    %c1 = arith.constant 1 : index
    %c0_14 = arith.constant 0 : index
    %c0_15 = arith.constant 0 : index
    %26 = vector.load %arg2[%c1, %c0_14, %c0_15] : memref<8x16x288xbf16, #tpu.memory_space<vmem>>, vector<1x16x288xbf16>
    %27 = vector.shape_cast %26 : vector<1x16x288xbf16> to vector<16x288xbf16>
    %c1_16 = arith.constant 1 : index
    %c0_17 = arith.constant 0 : index
    %c0_18 = arith.constant 0 : index
    %28 = vector.load %arg1[%c1_16, %c0_17, %c0_18] : memref<8x288x128xbf16, #tpu.memory_space<vmem>>, vector<1x288x128xbf16>
    %29 = vector.shape_cast %28 : vector<1x288x128xbf16> to vector<288x128xbf16>
    %cst_19 = arith.constant dense<0.000000e+00> : vector<16x128xf32>
    %30 = tpu.matmul %27, %29, %cst_19 {dimension_numbers = #tpu.dot_dimension_numbers<[1], [0], [0], [1], [0, 0, 1, 1], [], []>} : vector<16x288xbf16>, vector<288x128xbf16>, vector<16x128xf32> -> vector<16x128xf32>
    %c0_20 = arith.constant 0 : index
    %c0_21 = arith.constant 0 : index
    %31 = vector.load %arg3[%c0_20, %c0_21] : memref<16x1xf32, #tpu.memory_space<vmem>>, vector<16x1xf32>
    %32 = vector.broadcast %31 : vector<16x1xf32> to vector<16x128xf32>
    %33 = arith.addf %30, %32 : vector<16x128xf32>
    %c1_22 = arith.constant 1 : index
    %c0_23 = arith.constant 0 : index
    %c0_24 = arith.constant 0 : index
    %34 = vector.load %arg5[%c1_22, %c0_23, %c0_24] : memref<8x16x128xf32, #tpu.memory_space<vmem>>, vector<1x16x128xf32>
    %35 = vector.shape_cast %34 : vector<1x16x128xf32> to vector<16x128xf32>
    %36 = vector.shape_cast %33 : vector<16x128xf32> to vector<1x16x128xf32>
    tpu.vector_store %arg5[%c1_22, %c0_23, %c0_24], %36 {strides = array<i32>} : memref<8x16x128xf32, #tpu.memory_space<vmem>>, vector<1x16x128xf32>,
    %37 = arith.mulf %33, %4 : vector<16x128xf32>
    %cst_25 = arith.constant dense<0.000000e+00> : vector<16xf32>
    %38 = vector.multi_reduction <add>, %37, %cst_25 [1] : vector<16x128xf32> to vector<16xf32>
    %39 = vector.shape_cast %38 : vector<16xf32> to vector<16x1xf32>
    %40 = arith.addf %21, %39 : vector<16x1xf32>
    %41 = arith.mulf %37, %33 : vector<16x128xf32>
    %cst_26 = arith.constant dense<0.000000e+00> : vector<16xf32>
    %42 = vector.multi_reduction <add>, %41, %cst_26 [1] : vector<16x128xf32> to vector<16xf32>
    %43 = vector.shape_cast %42 : vector<16xf32> to vector<16x1xf32>
    %44 = arith.addf %25, %43 : vector<16x1xf32>
    %c2 = arith.constant 2 : index
    %c0_27 = arith.constant 0 : index
    %c0_28 = arith.constant 0 : index
    %45 = vector.load %arg2[%c2, %c0_27, %c0_28] : memref<8x16x288xbf16, #tpu.memory_space<vmem>>, vector<1x16x288xbf16>
    %46 = vector.shape_cast %45 : vector<1x16x288xbf16> to vector<16x288xbf16>
    %c2_29 = arith.constant 2 : index
    %c0_30 = arith.constant 0 : index
    %c0_31 = arith.constant 0 : index
    %47 = vector.load %arg1[%c2_29, %c0_30, %c0_31] : memref<8x288x128xbf16, #tpu.memory_space<vmem>>, vector<1x288x128xbf16>
    %48 = vector.shape_cast %47 : vector<1x288x128xbf16> to vector<288x128xbf16>
    %cst_32 = arith.constant dense<0.000000e+00> : vector<16x128xf32>
    %49 = tpu.matmul %46, %48, %cst_32 {dimension_numbers = #tpu.dot_dimension_numbers<[1], [0], [0], [1], [0, 0, 1, 1], [], []>} : vector<16x288xbf16>, vector<288x128xbf16>, vector<16x128xf32> -> vector<16x128xf32>
    %c0_33 = arith.constant 0 : index
    %c0_34 = arith.constant 0 : index
    %50 = vector.load %arg3[%c0_33, %c0_34] : memref<16x1xf32, #tpu.memory_space<vmem>>, vector<16x1xf32>
    %51 = vector.broadcast %50 : vector<16x1xf32> to vector<16x128xf32>
    %52 = arith.addf %49, %51 : vector<16x128xf32>
    %c2_35 = arith.constant 2 : index
    %c0_36 = arith.constant 0 : index
    %c0_37 = arith.constant 0 : index
    %53 = vector.load %arg5[%c2_35, %c0_36, %c0_37] : memref<8x16x128xf32, #tpu.memory_space<vmem>>, vector<1x16x128xf32>
    %54 = vector.shape_cast %53 : vector<1x16x128xf32> to vector<16x128xf32>
    %55 = vector.shape_cast %52 : vector<16x128xf32> to vector<1x16x128xf32>
    tpu.vector_store %arg5[%c2_35, %c0_36, %c0_37], %55 {strides = array<i32>} : memref<8x16x128xf32, #tpu.memory_space<vmem>>, vector<1x16x128xf32>,
    %56 = arith.mulf %52, %4 : vector<16x128xf32>
    %cst_38 = arith.constant dense<0.000000e+00> : vector<16xf32>
    %57 = vector.multi_reduction <add>, %56, %cst_38 [1] : vector<16x128xf32> to vector<16xf32>
    %58 = vector.shape_cast %57 : vector<16xf32> to vector<16x1xf32>
    %59 = arith.addf %40, %58 : vector<16x1xf32>
    %60 = arith.mulf %56, %52 : vector<16x128xf32>
    %cst_39 = arith.constant dense<0.000000e+00> : vector<16xf32>
    %61 = vector.multi_reduction <add>, %60, %cst_39 [1] : vector<16x128xf32> to vector<16xf32>
    %62 = vector.shape_cast %61 : vector<16xf32> to vector<16x1xf32>
    %63 = arith.addf %44, %62 : vector<16x1xf32>
    %c3 = arith.constant 3 : index
    %c0_40 = arith.constant 0 : index
    %c0_41 = arith.constant 0 : index
    %64 = vector.load %arg2[%c3, %c0_40, %c0_41] : memref<8x16x288xbf16, #tpu.memory_space<vmem>>, vector<1x16x288xbf16>
    %65 = vector.shape_cast %64 : vector<1x16x288xbf16> to vector<16x288xbf16>
    %c3_42 = arith.constant 3 : index
    %c0_43 = arith.constant 0 : index
    %c0_44 = arith.constant 0 : index
    %66 = vector.load %arg1[%c3_42, %c0_43, %c0_44] : memref<8x288x128xbf16, #tpu.memory_space<vmem>>, vector<1x288x128xbf16>
    %67 = vector.shape_cast %66 : vector<1x288x128xbf16> to vector<288x128xbf16>
    %cst_45 = arith.constant dense<0.000000e+00> : vector<16x128xf32>
    %68 = tpu.matmul %65, %67, %cst_45 {dimension_numbers = #tpu.dot_dimension_numbers<[1], [0], [0], [1], [0, 0, 1, 1], [], []>} : vector<16x288xbf16>, vector<288x128xbf16>, vector<16x128xf32> -> vector<16x128xf32>
    %c0_46 = arith.constant 0 : index
    %c0_47 = arith.constant 0 : index
    %69 = vector.load %arg3[%c0_46, %c0_47] : memref<16x1xf32, #tpu.memory_space<vmem>>, vector<16x1xf32>
    %70 = vector.broadcast %69 : vector<16x1xf32> to vector<16x128xf32>
    %71 = arith.addf %68, %70 : vector<16x128xf32>
    %c3_48 = arith.constant 3 : index
    %c0_49 = arith.constant 0 : index
    %c0_50 = arith.constant 0 : index
    %72 = vector.load %arg5[%c3_48, %c0_49, %c0_50] : memref<8x16x128xf32, #tpu.memory_space<vmem>>, vector<1x16x128xf32>
    %73 = vector.shape_cast %72 : vector<1x16x128xf32> to vector<16x128xf32>
    %74 = vector.shape_cast %71 : vector<16x128xf32> to vector<1x16x128xf32>
    tpu.vector_store %arg5[%c3_48, %c0_49, %c0_50], %74 {strides = array<i32>} : memref<8x16x128xf32, #tpu.memory_space<vmem>>, vector<1x16x128xf32>,
    %75 = arith.mulf %71, %4 : vector<16x128xf32>
    %cst_51 = arith.constant dense<0.000000e+00> : vector<16xf32>
    %76 = vector.multi_reduction <add>, %75, %cst_51 [1] : vector<16x128xf32> to vector<16xf32>
    %77 = vector.shape_cast %76 : vector<16xf32> to vector<16x1xf32>
    %78 = arith.addf %59, %77 : vector<16x1xf32>
    %79 = arith.mulf %75, %71 : vector<16x128xf32>
    %cst_52 = arith.constant dense<0.000000e+00> : vector<16xf32>
    %80 = vector.multi_reduction <add>, %79, %cst_52 [1] : vector<16x128xf32> to vector<16xf32>
    %81 = vector.shape_cast %80 : vector<16xf32> to vector<16x1xf32>
    %82 = arith.addf %63, %81 : vector<16x1xf32>
    %c4 = arith.constant 4 : index
    %c0_53 = arith.constant 0 : index
    %c0_54 = arith.constant 0 : index
    %83 = vector.load %arg2[%c4, %c0_53, %c0_54] : memref<8x16x288xbf16, #tpu.memory_space<vmem>>, vector<1x16x288xbf16>
    %84 = vector.shape_cast %83 : vector<1x16x288xbf16> to vector<16x288xbf16>
    %c4_55 = arith.constant 4 : index
    %c0_56 = arith.constant 0 : index
    %c0_57 = arith.constant 0 : index
    %85 = vector.load %arg1[%c4_55, %c0_56, %c0_57] : memref<8x288x128xbf16, #tpu.memory_space<vmem>>, vector<1x288x128xbf16>
    %86 = vector.shape_cast %85 : vector<1x288x128xbf16> to vector<288x128xbf16>
    %cst_58 = arith.constant dense<0.000000e+00> : vector<16x128xf32>
    %87 = tpu.matmul %84, %86, %cst_58 {dimension_numbers = #tpu.dot_dimension_numbers<[1], [0], [0], [1], [0, 0, 1, 1], [], []>} : vector<16x288xbf16>, vector<288x128xbf16>, vector<16x128xf32> -> vector<16x128xf32>
    %c0_59 = arith.constant 0 : index
    %c0_60 = arith.constant 0 : index
    %88 = vector.load %arg3[%c0_59, %c0_60] : memref<16x1xf32, #tpu.memory_space<vmem>>, vector<16x1xf32>
    %89 = vector.broadcast %88 : vector<16x1xf32> to vector<16x128xf32>
    %90 = arith.addf %87, %89 : vector<16x128xf32>
    %c4_61 = arith.constant 4 : index
    %c0_62 = arith.constant 0 : index
    %c0_63 = arith.constant 0 : index
    %91 = vector.load %arg5[%c4_61, %c0_62, %c0_63] : memref<8x16x128xf32, #tpu.memory_space<vmem>>, vector<1x16x128xf32>
    %92 = vector.shape_cast %91 : vector<1x16x128xf32> to vector<16x128xf32>
    %93 = vector.shape_cast %90 : vector<16x128xf32> to vector<1x16x128xf32>
    tpu.vector_store %arg5[%c4_61, %c0_62, %c0_63], %93 {strides = array<i32>} : memref<8x16x128xf32, #tpu.memory_space<vmem>>, vector<1x16x128xf32>,
    %94 = arith.mulf %90, %4 : vector<16x128xf32>
    %cst_64 = arith.constant dense<0.000000e+00> : vector<16xf32>
    %95 = vector.multi_reduction <add>, %94, %cst_64 [1] : vector<16x128xf32> to vector<16xf32>
    %96 = vector.shape_cast %95 : vector<16xf32> to vector<16x1xf32>
    %97 = arith.addf %78, %96 : vector<16x1xf32>
    %98 = arith.mulf %94, %90 : vector<16x128xf32>
    %cst_65 = arith.constant dense<0.000000e+00> : vector<16xf32>
    %99 = vector.multi_reduction <add>, %98, %cst_65 [1] : vector<16x128xf32> to vector<16xf32>
    %100 = vector.shape_cast %99 : vector<16xf32> to vector<16x1xf32>
    %101 = arith.addf %82, %100 : vector<16x1xf32>
    %c5 = arith.constant 5 : index
    %c0_66 = arith.constant 0 : index
    %c0_67 = arith.constant 0 : index
    %102 = vector.load %arg2[%c5, %c0_66, %c0_67] : memref<8x16x288xbf16, #tpu.memory_space<vmem>>, vector<1x16x288xbf16>
    %103 = vector.shape_cast %102 : vector<1x16x288xbf16> to vector<16x288xbf16>
    %c5_68 = arith.constant 5 : index
    %c0_69 = arith.constant 0 : index
    %c0_70 = arith.constant 0 : index
    %104 = vector.load %arg1[%c5_68, %c0_69, %c0_70] : memref<8x288x128xbf16, #tpu.memory_space<vmem>>, vector<1x288x128xbf16>
    %105 = vector.shape_cast %104 : vector<1x288x128xbf16> to vector<288x128xbf16>
    %cst_71 = arith.constant dense<0.000000e+00> : vector<16x128xf32>
    %106 = tpu.matmul %103, %105, %cst_71 {dimension_numbers = #tpu.dot_dimension_numbers<[1], [0], [0], [1], [0, 0, 1, 1], [], []>} : vector<16x288xbf16>, vector<288x128xbf16>, vector<16x128xf32> -> vector<16x128xf32>
    %c0_72 = arith.constant 0 : index
    %c0_73 = arith.constant 0 : index
    %107 = vector.load %arg3[%c0_72, %c0_73] : memref<16x1xf32, #tpu.memory_space<vmem>>, vector<16x1xf32>
    %108 = vector.broadcast %107 : vector<16x1xf32> to vector<16x128xf32>
    %109 = arith.addf %106, %108 : vector<16x128xf32>
    %c5_74 = arith.constant 5 : index
    %c0_75 = arith.constant 0 : index
    %c0_76 = arith.constant 0 : index
    %110 = vector.load %arg5[%c5_74, %c0_75, %c0_76] : memref<8x16x128xf32, #tpu.memory_space<vmem>>, vector<1x16x128xf32>
    %111 = vector.shape_cast %110 : vector<1x16x128xf32> to vector<16x128xf32>
    %112 = vector.shape_cast %109 : vector<16x128xf32> to vector<1x16x128xf32>
    tpu.vector_store %arg5[%c5_74, %c0_75, %c0_76], %112 {strides = array<i32>} : memref<8x16x128xf32, #tpu.memory_space<vmem>>, vector<1x16x128xf32>,
    %113 = arith.mulf %109, %4 : vector<16x128xf32>
    %cst_77 = arith.constant dense<0.000000e+00> : vector<16xf32>
    %114 = vector.multi_reduction <add>, %113, %cst_77 [1] : vector<16x128xf32> to vector<16xf32>
    %115 = vector.shape_cast %114 : vector<16xf32> to vector<16x1xf32>
    %116 = arith.addf %97, %115 : vector<16x1xf32>
    %117 = arith.mulf %113, %109 : vector<16x128xf32>
    %cst_78 = arith.constant dense<0.000000e+00> : vector<16xf32>
    %118 = vector.multi_reduction <add>, %117, %cst_78 [1] : vector<16x128xf32> to vector<16xf32>
    %119 = vector.shape_cast %118 : vector<16xf32> to vector<16x1xf32>
    %120 = arith.addf %101, %119 : vector<16x1xf32>
    %c6 = arith.constant 6 : index
    %c0_79 = arith.constant 0 : index
    %c0_80 = arith.constant 0 : index
    %121 = vector.load %arg2[%c6, %c0_79, %c0_80] : memref<8x16x288xbf16, #tpu.memory_space<vmem>>, vector<1x16x288xbf16>
    %122 = vector.shape_cast %121 : vector<1x16x288xbf16> to vector<16x288xbf16>
    %c6_81 = arith.constant 6 : index
    %c0_82 = arith.constant 0 : index
    %c0_83 = arith.constant 0 : index
    %123 = vector.load %arg1[%c6_81, %c0_82, %c0_83] : memref<8x288x128xbf16, #tpu.memory_space<vmem>>, vector<1x288x128xbf16>
    %124 = vector.shape_cast %123 : vector<1x288x128xbf16> to vector<288x128xbf16>
    %cst_84 = arith.constant dense<0.000000e+00> : vector<16x128xf32>
    %125 = tpu.matmul %122, %124, %cst_84 {dimension_numbers = #tpu.dot_dimension_numbers<[1], [0], [0], [1], [0, 0, 1, 1], [], []>} : vector<16x288xbf16>, vector<288x128xbf16>, vector<16x128xf32> -> vector<16x128xf32>
    %c0_85 = arith.constant 0 : index
    %c0_86 = arith.constant 0 : index
    %126 = vector.load %arg3[%c0_85, %c0_86] : memref<16x1xf32, #tpu.memory_space<vmem>>, vector<16x1xf32>
    %127 = vector.broadcast %126 : vector<16x1xf32> to vector<16x128xf32>
    %128 = arith.addf %125, %127 : vector<16x128xf32>
    %c6_87 = arith.constant 6 : index
    %c0_88 = arith.constant 0 : index
    %c0_89 = arith.constant 0 : index
    %129 = vector.load %arg5[%c6_87, %c0_88, %c0_89] : memref<8x16x128xf32, #tpu.memory_space<vmem>>, vector<1x16x128xf32>
    %130 = vector.shape_cast %129 : vector<1x16x128xf32> to vector<16x128xf32>
    %131 = vector.shape_cast %128 : vector<16x128xf32> to vector<1x16x128xf32>
    tpu.vector_store %arg5[%c6_87, %c0_88, %c0_89], %131 {strides = array<i32>} : memref<8x16x128xf32, #tpu.memory_space<vmem>>, vector<1x16x128xf32>,
    %132 = arith.mulf %128, %4 : vector<16x128xf32>
    %cst_90 = arith.constant dense<0.000000e+00> : vector<16xf32>
    %133 = vector.multi_reduction <add>, %132, %cst_90 [1] : vector<16x128xf32> to vector<16xf32>
    %134 = vector.shape_cast %133 : vector<16xf32> to vector<16x1xf32>
    %135 = arith.addf %116, %134 : vector<16x1xf32>
    %136 = arith.mulf %132, %128 : vector<16x128xf32>
    %cst_91 = arith.constant dense<0.000000e+00> : vector<16xf32>
    %137 = vector.multi_reduction <add>, %136, %cst_91 [1] : vector<16x128xf32> to vector<16xf32>
    %138 = vector.shape_cast %137 : vector<16xf32> to vector<16x1xf32>
    %139 = arith.addf %120, %138 : vector<16x1xf32>
    %c7 = arith.constant 7 : index
    %c0_92 = arith.constant 0 : index
    %c0_93 = arith.constant 0 : index
    %140 = vector.load %arg2[%c7, %c0_92, %c0_93] : memref<8x16x288xbf16, #tpu.memory_space<vmem>>, vector<1x16x288xbf16>
    %141 = vector.shape_cast %140 : vector<1x16x288xbf16> to vector<16x288xbf16>
    %c7_94 = arith.constant 7 : index
    %c0_95 = arith.constant 0 : index
    %c0_96 = arith.constant 0 : index
    %142 = vector.load %arg1[%c7_94, %c0_95, %c0_96] : memref<8x288x128xbf16, #tpu.memory_space<vmem>>, vector<1x288x128xbf16>
    %143 = vector.shape_cast %142 : vector<1x288x128xbf16> to vector<288x128xbf16>
    %cst_97 = arith.constant dense<0.000000e+00> : vector<16x128xf32>
    %144 = tpu.matmul %141, %143, %cst_97 {dimension_numbers = #tpu.dot_dimension_numbers<[1], [0], [0], [1], [0, 0, 1, 1], [], []>} : vector<16x288xbf16>, vector<288x128xbf16>, vector<16x128xf32> -> vector<16x128xf32>
    %c0_98 = arith.constant 0 : index
    %c0_99 = arith.constant 0 : index
    %145 = vector.load %arg3[%c0_98, %c0_99] : memref<16x1xf32, #tpu.memory_space<vmem>>, vector<16x1xf32>
    %146 = vector.broadcast %145 : vector<16x1xf32> to vector<16x128xf32>
    %147 = arith.addf %144, %146 : vector<16x128xf32>
    %c7_100 = arith.constant 7 : index
    %c0_101 = arith.constant 0 : index
    %c0_102 = arith.constant 0 : index
    %148 = vector.load %arg5[%c7_100, %c0_101, %c0_102] : memref<8x16x128xf32, #tpu.memory_space<vmem>>, vector<1x16x128xf32>
    %149 = vector.shape_cast %148 : vector<1x16x128xf32> to vector<16x128xf32>
    %150 = vector.shape_cast %147 : vector<16x128xf32> to vector<1x16x128xf32>
    tpu.vector_store %arg5[%c7_100, %c0_101, %c0_102], %150 {strides = array<i32>} : memref<8x16x128xf32, #tpu.memory_space<vmem>>, vector<1x16x128xf32>,
    %151 = arith.mulf %147, %4 : vector<16x128xf32>
    %cst_103 = arith.constant dense<0.000000e+00> : vector<16xf32>
    %152 = vector.multi_reduction <add>, %151, %cst_103 [1] : vector<16x128xf32> to vector<16xf32>
    %153 = vector.shape_cast %152 : vector<16xf32> to vector<16x1xf32>
    %154 = arith.addf %135, %153 : vector<16x1xf32>
    %155 = arith.mulf %151, %147 : vector<16x128xf32>
    %cst_104 = arith.constant dense<0.000000e+00> : vector<16xf32>
    %156 = vector.multi_reduction <add>, %155, %cst_104 [1] : vector<16x128xf32> to vector<16xf32>
    %157 = vector.shape_cast %156 : vector<16xf32> to vector<16x1xf32>
    %158 = arith.addf %139, %157 : vector<16x1xf32>
    %cst_105 = arith.constant 7.812500e-03 : f32
    %159 = vector.broadcast %cst_105 : f32 to vector<16x1xf32>
    %160 = arith.mulf %154, %159 : vector<16x1xf32>
    %cst_106 = arith.constant 7.812500e-03 : f32
    %161 = vector.broadcast %cst_106 : f32 to vector<16x1xf32>
    %162 = arith.mulf %158, %161 : vector<16x1xf32>
    %163 = arith.mulf %160, %160 : vector<16x1xf32>
    %164 = arith.subf %162, %163 : vector<16x1xf32>
    %cst_107 = arith.constant 0.000000e+00 : f32
    %165 = vector.broadcast %cst_107 : f32 to vector<16x1xf32>
    %166 = arith.maximumf %164, %165 : vector<16x1xf32>
    %cst_108 = arith.constant 9.99999974E-6 : f32
    %167 = vector.broadcast %cst_108 : f32 to vector<16x1xf32>
    %168 = arith.addf %166, %167 : vector<16x1xf32>
    %169 = math.rsqrt %168 : vector<16x1xf32>
    %cst_109 = arith.constant 0.000000e+00 : f32
    %170 = vector.broadcast %cst_109 : f32 to vector<16x1xf32>
    %171 = arith.subf %170, %160 : vector<16x1xf32>
    %172 = arith.mulf %171, %169 : vector<16x1xf32>
    %c0_110 = arith.constant 0 : index
    %c0_111 = arith.constant 0 : index
    %c0_112 = arith.constant 0 : index
    %173 = vector.load %arg5[%c0_110, %c0_111, %c0_112] : memref<8x16x128xf32, #tpu.memory_space<vmem>>, vector<1x16x128xf32>
    %174 = vector.shape_cast %173 : vector<1x16x128xf32> to vector<16x128xf32>
    %175 = vector.broadcast %169 : vector<16x1xf32> to vector<16x128xf32>
    %176 = arith.mulf %174, %175 : vector<16x128xf32>
    %177 = vector.broadcast %172 : vector<16x1xf32> to vector<16x128xf32>
    %178 = arith.addf %176, %177 : vector<16x128xf32>
    %cst_113 = arith.constant 0.000000e+00 : f32
    %179 = vector.broadcast %cst_113 : f32 to vector<16x128xf32>
    %180 = arith.cmpf oge, %178, %179 : vector<16x128xf32>
    %cst_114 = arith.constant 0.00999999977 : f32
    %181 = vector.broadcast %cst_114 : f32 to vector<16x128xf32>
    %182 = arith.mulf %181, %178 : vector<16x128xf32>
    %183 = arith.select %180, %178, %182 : vector<16x128xi1>, vector<16x128xf32>
    %184 = arith.truncf %183 : vector<16x128xf32> to vector<16x128xbf16>
    %c0_115 = arith.constant 0 : index
    %c0_116 = arith.constant 0 : index
    %c0_117 = arith.constant 0 : index
    %185 = vector.load %arg4[%c0_115, %c0_116, %c0_117] : memref<8x16x128xbf16, #tpu.memory_space<vmem>>, vector<1x16x128xbf16>
    %186 = vector.shape_cast %185 : vector<1x16x128xbf16> to vector<16x128xbf16>
    %187 = vector.shape_cast %184 : vector<16x128xbf16> to vector<1x16x128xbf16>
    tpu.vector_store %arg4[%c0_115, %c0_116, %c0_117], %187 {strides = array<i32>} : memref<8x16x128xbf16, #tpu.memory_space<vmem>>, vector<1x16x128xbf16>,
    %c1_118 = arith.constant 1 : index
    %c0_119 = arith.constant 0 : index
    %c0_120 = arith.constant 0 : index
    %188 = vector.load %arg5[%c1_118, %c0_119, %c0_120] : memref<8x16x128xf32, #tpu.memory_space<vmem>>, vector<1x16x128xf32>
    %189 = vector.shape_cast %188 : vector<1x16x128xf32> to vector<16x128xf32>
    %190 = vector.broadcast %169 : vector<16x1xf32> to vector<16x128xf32>
    %191 = arith.mulf %189, %190 : vector<16x128xf32>
    %192 = vector.broadcast %172 : vector<16x1xf32> to vector<16x128xf32>
    %193 = arith.addf %191, %192 : vector<16x128xf32>
    %cst_121 = arith.constant 0.000000e+00 : f32
    %194 = vector.broadcast %cst_121 : f32 to vector<16x128xf32>
    %195 = arith.cmpf oge, %193, %194 : vector<16x128xf32>
    %cst_122 = arith.constant 0.00999999977 : f32
    %196 = vector.broadcast %cst_122 : f32 to vector<16x128xf32>
    %197 = arith.mulf %196, %193 : vector<16x128xf32>
    %198 = arith.select %195, %193, %197 : vector<16x128xi1>, vector<16x128xf32>
    %199 = arith.truncf %198 : vector<16x128xf32> to vector<16x128xbf16>
    %c1_123 = arith.constant 1 : index
    %c0_124 = arith.constant 0 : index
    %c0_125 = arith.constant 0 : index
    %200 = vector.load %arg4[%c1_123, %c0_124, %c0_125] : memref<8x16x128xbf16, #tpu.memory_space<vmem>>, vector<1x16x128xbf16>
    %201 = vector.shape_cast %200 : vector<1x16x128xbf16> to vector<16x128xbf16>
    %202 = vector.shape_cast %199 : vector<16x128xbf16> to vector<1x16x128xbf16>
    tpu.vector_store %arg4[%c1_123, %c0_124, %c0_125], %202 {strides = array<i32>} : memref<8x16x128xbf16, #tpu.memory_space<vmem>>, vector<1x16x128xbf16>,
    %c2_126 = arith.constant 2 : index
    %c0_127 = arith.constant 0 : index
    %c0_128 = arith.constant 0 : index
    %203 = vector.load %arg5[%c2_126, %c0_127, %c0_128] : memref<8x16x128xf32, #tpu.memory_space<vmem>>, vector<1x16x128xf32>
    %204 = vector.shape_cast %203 : vector<1x16x128xf32> to vector<16x128xf32>
    %205 = vector.broadcast %169 : vector<16x1xf32> to vector<16x128xf32>
    %206 = arith.mulf %204, %205 : vector<16x128xf32>
    %207 = vector.broadcast %172 : vector<16x1xf32> to vector<16x128xf32>
    %208 = arith.addf %206, %207 : vector<16x128xf32>
    %cst_129 = arith.constant 0.000000e+00 : f32
    %209 = vector.broadcast %cst_129 : f32 to vector<16x128xf32>
    %210 = arith.cmpf oge, %208, %209 : vector<16x128xf32>
    %cst_130 = arith.constant 0.00999999977 : f32
    %211 = vector.broadcast %cst_130 : f32 to vector<16x128xf32>
    %212 = arith.mulf %211, %208 : vector<16x128xf32>
    %213 = arith.select %210, %208, %212 : vector<16x128xi1>, vector<16x128xf32>
    %214 = arith.truncf %213 : vector<16x128xf32> to vector<16x128xbf16>
    %c2_131 = arith.constant 2 : index
    %c0_132 = arith.constant 0 : index
    %c0_133 = arith.constant 0 : index
    %215 = vector.load %arg4[%c2_131, %c0_132, %c0_133] : memref<8x16x128xbf16, #tpu.memory_space<vmem>>, vector<1x16x128xbf16>
    %216 = vector.shape_cast %215 : vector<1x16x128xbf16> to vector<16x128xbf16>
    %217 = vector.shape_cast %214 : vector<16x128xbf16> to vector<1x16x128xbf16>
    tpu.vector_store %arg4[%c2_131, %c0_132, %c0_133], %217 {strides = array<i32>} : memref<8x16x128xbf16, #tpu.memory_space<vmem>>, vector<1x16x128xbf16>,
    %c3_134 = arith.constant 3 : index
    %c0_135 = arith.constant 0 : index
    %c0_136 = arith.constant 0 : index
    %218 = vector.load %arg5[%c3_134, %c0_135, %c0_136] : memref<8x16x128xf32, #tpu.memory_space<vmem>>, vector<1x16x128xf32>
    %219 = vector.shape_cast %218 : vector<1x16x128xf32> to vector<16x128xf32>
    %220 = vector.broadcast %169 : vector<16x1xf32> to vector<16x128xf32>
    %221 = arith.mulf %219, %220 : vector<16x128xf32>
    %222 = vector.broadcast %172 : vector<16x1xf32> to vector<16x128xf32>
    %223 = arith.addf %221, %222 : vector<16x128xf32>
    %cst_137 = arith.constant 0.000000e+00 : f32
    %224 = vector.broadcast %cst_137 : f32 to vector<16x128xf32>
    %225 = arith.cmpf oge, %223, %224 : vector<16x128xf32>
    %cst_138 = arith.constant 0.00999999977 : f32
    %226 = vector.broadcast %cst_138 : f32 to vector<16x128xf32>
    %227 = arith.mulf %226, %223 : vector<16x128xf32>
    %228 = arith.select %225, %223, %227 : vector<16x128xi1>, vector<16x128xf32>
    %229 = arith.truncf %228 : vector<16x128xf32> to vector<16x128xbf16>
    %c3_139 = arith.constant 3 : index
    %c0_140 = arith.constant 0 : index
    %c0_141 = arith.constant 0 : index
    %230 = vector.load %arg4[%c3_139, %c0_140, %c0_141] : memref<8x16x128xbf16, #tpu.memory_space<vmem>>, vector<1x16x128xbf16>
    %231 = vector.shape_cast %230 : vector<1x16x128xbf16> to vector<16x128xbf16>
    %232 = vector.shape_cast %229 : vector<16x128xbf16> to vector<1x16x128xbf16>
    tpu.vector_store %arg4[%c3_139, %c0_140, %c0_141], %232 {strides = array<i32>} : memref<8x16x128xbf16, #tpu.memory_space<vmem>>, vector<1x16x128xbf16>,
    %c4_142 = arith.constant 4 : index
    %c0_143 = arith.constant 0 : index
    %c0_144 = arith.constant 0 : index
    %233 = vector.load %arg5[%c4_142, %c0_143, %c0_144] : memref<8x16x128xf32, #tpu.memory_space<vmem>>, vector<1x16x128xf32>
    %234 = vector.shape_cast %233 : vector<1x16x128xf32> to vector<16x128xf32>
    %235 = vector.broadcast %169 : vector<16x1xf32> to vector<16x128xf32>
    %236 = arith.mulf %234, %235 : vector<16x128xf32>
    %237 = vector.broadcast %172 : vector<16x1xf32> to vector<16x128xf32>
    %238 = arith.addf %236, %237 : vector<16x128xf32>
    %cst_145 = arith.constant 0.000000e+00 : f32
    %239 = vector.broadcast %cst_145 : f32 to vector<16x128xf32>
    %240 = arith.cmpf oge, %238, %239 : vector<16x128xf32>
    %cst_146 = arith.constant 0.00999999977 : f32
    %241 = vector.broadcast %cst_146 : f32 to vector<16x128xf32>
    %242 = arith.mulf %241, %238 : vector<16x128xf32>
    %243 = arith.select %240, %238, %242 : vector<16x128xi1>, vector<16x128xf32>
    %244 = arith.truncf %243 : vector<16x128xf32> to vector<16x128xbf16>
    %c4_147 = arith.constant 4 : index
    %c0_148 = arith.constant 0 : index
    %c0_149 = arith.constant 0 : index
    %245 = vector.load %arg4[%c4_147, %c0_148, %c0_149] : memref<8x16x128xbf16, #tpu.memory_space<vmem>>, vector<1x16x128xbf16>
    %246 = vector.shape_cast %245 : vector<1x16x128xbf16> to vector<16x128xbf16>
    %247 = vector.shape_cast %244 : vector<16x128xbf16> to vector<1x16x128xbf16>
    tpu.vector_store %arg4[%c4_147, %c0_148, %c0_149], %247 {strides = array<i32>} : memref<8x16x128xbf16, #tpu.memory_space<vmem>>, vector<1x16x128xbf16>,
    %c5_150 = arith.constant 5 : index
    %c0_151 = arith.constant 0 : index
    %c0_152 = arith.constant 0 : index
    %248 = vector.load %arg5[%c5_150, %c0_151, %c0_152] : memref<8x16x128xf32, #tpu.memory_space<vmem>>, vector<1x16x128xf32>
    %249 = vector.shape_cast %248 : vector<1x16x128xf32> to vector<16x128xf32>
    %250 = vector.broadcast %169 : vector<16x1xf32> to vector<16x128xf32>
    %251 = arith.mulf %249, %250 : vector<16x128xf32>
    %252 = vector.broadcast %172 : vector<16x1xf32> to vector<16x128xf32>
    %253 = arith.addf %251, %252 : vector<16x128xf32>
    %cst_153 = arith.constant 0.000000e+00 : f32
    %254 = vector.broadcast %cst_153 : f32 to vector<16x128xf32>
    %255 = arith.cmpf oge, %253, %254 : vector<16x128xf32>
    %cst_154 = arith.constant 0.00999999977 : f32
    %256 = vector.broadcast %cst_154 : f32 to vector<16x128xf32>
    %257 = arith.mulf %256, %253 : vector<16x128xf32>
    %258 = arith.select %255, %253, %257 : vector<16x128xi1>, vector<16x128xf32>
    %259 = arith.truncf %258 : vector<16x128xf32> to vector<16x128xbf16>
    %c5_155 = arith.constant 5 : index
    %c0_156 = arith.constant 0 : index
    %c0_157 = arith.constant 0 : index
    %260 = vector.load %arg4[%c5_155, %c0_156, %c0_157] : memref<8x16x128xbf16, #tpu.memory_space<vmem>>, vector<1x16x128xbf16>
    %261 = vector.shape_cast %260 : vector<1x16x128xbf16> to vector<16x128xbf16>
    %262 = vector.shape_cast %259 : vector<16x128xbf16> to vector<1x16x128xbf16>
    tpu.vector_store %arg4[%c5_155, %c0_156, %c0_157], %262 {strides = array<i32>} : memref<8x16x128xbf16, #tpu.memory_space<vmem>>, vector<1x16x128xbf16>,
    %c6_158 = arith.constant 6 : index
    %c0_159 = arith.constant 0 : index
    %c0_160 = arith.constant 0 : index
    %263 = vector.load %arg5[%c6_158, %c0_159, %c0_160] : memref<8x16x128xf32, #tpu.memory_space<vmem>>, vector<1x16x128xf32>
    %264 = vector.shape_cast %263 : vector<1x16x128xf32> to vector<16x128xf32>
    %265 = vector.broadcast %169 : vector<16x1xf32> to vector<16x128xf32>
    %266 = arith.mulf %264, %265 : vector<16x128xf32>
    %267 = vector.broadcast %172 : vector<16x1xf32> to vector<16x128xf32>
    %268 = arith.addf %266, %267 : vector<16x128xf32>
    %cst_161 = arith.constant 0.000000e+00 : f32
    %269 = vector.broadcast %cst_161 : f32 to vector<16x128xf32>
    %270 = arith.cmpf oge, %268, %269 : vector<16x128xf32>
    %cst_162 = arith.constant 0.00999999977 : f32
    %271 = vector.broadcast %cst_162 : f32 to vector<16x128xf32>
    %272 = arith.mulf %271, %268 : vector<16x128xf32>
    %273 = arith.select %270, %268, %272 : vector<16x128xi1>, vector<16x128xf32>
    %274 = arith.truncf %273 : vector<16x128xf32> to vector<16x128xbf16>
    %c6_163 = arith.constant 6 : index
    %c0_164 = arith.constant 0 : index
    %c0_165 = arith.constant 0 : index
    %275 = vector.load %arg4[%c6_163, %c0_164, %c0_165] : memref<8x16x128xbf16, #tpu.memory_space<vmem>>, vector<1x16x128xbf16>
    %276 = vector.shape_cast %275 : vector<1x16x128xbf16> to vector<16x128xbf16>
    %277 = vector.shape_cast %274 : vector<16x128xbf16> to vector<1x16x128xbf16>
    tpu.vector_store %arg4[%c6_163, %c0_164, %c0_165], %277 {strides = array<i32>} : memref<8x16x128xbf16, #tpu.memory_space<vmem>>, vector<1x16x128xbf16>,
    %c7_166 = arith.constant 7 : index
    %c0_167 = arith.constant 0 : index
    %c0_168 = arith.constant 0 : index
    %278 = vector.load %arg5[%c7_166, %c0_167, %c0_168] : memref<8x16x128xf32, #tpu.memory_space<vmem>>, vector<1x16x128xf32>
    %279 = vector.shape_cast %278 : vector<1x16x128xf32> to vector<16x128xf32>
    %280 = vector.broadcast %169 : vector<16x1xf32> to vector<16x128xf32>
    %281 = arith.mulf %279, %280 : vector<16x128xf32>
    %282 = vector.broadcast %172 : vector<16x1xf32> to vector<16x128xf32>
    %283 = arith.addf %281, %282 : vector<16x128xf32>
    %cst_169 = arith.constant 0.000000e+00 : f32
    %284 = vector.broadcast %cst_169 : f32 to vector<16x128xf32>
    %285 = arith.cmpf oge, %283, %284 : vector<16x128xf32>
    %cst_170 = arith.constant 0.00999999977 : f32
    %286 = vector.broadcast %cst_170 : f32 to vector<16x128xf32>
    %287 = arith.mulf %286, %283 : vector<16x128xf32>
    %288 = arith.select %285, %283, %287 : vector<16x128xi1>, vector<16x128xf32>
    %289 = arith.truncf %288 : vector<16x128xf32> to vector<16x128xbf16>
    %c7_171 = arith.constant 7 : index
    %c0_172 = arith.constant 0 : index
    %c0_173 = arith.constant 0 : index
    %290 = vector.load %arg4[%c7_171, %c0_172, %c0_173] : memref<8x16x128xbf16, #tpu.memory_space<vmem>>, vector<1x16x128xbf16>
    %291 = vector.shape_cast %290 : vector<1x16x128xbf16> to vector<16x128xbf16>
    %292 = vector.shape_cast %289 : vector<16x128xbf16> to vector<1x16x128xbf16>
    tpu.vector_store %arg4[%c7_171, %c0_172, %c0_173], %292 {strides = array<i32>} : memref<8x16x128xbf16, #tpu.memory_space<vmem>>, vector<1x16x128xbf16>,
    return
  }
  func.func @transform_0(%arg0: i32) -> (i32, i32, i32) {
    %c0_i32 = arith.constant 0 : i32
    %c0_i32_0 = arith.constant 0 : i32
    %c0_i32_1 = arith.constant 0 : i32
    %c0_i32_2 = arith.constant 0 : i32
    return %c0_i32, %c0_i32_0, %c0_i32_1 : i32, i32, i32
  }
  func.func @transform_1(%arg0: i32) -> (i32, i32, i32) {
    %c0_i32 = arith.constant 0 : i32
    %c0_i32_0 = arith.constant 0 : i32
    %c0_i32_1 = arith.constant 0 : i32
    %c0_i32_2 = arith.constant 0 : i32
    return %c0_i32, %c0_i32_0, %c0_i32_1 : i32, i32, i32
  }
  func.func @transform_2(%arg0: i32) -> (i32, i32) {
    %c0_i32 = arith.constant 0 : i32
    %c0_i32_0 = arith.constant 0 : i32
    %c0_i32_1 = arith.constant 0 : i32
    return %c0_i32, %c0_i32_0 : i32, i32
  }
  func.func @transform_3(%arg0: i32) -> (i32, i32, i32) {
    %c0_i32 = arith.constant 0 : i32
    %c0_i32_0 = arith.constant 0 : i32
    %c0_i32_1 = arith.constant 0 : i32
    %c0_i32_2 = arith.constant 0 : i32
    return %c0_i32, %c0_i32_0, %c0_i32_1 : i32, i32, i32
  }
}

module attributes {stable_mosaic.version = 11 : i64} {
  func.func @kernel(%arg0: i32, %arg1: memref<8x160x128xbf16, #tpu.memory_space<vmem>>, %arg2: memref<8x8x160xbf16, #tpu.memory_space<vmem>>, %arg3: memref<8x1xf32, #tpu.memory_space<vmem>>, %arg4: memref<8x8x128xbf16, #tpu.memory_space<vmem>>, %arg5: memref<8x8x128xf32, #tpu.memory_space<vmem>>) attributes {dimension_semantics = [#tpu.dimension_semantics<arbitrary>], iteration_bounds = array<i64: 1>, scalar_prefetch = 0 : i64, scratch_operands = 1 : i64, tpu.core_type = #tpu.core_type<tc>, window_params = [{pipeline_mode = #tpu.pipeline_mode<synchronous>, transform_indices = @transform_0, window_bounds = array<i64: 8, 160, 128>}, {pipeline_mode = #tpu.pipeline_mode<synchronous>, transform_indices = @transform_1, window_bounds = array<i64: 8, 8, 160>}, {pipeline_mode = #tpu.pipeline_mode<synchronous>, transform_indices = @transform_2, window_bounds = array<i64: 8, 1>}, {pipeline_mode = #tpu.pipeline_mode<synchronous>, transform_indices = @transform_3, window_bounds = array<i64: 8, 8, 128>}]} {
    %cst = arith.constant 0.000000e+00 : f32
    %0 = vector.broadcast %cst : f32 to vector<8x1xf32>
    %cst_0 = arith.constant 0.000000e+00 : f32
    %1 = vector.broadcast %cst_0 : f32 to vector<8x1xf32>
    %c0 = arith.constant 0 : index
    %c0_1 = arith.constant 0 : index
    %c0_2 = arith.constant 0 : index
    %2 = vector.load %arg2[%c0, %c0_1, %c0_2] : memref<8x8x160xbf16, #tpu.memory_space<vmem>>, vector<1x8x160xbf16>
    %3 = vector.shape_cast %2 : vector<1x8x160xbf16> to vector<8x160xbf16>
    %c0_3 = arith.constant 0 : index
    %c0_4 = arith.constant 0 : index
    %c0_5 = arith.constant 0 : index
    %4 = vector.load %arg1[%c0_3, %c0_4, %c0_5] : memref<8x160x128xbf16, #tpu.memory_space<vmem>>, vector<1x160x128xbf16>
    %5 = vector.shape_cast %4 : vector<1x160x128xbf16> to vector<160x128xbf16>
    %cst_6 = arith.constant dense<0.000000e+00> : vector<8x128xf32>
    %6 = tpu.matmul %3, %5, %cst_6 {dimension_numbers = #tpu.dot_dimension_numbers<[1], [0], [0], [1], [0, 0, 1, 1], [], []>} : vector<8x160xbf16>, vector<160x128xbf16>, vector<8x128xf32> -> vector<8x128xf32>
    %c0_7 = arith.constant 0 : index
    %c0_8 = arith.constant 0 : index
    %7 = vector.load %arg3[%c0_7, %c0_8] : memref<8x1xf32, #tpu.memory_space<vmem>>, vector<8x1xf32>
    %8 = vector.broadcast %7 : vector<8x1xf32> to vector<8x128xf32>
    %9 = arith.addf %6, %8 : vector<8x128xf32>
    %c0_9 = arith.constant 0 : index
    %c0_10 = arith.constant 0 : index
    %c0_11 = arith.constant 0 : index
    %10 = vector.load %arg5[%c0_9, %c0_10, %c0_11] : memref<8x8x128xf32, #tpu.memory_space<vmem>>, vector<1x8x128xf32>
    %11 = vector.shape_cast %10 : vector<1x8x128xf32> to vector<8x128xf32>
    %12 = vector.shape_cast %9 : vector<8x128xf32> to vector<1x8x128xf32>
    tpu.vector_store %arg5[%c0_9, %c0_10, %c0_11], %12 {strides = array<i32>} : memref<8x8x128xf32, #tpu.memory_space<vmem>>, vector<1x8x128xf32>,
    %cst_12 = arith.constant dense<0.000000e+00> : vector<8xf32>
    %13 = vector.multi_reduction <add>, %9, %cst_12 [1] : vector<8x128xf32> to vector<8xf32>
    %14 = vector.shape_cast %13 : vector<8xf32> to vector<8x1xf32>
    %15 = arith.addf %0, %14 : vector<8x1xf32>
    %16 = arith.mulf %9, %9 : vector<8x128xf32>
    %cst_13 = arith.constant dense<0.000000e+00> : vector<8xf32>
    %17 = vector.multi_reduction <add>, %16, %cst_13 [1] : vector<8x128xf32> to vector<8xf32>
    %18 = vector.shape_cast %17 : vector<8xf32> to vector<8x1xf32>
    %19 = arith.addf %1, %18 : vector<8x1xf32>
    %c1 = arith.constant 1 : index
    %c0_14 = arith.constant 0 : index
    %c0_15 = arith.constant 0 : index
    %20 = vector.load %arg2[%c1, %c0_14, %c0_15] : memref<8x8x160xbf16, #tpu.memory_space<vmem>>, vector<1x8x160xbf16>
    %21 = vector.shape_cast %20 : vector<1x8x160xbf16> to vector<8x160xbf16>
    %c1_16 = arith.constant 1 : index
    %c0_17 = arith.constant 0 : index
    %c0_18 = arith.constant 0 : index
    %22 = vector.load %arg1[%c1_16, %c0_17, %c0_18] : memref<8x160x128xbf16, #tpu.memory_space<vmem>>, vector<1x160x128xbf16>
    %23 = vector.shape_cast %22 : vector<1x160x128xbf16> to vector<160x128xbf16>
    %cst_19 = arith.constant dense<0.000000e+00> : vector<8x128xf32>
    %24 = tpu.matmul %21, %23, %cst_19 {dimension_numbers = #tpu.dot_dimension_numbers<[1], [0], [0], [1], [0, 0, 1, 1], [], []>} : vector<8x160xbf16>, vector<160x128xbf16>, vector<8x128xf32> -> vector<8x128xf32>
    %c0_20 = arith.constant 0 : index
    %c0_21 = arith.constant 0 : index
    %25 = vector.load %arg3[%c0_20, %c0_21] : memref<8x1xf32, #tpu.memory_space<vmem>>, vector<8x1xf32>
    %26 = vector.broadcast %25 : vector<8x1xf32> to vector<8x128xf32>
    %27 = arith.addf %24, %26 : vector<8x128xf32>
    %c1_22 = arith.constant 1 : index
    %c0_23 = arith.constant 0 : index
    %c0_24 = arith.constant 0 : index
    %28 = vector.load %arg5[%c1_22, %c0_23, %c0_24] : memref<8x8x128xf32, #tpu.memory_space<vmem>>, vector<1x8x128xf32>
    %29 = vector.shape_cast %28 : vector<1x8x128xf32> to vector<8x128xf32>
    %30 = vector.shape_cast %27 : vector<8x128xf32> to vector<1x8x128xf32>
    tpu.vector_store %arg5[%c1_22, %c0_23, %c0_24], %30 {strides = array<i32>} : memref<8x8x128xf32, #tpu.memory_space<vmem>>, vector<1x8x128xf32>,
    %cst_25 = arith.constant dense<0.000000e+00> : vector<8xf32>
    %31 = vector.multi_reduction <add>, %27, %cst_25 [1] : vector<8x128xf32> to vector<8xf32>
    %32 = vector.shape_cast %31 : vector<8xf32> to vector<8x1xf32>
    %33 = arith.addf %15, %32 : vector<8x1xf32>
    %34 = arith.mulf %27, %27 : vector<8x128xf32>
    %cst_26 = arith.constant dense<0.000000e+00> : vector<8xf32>
    %35 = vector.multi_reduction <add>, %34, %cst_26 [1] : vector<8x128xf32> to vector<8xf32>
    %36 = vector.shape_cast %35 : vector<8xf32> to vector<8x1xf32>
    %37 = arith.addf %19, %36 : vector<8x1xf32>
    %c2 = arith.constant 2 : index
    %c0_27 = arith.constant 0 : index
    %c0_28 = arith.constant 0 : index
    %38 = vector.load %arg2[%c2, %c0_27, %c0_28] : memref<8x8x160xbf16, #tpu.memory_space<vmem>>, vector<1x8x160xbf16>
    %39 = vector.shape_cast %38 : vector<1x8x160xbf16> to vector<8x160xbf16>
    %c2_29 = arith.constant 2 : index
    %c0_30 = arith.constant 0 : index
    %c0_31 = arith.constant 0 : index
    %40 = vector.load %arg1[%c2_29, %c0_30, %c0_31] : memref<8x160x128xbf16, #tpu.memory_space<vmem>>, vector<1x160x128xbf16>
    %41 = vector.shape_cast %40 : vector<1x160x128xbf16> to vector<160x128xbf16>
    %cst_32 = arith.constant dense<0.000000e+00> : vector<8x128xf32>
    %42 = tpu.matmul %39, %41, %cst_32 {dimension_numbers = #tpu.dot_dimension_numbers<[1], [0], [0], [1], [0, 0, 1, 1], [], []>} : vector<8x160xbf16>, vector<160x128xbf16>, vector<8x128xf32> -> vector<8x128xf32>
    %c0_33 = arith.constant 0 : index
    %c0_34 = arith.constant 0 : index
    %43 = vector.load %arg3[%c0_33, %c0_34] : memref<8x1xf32, #tpu.memory_space<vmem>>, vector<8x1xf32>
    %44 = vector.broadcast %43 : vector<8x1xf32> to vector<8x128xf32>
    %45 = arith.addf %42, %44 : vector<8x128xf32>
    %c2_35 = arith.constant 2 : index
    %c0_36 = arith.constant 0 : index
    %c0_37 = arith.constant 0 : index
    %46 = vector.load %arg5[%c2_35, %c0_36, %c0_37] : memref<8x8x128xf32, #tpu.memory_space<vmem>>, vector<1x8x128xf32>
    %47 = vector.shape_cast %46 : vector<1x8x128xf32> to vector<8x128xf32>
    %48 = vector.shape_cast %45 : vector<8x128xf32> to vector<1x8x128xf32>
    tpu.vector_store %arg5[%c2_35, %c0_36, %c0_37], %48 {strides = array<i32>} : memref<8x8x128xf32, #tpu.memory_space<vmem>>, vector<1x8x128xf32>,
    %cst_38 = arith.constant dense<0.000000e+00> : vector<8xf32>
    %49 = vector.multi_reduction <add>, %45, %cst_38 [1] : vector<8x128xf32> to vector<8xf32>
    %50 = vector.shape_cast %49 : vector<8xf32> to vector<8x1xf32>
    %51 = arith.addf %33, %50 : vector<8x1xf32>
    %52 = arith.mulf %45, %45 : vector<8x128xf32>
    %cst_39 = arith.constant dense<0.000000e+00> : vector<8xf32>
    %53 = vector.multi_reduction <add>, %52, %cst_39 [1] : vector<8x128xf32> to vector<8xf32>
    %54 = vector.shape_cast %53 : vector<8xf32> to vector<8x1xf32>
    %55 = arith.addf %37, %54 : vector<8x1xf32>
    %c3 = arith.constant 3 : index
    %c0_40 = arith.constant 0 : index
    %c0_41 = arith.constant 0 : index
    %56 = vector.load %arg2[%c3, %c0_40, %c0_41] : memref<8x8x160xbf16, #tpu.memory_space<vmem>>, vector<1x8x160xbf16>
    %57 = vector.shape_cast %56 : vector<1x8x160xbf16> to vector<8x160xbf16>
    %c3_42 = arith.constant 3 : index
    %c0_43 = arith.constant 0 : index
    %c0_44 = arith.constant 0 : index
    %58 = vector.load %arg1[%c3_42, %c0_43, %c0_44] : memref<8x160x128xbf16, #tpu.memory_space<vmem>>, vector<1x160x128xbf16>
    %59 = vector.shape_cast %58 : vector<1x160x128xbf16> to vector<160x128xbf16>
    %cst_45 = arith.constant dense<0.000000e+00> : vector<8x128xf32>
    %60 = tpu.matmul %57, %59, %cst_45 {dimension_numbers = #tpu.dot_dimension_numbers<[1], [0], [0], [1], [0, 0, 1, 1], [], []>} : vector<8x160xbf16>, vector<160x128xbf16>, vector<8x128xf32> -> vector<8x128xf32>
    %c0_46 = arith.constant 0 : index
    %c0_47 = arith.constant 0 : index
    %61 = vector.load %arg3[%c0_46, %c0_47] : memref<8x1xf32, #tpu.memory_space<vmem>>, vector<8x1xf32>
    %62 = vector.broadcast %61 : vector<8x1xf32> to vector<8x128xf32>
    %63 = arith.addf %60, %62 : vector<8x128xf32>
    %c3_48 = arith.constant 3 : index
    %c0_49 = arith.constant 0 : index
    %c0_50 = arith.constant 0 : index
    %64 = vector.load %arg5[%c3_48, %c0_49, %c0_50] : memref<8x8x128xf32, #tpu.memory_space<vmem>>, vector<1x8x128xf32>
    %65 = vector.shape_cast %64 : vector<1x8x128xf32> to vector<8x128xf32>
    %66 = vector.shape_cast %63 : vector<8x128xf32> to vector<1x8x128xf32>
    tpu.vector_store %arg5[%c3_48, %c0_49, %c0_50], %66 {strides = array<i32>} : memref<8x8x128xf32, #tpu.memory_space<vmem>>, vector<1x8x128xf32>,
    %cst_51 = arith.constant dense<0.000000e+00> : vector<8xf32>
    %67 = vector.multi_reduction <add>, %63, %cst_51 [1] : vector<8x128xf32> to vector<8xf32>
    %68 = vector.shape_cast %67 : vector<8xf32> to vector<8x1xf32>
    %69 = arith.addf %51, %68 : vector<8x1xf32>
    %70 = arith.mulf %63, %63 : vector<8x128xf32>
    %cst_52 = arith.constant dense<0.000000e+00> : vector<8xf32>
    %71 = vector.multi_reduction <add>, %70, %cst_52 [1] : vector<8x128xf32> to vector<8xf32>
    %72 = vector.shape_cast %71 : vector<8xf32> to vector<8x1xf32>
    %73 = arith.addf %55, %72 : vector<8x1xf32>
    %c4 = arith.constant 4 : index
    %c0_53 = arith.constant 0 : index
    %c0_54 = arith.constant 0 : index
    %74 = vector.load %arg2[%c4, %c0_53, %c0_54] : memref<8x8x160xbf16, #tpu.memory_space<vmem>>, vector<1x8x160xbf16>
    %75 = vector.shape_cast %74 : vector<1x8x160xbf16> to vector<8x160xbf16>
    %c4_55 = arith.constant 4 : index
    %c0_56 = arith.constant 0 : index
    %c0_57 = arith.constant 0 : index
    %76 = vector.load %arg1[%c4_55, %c0_56, %c0_57] : memref<8x160x128xbf16, #tpu.memory_space<vmem>>, vector<1x160x128xbf16>
    %77 = vector.shape_cast %76 : vector<1x160x128xbf16> to vector<160x128xbf16>
    %cst_58 = arith.constant dense<0.000000e+00> : vector<8x128xf32>
    %78 = tpu.matmul %75, %77, %cst_58 {dimension_numbers = #tpu.dot_dimension_numbers<[1], [0], [0], [1], [0, 0, 1, 1], [], []>} : vector<8x160xbf16>, vector<160x128xbf16>, vector<8x128xf32> -> vector<8x128xf32>
    %c0_59 = arith.constant 0 : index
    %c0_60 = arith.constant 0 : index
    %79 = vector.load %arg3[%c0_59, %c0_60] : memref<8x1xf32, #tpu.memory_space<vmem>>, vector<8x1xf32>
    %80 = vector.broadcast %79 : vector<8x1xf32> to vector<8x128xf32>
    %81 = arith.addf %78, %80 : vector<8x128xf32>
    %c4_61 = arith.constant 4 : index
    %c0_62 = arith.constant 0 : index
    %c0_63 = arith.constant 0 : index
    %82 = vector.load %arg5[%c4_61, %c0_62, %c0_63] : memref<8x8x128xf32, #tpu.memory_space<vmem>>, vector<1x8x128xf32>
    %83 = vector.shape_cast %82 : vector<1x8x128xf32> to vector<8x128xf32>
    %84 = vector.shape_cast %81 : vector<8x128xf32> to vector<1x8x128xf32>
    tpu.vector_store %arg5[%c4_61, %c0_62, %c0_63], %84 {strides = array<i32>} : memref<8x8x128xf32, #tpu.memory_space<vmem>>, vector<1x8x128xf32>,
    %cst_64 = arith.constant dense<0.000000e+00> : vector<8xf32>
    %85 = vector.multi_reduction <add>, %81, %cst_64 [1] : vector<8x128xf32> to vector<8xf32>
    %86 = vector.shape_cast %85 : vector<8xf32> to vector<8x1xf32>
    %87 = arith.addf %69, %86 : vector<8x1xf32>
    %88 = arith.mulf %81, %81 : vector<8x128xf32>
    %cst_65 = arith.constant dense<0.000000e+00> : vector<8xf32>
    %89 = vector.multi_reduction <add>, %88, %cst_65 [1] : vector<8x128xf32> to vector<8xf32>
    %90 = vector.shape_cast %89 : vector<8xf32> to vector<8x1xf32>
    %91 = arith.addf %73, %90 : vector<8x1xf32>
    %c5 = arith.constant 5 : index
    %c0_66 = arith.constant 0 : index
    %c0_67 = arith.constant 0 : index
    %92 = vector.load %arg2[%c5, %c0_66, %c0_67] : memref<8x8x160xbf16, #tpu.memory_space<vmem>>, vector<1x8x160xbf16>
    %93 = vector.shape_cast %92 : vector<1x8x160xbf16> to vector<8x160xbf16>
    %c5_68 = arith.constant 5 : index
    %c0_69 = arith.constant 0 : index
    %c0_70 = arith.constant 0 : index
    %94 = vector.load %arg1[%c5_68, %c0_69, %c0_70] : memref<8x160x128xbf16, #tpu.memory_space<vmem>>, vector<1x160x128xbf16>
    %95 = vector.shape_cast %94 : vector<1x160x128xbf16> to vector<160x128xbf16>
    %cst_71 = arith.constant dense<0.000000e+00> : vector<8x128xf32>
    %96 = tpu.matmul %93, %95, %cst_71 {dimension_numbers = #tpu.dot_dimension_numbers<[1], [0], [0], [1], [0, 0, 1, 1], [], []>} : vector<8x160xbf16>, vector<160x128xbf16>, vector<8x128xf32> -> vector<8x128xf32>
    %c0_72 = arith.constant 0 : index
    %c0_73 = arith.constant 0 : index
    %97 = vector.load %arg3[%c0_72, %c0_73] : memref<8x1xf32, #tpu.memory_space<vmem>>, vector<8x1xf32>
    %98 = vector.broadcast %97 : vector<8x1xf32> to vector<8x128xf32>
    %99 = arith.addf %96, %98 : vector<8x128xf32>
    %c5_74 = arith.constant 5 : index
    %c0_75 = arith.constant 0 : index
    %c0_76 = arith.constant 0 : index
    %100 = vector.load %arg5[%c5_74, %c0_75, %c0_76] : memref<8x8x128xf32, #tpu.memory_space<vmem>>, vector<1x8x128xf32>
    %101 = vector.shape_cast %100 : vector<1x8x128xf32> to vector<8x128xf32>
    %102 = vector.shape_cast %99 : vector<8x128xf32> to vector<1x8x128xf32>
    tpu.vector_store %arg5[%c5_74, %c0_75, %c0_76], %102 {strides = array<i32>} : memref<8x8x128xf32, #tpu.memory_space<vmem>>, vector<1x8x128xf32>,
    %cst_77 = arith.constant dense<0.000000e+00> : vector<8xf32>
    %103 = vector.multi_reduction <add>, %99, %cst_77 [1] : vector<8x128xf32> to vector<8xf32>
    %104 = vector.shape_cast %103 : vector<8xf32> to vector<8x1xf32>
    %105 = arith.addf %87, %104 : vector<8x1xf32>
    %106 = arith.mulf %99, %99 : vector<8x128xf32>
    %cst_78 = arith.constant dense<0.000000e+00> : vector<8xf32>
    %107 = vector.multi_reduction <add>, %106, %cst_78 [1] : vector<8x128xf32> to vector<8xf32>
    %108 = vector.shape_cast %107 : vector<8xf32> to vector<8x1xf32>
    %109 = arith.addf %91, %108 : vector<8x1xf32>
    %c6 = arith.constant 6 : index
    %c0_79 = arith.constant 0 : index
    %c0_80 = arith.constant 0 : index
    %110 = vector.load %arg2[%c6, %c0_79, %c0_80] : memref<8x8x160xbf16, #tpu.memory_space<vmem>>, vector<1x8x160xbf16>
    %111 = vector.shape_cast %110 : vector<1x8x160xbf16> to vector<8x160xbf16>
    %c6_81 = arith.constant 6 : index
    %c0_82 = arith.constant 0 : index
    %c0_83 = arith.constant 0 : index
    %112 = vector.load %arg1[%c6_81, %c0_82, %c0_83] : memref<8x160x128xbf16, #tpu.memory_space<vmem>>, vector<1x160x128xbf16>
    %113 = vector.shape_cast %112 : vector<1x160x128xbf16> to vector<160x128xbf16>
    %cst_84 = arith.constant dense<0.000000e+00> : vector<8x128xf32>
    %114 = tpu.matmul %111, %113, %cst_84 {dimension_numbers = #tpu.dot_dimension_numbers<[1], [0], [0], [1], [0, 0, 1, 1], [], []>} : vector<8x160xbf16>, vector<160x128xbf16>, vector<8x128xf32> -> vector<8x128xf32>
    %c0_85 = arith.constant 0 : index
    %c0_86 = arith.constant 0 : index
    %115 = vector.load %arg3[%c0_85, %c0_86] : memref<8x1xf32, #tpu.memory_space<vmem>>, vector<8x1xf32>
    %116 = vector.broadcast %115 : vector<8x1xf32> to vector<8x128xf32>
    %117 = arith.addf %114, %116 : vector<8x128xf32>
    %c6_87 = arith.constant 6 : index
    %c0_88 = arith.constant 0 : index
    %c0_89 = arith.constant 0 : index
    %118 = vector.load %arg5[%c6_87, %c0_88, %c0_89] : memref<8x8x128xf32, #tpu.memory_space<vmem>>, vector<1x8x128xf32>
    %119 = vector.shape_cast %118 : vector<1x8x128xf32> to vector<8x128xf32>
    %120 = vector.shape_cast %117 : vector<8x128xf32> to vector<1x8x128xf32>
    tpu.vector_store %arg5[%c6_87, %c0_88, %c0_89], %120 {strides = array<i32>} : memref<8x8x128xf32, #tpu.memory_space<vmem>>, vector<1x8x128xf32>,
    %cst_90 = arith.constant dense<0.000000e+00> : vector<8xf32>
    %121 = vector.multi_reduction <add>, %117, %cst_90 [1] : vector<8x128xf32> to vector<8xf32>
    %122 = vector.shape_cast %121 : vector<8xf32> to vector<8x1xf32>
    %123 = arith.addf %105, %122 : vector<8x1xf32>
    %124 = arith.mulf %117, %117 : vector<8x128xf32>
    %cst_91 = arith.constant dense<0.000000e+00> : vector<8xf32>
    %125 = vector.multi_reduction <add>, %124, %cst_91 [1] : vector<8x128xf32> to vector<8xf32>
    %126 = vector.shape_cast %125 : vector<8xf32> to vector<8x1xf32>
    %127 = arith.addf %109, %126 : vector<8x1xf32>
    %c7 = arith.constant 7 : index
    %c0_92 = arith.constant 0 : index
    %c0_93 = arith.constant 0 : index
    %128 = vector.load %arg2[%c7, %c0_92, %c0_93] : memref<8x8x160xbf16, #tpu.memory_space<vmem>>, vector<1x8x160xbf16>
    %129 = vector.shape_cast %128 : vector<1x8x160xbf16> to vector<8x160xbf16>
    %c7_94 = arith.constant 7 : index
    %c0_95 = arith.constant 0 : index
    %c0_96 = arith.constant 0 : index
    %130 = vector.load %arg1[%c7_94, %c0_95, %c0_96] : memref<8x160x128xbf16, #tpu.memory_space<vmem>>, vector<1x160x128xbf16>
    %131 = vector.shape_cast %130 : vector<1x160x128xbf16> to vector<160x128xbf16>
    %cst_97 = arith.constant dense<0.000000e+00> : vector<8x128xf32>
    %132 = tpu.matmul %129, %131, %cst_97 {dimension_numbers = #tpu.dot_dimension_numbers<[1], [0], [0], [1], [0, 0, 1, 1], [], []>} : vector<8x160xbf16>, vector<160x128xbf16>, vector<8x128xf32> -> vector<8x128xf32>
    %c0_98 = arith.constant 0 : index
    %c0_99 = arith.constant 0 : index
    %133 = vector.load %arg3[%c0_98, %c0_99] : memref<8x1xf32, #tpu.memory_space<vmem>>, vector<8x1xf32>
    %134 = vector.broadcast %133 : vector<8x1xf32> to vector<8x128xf32>
    %135 = arith.addf %132, %134 : vector<8x128xf32>
    %c7_100 = arith.constant 7 : index
    %c0_101 = arith.constant 0 : index
    %c0_102 = arith.constant 0 : index
    %136 = vector.load %arg5[%c7_100, %c0_101, %c0_102] : memref<8x8x128xf32, #tpu.memory_space<vmem>>, vector<1x8x128xf32>
    %137 = vector.shape_cast %136 : vector<1x8x128xf32> to vector<8x128xf32>
    %138 = vector.shape_cast %135 : vector<8x128xf32> to vector<1x8x128xf32>
    tpu.vector_store %arg5[%c7_100, %c0_101, %c0_102], %138 {strides = array<i32>} : memref<8x8x128xf32, #tpu.memory_space<vmem>>, vector<1x8x128xf32>,
    %cst_103 = arith.constant dense<0.000000e+00> : vector<8xf32>
    %139 = vector.multi_reduction <add>, %135, %cst_103 [1] : vector<8x128xf32> to vector<8xf32>
    %140 = vector.shape_cast %139 : vector<8xf32> to vector<8x1xf32>
    %141 = arith.addf %123, %140 : vector<8x1xf32>
    %142 = arith.mulf %135, %135 : vector<8x128xf32>
    %cst_104 = arith.constant dense<0.000000e+00> : vector<8xf32>
    %143 = vector.multi_reduction <add>, %142, %cst_104 [1] : vector<8x128xf32> to vector<8xf32>
    %144 = vector.shape_cast %143 : vector<8xf32> to vector<8x1xf32>
    %145 = arith.addf %127, %144 : vector<8x1xf32>
    %cst_105 = arith.constant 9.765625E-4 : f32
    %146 = vector.broadcast %cst_105 : f32 to vector<8x1xf32>
    %147 = arith.mulf %141, %146 : vector<8x1xf32>
    %cst_106 = arith.constant 9.765625E-4 : f32
    %148 = vector.broadcast %cst_106 : f32 to vector<8x1xf32>
    %149 = arith.mulf %145, %148 : vector<8x1xf32>
    %150 = arith.mulf %147, %147 : vector<8x1xf32>
    %151 = arith.subf %149, %150 : vector<8x1xf32>
    %cst_107 = arith.constant 0.000000e+00 : f32
    %152 = vector.broadcast %cst_107 : f32 to vector<8x1xf32>
    %153 = arith.maximumf %151, %152 : vector<8x1xf32>
    %cst_108 = arith.constant 9.99999974E-6 : f32
    %154 = vector.broadcast %cst_108 : f32 to vector<8x1xf32>
    %155 = arith.addf %153, %154 : vector<8x1xf32>
    %156 = math.rsqrt %155 : vector<8x1xf32>
    %cst_109 = arith.constant 0.000000e+00 : f32
    %157 = vector.broadcast %cst_109 : f32 to vector<8x1xf32>
    %158 = arith.subf %157, %147 : vector<8x1xf32>
    %159 = arith.mulf %158, %156 : vector<8x1xf32>
    %c0_110 = arith.constant 0 : index
    %c0_111 = arith.constant 0 : index
    %c0_112 = arith.constant 0 : index
    %160 = vector.load %arg5[%c0_110, %c0_111, %c0_112] : memref<8x8x128xf32, #tpu.memory_space<vmem>>, vector<1x8x128xf32>
    %161 = vector.shape_cast %160 : vector<1x8x128xf32> to vector<8x128xf32>
    %162 = vector.broadcast %156 : vector<8x1xf32> to vector<8x128xf32>
    %163 = arith.mulf %161, %162 : vector<8x128xf32>
    %164 = vector.broadcast %159 : vector<8x1xf32> to vector<8x128xf32>
    %165 = arith.addf %163, %164 : vector<8x128xf32>
    %cst_113 = arith.constant 0.000000e+00 : f32
    %166 = vector.broadcast %cst_113 : f32 to vector<8x128xf32>
    %167 = arith.cmpf oge, %165, %166 : vector<8x128xf32>
    %cst_114 = arith.constant 0.00999999977 : f32
    %168 = vector.broadcast %cst_114 : f32 to vector<8x128xf32>
    %169 = arith.mulf %168, %165 : vector<8x128xf32>
    %170 = arith.select %167, %165, %169 : vector<8x128xi1>, vector<8x128xf32>
    %171 = arith.truncf %170 : vector<8x128xf32> to vector<8x128xbf16>
    %c0_115 = arith.constant 0 : index
    %c0_116 = arith.constant 0 : index
    %c0_117 = arith.constant 0 : index
    %172 = vector.load %arg4[%c0_115, %c0_116, %c0_117] : memref<8x8x128xbf16, #tpu.memory_space<vmem>>, vector<1x8x128xbf16>
    %173 = vector.shape_cast %172 : vector<1x8x128xbf16> to vector<8x128xbf16>
    %174 = vector.shape_cast %171 : vector<8x128xbf16> to vector<1x8x128xbf16>
    tpu.vector_store %arg4[%c0_115, %c0_116, %c0_117], %174 {strides = array<i32>} : memref<8x8x128xbf16, #tpu.memory_space<vmem>>, vector<1x8x128xbf16>,
    %c1_118 = arith.constant 1 : index
    %c0_119 = arith.constant 0 : index
    %c0_120 = arith.constant 0 : index
    %175 = vector.load %arg5[%c1_118, %c0_119, %c0_120] : memref<8x8x128xf32, #tpu.memory_space<vmem>>, vector<1x8x128xf32>
    %176 = vector.shape_cast %175 : vector<1x8x128xf32> to vector<8x128xf32>
    %177 = vector.broadcast %156 : vector<8x1xf32> to vector<8x128xf32>
    %178 = arith.mulf %176, %177 : vector<8x128xf32>
    %179 = vector.broadcast %159 : vector<8x1xf32> to vector<8x128xf32>
    %180 = arith.addf %178, %179 : vector<8x128xf32>
    %cst_121 = arith.constant 0.000000e+00 : f32
    %181 = vector.broadcast %cst_121 : f32 to vector<8x128xf32>
    %182 = arith.cmpf oge, %180, %181 : vector<8x128xf32>
    %cst_122 = arith.constant 0.00999999977 : f32
    %183 = vector.broadcast %cst_122 : f32 to vector<8x128xf32>
    %184 = arith.mulf %183, %180 : vector<8x128xf32>
    %185 = arith.select %182, %180, %184 : vector<8x128xi1>, vector<8x128xf32>
    %186 = arith.truncf %185 : vector<8x128xf32> to vector<8x128xbf16>
    %c1_123 = arith.constant 1 : index
    %c0_124 = arith.constant 0 : index
    %c0_125 = arith.constant 0 : index
    %187 = vector.load %arg4[%c1_123, %c0_124, %c0_125] : memref<8x8x128xbf16, #tpu.memory_space<vmem>>, vector<1x8x128xbf16>
    %188 = vector.shape_cast %187 : vector<1x8x128xbf16> to vector<8x128xbf16>
    %189 = vector.shape_cast %186 : vector<8x128xbf16> to vector<1x8x128xbf16>
    tpu.vector_store %arg4[%c1_123, %c0_124, %c0_125], %189 {strides = array<i32>} : memref<8x8x128xbf16, #tpu.memory_space<vmem>>, vector<1x8x128xbf16>,
    %c2_126 = arith.constant 2 : index
    %c0_127 = arith.constant 0 : index
    %c0_128 = arith.constant 0 : index
    %190 = vector.load %arg5[%c2_126, %c0_127, %c0_128] : memref<8x8x128xf32, #tpu.memory_space<vmem>>, vector<1x8x128xf32>
    %191 = vector.shape_cast %190 : vector<1x8x128xf32> to vector<8x128xf32>
    %192 = vector.broadcast %156 : vector<8x1xf32> to vector<8x128xf32>
    %193 = arith.mulf %191, %192 : vector<8x128xf32>
    %194 = vector.broadcast %159 : vector<8x1xf32> to vector<8x128xf32>
    %195 = arith.addf %193, %194 : vector<8x128xf32>
    %cst_129 = arith.constant 0.000000e+00 : f32
    %196 = vector.broadcast %cst_129 : f32 to vector<8x128xf32>
    %197 = arith.cmpf oge, %195, %196 : vector<8x128xf32>
    %cst_130 = arith.constant 0.00999999977 : f32
    %198 = vector.broadcast %cst_130 : f32 to vector<8x128xf32>
    %199 = arith.mulf %198, %195 : vector<8x128xf32>
    %200 = arith.select %197, %195, %199 : vector<8x128xi1>, vector<8x128xf32>
    %201 = arith.truncf %200 : vector<8x128xf32> to vector<8x128xbf16>
    %c2_131 = arith.constant 2 : index
    %c0_132 = arith.constant 0 : index
    %c0_133 = arith.constant 0 : index
    %202 = vector.load %arg4[%c2_131, %c0_132, %c0_133] : memref<8x8x128xbf16, #tpu.memory_space<vmem>>, vector<1x8x128xbf16>
    %203 = vector.shape_cast %202 : vector<1x8x128xbf16> to vector<8x128xbf16>
    %204 = vector.shape_cast %201 : vector<8x128xbf16> to vector<1x8x128xbf16>
    tpu.vector_store %arg4[%c2_131, %c0_132, %c0_133], %204 {strides = array<i32>} : memref<8x8x128xbf16, #tpu.memory_space<vmem>>, vector<1x8x128xbf16>,
    %c3_134 = arith.constant 3 : index
    %c0_135 = arith.constant 0 : index
    %c0_136 = arith.constant 0 : index
    %205 = vector.load %arg5[%c3_134, %c0_135, %c0_136] : memref<8x8x128xf32, #tpu.memory_space<vmem>>, vector<1x8x128xf32>
    %206 = vector.shape_cast %205 : vector<1x8x128xf32> to vector<8x128xf32>
    %207 = vector.broadcast %156 : vector<8x1xf32> to vector<8x128xf32>
    %208 = arith.mulf %206, %207 : vector<8x128xf32>
    %209 = vector.broadcast %159 : vector<8x1xf32> to vector<8x128xf32>
    %210 = arith.addf %208, %209 : vector<8x128xf32>
    %cst_137 = arith.constant 0.000000e+00 : f32
    %211 = vector.broadcast %cst_137 : f32 to vector<8x128xf32>
    %212 = arith.cmpf oge, %210, %211 : vector<8x128xf32>
    %cst_138 = arith.constant 0.00999999977 : f32
    %213 = vector.broadcast %cst_138 : f32 to vector<8x128xf32>
    %214 = arith.mulf %213, %210 : vector<8x128xf32>
    %215 = arith.select %212, %210, %214 : vector<8x128xi1>, vector<8x128xf32>
    %216 = arith.truncf %215 : vector<8x128xf32> to vector<8x128xbf16>
    %c3_139 = arith.constant 3 : index
    %c0_140 = arith.constant 0 : index
    %c0_141 = arith.constant 0 : index
    %217 = vector.load %arg4[%c3_139, %c0_140, %c0_141] : memref<8x8x128xbf16, #tpu.memory_space<vmem>>, vector<1x8x128xbf16>
    %218 = vector.shape_cast %217 : vector<1x8x128xbf16> to vector<8x128xbf16>
    %219 = vector.shape_cast %216 : vector<8x128xbf16> to vector<1x8x128xbf16>
    tpu.vector_store %arg4[%c3_139, %c0_140, %c0_141], %219 {strides = array<i32>} : memref<8x8x128xbf16, #tpu.memory_space<vmem>>, vector<1x8x128xbf16>,
    %c4_142 = arith.constant 4 : index
    %c0_143 = arith.constant 0 : index
    %c0_144 = arith.constant 0 : index
    %220 = vector.load %arg5[%c4_142, %c0_143, %c0_144] : memref<8x8x128xf32, #tpu.memory_space<vmem>>, vector<1x8x128xf32>
    %221 = vector.shape_cast %220 : vector<1x8x128xf32> to vector<8x128xf32>
    %222 = vector.broadcast %156 : vector<8x1xf32> to vector<8x128xf32>
    %223 = arith.mulf %221, %222 : vector<8x128xf32>
    %224 = vector.broadcast %159 : vector<8x1xf32> to vector<8x128xf32>
    %225 = arith.addf %223, %224 : vector<8x128xf32>
    %cst_145 = arith.constant 0.000000e+00 : f32
    %226 = vector.broadcast %cst_145 : f32 to vector<8x128xf32>
    %227 = arith.cmpf oge, %225, %226 : vector<8x128xf32>
    %cst_146 = arith.constant 0.00999999977 : f32
    %228 = vector.broadcast %cst_146 : f32 to vector<8x128xf32>
    %229 = arith.mulf %228, %225 : vector<8x128xf32>
    %230 = arith.select %227, %225, %229 : vector<8x128xi1>, vector<8x128xf32>
    %231 = arith.truncf %230 : vector<8x128xf32> to vector<8x128xbf16>
    %c4_147 = arith.constant 4 : index
    %c0_148 = arith.constant 0 : index
    %c0_149 = arith.constant 0 : index
    %232 = vector.load %arg4[%c4_147, %c0_148, %c0_149] : memref<8x8x128xbf16, #tpu.memory_space<vmem>>, vector<1x8x128xbf16>
    %233 = vector.shape_cast %232 : vector<1x8x128xbf16> to vector<8x128xbf16>
    %234 = vector.shape_cast %231 : vector<8x128xbf16> to vector<1x8x128xbf16>
    tpu.vector_store %arg4[%c4_147, %c0_148, %c0_149], %234 {strides = array<i32>} : memref<8x8x128xbf16, #tpu.memory_space<vmem>>, vector<1x8x128xbf16>,
    %c5_150 = arith.constant 5 : index
    %c0_151 = arith.constant 0 : index
    %c0_152 = arith.constant 0 : index
    %235 = vector.load %arg5[%c5_150, %c0_151, %c0_152] : memref<8x8x128xf32, #tpu.memory_space<vmem>>, vector<1x8x128xf32>
    %236 = vector.shape_cast %235 : vector<1x8x128xf32> to vector<8x128xf32>
    %237 = vector.broadcast %156 : vector<8x1xf32> to vector<8x128xf32>
    %238 = arith.mulf %236, %237 : vector<8x128xf32>
    %239 = vector.broadcast %159 : vector<8x1xf32> to vector<8x128xf32>
    %240 = arith.addf %238, %239 : vector<8x128xf32>
    %cst_153 = arith.constant 0.000000e+00 : f32
    %241 = vector.broadcast %cst_153 : f32 to vector<8x128xf32>
    %242 = arith.cmpf oge, %240, %241 : vector<8x128xf32>
    %cst_154 = arith.constant 0.00999999977 : f32
    %243 = vector.broadcast %cst_154 : f32 to vector<8x128xf32>
    %244 = arith.mulf %243, %240 : vector<8x128xf32>
    %245 = arith.select %242, %240, %244 : vector<8x128xi1>, vector<8x128xf32>
    %246 = arith.truncf %245 : vector<8x128xf32> to vector<8x128xbf16>
    %c5_155 = arith.constant 5 : index
    %c0_156 = arith.constant 0 : index
    %c0_157 = arith.constant 0 : index
    %247 = vector.load %arg4[%c5_155, %c0_156, %c0_157] : memref<8x8x128xbf16, #tpu.memory_space<vmem>>, vector<1x8x128xbf16>
    %248 = vector.shape_cast %247 : vector<1x8x128xbf16> to vector<8x128xbf16>
    %249 = vector.shape_cast %246 : vector<8x128xbf16> to vector<1x8x128xbf16>
    tpu.vector_store %arg4[%c5_155, %c0_156, %c0_157], %249 {strides = array<i32>} : memref<8x8x128xbf16, #tpu.memory_space<vmem>>, vector<1x8x128xbf16>,
    %c6_158 = arith.constant 6 : index
    %c0_159 = arith.constant 0 : index
    %c0_160 = arith.constant 0 : index
    %250 = vector.load %arg5[%c6_158, %c0_159, %c0_160] : memref<8x8x128xf32, #tpu.memory_space<vmem>>, vector<1x8x128xf32>
    %251 = vector.shape_cast %250 : vector<1x8x128xf32> to vector<8x128xf32>
    %252 = vector.broadcast %156 : vector<8x1xf32> to vector<8x128xf32>
    %253 = arith.mulf %251, %252 : vector<8x128xf32>
    %254 = vector.broadcast %159 : vector<8x1xf32> to vector<8x128xf32>
    %255 = arith.addf %253, %254 : vector<8x128xf32>
    %cst_161 = arith.constant 0.000000e+00 : f32
    %256 = vector.broadcast %cst_161 : f32 to vector<8x128xf32>
    %257 = arith.cmpf oge, %255, %256 : vector<8x128xf32>
    %cst_162 = arith.constant 0.00999999977 : f32
    %258 = vector.broadcast %cst_162 : f32 to vector<8x128xf32>
    %259 = arith.mulf %258, %255 : vector<8x128xf32>
    %260 = arith.select %257, %255, %259 : vector<8x128xi1>, vector<8x128xf32>
    %261 = arith.truncf %260 : vector<8x128xf32> to vector<8x128xbf16>
    %c6_163 = arith.constant 6 : index
    %c0_164 = arith.constant 0 : index
    %c0_165 = arith.constant 0 : index
    %262 = vector.load %arg4[%c6_163, %c0_164, %c0_165] : memref<8x8x128xbf16, #tpu.memory_space<vmem>>, vector<1x8x128xbf16>
    %263 = vector.shape_cast %262 : vector<1x8x128xbf16> to vector<8x128xbf16>
    %264 = vector.shape_cast %261 : vector<8x128xbf16> to vector<1x8x128xbf16>
    tpu.vector_store %arg4[%c6_163, %c0_164, %c0_165], %264 {strides = array<i32>} : memref<8x8x128xbf16, #tpu.memory_space<vmem>>, vector<1x8x128xbf16>,
    %c7_166 = arith.constant 7 : index
    %c0_167 = arith.constant 0 : index
    %c0_168 = arith.constant 0 : index
    %265 = vector.load %arg5[%c7_166, %c0_167, %c0_168] : memref<8x8x128xf32, #tpu.memory_space<vmem>>, vector<1x8x128xf32>
    %266 = vector.shape_cast %265 : vector<1x8x128xf32> to vector<8x128xf32>
    %267 = vector.broadcast %156 : vector<8x1xf32> to vector<8x128xf32>
    %268 = arith.mulf %266, %267 : vector<8x128xf32>
    %269 = vector.broadcast %159 : vector<8x1xf32> to vector<8x128xf32>
    %270 = arith.addf %268, %269 : vector<8x128xf32>
    %cst_169 = arith.constant 0.000000e+00 : f32
    %271 = vector.broadcast %cst_169 : f32 to vector<8x128xf32>
    %272 = arith.cmpf oge, %270, %271 : vector<8x128xf32>
    %cst_170 = arith.constant 0.00999999977 : f32
    %273 = vector.broadcast %cst_170 : f32 to vector<8x128xf32>
    %274 = arith.mulf %273, %270 : vector<8x128xf32>
    %275 = arith.select %272, %270, %274 : vector<8x128xi1>, vector<8x128xf32>
    %276 = arith.truncf %275 : vector<8x128xf32> to vector<8x128xbf16>
    %c7_171 = arith.constant 7 : index
    %c0_172 = arith.constant 0 : index
    %c0_173 = arith.constant 0 : index
    %277 = vector.load %arg4[%c7_171, %c0_172, %c0_173] : memref<8x8x128xbf16, #tpu.memory_space<vmem>>, vector<1x8x128xbf16>
    %278 = vector.shape_cast %277 : vector<1x8x128xbf16> to vector<8x128xbf16>
    %279 = vector.shape_cast %276 : vector<8x128xbf16> to vector<1x8x128xbf16>
    tpu.vector_store %arg4[%c7_171, %c0_172, %c0_173], %279 {strides = array<i32>} : memref<8x8x128xbf16, #tpu.memory_space<vmem>>, vector<1x8x128xbf16>,
    return
  }
  func.func @transform_0(%arg0: i32) -> (i32, i32, i32) {
    %c0_i32 = arith.constant 0 : i32
    %c0_i32_0 = arith.constant 0 : i32
    %c0_i32_1 = arith.constant 0 : i32
    %c0_i32_2 = arith.constant 0 : i32
    return %c0_i32, %c0_i32_0, %c0_i32_1 : i32, i32, i32
  }
  func.func @transform_1(%arg0: i32) -> (i32, i32, i32) {
    %c0_i32 = arith.constant 0 : i32
    %c0_i32_0 = arith.constant 0 : i32
    %c0_i32_1 = arith.constant 0 : i32
    %c0_i32_2 = arith.constant 0 : i32
    return %c0_i32, %c0_i32_0, %c0_i32_1 : i32, i32, i32
  }
  func.func @transform_2(%arg0: i32) -> (i32, i32) {
    %c0_i32 = arith.constant 0 : i32
    %c0_i32_0 = arith.constant 0 : i32
    %c0_i32_1 = arith.constant 0 : i32
    return %c0_i32, %c0_i32_0 : i32, i32
  }
  func.func @transform_3(%arg0: i32) -> (i32, i32, i32) {
    %c0_i32 = arith.constant 0 : i32
    %c0_i32_0 = arith.constant 0 : i32
    %c0_i32_1 = arith.constant 0 : i32
    %c0_i32_2 = arith.constant 0 : i32
    return %c0_i32, %c0_i32_0, %c0_i32_1 : i32, i32, i32
  }
}

module attributes {stable_mosaic.version = 11 : i64} {
  func.func @_deconv_tanh_kernel(%arg0: i32, %arg1: memref<1x96x1024xbf16, #tpu.memory_space<vmem>>, %arg2: memref<1x8x96xbf16, #tpu.memory_space<vmem>>, %arg3: memref<8x1xf32, #tpu.memory_space<vmem>>, %arg4: memref<1x8x1024xbf16, #tpu.memory_space<vmem>>) attributes {dimension_semantics = [#tpu.dimension_semantics<parallel>], iteration_bounds = array<i64: 8>, scalar_prefetch = 0 : i64, scratch_operands = 0 : i64, tpu.core_type = #tpu.core_type<tc>, window_params = [{transform_indices = @transform_0, window_bounds = array<i64: 1, 96, 1024>}, {transform_indices = @transform_1, window_bounds = array<i64: 1, 8, 96>}, {pipeline_mode = #tpu.pipeline_mode<synchronous>, transform_indices = @transform_2, window_bounds = array<i64: 8, 1>}, {transform_indices = @transform_3, window_bounds = array<i64: 1, 8, 1024>}]} {
    %c0 = arith.constant 0 : index
    %c0_0 = arith.constant 0 : index
    %c0_1 = arith.constant 0 : index
    %0 = vector.load %arg2[%c0, %c0_0, %c0_1] : memref<1x8x96xbf16, #tpu.memory_space<vmem>>, vector<1x8x96xbf16>
    %1 = vector.shape_cast %0 : vector<1x8x96xbf16> to vector<8x96xbf16>
    %c0_2 = arith.constant 0 : index
    %c0_3 = arith.constant 0 : index
    %c0_4 = arith.constant 0 : index
    %2 = vector.load %arg1[%c0_2, %c0_3, %c0_4] : memref<1x96x1024xbf16, #tpu.memory_space<vmem>>, vector<1x96x1024xbf16>
    %3 = vector.shape_cast %2 : vector<1x96x1024xbf16> to vector<96x1024xbf16>
    %cst = arith.constant dense<0.000000e+00> : vector<8x1024xf32>
    %4 = tpu.matmul %1, %3, %cst {dimension_numbers = #tpu.dot_dimension_numbers<[1], [0], [0], [1], [0, 0, 1, 1], [], []>} : vector<8x96xbf16>, vector<96x1024xbf16>, vector<8x1024xf32> -> vector<8x1024xf32>
    %c0_5 = arith.constant 0 : index
    %c0_6 = arith.constant 0 : index
    %5 = vector.load %arg3[%c0_5, %c0_6] : memref<8x1xf32, #tpu.memory_space<vmem>>, vector<8x1xf32>
    %6 = vector.broadcast %5 : vector<8x1xf32> to vector<8x1024xf32>
    %7 = arith.addf %4, %6 : vector<8x1024xf32>
    %8 = math.tanh %7 : vector<8x1024xf32>
    %9 = arith.truncf %8 : vector<8x1024xf32> to vector<8x1024xbf16>
    %c0_7 = arith.constant 0 : index
    %c0_8 = arith.constant 0 : index
    %c0_9 = arith.constant 0 : index
    %10 = vector.load %arg4[%c0_7, %c0_8, %c0_9] : memref<1x8x1024xbf16, #tpu.memory_space<vmem>>, vector<1x8x1024xbf16>
    %11 = vector.shape_cast %10 : vector<1x8x1024xbf16> to vector<8x1024xbf16>
    %12 = vector.shape_cast %9 : vector<8x1024xbf16> to vector<1x8x1024xbf16>
    tpu.vector_store %arg4[%c0_7, %c0_8, %c0_9], %12 {strides = array<i32>} : memref<1x8x1024xbf16, #tpu.memory_space<vmem>>, vector<1x8x1024xbf16>,
    return
  }
  func.func @transform_0(%arg0: i32) -> (i32, i32, i32) {
    %c0_i32 = arith.constant 0 : i32
    %c0_i32_0 = arith.constant 0 : i32
    %c0_i32_1 = arith.constant 0 : i32
    return %arg0, %c0_i32, %c0_i32_0 : i32, i32, i32
  }
  func.func @transform_1(%arg0: i32) -> (i32, i32, i32) {
    %c0_i32 = arith.constant 0 : i32
    %c0_i32_0 = arith.constant 0 : i32
    %c0_i32_1 = arith.constant 0 : i32
    return %arg0, %c0_i32, %c0_i32_0 : i32, i32, i32
  }
  func.func @transform_2(%arg0: i32) -> (i32, i32) {
    %c0_i32 = arith.constant 0 : i32
    %c0_i32_0 = arith.constant 0 : i32
    %c0_i32_1 = arith.constant 0 : i32
    return %c0_i32, %c0_i32_0 : i32, i32
  }
  func.func @transform_3(%arg0: i32) -> (i32, i32, i32) {
    %c0_i32 = arith.constant 0 : i32
    %c0_i32_0 = arith.constant 0 : i32
    %c0_i32_1 = arith.constant 0 : i32
    return %arg0, %c0_i32, %c0_i32_0 : i32, i32, i32
  }
}

module attributes {stable_mosaic.version = 11 : i64} {
  func.func @kernel(%arg0: i32, %arg1: memref<2x4096xbf16, #tpu.memory_space<vmem>>, %arg2: memref<1x4096x64xbf16, #tpu.memory_space<vmem>>, %arg3: memref<1x1x64xf32, #tpu.memory_space<vmem>>, %arg4: memref<1x2x64xf32, #tpu.memory_space<vmem>>) attributes {dimension_semantics = [#tpu.dimension_semantics<parallel>], iteration_bounds = array<i64: 1>, scalar_prefetch = 0 : i64, scratch_operands = 0 : i64, tpu.core_type = #tpu.core_type<tc>, window_params = [{pipeline_mode = #tpu.pipeline_mode<synchronous>, transform_indices = @transform_0, window_bounds = array<i64: 2, 4096>}, {transform_indices = @transform_1, window_bounds = array<i64: 1, 4096, 64>}, {transform_indices = @transform_2, window_bounds = array<i64: 1, 1, 64>}, {transform_indices = @transform_3, window_bounds = array<i64: 1, 2, 64>}]} {
    %c0 = arith.constant 0 : index
    %c0_0 = arith.constant 0 : index
    %0 = vector.load %arg1[%c0, %c0_0] : memref<2x4096xbf16, #tpu.memory_space<vmem>>, vector<2x4096xbf16>
    %c0_1 = arith.constant 0 : index
    %c0_2 = arith.constant 0 : index
    %c0_3 = arith.constant 0 : index
    %1 = vector.load %arg2[%c0_1, %c0_2, %c0_3] : memref<1x4096x64xbf16, #tpu.memory_space<vmem>>, vector<1x4096x64xbf16>
    %2 = vector.shape_cast %1 : vector<1x4096x64xbf16> to vector<4096x64xbf16>
    %cst = arith.constant dense<0.000000e+00> : vector<2x64xf32>
    %3 = tpu.matmul %0, %2, %cst {dimension_numbers = #tpu.dot_dimension_numbers<[1], [0], [0], [1], [0, 0, 1, 1], [], []>} : vector<2x4096xbf16>, vector<4096x64xbf16>, vector<2x64xf32> -> vector<2x64xf32>
    %c0_4 = arith.constant 0 : index
    %c0_5 = arith.constant 0 : index
    %c0_6 = arith.constant 0 : index
    %4 = vector.load %arg3[%c0_4, %c0_5, %c0_6] : memref<1x1x64xf32, #tpu.memory_space<vmem>>, vector<1x1x64xf32>
    %5 = vector.shape_cast %4 : vector<1x1x64xf32> to vector<1x64xf32>
    %6 = vector.broadcast %5 : vector<1x64xf32> to vector<2x64xf32>
    %7 = arith.addf %3, %6 : vector<2x64xf32>
    %c0_7 = arith.constant 0 : index
    %c0_8 = arith.constant 0 : index
    %c0_9 = arith.constant 0 : index
    %8 = vector.load %arg4[%c0_7, %c0_8, %c0_9] : memref<1x2x64xf32, #tpu.memory_space<vmem>>, vector<1x2x64xf32>
    %9 = vector.shape_cast %8 : vector<1x2x64xf32> to vector<2x64xf32>
    %10 = vector.shape_cast %7 : vector<2x64xf32> to vector<1x2x64xf32>
    tpu.vector_store %arg4[%c0_7, %c0_8, %c0_9], %10 {strides = array<i32>} : memref<1x2x64xf32, #tpu.memory_space<vmem>>, vector<1x2x64xf32>,
    return
  }
  func.func @transform_0(%arg0: i32) -> (i32, i32) {
    %c0_i32 = arith.constant 0 : i32
    %c0_i32_0 = arith.constant 0 : i32
    %c0_i32_1 = arith.constant 0 : i32
    return %c0_i32, %c0_i32_0 : i32, i32
  }
  func.func @transform_1(%arg0: i32) -> (i32, i32, i32) {
    %c0_i32 = arith.constant 0 : i32
    %c0_i32_0 = arith.constant 0 : i32
    %c0_i32_1 = arith.constant 0 : i32
    return %arg0, %c0_i32, %c0_i32_0 : i32, i32, i32
  }
  func.func @transform_2(%arg0: i32) -> (i32, i32, i32) {
    %c0_i32 = arith.constant 0 : i32
    %c0_i32_0 = arith.constant 0 : i32
    %c0_i32_1 = arith.constant 0 : i32
    return %arg0, %c0_i32, %c0_i32_0 : i32, i32, i32
  }
  func.func @transform_3(%arg0: i32) -> (i32, i32, i32) {
    %c0_i32 = arith.constant 0 : i32
    %c0_i32_0 = arith.constant 0 : i32
    %c0_i32_1 = arith.constant 0 : i32
    return %arg0, %c0_i32, %c0_i32_0 : i32, i32, i32
  }
}

</mosaic_0001>

<bundles_post_ra>
// kernel: squeeze.6
= control target key start
LH: loop header
LB: loop body
LE: loop exit
PB: predicated region body
PF: predicated region fallthrough
CT: control target
= control target key end

     0   :  { %s301_s8 = smov 122   ;;  %vm19_vm0 = vcmask 15360   ;;  %s302_s9 = smov 124   ;;  %v315_v26 = vmov 0.0   ;;  %s425_s0 = inlined_call_operand.vmem [shape: bf16[1,2,32], index: 0, kind: input, shape index: {}]   ;;  %s426_s1 = inlined_call_operand.vmem [shape: bf16[2,4,2,2,2], index: 1, kind: output, shape index: {}]  }
   0x1   :  { %v14_v0 = vld [vmem:[%s425_s0] sm:$0x1]  ;;  %s300_s0 = smov 126   ;;  %s303_s10 = smov 120  }
   0x2   :  { %v15_v1 = vunpack.c.l.bf16 %v14_v0  ;;  %s304_s11 = smov 118   ;;  %s305_s12 = smov 116  }
   0x3   :  { %s306_s13 = smov 114   ;;  %s307_s14 = smov 112  }
   0x4   :  { %17 = vst [vmem:[#allocation1] sm:$0x3] %v15_v1  ;;  %s308_s15 = smov 110   ;;  %s309_s16 = smov 108  }
   0x5   :  { %s310_s17 = smov 106   ;;  %s311_s18 = smov 104  }
   0x6   :  { %s312_s19 = smov 102   ;;  %s313_s20 = smov 100  }
   0x7   :  { %s314_s21 = smov 98  }
   0xb   :  { %v23_v2 = vld [vmem:[#allocation1] sm:$0x3]  }
   0xc   :  { %v39_v3 = vld [vmem:[#allocation1] sm:$0x3]   ;;  %24 = vrot.lane.b32.xlu0 %v23_v2, %s300_s0 }
   0xd   :  { %40 = vrot.lane.b32.xlu1 %v39_v3, %s301_s8  ;;  %v31_v4 = vld [vmem:[#allocation1] sm:$0x3]  }
   0xe   :  { %v47_v5 = vld [vmem:[#allocation1] sm:$0x3]  }
   0xf   :  { %v18_v6 = vld [vmem:[#allocation1] sm:$0x3]  }
  0x10   :  { %32 = vrot.lane.b32.xlu0 %v31_v4, %s302_s9  ;;  %v55_v7 = vld [vmem:[#allocation1] sm:$0x3]   ;;  %20 = vst.msk [vmem:[#allocation0] sm:$0x1] %vm19_vm0, %v18_v6   ;;  %22 = vst.msk [vmem:[#allocation0 + $0x3f] sm:$0x2] %vm19_vm0, %v18_v6  }
  0x11   :  { %48 = vrot.lane.b32.xlu1 %v47_v5, %s303_s10  ;;  %v63_v8 = vld [vmem:[#allocation1] sm:$0x3]  }
  0x12   :  { %v71_v9 = vld [vmem:[#allocation1] sm:$0x3]  }
  0x13   :  { %v79_v10 = vld [vmem:[#allocation1] sm:$0x3]  }
  0x14   :  { %56 = vrot.lane.b32.xlu0 %v55_v7, %s304_s11  ;;  %v87_v11 = vld [vmem:[#allocation1] sm:$0x3]  }
  0x15   :  { %64 = vrot.lane.b32.xlu1 %v63_v8, %s305_s12  ;;  %v95_v12 = vld [vmem:[#allocation1] sm:$0x3]  }
  0x16   :  { %v103_v13 = vld [vmem:[#allocation1] sm:$0x3]  }
  0x17   :  { %v111_v14 = vld [vmem:[#allocation1] sm:$0x3]  }
  0x18   :  { %72 = vrot.lane.b32.xlu0 %v71_v9, %s306_s13  ;;  %v119_v15 = vld [vmem:[#allocation1] sm:$0x3]  }
  0x19   :  { %80 = vrot.lane.b32.xlu1 %v79_v10, %s307_s14  ;;  %v127_v16 = vld [vmem:[#allocation1] sm:$0x3]  }
  0x1a   :  { %v135_v17 = vld [vmem:[#allocation1] sm:$0x3]  }
  0x1c   :  { %88 = vrot.lane.b32.xlu0 %v87_v11, %s308_s15 }
  0x1d   :  { %96 = vrot.lane.b32.xlu1 %v95_v12, %s309_s16 }
  0x20   :  { %104 = vrot.lane.b32.xlu0 %v103_v13, %s310_s17 }
  0x21   :  { %112 = vrot.lane.b32.xlu1 %v111_v14, %s311_s18 }
  0x24   :  { %120 = vrot.lane.b32.xlu0 %v119_v15, %s312_s19 }
  0x25   :  { %128 = vrot.lane.b32.xlu1 %v127_v16, %s313_s20 }
  0x28   :  { %136 = vrot.lane.b32.xlu0 %v135_v17, %s314_s21 }
  0x7e   :  { %v25_v18 = vpop.permute.xlu0 %24  }
  0x7f   :  { %v41_v19 = vpop.permute.xlu1 %40   ;;  %28 = vst.msk [vmem:[#allocation0 + $0x1] sm:$0x1] %vm19_vm0, %v25_v18   ;;  %30 = vst.msk [vmem:[#allocation0 + $0x40] sm:$0x2] %vm19_vm0, %v25_v18  }
  0x80   :  { %44 = vst.msk [vmem:[#allocation0 + $0x9] sm:$0x1] %vm19_vm0, %v41_v19   ;;  %46 = vst.msk [vmem:[#allocation0 + $0x48] sm:$0x2] %vm19_vm0, %v41_v19  }
  0x82   :  { %v33_v20 = vpop.permute.xlu0 %32  }
  0x83   :  { %v49_v21 = vpop.permute.xlu1 %48   ;;  %36 = vst.msk [vmem:[#allocation0 + $0x8] sm:$0x1] %vm19_vm0, %v33_v20   ;;  %38 = vst.msk [vmem:[#allocation0 + $0x47] sm:$0x2] %vm19_vm0, %v33_v20  }
  0x84   :  { %52 = vst.msk [vmem:[#allocation0 + $0x10] sm:$0x1] %vm19_vm0, %v49_v21   ;;  %54 = vst.msk [vmem:[#allocation0 + $0x4f] sm:$0x2] %vm19_vm0, %v49_v21  }
  0x86   :  { %v147_v22 = vld [vmem:[#allocation0] sm:$0x3]  ;;  %v57_v24 = vpop.permute.xlu0 %56  }
  0x87   :  { %v200_v23 = vld [vmem:[#allocation0 + $0x40] sm:$0x3]  ;;  %v65_v25 = vpop.permute.xlu1 %64   ;;  %v148_v27 = vpack.c.bf16 %v315_v26, %v147_v22  ;;  %60 = vst.msk [vmem:[#allocation0 + $0x11] sm:$0x1] %vm19_vm0, %v57_v24   ;;  %62 = vst.msk [vmem:[#allocation0 + $0x50] sm:$0x2] %vm19_vm0, %v57_v24  }
  0x88   :  { %v201_v28 = vpack.c.bf16 %v315_v26, %v200_v23  ;;  %68 = vst.msk [vmem:[#allocation0 + $0x18] sm:$0x1] %vm19_vm0, %v65_v25   ;;  %70 = vst.msk [vmem:[#allocation0 + $0x57] sm:$0x2] %vm19_vm0, %v65_v25  }
  0x89   :  { %150 = vst [vmem:[%s426_s1] sm:$0x1] %v148_v27 }
  0x8a   :  { %276 = vst [vmem:[%s426_s1 + $0x8] sm:$0x1] %v201_v28  ;;  %v152_v29 = vld [vmem:[#allocation0 + $0x8] sm:$0x3]  ;;  %v73_v31 = vpop.permute.xlu0 %72  }
  0x8b   :  { %v207_v30 = vld [vmem:[#allocation0 + $0x48] sm:$0x3]  ;;  %v81_v32 = vpop.permute.xlu1 %80   ;;  %v153_v33 = vpack.c.bf16 %v315_v26, %v152_v29  ;;  %76 = vst.msk [vmem:[#allocation0 + $0x19] sm:$0x1] %vm19_vm0, %v73_v31   ;;  %78 = vst.msk [vmem:[#allocation0 + $0x58] sm:$0x2] %vm19_vm0, %v73_v31  }
  0x8c   :  { %v208_v34 = vpack.c.bf16 %v315_v26, %v207_v30  ;;  %84 = vst.msk [vmem:[#allocation0 + $0x20] sm:$0x1] %vm19_vm0, %v81_v32   ;;  %86 = vst.msk [vmem:[#allocation0 + $0x5f] sm:$0x2] %vm19_vm0, %v81_v32  }
  0x8d   :  { %269 = vst [vmem:[%s426_s1 + $0x1] sm:$0x1] %v153_v33 }
  0x8e   :  { %277 = vst [vmem:[%s426_s1 + $0x9] sm:$0x1] %v208_v34  ;;  %v158_v35 = vld [vmem:[#allocation0 + $0x10] sm:$0x3]  ;;  %v89_v37 = vpop.permute.xlu0 %88  }
  0x8f   :  { %v214_v36 = vld [vmem:[#allocation0 + $0x50] sm:$0x3]  ;;  %v97_v38 = vpop.permute.xlu1 %96   ;;  %v159_v39 = vpack.c.bf16 %v315_v26, %v158_v35  ;;  %92 = vst.msk [vmem:[#allocation0 + $0x21] sm:$0x1] %vm19_vm0, %v89_v37   ;;  %94 = vst.msk [vmem:[#allocation0 + $0x60] sm:$0x2] %vm19_vm0, %v89_v37  }
  0x90   :  { %v215_v40 = vpack.c.bf16 %v315_v26, %v214_v36  ;;  %100 = vst.msk [vmem:[#allocation0 + $0x28] sm:$0x1] %vm19_vm0, %v97_v38   ;;  %102 = vst.msk [vmem:[#allocation0 + $0x67] sm:$0x2] %vm19_vm0, %v97_v38  }
  0x91   :  { %270 = vst [vmem:[%s426_s1 + $0x2] sm:$0x1] %v159_v39 }
  0x92   :  { %278 = vst [vmem:[%s426_s1 + $0xa] sm:$0x1] %v215_v40  ;;  %v165_v41 = vld [vmem:[#allocation0 + $0x18] sm:$0x3]  ;;  %v105_v43 = vpop.permute.xlu0 %104  }
  0x93   :  { %v221_v42 = vld [vmem:[#allocation0 + $0x58] sm:$0x3]  ;;  %v113_v44 = vpop.permute.xlu1 %112   ;;  %v166_v45 = vpack.c.bf16 %v315_v26, %v165_v41  ;;  %108 = vst.msk [vmem:[#allocation0 + $0x29] sm:$0x1] %vm19_vm0, %v105_v43   ;;  %110 = vst.msk [vmem:[#allocation0 + $0x68] sm:$0x2] %vm19_vm0, %v105_v43  }
  0x94   :  { %v222_v46 = vpack.c.bf16 %v315_v26, %v221_v42  ;;  %116 = vst.msk [vmem:[#allocation0 + $0x30] sm:$0x1] %vm19_vm0, %v113_v44   ;;  %118 = vst.msk [vmem:[#allocation0 + $0x6f] sm:$0x2] %vm19_vm0, %v113_v44  }
  0x95   :  { %271 = vst [vmem:[%s426_s1 + $0x3] sm:$0x1] %v166_v45 }
  0x96   :  { %279 = vst [vmem:[%s426_s1 + $0xb] sm:$0x1] %v222_v46  ;;  %v172_v47 = vld [vmem:[#allocation0 + $0x20] sm:$0x3]  ;;  %v121_v49 = vpop.permute.xlu0 %120  }
  0x97   :  { %v228_v48 = vld [vmem:[#allocation0 + $0x60] sm:$0x3]  ;;  %v129_v50 = vpop.permute.xlu1 %128   ;;  %v173_v51 = vpack.c.bf16 %v315_v26, %v172_v47  ;;  %124 = vst.msk [vmem:[#allocation0 + $0x31] sm:$0x1] %vm19_vm0, %v121_v49   ;;  %126 = vst.msk [vmem:[#allocation0 + $0x70] sm:$0x2] %vm19_vm0, %v121_v49  }
  0x98   :  { %v229_v52 = vpack.c.bf16 %v315_v26, %v228_v48  ;;  %132 = vst.msk [vmem:[#allocation0 + $0x38] sm:$0x1] %vm19_vm0, %v129_v50   ;;  %134 = vst.msk [vmem:[#allocation0 + $0x77] sm:$0x2] %vm19_vm0, %v129_v50  }
  0x99   :  { %272 = vst [vmem:[%s426_s1 + $0x4] sm:$0x1] %v173_v51 }
  0x9a   :  { %280 = vst [vmem:[%s426_s1 + $0xc] sm:$0x1] %v229_v52  ;;  %v179_v53 = vld [vmem:[#allocation0 + $0x28] sm:$0x3]  ;;  %v137_v55 = vpop.permute.xlu0 %136  }
  0x9b   :  { %v235_v54 = vld [vmem:[#allocation0 + $0x68] sm:$0x3]  ;;  %v180_v56 = vpack.c.bf16 %v315_v26, %v179_v53  ;;  %140 = vst.msk [vmem:[#allocation0 + $0x39] sm:$0x1] %vm19_vm0, %v137_v55   ;;  %142 = vst.msk [vmem:[#allocation0 + $0x78] sm:$0x2] %vm19_vm0, %v137_v55  }
  0x9c   :  { %v236_v57 = vpack.c.bf16 %v315_v26, %v235_v54 }
  0x9d   :  { %273 = vst [vmem:[%s426_s1 + $0x5] sm:$0x1] %v180_v56 }
  0x9e   :  { %281 = vst [vmem:[%s426_s1 + $0xd] sm:$0x1] %v236_v57  ;;  %v186_v58 = vld [vmem:[#allocation0 + $0x30] sm:$0x3] }
  0x9f   :  { %v242_v59 = vld [vmem:[#allocation0 + $0x70] sm:$0x3]  ;;  %v187_v60 = vpack.c.bf16 %v315_v26, %v186_v58 }
  0xa0   :  { %v243_v61 = vpack.c.bf16 %v315_v26, %v242_v59 }
  0xa1   :  { %274 = vst [vmem:[%s426_s1 + $0x6] sm:$0x1] %v187_v60 }
  0xa2   :  { %282 = vst [vmem:[%s426_s1 + $0xe] sm:$0x1] %v243_v61  ;;  %v193_v62 = vld [vmem:[#allocation0 + $0x38] sm:$0x3] }
  0xa3   :  { %v249_v63 = vld [vmem:[#allocation0 + $0x78] sm:$0x3]  ;;  %v194_v0 = vpack.c.bf16 %v315_v26, %v193_v62 }
  0xa4   :  { %v250_v1 = vpack.c.bf16 %v315_v26, %v249_v63 }
  0xa5   :  { %275 = vst [vmem:[%s426_s1 + $0x7] sm:$0x1] %v194_v0 }
  0xa6   :  { %283 = vst [vmem:[%s426_s1 + $0xf] sm:$0x1] %v250_v1 }

// kernel: squeeze.5
= control target key start
LH: loop header
LB: loop body
LE: loop exit
PB: predicated region body
PF: predicated region fallthrough
CT: control target
= control target key end

     0   :  { %vm34_vm0 = vcmask 15360   ;;  %s2016_s10 = smov 122   ;;  %s2017_s11 = smov 124   ;;  %v2077_v16 = vmov 0.0   ;;  %s2928_s0 = inlined_call_operand.vmem [shape: bf16[1,2,256], index: 0, kind: input, shape index: {}]   ;;  %s2929_s1 = inlined_call_operand.vmem [shape: bf16[2,32,2,2,2], index: 1, kind: output, shape index: {}]  }
   0x1   :  { %v1823_v0 = vld [vmem:[%s2928_s0 + $0x1] sm:$0x1]  ;;  %v29_v1 = vld [vmem:[%s2928_s0] sm:$0x1]  ;;  %s2015_s0 = smov 126   ;;  %s2018_s12 = smov 120  }
   0x2   :  { %v16_v2 = vunpack.c.l.bf16 %v1823_v0  ;;  %v30_v3 = vunpack.c.l.bf16 %v29_v1  ;;  %s2019_s13 = smov 118   ;;  %s2020_s14 = smov 116  }
   0x3   :  { %s2021_s15 = smov 114   ;;  %s2022_s16 = smov 112  }
   0x4   :  { %19 = vst [vmem:[#allocation1 + $0x8] sm:$0x3] %v16_v2  ;;  %32 = vst [vmem:[#allocation1] sm:$0x3] %v30_v3  ;;  %s2023_s17 = smov 110   ;;  %s2024_s18 = smov 108  }
   0x5   :  { %s2025_s19 = smov 106   ;;  %s2026_s20 = smov 104  }
   0x6   :  { %s2027_s21 = smov 102   ;;  %s2028_s22 = smov 100  }
   0x7   :  { %s2029_s23 = smov 98   ;;  %s2030_s24 = smov 96  }
   0x8   :  { %s2031_s25 = smov 94   ;;  %s2032_s26 = smov 92  }
   0x9   :  { %s2033_s27 = smov 90   ;;  %s2034_s28 = smov 88  }
   0xa   :  { %s2035_s29 = smov 86   ;;  %s2036_s30 = smov 84  }
   0xb   :  { %v2095_v4 = vld.sshfl [vmem:[#allocation1] sm:$0xff pattern:$0x99999810]   ;;  %s2037_s2 = smov 82   ;;  %s2038_s3 = smov 80  }
   0xc   :  { %46 = vrot.lane.b32.xlu0 %v2095_v4, %s2015_s0  ;;  %70 = vrot.lane.b32.xlu1 %v2095_v4, %s2016_s10  ;;  %v33_v5 = vld [vmem:[#allocation1] sm:$0x3]   ;;  %v39_v6 = vld [vmem:[#allocation1 + $0x8] sm:$0x3]   ;;  %s2039_s4 = smov 78   ;;  %s2040_s5 = smov 76  }
   0xd   :  { %35 = vst.msk [vmem:[#allocation0] sm:$0x1] %vm34_vm0, %v33_v5   ;;  %37 = vst.msk [vmem:[#allocation0 + $0x1ff] sm:$0x2] %vm34_vm0, %v33_v5   ;;  %s2041_s6 = smov 74   ;;  %s2042_s7 = smov 72  }
   0xe   :  { %42 = vst.msk [vmem:[#allocation0 + $0x100] sm:$0x1] %vm34_vm0, %v39_v6   ;;  %44 = vst.msk [vmem:[#allocation0 + $0x2ff] sm:$0x2] %vm34_vm0, %v39_v6   ;;  %s2043_s8 = smov 70   ;;  %s2044_s9 = smov 68  }
   0xf   :  { %s2045_s0 = smov 66   ;;  %s2046_s10 = smov 64  }
  0x10   :  { %58 = vrot.lane.b32.xlu0 %v2095_v4, %s2017_s11  ;;  %82 = vrot.lane.b32.xlu1 %v2095_v4, %s2018_s12  ;;  %s2047_s11 = smov 62   ;;  %s2048_s12 = smov 60  }
  0x14   :  { %94 = vrot.lane.b32.xlu0 %v2095_v4, %s2019_s13  ;;  %106 = vrot.lane.b32.xlu1 %v2095_v4, %s2020_s14  ;;  %s2049_s13 = smov 58   ;;  %s2050_s14 = smov 56  }
  0x18   :  { %118 = vrot.lane.b32.xlu0 %v2095_v4, %s2021_s15  ;;  %130 = vrot.lane.b32.xlu1 %v2095_v4, %s2022_s16  ;;  %s2051_s15 = smov 54   ;;  %s2052_s16 = smov 52  }
  0x1c   :  { %142 = vrot.lane.b32.xlu0 %v2095_v4, %s2023_s17  ;;  %154 = vrot.lane.b32.xlu1 %v2095_v4, %s2024_s18  ;;  %s2053_s17 = smov 50   ;;  %s2054_s18 = smov 48  }
  0x20   :  { %166 = vrot.lane.b32.xlu0 %v2095_v4, %s2025_s19  ;;  %178 = vrot.lane.b32.xlu1 %v2095_v4, %s2026_s20  ;;  %s2055_s19 = smov 46   ;;  %s2056_s20 = smov 44  }
  0x24   :  { %190 = vrot.lane.b32.xlu0 %v2095_v4, %s2027_s21  ;;  %202 = vrot.lane.b32.xlu1 %v2095_v4, %s2028_s22  ;;  %s2057_s21 = smov 42   ;;  %s2058_s22 = smov 40  }
  0x28   :  { %214 = vrot.lane.b32.xlu0 %v2095_v4, %s2029_s23  ;;  %226 = vrot.lane.b32.xlu1 %v2095_v4, %s2030_s24  ;;  %s2059_s23 = smov 38   ;;  %s2060_s24 = smov 36  }
  0x2c   :  { %238 = vrot.lane.b32.xlu0 %v2095_v4, %s2031_s25  ;;  %250 = vrot.lane.b32.xlu1 %v2095_v4, %s2032_s26  ;;  %s2061_s25 = smov 34   ;;  %s2062_s26 = smov 32  }
  0x30   :  { %262 = vrot.lane.b32.xlu0 %v2095_v4, %s2033_s27  ;;  %274 = vrot.lane.b32.xlu1 %v2095_v4, %s2034_s28  ;;  %s2063_s27 = smov 30   ;;  %s2064_s28 = smov 28  }
  0x34   :  { %286 = vrot.lane.b32.xlu0 %v2095_v4, %s2035_s29  ;;  %298 = vrot.lane.b32.xlu1 %v2095_v4, %s2036_s30  ;;  %s2065_s29 = smov 26   ;;  %s2066_s30 = smov 24  }
  0x38   :  { %310 = vrot.lane.b32.xlu0 %v2095_v4, %s2037_s2  ;;  %322 = vrot.lane.b32.xlu1 %v2095_v4, %s2038_s3  ;;  %s2067_s2 = smov 22   ;;  %s2068_s3 = smov 20  }
  0x3c   :  { %334 = vrot.lane.b32.xlu0 %v2095_v4, %s2039_s4  ;;  %346 = vrot.lane.b32.xlu1 %v2095_v4, %s2040_s5  ;;  %s2069_s4 = smov 18   ;;  %s2070_s5 = smov 16  }
  0x40   :  { %358 = vrot.lane.b32.xlu0 %v2095_v4, %s2041_s6  ;;  %370 = vrot.lane.b32.xlu1 %v2095_v4, %s2042_s7  ;;  %s2071_s6 = smov 14   ;;  %s2072_s7 = smov 12  }
  0x44   :  { %382 = vrot.lane.b32.xlu0 %v2095_v4, %s2043_s8  ;;  %394 = vrot.lane.b32.xlu1 %v2095_v4, %s2044_s9  ;;  %s2073_s8 = smov 10   ;;  %s2074_s9 = smov 8  }
  0x48   :  { %406 = vrot.lane.b32.xlu0 %v2095_v4, %s2045_s0  ;;  %418 = vrot.lane.b32.xlu1 %v2095_v4, %s2046_s10  ;;  %s2075_s0 = smov 6   ;;  %s2076_s10 = smov 4  }
  0x4c   :  { %430 = vrot.lane.b32.xlu0 %v2095_v4, %s2047_s11  ;;  %442 = vrot.lane.b32.xlu1 %v2095_v4, %s2048_s12  ;;  %s2078_s11 = smov 2  }
  0x50   :  { %454 = vrot.lane.b32.xlu0 %v2095_v4, %s2049_s13  ;;  %466 = vrot.lane.b32.xlu1 %v2095_v4, %s2050_s14 }
  0x54   :  { %478 = vrot.lane.b32.xlu0 %v2095_v4, %s2051_s15  ;;  %490 = vrot.lane.b32.xlu1 %v2095_v4, %s2052_s16 }
  0x58   :  { %502 = vrot.lane.b32.xlu0 %v2095_v4, %s2053_s17  ;;  %514 = vrot.lane.b32.xlu1 %v2095_v4, %s2054_s18 }
  0x5c   :  { %526 = vrot.lane.b32.xlu0 %v2095_v4, %s2055_s19  ;;  %538 = vrot.lane.b32.xlu1 %v2095_v4, %s2056_s20 }
  0x60   :  { %550 = vrot.lane.b32.xlu0 %v2095_v4, %s2057_s21  ;;  %562 = vrot.lane.b32.xlu1 %v2095_v4, %s2058_s22 }
  0x64   :  { %574 = vrot.lane.b32.xlu0 %v2095_v4, %s2059_s23  ;;  %586 = vrot.lane.b32.xlu1 %v2095_v4, %s2060_s24 }
  0x68   :  { %598 = vrot.lane.b32.xlu0 %v2095_v4, %s2061_s25  ;;  %610 = vrot.lane.b32.xlu1 %v2095_v4, %s2062_s26 }
  0x6c   :  { %622 = vrot.lane.b32.xlu0 %v2095_v4, %s2063_s27  ;;  %634 = vrot.lane.b32.xlu1 %v2095_v4, %s2064_s28 }
  0x70   :  { %646 = vrot.lane.b32.xlu0 %v2095_v4, %s2065_s29  ;;  %658 = vrot.lane.b32.xlu1 %v2095_v4, %s2066_s30 }
  0x74   :  { %670 = vrot.lane.b32.xlu0 %v2095_v4, %s2067_s2  ;;  %682 = vrot.lane.b32.xlu1 %v2095_v4, %s2068_s3 }
  0x78   :  { %694 = vrot.lane.b32.xlu0 %v2095_v4, %s2069_s4  ;;  %706 = vrot.lane.b32.xlu1 %v2095_v4, %s2070_s5 }
  0x7c   :  { %718 = vrot.lane.b32.xlu0 %v2095_v4, %s2071_s6  ;;  %730 = vrot.lane.b32.xlu1 %v2095_v4, %s2072_s7 }
  0x7e   :  { %v47_v7 = vpop.permute.xlu0 %46   ;;  %v71_v8 = vpop.permute.xlu1 %70  }
  0x7f   :  { %50 = vst.msk [vmem:[#allocation0 + $0x1] sm:$0x1] %vm34_vm0, %v47_v7   ;;  %52 = vst.msk [vmem:[#allocation0 + $0x200] sm:$0x2] %vm34_vm0, %v47_v7  }
  0x80   :  { %54 = vst.msk [vmem:[#allocation0 + $0xff] sm:$0x4] %vm34_vm0, %v47_v7   ;;  %56 = vst.msk [vmem:[#allocation0 + $0x2fe] sm:$0x8] %vm34_vm0, %v47_v7   ;;  %742 = vrot.lane.b32.xlu0 %v2095_v4, %s2073_s8  ;;  %754 = vrot.lane.b32.xlu1 %v2095_v4, %s2074_s9 }
  0x81   :  { %74 = vst.msk [vmem:[#allocation0 + $0x9] sm:$0x1] %vm34_vm0, %v71_v8   ;;  %76 = vst.msk [vmem:[#allocation0 + $0x208] sm:$0x2] %vm34_vm0, %v71_v8  }
  0x82   :  { %78 = vst.msk [vmem:[#allocation0 + $0x107] sm:$0x4] %vm34_vm0, %v71_v8   ;;  %80 = vst.msk [vmem:[#allocation0 + $0x306] sm:$0x8] %vm34_vm0, %v71_v8   ;;  %v59_v9 = vpop.permute.xlu0 %58   ;;  %v83_v10 = vpop.permute.xlu1 %82  }
  0x83   :  { %62 = vst.msk [vmem:[#allocation0 + $0x8] sm:$0x1] %vm34_vm0, %v59_v9   ;;  %64 = vst.msk [vmem:[#allocation0 + $0x207] sm:$0x2] %vm34_vm0, %v59_v9  }
  0x84   :  { %66 = vst.msk [vmem:[#allocation0 + $0x106] sm:$0x4] %vm34_vm0, %v59_v9   ;;  %68 = vst.msk [vmem:[#allocation0 + $0x305] sm:$0x8] %vm34_vm0, %v59_v9   ;;  %766 = vrot.lane.b32.xlu0 %v2095_v4, %s2075_s0  ;;  %778 = vrot.lane.b32.xlu1 %v2095_v4, %s2076_s10 }
  0x85   :  { %86 = vst.msk [vmem:[#allocation0 + $0x10] sm:$0x1] %vm34_vm0, %v83_v10   ;;  %88 = vst.msk [vmem:[#allocation0 + $0x20f] sm:$0x2] %vm34_vm0, %v83_v10  }
  0x86   :  { %90 = vst.msk [vmem:[#allocation0 + $0x10e] sm:$0x4] %vm34_vm0, %v83_v10   ;;  %92 = vst.msk [vmem:[#allocation0 + $0x30d] sm:$0x8] %vm34_vm0, %v83_v10   ;;  %v805_v11 = vld [vmem:[#allocation0] sm:$0x3]  ;;  %v95_v14 = vpop.permute.xlu0 %94   ;;  %v107_v15 = vpop.permute.xlu1 %106  }
  0x87   :  { %v1026_v12 = vld [vmem:[#allocation0 + $0x100] sm:$0x3]  ;;  %v806_v17 = vpack.c.bf16 %v2077_v16, %v805_v11  ;;  %98 = vst.msk [vmem:[#allocation0 + $0x11] sm:$0x1] %vm34_vm0, %v95_v14   ;;  %100 = vst.msk [vmem:[#allocation0 + $0x210] sm:$0x2] %vm34_vm0, %v95_v14  }
  0x88   :  { %v1250_v13 = vld [vmem:[#allocation0 + $0x200] sm:$0x3]  ;;  %v1027_v18 = vpack.c.bf16 %v2077_v16, %v1026_v12  ;;  %102 = vst.msk [vmem:[#allocation0 + $0x10f] sm:$0x4] %vm34_vm0, %v95_v14   ;;  %104 = vst.msk [vmem:[#allocation0 + $0x30e] sm:$0x8] %vm34_vm0, %v95_v14   ;;  %790 = vrot.lane.b32.xlu0 %v2095_v4, %s2078_s11 }
  0x89   :  { %v1251_v19 = vpack.c.bf16 %v2077_v16, %v1250_v13  ;;  %v1474_v20 = vld [vmem:[#allocation0 + $0x300] sm:$0x3]  ;;  %110 = vst.msk [vmem:[#allocation0 + $0x18] sm:$0x1] %vm34_vm0, %v107_v15   ;;  %112 = vst.msk [vmem:[#allocation0 + $0x217] sm:$0x2] %vm34_vm0, %v107_v15  }
  0x8a   :  { %114 = vst.msk [vmem:[#allocation0 + $0x116] sm:$0x4] %vm34_vm0, %v107_v15   ;;  %116 = vst.msk [vmem:[#allocation0 + $0x315] sm:$0x8] %vm34_vm0, %v107_v15   ;;  %v1475_v21 = vpack.c.bf16 %v2077_v16, %v1474_v20  ;;  %v1257_v23 = vld [vmem:[#allocation0 + $0x208] sm:$0x3]  ;;  %v119_v25 = vpop.permute.xlu0 %118   ;;  %v131_v26 = vpop.permute.xlu1 %130  }
  0x8b   :  { %808 = vst [vmem:[%s2929_s1] sm:$0x1] %v806_v17  ;;  %1855 = vst [vmem:[%s2929_s1 + $0x20] sm:$0x1] %v1027_v18  ;;  %v1033_v22 = vld [vmem:[#allocation0 + $0x108] sm:$0x3]  ;;  %v1258_v28 = vpack.c.bf16 %v2077_v16, %v1257_v23 }
  0x8c   :  { %1887 = vst [vmem:[%s2929_s1 + $0x40] sm:$0x1] %v1251_v19  ;;  %1919 = vst [vmem:[%s2929_s1 + $0x60] sm:$0x1] %v1475_v21  ;;  %v1481_v24 = vld [vmem:[#allocation0 + $0x308] sm:$0x3]  ;;  %v1034_v27 = vpack.c.bf16 %v2077_v16, %v1033_v22 }
  0x8d   :  { %v1482_v29 = vpack.c.bf16 %v2077_v16, %v1481_v24  ;;  %v810_v30 = vld [vmem:[#allocation0 + $0x8] sm:$0x3]  ;;  %122 = vst.msk [vmem:[#allocation0 + $0x19] sm:$0x1] %vm34_vm0, %v119_v25   ;;  %124 = vst.msk [vmem:[#allocation0 + $0x218] sm:$0x2] %vm34_vm0, %v119_v25  }
  0x8e   :  { %126 = vst.msk [vmem:[#allocation0 + $0x117] sm:$0x4] %vm34_vm0, %v119_v25   ;;  %128 = vst.msk [vmem:[#allocation0 + $0x316] sm:$0x8] %vm34_vm0, %v119_v25   ;;  %v811_v31 = vpack.c.bf16 %v2077_v16, %v810_v30  ;;  %v816_v33 = vld [vmem:[#allocation0 + $0x10] sm:$0x3]  ;;  %v143_v35 = vpop.permute.xlu0 %142   ;;  %v155_v36 = vpop.permute.xlu1 %154  }
  0x8f   :  { %134 = vst.msk [vmem:[#allocation0 + $0x20] sm:$0x1] %vm34_vm0, %v131_v26   ;;  %136 = vst.msk [vmem:[#allocation0 + $0x21f] sm:$0x2] %vm34_vm0, %v131_v26   ;;  %v1488_v32 = vld [vmem:[#allocation0 + $0x310] sm:$0x3]  ;;  %v817_v39 = vpack.c.bf16 %v2077_v16, %v816_v33 }
  0x90   :  { %138 = vst.msk [vmem:[#allocation0 + $0x11e] sm:$0x4] %vm34_vm0, %v131_v26   ;;  %140 = vst.msk [vmem:[#allocation0 + $0x31d] sm:$0x8] %vm34_vm0, %v131_v26   ;;  %v1040_v34 = vld [vmem:[#allocation0 + $0x110] sm:$0x3]  ;;  %v1489_v37 = vpack.c.bf16 %v2077_v16, %v1488_v32 }
  0x91   :  { %1856 = vst [vmem:[%s2929_s1 + $0x21] sm:$0x1] %v1034_v27  ;;  %1888 = vst [vmem:[%s2929_s1 + $0x41] sm:$0x1] %v1258_v28  ;;  %v1264_v38 = vld [vmem:[#allocation0 + $0x210] sm:$0x3]  ;;  %v1041_v40 = vpack.c.bf16 %v2077_v16, %v1040_v34 }
  0x92   :  { %1920 = vst [vmem:[%s2929_s1 + $0x61] sm:$0x1] %v1482_v29  ;;  %1824 = vst [vmem:[%s2929_s1 + $0x1] sm:$0x1] %v811_v31  ;;  %v1265_v41 = vpack.c.bf16 %v2077_v16, %v1264_v38  ;;  %v167_v45 = vpop.permute.xlu0 %166   ;;  %v179_v46 = vpop.permute.xlu1 %178  }
  0x93   :  { %146 = vst.msk [vmem:[#allocation0 + $0x21] sm:$0x1] %vm34_vm0, %v143_v35   ;;  %148 = vst.msk [vmem:[#allocation0 + $0x220] sm:$0x2] %vm34_vm0, %v143_v35  }
  0x94   :  { %150 = vst.msk [vmem:[#allocation0 + $0x11f] sm:$0x4] %vm34_vm0, %v143_v35   ;;  %152 = vst.msk [vmem:[#allocation0 + $0x31e] sm:$0x8] %vm34_vm0, %v143_v35   ;;  %v1271_v42 = vld [vmem:[#allocation0 + $0x218] sm:$0x3] }
  0x95   :  { %158 = vst.msk [vmem:[#allocation0 + $0x28] sm:$0x1] %vm34_vm0, %v155_v36   ;;  %160 = vst.msk [vmem:[#allocation0 + $0x227] sm:$0x2] %vm34_vm0, %v155_v36   ;;  %v1495_v43 = vld [vmem:[#allocation0 + $0x318] sm:$0x3]  ;;  %v1272_v47 = vpack.c.bf16 %v2077_v16, %v1271_v42 }
  0x96   :  { %162 = vst.msk [vmem:[#allocation0 + $0x126] sm:$0x4] %vm34_vm0, %v155_v36   ;;  %164 = vst.msk [vmem:[#allocation0 + $0x325] sm:$0x8] %vm34_vm0, %v155_v36   ;;  %v823_v44 = vld [vmem:[#allocation0 + $0x18] sm:$0x3]  ;;  %v1496_v48 = vpack.c.bf16 %v2077_v16, %v1495_v43  ;;  %v191_v55 = vpop.permute.xlu0 %190   ;;  %v203_v56 = vpop.permute.xlu1 %202  }
  0x97   :  { %1921 = vst [vmem:[%s2929_s1 + $0x62] sm:$0x1] %v1489_v37  ;;  %1825 = vst [vmem:[%s2929_s1 + $0x2] sm:$0x1] %v817_v39  ;;  %v1047_v49 = vld [vmem:[#allocation0 + $0x118] sm:$0x3]  ;;  %v824_v50 = vpack.c.bf16 %v2077_v16, %v823_v44 }
  0x98   :  { %1857 = vst [vmem:[%s2929_s1 + $0x22] sm:$0x1] %v1041_v40  ;;  %1889 = vst [vmem:[%s2929_s1 + $0x42] sm:$0x1] %v1265_v41  ;;  %v1048_v51 = vpack.c.bf16 %v2077_v16, %v1047_v49 }
  0x99   :  { %170 = vst.msk [vmem:[#allocation0 + $0x29] sm:$0x1] %vm34_vm0, %v167_v45   ;;  %172 = vst.msk [vmem:[#allocation0 + $0x228] sm:$0x2] %vm34_vm0, %v167_v45  }
  0x9a   :  { %174 = vst.msk [vmem:[#allocation0 + $0x127] sm:$0x4] %vm34_vm0, %v167_v45   ;;  %176 = vst.msk [vmem:[#allocation0 + $0x326] sm:$0x8] %vm34_vm0, %v167_v45   ;;  %v830_v52 = vld [vmem:[#allocation0 + $0x20] sm:$0x3]  ;;  %v215_v1 = vpop.permute.xlu0 %214   ;;  %v227_v2 = vpop.permute.xlu1 %226  }
  0x9b   :  { %182 = vst.msk [vmem:[#allocation0 + $0x30] sm:$0x1] %vm34_vm0, %v179_v46   ;;  %184 = vst.msk [vmem:[#allocation0 + $0x22f] sm:$0x2] %vm34_vm0, %v179_v46   ;;  %v1054_v53 = vld [vmem:[#allocation0 + $0x120] sm:$0x3]  ;;  %v831_v58 = vpack.c.bf16 %v2077_v16, %v830_v52 }
  0x9c   :  { %186 = vst.msk [vmem:[#allocation0 + $0x12e] sm:$0x4] %vm34_vm0, %v179_v46   ;;  %188 = vst.msk [vmem:[#allocation0 + $0x32d] sm:$0x8] %vm34_vm0, %v179_v46   ;;  %v1278_v54 = vld [vmem:[#allocation0 + $0x220] sm:$0x3]  ;;  %v1055_v59 = vpack.c.bf16 %v2077_v16, %v1054_v53 }
  0x9d   :  { %1890 = vst [vmem:[%s2929_s1 + $0x43] sm:$0x1] %v1272_v47  ;;  %1922 = vst [vmem:[%s2929_s1 + $0x63] sm:$0x1] %v1496_v48  ;;  %v1502_v57 = vld [vmem:[#allocation0 + $0x320] sm:$0x3]  ;;  %v1279_v60 = vpack.c.bf16 %v2077_v16, %v1278_v54 }
  0x9e   :  { %1826 = vst [vmem:[%s2929_s1 + $0x3] sm:$0x1] %v824_v50  ;;  %1858 = vst [vmem:[%s2929_s1 + $0x23] sm:$0x1] %v1048_v51  ;;  %v1503_v61 = vpack.c.bf16 %v2077_v16, %v1502_v57  ;;  %v239_v11 = vpop.permute.xlu0 %238   ;;  %v251_v12 = vpop.permute.xlu1 %250  }
  0x9f   :  { %194 = vst.msk [vmem:[#allocation0 + $0x31] sm:$0x1] %vm34_vm0, %v191_v55   ;;  %196 = vst.msk [vmem:[#allocation0 + $0x230] sm:$0x2] %vm34_vm0, %v191_v55  }
  0xa0   :  { %198 = vst.msk [vmem:[#allocation0 + $0x12f] sm:$0x4] %vm34_vm0, %v191_v55   ;;  %200 = vst.msk [vmem:[#allocation0 + $0x32e] sm:$0x8] %vm34_vm0, %v191_v55   ;;  %v837_v63 = vld [vmem:[#allocation0 + $0x28] sm:$0x3] }
  0xa1   :  { %206 = vst.msk [vmem:[#allocation0 + $0x38] sm:$0x1] %vm34_vm0, %v203_v56   ;;  %208 = vst.msk [vmem:[#allocation0 + $0x237] sm:$0x2] %vm34_vm0, %v203_v56   ;;  %v1509_v62 = vld [vmem:[#allocation0 + $0x328] sm:$0x3]  ;;  %v838_v5 = vpack.c.bf16 %v2077_v16, %v837_v63 }
  0xa2   :  { %210 = vst.msk [vmem:[#allocation0 + $0x136] sm:$0x4] %vm34_vm0, %v203_v56   ;;  %212 = vst.msk [vmem:[#allocation0 + $0x335] sm:$0x8] %vm34_vm0, %v203_v56   ;;  %v1061_v0 = vld [vmem:[#allocation0 + $0x128] sm:$0x3]  ;;  %v1510_v3 = vpack.c.bf16 %v2077_v16, %v1509_v62  ;;  %v263_v22 = vpop.permute.xlu0 %262   ;;  %v275_v23 = vpop.permute.xlu1 %274  }
  0xa3   :  { %1827 = vst [vmem:[%s2929_s1 + $0x4] sm:$0x1] %v831_v58  ;;  %1859 = vst [vmem:[%s2929_s1 + $0x24] sm:$0x1] %v1055_v59  ;;  %v1285_v4 = vld [vmem:[#allocation0 + $0x228] sm:$0x3]  ;;  %v1062_v6 = vpack.c.bf16 %v2077_v16, %v1061_v0 }
  0xa4   :  { %1891 = vst [vmem:[%s2929_s1 + $0x44] sm:$0x1] %v1279_v60  ;;  %1923 = vst [vmem:[%s2929_s1 + $0x64] sm:$0x1] %v1503_v61  ;;  %v1286_v7 = vpack.c.bf16 %v2077_v16, %v1285_v4 }
  0xa5   :  { %218 = vst.msk [vmem:[#allocation0 + $0x39] sm:$0x1] %vm34_vm0, %v215_v1   ;;  %220 = vst.msk [vmem:[#allocation0 + $0x238] sm:$0x2] %vm34_vm0, %v215_v1  }
  0xa6   :  { %222 = vst.msk [vmem:[#allocation0 + $0x137] sm:$0x4] %vm34_vm0, %v215_v1   ;;  %224 = vst.msk [vmem:[#allocation0 + $0x336] sm:$0x8] %vm34_vm0, %v215_v1   ;;  %v844_v8 = vld [vmem:[#allocation0 + $0x30] sm:$0x3]  ;;  %v287_v32 = vpop.permute.xlu0 %286   ;;  %v299_v33 = vpop.permute.xlu1 %298  }
  0xa7   :  { %230 = vst.msk [vmem:[#allocation0 + $0x40] sm:$0x1] %vm34_vm0, %v227_v2   ;;  %232 = vst.msk [vmem:[#allocation0 + $0x23f] sm:$0x2] %vm34_vm0, %v227_v2   ;;  %v1516_v9 = vld [vmem:[#allocation0 + $0x330] sm:$0x3]  ;;  %v845_v13 = vpack.c.bf16 %v2077_v16, %v844_v8 }
  0xa8   :  { %234 = vst.msk [vmem:[#allocation0 + $0x13e] sm:$0x4] %vm34_vm0, %v227_v2   ;;  %236 = vst.msk [vmem:[#allocation0 + $0x33d] sm:$0x8] %vm34_vm0, %v227_v2   ;;  %v1068_v10 = vld [vmem:[#allocation0 + $0x130] sm:$0x3]  ;;  %v1517_v14 = vpack.c.bf16 %v2077_v16, %v1516_v9 }
  0xa9   :  { %1924 = vst [vmem:[%s2929_s1 + $0x65] sm:$0x1] %v1510_v3  ;;  %1828 = vst [vmem:[%s2929_s1 + $0x5] sm:$0x1] %v838_v5  ;;  %v1292_v15 = vld [vmem:[#allocation0 + $0x230] sm:$0x3]  ;;  %v1069_v17 = vpack.c.bf16 %v2077_v16, %v1068_v10 }
  0xaa   :  { %1860 = vst [vmem:[%s2929_s1 + $0x25] sm:$0x1] %v1062_v6  ;;  %1892 = vst [vmem:[%s2929_s1 + $0x45] sm:$0x1] %v1286_v7  ;;  %v1293_v18 = vpack.c.bf16 %v2077_v16, %v1292_v15  ;;  %v311_v42 = vpop.permute.xlu0 %310   ;;  %v323_v43 = vpop.permute.xlu1 %322  }
  0xab   :  { %242 = vst.msk [vmem:[#allocation0 + $0x41] sm:$0x1] %vm34_vm0, %v239_v11   ;;  %244 = vst.msk [vmem:[#allocation0 + $0x240] sm:$0x2] %vm34_vm0, %v239_v11  }
  0xac   :  { %246 = vst.msk [vmem:[#allocation0 + $0x13f] sm:$0x4] %vm34_vm0, %v239_v11   ;;  %248 = vst.msk [vmem:[#allocation0 + $0x33e] sm:$0x8] %vm34_vm0, %v239_v11   ;;  %v851_v19 = vld [vmem:[#allocation0 + $0x38] sm:$0x3] }
  0xad   :  { %254 = vst.msk [vmem:[#allocation0 + $0x48] sm:$0x1] %vm34_vm0, %v251_v12   ;;  %256 = vst.msk [vmem:[#allocation0 + $0x247] sm:$0x2] %vm34_vm0, %v251_v12   ;;  %v1523_v20 = vld [vmem:[#allocation0 + $0x338] sm:$0x3]  ;;  %v852_v24 = vpack.c.bf16 %v2077_v16, %v851_v19 }
  0xae   :  { %258 = vst.msk [vmem:[#allocation0 + $0x146] sm:$0x4] %vm34_vm0, %v251_v12   ;;  %260 = vst.msk [vmem:[#allocation0 + $0x345] sm:$0x8] %vm34_vm0, %v251_v12   ;;  %v1075_v21 = vld [vmem:[#allocation0 + $0x138] sm:$0x3]  ;;  %v1524_v25 = vpack.c.bf16 %v2077_v16, %v1523_v20  ;;  %v335_v52 = vpop.permute.xlu0 %334   ;;  %v347_v53 = vpop.permute.xlu1 %346  }
  0xaf   :  { %1829 = vst [vmem:[%s2929_s1 + $0x6] sm:$0x1] %v845_v13  ;;  %1925 = vst [vmem:[%s2929_s1 + $0x66] sm:$0x1] %v1517_v14  ;;  %v1299_v26 = vld [vmem:[#allocation0 + $0x238] sm:$0x3]  ;;  %v1076_v27 = vpack.c.bf16 %v2077_v16, %v1075_v21 }
  0xb0   :  { %1861 = vst [vmem:[%s2929_s1 + $0x26] sm:$0x1] %v1069_v17  ;;  %1893 = vst [vmem:[%s2929_s1 + $0x46] sm:$0x1] %v1293_v18  ;;  %v1300_v28 = vpack.c.bf16 %v2077_v16, %v1299_v26 }
  0xb1   :  { %266 = vst.msk [vmem:[#allocation0 + $0x49] sm:$0x1] %vm34_vm0, %v263_v22   ;;  %268 = vst.msk [vmem:[#allocation0 + $0x248] sm:$0x2] %vm34_vm0, %v263_v22  }
  0xb2   :  { %270 = vst.msk [vmem:[#allocation0 + $0x147] sm:$0x4] %vm34_vm0, %v263_v22   ;;  %272 = vst.msk [vmem:[#allocation0 + $0x346] sm:$0x8] %vm34_vm0, %v263_v22   ;;  %v858_v29 = vld [vmem:[#allocation0 + $0x40] sm:$0x3]  ;;  %v359_v62 = vpop.permute.xlu0 %358   ;;  %v371_v63 = vpop.permute.xlu1 %370  }
  0xb3   :  { %278 = vst.msk [vmem:[#allocation0 + $0x50] sm:$0x1] %vm34_vm0, %v275_v23   ;;  %280 = vst.msk [vmem:[#allocation0 + $0x24f] sm:$0x2] %vm34_vm0, %v275_v23   ;;  %v1306_v30 = vld [vmem:[#allocation0 + $0x240] sm:$0x3]  ;;  %v859_v34 = vpack.c.bf16 %v2077_v16, %v858_v29 }
  0xb4   :  { %282 = vst.msk [vmem:[#allocation0 + $0x14e] sm:$0x4] %vm34_vm0, %v275_v23   ;;  %284 = vst.msk [vmem:[#allocation0 + $0x34d] sm:$0x8] %vm34_vm0, %v275_v23   ;;  %v1530_v31 = vld [vmem:[#allocation0 + $0x340] sm:$0x3]  ;;  %v1307_v35 = vpack.c.bf16 %v2077_v16, %v1306_v30 }
  0xb5   :  { %1830 = vst [vmem:[%s2929_s1 + $0x7] sm:$0x1] %v852_v24  ;;  %1926 = vst [vmem:[%s2929_s1 + $0x67] sm:$0x1] %v1524_v25  ;;  %v1531_v36 = vpack.c.bf16 %v2077_v16, %v1530_v31  ;;  %v1082_v37 = vld [vmem:[#allocation0 + $0x140] sm:$0x3] }
  0xb6   :  { %1862 = vst [vmem:[%s2929_s1 + $0x27] sm:$0x1] %v1076_v27  ;;  %1894 = vst [vmem:[%s2929_s1 + $0x47] sm:$0x1] %v1300_v28  ;;  %v1083_v38 = vpack.c.bf16 %v2077_v16, %v1082_v37  ;;  %v383_v8 = vpop.permute.xlu0 %382   ;;  %v395_v9 = vpop.permute.xlu1 %394  }
  0xb7   :  { %290 = vst.msk [vmem:[#allocation0 + $0x51] sm:$0x1] %vm34_vm0, %v287_v32   ;;  %292 = vst.msk [vmem:[#allocation0 + $0x250] sm:$0x2] %vm34_vm0, %v287_v32  }
  0xb8   :  { %294 = vst.msk [vmem:[#allocation0 + $0x14f] sm:$0x4] %vm34_vm0, %v287_v32   ;;  %296 = vst.msk [vmem:[#allocation0 + $0x34e] sm:$0x8] %vm34_vm0, %v287_v32   ;;  %v1313_v39 = vld [vmem:[#allocation0 + $0x248] sm:$0x3] }
  0xb9   :  { %302 = vst.msk [vmem:[#allocation0 + $0x58] sm:$0x1] %vm34_vm0, %v299_v33   ;;  %304 = vst.msk [vmem:[#allocation0 + $0x257] sm:$0x2] %vm34_vm0, %v299_v33   ;;  %v865_v40 = vld [vmem:[#allocation0 + $0x48] sm:$0x3]  ;;  %v1314_v44 = vpack.c.bf16 %v2077_v16, %v1313_v39 }
  0xba   :  { %306 = vst.msk [vmem:[#allocation0 + $0x156] sm:$0x4] %vm34_vm0, %v299_v33   ;;  %308 = vst.msk [vmem:[#allocation0 + $0x355] sm:$0x8] %vm34_vm0, %v299_v33   ;;  %v1089_v41 = vld [vmem:[#allocation0 + $0x148] sm:$0x3]  ;;  %v866_v46 = vpack.c.bf16 %v2077_v16, %v865_v40  ;;  %v407_v19 = vpop.permute.xlu0 %406   ;;  %v419_v20 = vpop.permute.xlu1 %418  }
  0xbb   :  { %1831 = vst [vmem:[%s2929_s1 + $0x8] sm:$0x1] %v859_v34  ;;  %1895 = vst [vmem:[%s2929_s1 + $0x48] sm:$0x1] %v1307_v35  ;;  %v1537_v45 = vld [vmem:[#allocation0 + $0x348] sm:$0x3]  ;;  %v1090_v47 = vpack.c.bf16 %v2077_v16, %v1089_v41 }
  0xbc   :  { %1927 = vst [vmem:[%s2929_s1 + $0x68] sm:$0x1] %v1531_v36  ;;  %1863 = vst [vmem:[%s2929_s1 + $0x28] sm:$0x1] %v1083_v38  ;;  %v1538_v48 = vpack.c.bf16 %v2077_v16, %v1537_v45 }
  0xbd   :  { %314 = vst.msk [vmem:[#allocation0 + $0x59] sm:$0x1] %vm34_vm0, %v311_v42   ;;  %316 = vst.msk [vmem:[#allocation0 + $0x258] sm:$0x2] %vm34_vm0, %v311_v42  }
  0xbe   :  { %318 = vst.msk [vmem:[#allocation0 + $0x157] sm:$0x4] %vm34_vm0, %v311_v42   ;;  %320 = vst.msk [vmem:[#allocation0 + $0x356] sm:$0x8] %vm34_vm0, %v311_v42   ;;  %v872_v49 = vld [vmem:[#allocation0 + $0x50] sm:$0x3]  ;;  %v431_v29 = vpop.permute.xlu0 %430   ;;  %v443_v30 = vpop.permute.xlu1 %442  }
  0xbf   :  { %326 = vst.msk [vmem:[#allocation0 + $0x60] sm:$0x1] %vm34_vm0, %v323_v43   ;;  %328 = vst.msk [vmem:[#allocation0 + $0x25f] sm:$0x2] %vm34_vm0, %v323_v43   ;;  %v1096_v50 = vld [vmem:[#allocation0 + $0x150] sm:$0x3]  ;;  %v873_v54 = vpack.c.bf16 %v2077_v16, %v872_v49 }
  0xc0   :  { %330 = vst.msk [vmem:[#allocation0 + $0x15e] sm:$0x4] %vm34_vm0, %v323_v43   ;;  %332 = vst.msk [vmem:[#allocation0 + $0x35d] sm:$0x8] %vm34_vm0, %v323_v43   ;;  %v1320_v51 = vld [vmem:[#allocation0 + $0x250] sm:$0x3]  ;;  %v1097_v55 = vpack.c.bf16 %v2077_v16, %v1096_v50 }
  0xc1   :  { %1896 = vst [vmem:[%s2929_s1 + $0x49] sm:$0x1] %v1314_v44  ;;  %1832 = vst [vmem:[%s2929_s1 + $0x9] sm:$0x1] %v866_v46  ;;  %v1544_v56 = vld [vmem:[#allocation0 + $0x350] sm:$0x3]  ;;  %v1321_v57 = vpack.c.bf16 %v2077_v16, %v1320_v51 }
  0xc2   :  { %1864 = vst [vmem:[%s2929_s1 + $0x29] sm:$0x1] %v1090_v47  ;;  %1928 = vst [vmem:[%s2929_s1 + $0x69] sm:$0x1] %v1538_v48  ;;  %v1545_v58 = vpack.c.bf16 %v2077_v16, %v1544_v56  ;;  %v455_v39 = vpop.permute.xlu0 %454   ;;  %v467_v40 = vpop.permute.xlu1 %466  }
  0xc3   :  { %338 = vst.msk [vmem:[#allocation0 + $0x61] sm:$0x1] %vm34_vm0, %v335_v52   ;;  %340 = vst.msk [vmem:[#allocation0 + $0x260] sm:$0x2] %vm34_vm0, %v335_v52  }
  0xc4   :  { %342 = vst.msk [vmem:[#allocation0 + $0x15f] sm:$0x4] %vm34_vm0, %v335_v52   ;;  %344 = vst.msk [vmem:[#allocation0 + $0x35e] sm:$0x8] %vm34_vm0, %v335_v52   ;;  %v879_v59 = vld [vmem:[#allocation0 + $0x58] sm:$0x3] }
  0xc5   :  { %350 = vst.msk [vmem:[#allocation0 + $0x68] sm:$0x1] %vm34_vm0, %v347_v53   ;;  %352 = vst.msk [vmem:[#allocation0 + $0x267] sm:$0x2] %vm34_vm0, %v347_v53   ;;  %v1103_v60 = vld [vmem:[#allocation0 + $0x158] sm:$0x3]  ;;  %v880_v0 = vpack.c.bf16 %v2077_v16, %v879_v59 }
  0xc6   :  { %354 = vst.msk [vmem:[#allocation0 + $0x166] sm:$0x4] %vm34_vm0, %v347_v53   ;;  %356 = vst.msk [vmem:[#allocation0 + $0x365] sm:$0x8] %vm34_vm0, %v347_v53   ;;  %v1551_v61 = vld [vmem:[#allocation0 + $0x358] sm:$0x3]  ;;  %v1104_v1 = vpack.c.bf16 %v2077_v16, %v1103_v60  ;;  %v479_v49 = vpop.permute.xlu0 %478   ;;  %v491_v50 = vpop.permute.xlu1 %490  }
  0xc7   :  { %1833 = vst [vmem:[%s2929_s1 + $0xa] sm:$0x1] %v873_v54  ;;  %1865 = vst [vmem:[%s2929_s1 + $0x2a] sm:$0x1] %v1097_v55  ;;  %v1552_v2 = vpack.c.bf16 %v2077_v16, %v1551_v61  ;;  %v1327_v3 = vld [vmem:[#allocation0 + $0x258] sm:$0x3] }
  0xc8   :  { %1897 = vst [vmem:[%s2929_s1 + $0x4a] sm:$0x1] %v1321_v57  ;;  %1929 = vst [vmem:[%s2929_s1 + $0x6a] sm:$0x1] %v1545_v58  ;;  %v1328_v4 = vpack.c.bf16 %v2077_v16, %v1327_v3 }
  0xc9   :  { %362 = vst.msk [vmem:[#allocation0 + $0x69] sm:$0x1] %vm34_vm0, %v359_v62   ;;  %364 = vst.msk [vmem:[#allocation0 + $0x268] sm:$0x2] %vm34_vm0, %v359_v62  }
  0xca   :  { %366 = vst.msk [vmem:[#allocation0 + $0x167] sm:$0x4] %vm34_vm0, %v359_v62   ;;  %368 = vst.msk [vmem:[#allocation0 + $0x366] sm:$0x8] %vm34_vm0, %v359_v62   ;;  %v1334_v5 = vld [vmem:[#allocation0 + $0x260] sm:$0x3]  ;;  %v503_v59 = vpop.permute.xlu0 %502   ;;  %v515_v60 = vpop.permute.xlu1 %514  }
  0xcb   :  { %374 = vst.msk [vmem:[#allocation0 + $0x70] sm:$0x1] %vm34_vm0, %v371_v63   ;;  %376 = vst.msk [vmem:[#allocation0 + $0x26f] sm:$0x2] %vm34_vm0, %v371_v63   ;;  %v886_v6 = vld [vmem:[#allocation0 + $0x60] sm:$0x3]  ;;  %v1335_v10 = vpack.c.bf16 %v2077_v16, %v1334_v5 }
  0xcc   :  { %378 = vst.msk [vmem:[#allocation0 + $0x16e] sm:$0x4] %vm34_vm0, %v371_v63   ;;  %380 = vst.msk [vmem:[#allocation0 + $0x36d] sm:$0x8] %vm34_vm0, %v371_v63   ;;  %v1110_v7 = vld [vmem:[#allocation0 + $0x160] sm:$0x3]  ;;  %v887_v12 = vpack.c.bf16 %v2077_v16, %v886_v6 }
  0xcd   :  { %1834 = vst [vmem:[%s2929_s1 + $0xb] sm:$0x1] %v880_v0  ;;  %1866 = vst [vmem:[%s2929_s1 + $0x2b] sm:$0x1] %v1104_v1  ;;  %v1558_v11 = vld [vmem:[#allocation0 + $0x360] sm:$0x3]  ;;  %v1111_v13 = vpack.c.bf16 %v2077_v16, %v1110_v7 }
  0xce   :  { %1930 = vst [vmem:[%s2929_s1 + $0x6b] sm:$0x1] %v1552_v2  ;;  %1898 = vst [vmem:[%s2929_s1 + $0x4b] sm:$0x1] %v1328_v4  ;;  %v1559_v14 = vpack.c.bf16 %v2077_v16, %v1558_v11  ;;  %v527_v5 = vpop.permute.xlu0 %526   ;;  %v539_v6 = vpop.permute.xlu1 %538  }
  0xcf   :  { %386 = vst.msk [vmem:[#allocation0 + $0x71] sm:$0x1] %vm34_vm0, %v383_v8   ;;  %388 = vst.msk [vmem:[#allocation0 + $0x270] sm:$0x2] %vm34_vm0, %v383_v8  }
  0xd0   :  { %390 = vst.msk [vmem:[#allocation0 + $0x16f] sm:$0x4] %vm34_vm0, %v383_v8   ;;  %392 = vst.msk [vmem:[#allocation0 + $0x36e] sm:$0x8] %vm34_vm0, %v383_v8   ;;  %v893_v15 = vld [vmem:[#allocation0 + $0x68] sm:$0x3] }
  0xd1   :  { %398 = vst.msk [vmem:[#allocation0 + $0x78] sm:$0x1] %vm34_vm0, %v395_v9   ;;  %400 = vst.msk [vmem:[#allocation0 + $0x277] sm:$0x2] %vm34_vm0, %v395_v9   ;;  %v1117_v17 = vld [vmem:[#allocation0 + $0x168] sm:$0x3]  ;;  %v894_v21 = vpack.c.bf16 %v2077_v16, %v893_v15 }
  0xd2   :  { %402 = vst.msk [vmem:[#allocation0 + $0x176] sm:$0x4] %vm34_vm0, %v395_v9   ;;  %404 = vst.msk [vmem:[#allocation0 + $0x375] sm:$0x8] %vm34_vm0, %v395_v9   ;;  %v1565_v18 = vld [vmem:[#allocation0 + $0x368] sm:$0x3]  ;;  %v1118_v22 = vpack.c.bf16 %v2077_v16, %v1117_v17  ;;  %v551_v15 = vpop.permute.xlu0 %550   ;;  %v563_v17 = vpop.permute.xlu1 %562  }
  0xd3   :  { %1899 = vst [vmem:[%s2929_s1 + $0x4c] sm:$0x1] %v1335_v10  ;;  %1835 = vst [vmem:[%s2929_s1 + $0xc] sm:$0x1] %v887_v12  ;;  %v1566_v23 = vpack.c.bf16 %v2077_v16, %v1565_v18  ;;  %v1341_v24 = vld [vmem:[#allocation0 + $0x268] sm:$0x3] }
  0xd4   :  { %1867 = vst [vmem:[%s2929_s1 + $0x2c] sm:$0x1] %v1111_v13  ;;  %1931 = vst [vmem:[%s2929_s1 + $0x6c] sm:$0x1] %v1559_v14  ;;  %v1342_v25 = vpack.c.bf16 %v2077_v16, %v1341_v24 }
  0xd5   :  { %410 = vst.msk [vmem:[#allocation0 + $0x79] sm:$0x1] %vm34_vm0, %v407_v19   ;;  %412 = vst.msk [vmem:[#allocation0 + $0x278] sm:$0x2] %vm34_vm0, %v407_v19  }
  0xd6   :  { %414 = vst.msk [vmem:[#allocation0 + $0x177] sm:$0x4] %vm34_vm0, %v407_v19   ;;  %416 = vst.msk [vmem:[#allocation0 + $0x376] sm:$0x8] %vm34_vm0, %v407_v19   ;;  %v1348_v26 = vld [vmem:[#allocation0 + $0x270] sm:$0x3] }
  0xd7   :  { %422 = vst.msk [vmem:[#allocation0 + $0x80] sm:$0x1] %vm34_vm0, %v419_v20   ;;  %424 = vst.msk [vmem:[#allocation0 + $0x27f] sm:$0x2] %vm34_vm0, %v419_v20   ;;  %v1572_v27 = vld [vmem:[#allocation0 + $0x370] sm:$0x3]  ;;  %v1349_v31 = vpack.c.bf16 %v2077_v16, %v1348_v26  ;;  %v575_v26 = vpop.permute.xlu0 %574  }
  0xd8   :  { %426 = vst.msk [vmem:[#allocation0 + $0x17e] sm:$0x4] %vm34_vm0, %v419_v20   ;;  %428 = vst.msk [vmem:[#allocation0 + $0x37d] sm:$0x8] %vm34_vm0, %v419_v20   ;;  %v900_v28 = vld [vmem:[#allocation0 + $0x70] sm:$0x3]  ;;  %v1573_v32 = vpack.c.bf16 %v2077_v16, %v1572_v27  ;;  %v587_v27 = vpop.permute.xlu1 %586  }
  0xd9   :  { %1836 = vst [vmem:[%s2929_s1 + $0xd] sm:$0x1] %v894_v21  ;;  %1868 = vst [vmem:[%s2929_s1 + $0x2d] sm:$0x1] %v1118_v22  ;;  %v1124_v33 = vld [vmem:[#allocation0 + $0x170] sm:$0x3]  ;;  %v901_v34 = vpack.c.bf16 %v2077_v16, %v900_v28 }
  0xda   :  { %1932 = vst [vmem:[%s2929_s1 + $0x6d] sm:$0x1] %v1566_v23  ;;  %1900 = vst [vmem:[%s2929_s1 + $0x4d] sm:$0x1] %v1342_v25  ;;  %v1125_v35 = vpack.c.bf16 %v2077_v16, %v1124_v33 }
  0xdb   :  { %434 = vst.msk [vmem:[#allocation0 + $0x81] sm:$0x1] %vm34_vm0, %v431_v29   ;;  %436 = vst.msk [vmem:[#allocation0 + $0x280] sm:$0x2] %vm34_vm0, %v431_v29  }
  0xdc   :  { %438 = vst.msk [vmem:[#allocation0 + $0x17f] sm:$0x4] %vm34_vm0, %v431_v29   ;;  %440 = vst.msk [vmem:[#allocation0 + $0x37e] sm:$0x8] %vm34_vm0, %v431_v29   ;;  %v1355_v36 = vld [vmem:[#allocation0 + $0x278] sm:$0x3] }
  0xdd   :  { %446 = vst.msk [vmem:[#allocation0 + $0x88] sm:$0x1] %vm34_vm0, %v443_v30   ;;  %448 = vst.msk [vmem:[#allocation0 + $0x287] sm:$0x2] %vm34_vm0, %v443_v30   ;;  %v1579_v37 = vld [vmem:[#allocation0 + $0x378] sm:$0x3]  ;;  %v1356_v41 = vpack.c.bf16 %v2077_v16, %v1355_v36  ;;  %v599_v36 = vpop.permute.xlu0 %598  }
  0xde   :  { %450 = vst.msk [vmem:[#allocation0 + $0x186] sm:$0x4] %vm34_vm0, %v443_v30   ;;  %452 = vst.msk [vmem:[#allocation0 + $0x385] sm:$0x8] %vm34_vm0, %v443_v30   ;;  %v907_v38 = vld [vmem:[#allocation0 + $0x78] sm:$0x3]  ;;  %v1580_v42 = vpack.c.bf16 %v2077_v16, %v1579_v37  ;;  %v611_v37 = vpop.permute.xlu1 %610  }
  0xdf   :  { %1901 = vst [vmem:[%s2929_s1 + $0x4e] sm:$0x1] %v1349_v31  ;;  %1933 = vst [vmem:[%s2929_s1 + $0x6e] sm:$0x1] %v1573_v32  ;;  %v1131_v43 = vld [vmem:[#allocation0 + $0x178] sm:$0x3]  ;;  %v908_v44 = vpack.c.bf16 %v2077_v16, %v907_v38 }
  0xe0   :  { %1837 = vst [vmem:[%s2929_s1 + $0xe] sm:$0x1] %v901_v34  ;;  %1869 = vst [vmem:[%s2929_s1 + $0x2e] sm:$0x1] %v1125_v35  ;;  %v1132_v45 = vpack.c.bf16 %v2077_v16, %v1131_v43 }
  0xe1   :  { %458 = vst.msk [vmem:[#allocation0 + $0x89] sm:$0x1] %vm34_vm0, %v455_v39   ;;  %460 = vst.msk [vmem:[#allocation0 + $0x288] sm:$0x2] %vm34_vm0, %v455_v39  }
  0xe2   :  { %462 = vst.msk [vmem:[#allocation0 + $0x187] sm:$0x4] %vm34_vm0, %v455_v39   ;;  %464 = vst.msk [vmem:[#allocation0 + $0x386] sm:$0x8] %vm34_vm0, %v455_v39   ;;  %v914_v46 = vld [vmem:[#allocation0 + $0x80] sm:$0x3] }
  0xe3   :  { %470 = vst.msk [vmem:[#allocation0 + $0x90] sm:$0x1] %vm34_vm0, %v467_v40   ;;  %472 = vst.msk [vmem:[#allocation0 + $0x28f] sm:$0x2] %vm34_vm0, %v467_v40   ;;  %v1138_v47 = vld [vmem:[#allocation0 + $0x180] sm:$0x3]  ;;  %v915_v51 = vpack.c.bf16 %v2077_v16, %v914_v46  ;;  %v623_v46 = vpop.permute.xlu0 %622  }
  0xe4   :  { %474 = vst.msk [vmem:[#allocation0 + $0x18e] sm:$0x4] %vm34_vm0, %v467_v40   ;;  %476 = vst.msk [vmem:[#allocation0 + $0x38d] sm:$0x8] %vm34_vm0, %v467_v40   ;;  %v1362_v48 = vld [vmem:[#allocation0 + $0x280] sm:$0x3]  ;;  %v1139_v52 = vpack.c.bf16 %v2077_v16, %v1138_v47  ;;  %v635_v47 = vpop.permute.xlu1 %634  }
  0xe5   :  { %1902 = vst [vmem:[%s2929_s1 + $0x4f] sm:$0x1] %v1356_v41  ;;  %1934 = vst [vmem:[%s2929_s1 + $0x6f] sm:$0x1] %v1580_v42  ;;  %v1586_v53 = vld [vmem:[#allocation0 + $0x380] sm:$0x3]  ;;  %v1363_v54 = vpack.c.bf16 %v2077_v16, %v1362_v48 }
  0xe6   :  { %1838 = vst [vmem:[%s2929_s1 + $0xf] sm:$0x1] %v908_v44  ;;  %1870 = vst [vmem:[%s2929_s1 + $0x2f] sm:$0x1] %v1132_v45  ;;  %v1587_v55 = vpack.c.bf16 %v2077_v16, %v1586_v53 }
  0xe7   :  { %482 = vst.msk [vmem:[#allocation0 + $0x91] sm:$0x1] %vm34_vm0, %v479_v49   ;;  %484 = vst.msk [vmem:[#allocation0 + $0x290] sm:$0x2] %vm34_vm0, %v479_v49  }
  0xe8   :  { %486 = vst.msk [vmem:[#allocation0 + $0x18f] sm:$0x4] %vm34_vm0, %v479_v49   ;;  %488 = vst.msk [vmem:[#allocation0 + $0x38e] sm:$0x8] %vm34_vm0, %v479_v49   ;;  %v921_v57 = vld [vmem:[#allocation0 + $0x88] sm:$0x3] }
  0xe9   :  { %494 = vst.msk [vmem:[#allocation0 + $0x98] sm:$0x1] %vm34_vm0, %v491_v50   ;;  %496 = vst.msk [vmem:[#allocation0 + $0x297] sm:$0x2] %vm34_vm0, %v491_v50   ;;  %v1145_v56 = vld [vmem:[#allocation0 + $0x188] sm:$0x3]  ;;  %v922_v63 = vpack.c.bf16 %v2077_v16, %v921_v57  ;;  %v659_v57 = vpop.permute.xlu1 %658  }
  0xea   :  { %498 = vst.msk [vmem:[#allocation0 + $0x196] sm:$0x4] %vm34_vm0, %v491_v50   ;;  %500 = vst.msk [vmem:[#allocation0 + $0x395] sm:$0x8] %vm34_vm0, %v491_v50   ;;  %v1369_v58 = vld [vmem:[#allocation0 + $0x288] sm:$0x3]  ;;  %v1146_v61 = vpack.c.bf16 %v2077_v16, %v1145_v56  ;;  %v647_v56 = vpop.permute.xlu0 %646  }
  0xeb   :  { %1839 = vst [vmem:[%s2929_s1 + $0x10] sm:$0x1] %v915_v51  ;;  %1871 = vst [vmem:[%s2929_s1 + $0x30] sm:$0x1] %v1139_v52  ;;  %v1593_v62 = vld [vmem:[#allocation0 + $0x388] sm:$0x3]  ;;  %v1370_v0 = vpack.c.bf16 %v2077_v16, %v1369_v58 }
  0xec   :  { %1903 = vst [vmem:[%s2929_s1 + $0x50] sm:$0x1] %v1363_v54  ;;  %1935 = vst [vmem:[%s2929_s1 + $0x70] sm:$0x1] %v1587_v55  ;;  %v1594_v1 = vpack.c.bf16 %v2077_v16, %v1593_v62 }
  0xed   :  { %506 = vst.msk [vmem:[#allocation0 + $0x99] sm:$0x1] %vm34_vm0, %v503_v59   ;;  %508 = vst.msk [vmem:[#allocation0 + $0x298] sm:$0x2] %vm34_vm0, %v503_v59  }
  0xee   :  { %510 = vst.msk [vmem:[#allocation0 + $0x197] sm:$0x4] %vm34_vm0, %v503_v59   ;;  %512 = vst.msk [vmem:[#allocation0 + $0x396] sm:$0x8] %vm34_vm0, %v503_v59   ;;  %v1376_v2 = vld [vmem:[#allocation0 + $0x290] sm:$0x3] }
  0xef   :  { %518 = vst.msk [vmem:[#allocation0 + $0xa0] sm:$0x1] %vm34_vm0, %v515_v60   ;;  %520 = vst.msk [vmem:[#allocation0 + $0x29f] sm:$0x2] %vm34_vm0, %v515_v60   ;;  %v1600_v3 = vld [vmem:[#allocation0 + $0x390] sm:$0x3]  ;;  %v1377_v7 = vpack.c.bf16 %v2077_v16, %v1376_v2  ;;  %v671_v2 = vpop.permute.xlu0 %670  }
  0xf0   :  { %522 = vst.msk [vmem:[#allocation0 + $0x19e] sm:$0x4] %vm34_vm0, %v515_v60   ;;  %524 = vst.msk [vmem:[#allocation0 + $0x39d] sm:$0x8] %vm34_vm0, %v515_v60   ;;  %v928_v4 = vld [vmem:[#allocation0 + $0x90] sm:$0x3]  ;;  %v1601_v8 = vpack.c.bf16 %v2077_v16, %v1600_v3  ;;  %v683_v3 = vpop.permute.xlu1 %682  }
  0xf1   :  { %1872 = vst [vmem:[%s2929_s1 + $0x31] sm:$0x1] %v1146_v61  ;;  %1840 = vst [vmem:[%s2929_s1 + $0x11] sm:$0x1] %v922_v63  ;;  %v1152_v9 = vld [vmem:[#allocation0 + $0x190] sm:$0x3]  ;;  %v929_v10 = vpack.c.bf16 %v2077_v16, %v928_v4 }
  0xf2   :  { %1904 = vst [vmem:[%s2929_s1 + $0x51] sm:$0x1] %v1370_v0  ;;  %1936 = vst [vmem:[%s2929_s1 + $0x71] sm:$0x1] %v1594_v1  ;;  %v1153_v11 = vpack.c.bf16 %v2077_v16, %v1152_v9 }
  0xf3   :  { %530 = vst.msk [vmem:[#allocation0 + $0xa1] sm:$0x1] %vm34_vm0, %v527_v5   ;;  %532 = vst.msk [vmem:[#allocation0 + $0x2a0] sm:$0x2] %vm34_vm0, %v527_v5  }
  0xf4   :  { %534 = vst.msk [vmem:[#allocation0 + $0x19f] sm:$0x4] %vm34_vm0, %v527_v5   ;;  %536 = vst.msk [vmem:[#allocation0 + $0x39e] sm:$0x8] %vm34_vm0, %v527_v5   ;;  %v1383_v12 = vld [vmem:[#allocation0 + $0x298] sm:$0x3] }
  0xf5   :  { %542 = vst.msk [vmem:[#allocation0 + $0xa8] sm:$0x1] %vm34_vm0, %v539_v6   ;;  %544 = vst.msk [vmem:[#allocation0 + $0x2a7] sm:$0x2] %vm34_vm0, %v539_v6   ;;  %v1607_v13 = vld [vmem:[#allocation0 + $0x398] sm:$0x3]  ;;  %v1384_v18 = vpack.c.bf16 %v2077_v16, %v1383_v12  ;;  %v695_v12 = vpop.permute.xlu0 %694  }
  0xf6   :  { %546 = vst.msk [vmem:[#allocation0 + $0x1a6] sm:$0x4] %vm34_vm0, %v539_v6   ;;  %548 = vst.msk [vmem:[#allocation0 + $0x3a5] sm:$0x8] %vm34_vm0, %v539_v6   ;;  %v935_v14 = vld [vmem:[#allocation0 + $0x98] sm:$0x3]  ;;  %v1608_v19 = vpack.c.bf16 %v2077_v16, %v1607_v13  ;;  %v707_v13 = vpop.permute.xlu1 %706  }
  0xf7   :  { %1905 = vst [vmem:[%s2929_s1 + $0x52] sm:$0x1] %v1377_v7  ;;  %1937 = vst [vmem:[%s2929_s1 + $0x72] sm:$0x1] %v1601_v8  ;;  %v1159_v20 = vld [vmem:[#allocation0 + $0x198] sm:$0x3]  ;;  %v936_v21 = vpack.c.bf16 %v2077_v16, %v935_v14 }
  0xf8   :  { %1841 = vst [vmem:[%s2929_s1 + $0x12] sm:$0x1] %v929_v10  ;;  %1873 = vst [vmem:[%s2929_s1 + $0x32] sm:$0x1] %v1153_v11  ;;  %v1160_v22 = vpack.c.bf16 %v2077_v16, %v1159_v20 }
  0xf9   :  { %554 = vst.msk [vmem:[#allocation0 + $0xa9] sm:$0x1] %vm34_vm0, %v551_v15   ;;  %556 = vst.msk [vmem:[#allocation0 + $0x2a8] sm:$0x2] %vm34_vm0, %v551_v15  }
  0xfa   :  { %558 = vst.msk [vmem:[#allocation0 + $0x1a7] sm:$0x4] %vm34_vm0, %v551_v15   ;;  %560 = vst.msk [vmem:[#allocation0 + $0x3a6] sm:$0x8] %vm34_vm0, %v551_v15   ;;  %v942_v23 = vld [vmem:[#allocation0 + $0xa0] sm:$0x3] }
  0xfb   :  { %566 = vst.msk [vmem:[#allocation0 + $0xb0] sm:$0x1] %vm34_vm0, %v563_v17   ;;  %568 = vst.msk [vmem:[#allocation0 + $0x2af] sm:$0x2] %vm34_vm0, %v563_v17   ;;  %v1166_v24 = vld [vmem:[#allocation0 + $0x1a0] sm:$0x3]  ;;  %v943_v28 = vpack.c.bf16 %v2077_v16, %v942_v23  ;;  %v719_v23 = vpop.permute.xlu0 %718  }
  0xfc   :  { %570 = vst.msk [vmem:[#allocation0 + $0x1ae] sm:$0x4] %vm34_vm0, %v563_v17   ;;  %572 = vst.msk [vmem:[#allocation0 + $0x3ad] sm:$0x8] %vm34_vm0, %v563_v17   ;;  %v1390_v25 = vld [vmem:[#allocation0 + $0x2a0] sm:$0x3]  ;;  %v1167_v29 = vpack.c.bf16 %v2077_v16, %v1166_v24  ;;  %v731_v24 = vpop.permute.xlu1 %730  }
  0xfd   :  { %1906 = vst [vmem:[%s2929_s1 + $0x53] sm:$0x1] %v1384_v18  ;;  %1938 = vst [vmem:[%s2929_s1 + $0x73] sm:$0x1] %v1608_v19  ;;  %v1614_v30 = vld [vmem:[#allocation0 + $0x3a0] sm:$0x3]  ;;  %v1391_v31 = vpack.c.bf16 %v2077_v16, %v1390_v25 }
  0xfe   :  { %1842 = vst [vmem:[%s2929_s1 + $0x13] sm:$0x1] %v936_v21  ;;  %1874 = vst [vmem:[%s2929_s1 + $0x33] sm:$0x1] %v1160_v22  ;;  %v1615_v32 = vpack.c.bf16 %v2077_v16, %v1614_v30 }
  0xff   :  { %578 = vst.msk [vmem:[#allocation0 + $0xb1] sm:$0x1] %vm34_vm0, %v575_v26   ;;  %580 = vst.msk [vmem:[#allocation0 + $0x2b0] sm:$0x2] %vm34_vm0, %v575_v26  }
 0x100   :  { %582 = vst.msk [vmem:[#allocation0 + $0x1af] sm:$0x4] %vm34_vm0, %v575_v26   ;;  %584 = vst.msk [vmem:[#allocation0 + $0x3ae] sm:$0x8] %vm34_vm0, %v575_v26   ;;  %v1397_v33 = vld [vmem:[#allocation0 + $0x2a8] sm:$0x3] }
 0x101   :  { %590 = vst.msk [vmem:[#allocation0 + $0xb8] sm:$0x1] %vm34_vm0, %v587_v27   ;;  %592 = vst.msk [vmem:[#allocation0 + $0x2b7] sm:$0x2] %vm34_vm0, %v587_v27   ;;  %v949_v34 = vld [vmem:[#allocation0 + $0xa8] sm:$0x3]  ;;  %v1398_v38 = vpack.c.bf16 %v2077_v16, %v1397_v33  ;;  %v743_v33 = vpop.permute.xlu0 %742  }
 0x102   :  { %594 = vst.msk [vmem:[#allocation0 + $0x1b6] sm:$0x4] %vm34_vm0, %v587_v27   ;;  %596 = vst.msk [vmem:[#allocation0 + $0x3b5] sm:$0x8] %vm34_vm0, %v587_v27   ;;  %v1173_v35 = vld [vmem:[#allocation0 + $0x1a8] sm:$0x3]  ;;  %v950_v40 = vpack.c.bf16 %v2077_v16, %v949_v34  ;;  %v755_v34 = vpop.permute.xlu1 %754  }
 0x103   :  { %1843 = vst [vmem:[%s2929_s1 + $0x14] sm:$0x1] %v943_v28  ;;  %1875 = vst [vmem:[%s2929_s1 + $0x34] sm:$0x1] %v1167_v29  ;;  %v1621_v39 = vld [vmem:[#allocation0 + $0x3a8] sm:$0x3]  ;;  %v1174_v41 = vpack.c.bf16 %v2077_v16, %v1173_v35 }
 0x104   :  { %1907 = vst [vmem:[%s2929_s1 + $0x54] sm:$0x1] %v1391_v31  ;;  %1939 = vst [vmem:[%s2929_s1 + $0x74] sm:$0x1] %v1615_v32  ;;  %v1622_v42 = vpack.c.bf16 %v2077_v16, %v1621_v39 }
 0x105   :  { %602 = vst.msk [vmem:[#allocation0 + $0xb9] sm:$0x1] %vm34_vm0, %v599_v36   ;;  %604 = vst.msk [vmem:[#allocation0 + $0x2b8] sm:$0x2] %vm34_vm0, %v599_v36  }
 0x106   :  { %606 = vst.msk [vmem:[#allocation0 + $0x1b7] sm:$0x4] %vm34_vm0, %v599_v36   ;;  %608 = vst.msk [vmem:[#allocation0 + $0x3b6] sm:$0x8] %vm34_vm0, %v599_v36   ;;  %v956_v43 = vld [vmem:[#allocation0 + $0xb0] sm:$0x3] }
 0x107   :  { %614 = vst.msk [vmem:[#allocation0 + $0xc0] sm:$0x1] %vm34_vm0, %v611_v37   ;;  %616 = vst.msk [vmem:[#allocation0 + $0x2bf] sm:$0x2] %vm34_vm0, %v611_v37   ;;  %v1180_v44 = vld [vmem:[#allocation0 + $0x1b0] sm:$0x3]  ;;  %v957_v48 = vpack.c.bf16 %v2077_v16, %v956_v43  ;;  %v767_v43 = vpop.permute.xlu0 %766  }
 0x108   :  { %618 = vst.msk [vmem:[#allocation0 + $0x1be] sm:$0x4] %vm34_vm0, %v611_v37   ;;  %620 = vst.msk [vmem:[#allocation0 + $0x3bd] sm:$0x8] %vm34_vm0, %v611_v37   ;;  %v1628_v45 = vld [vmem:[#allocation0 + $0x3b0] sm:$0x3]  ;;  %v1181_v49 = vpack.c.bf16 %v2077_v16, %v1180_v44  ;;  %v779_v44 = vpop.permute.xlu1 %778  }
 0x109   :  { %1908 = vst [vmem:[%s2929_s1 + $0x55] sm:$0x1] %v1398_v38  ;;  %1844 = vst [vmem:[%s2929_s1 + $0x15] sm:$0x1] %v950_v40  ;;  %v1629_v50 = vpack.c.bf16 %v2077_v16, %v1628_v45  ;;  %v1404_v51 = vld [vmem:[#allocation0 + $0x2b0] sm:$0x3] }
 0x10a   :  { %1876 = vst [vmem:[%s2929_s1 + $0x35] sm:$0x1] %v1174_v41  ;;  %1940 = vst [vmem:[%s2929_s1 + $0x75] sm:$0x1] %v1622_v42  ;;  %v1405_v52 = vpack.c.bf16 %v2077_v16, %v1404_v51 }
 0x10b   :  { %626 = vst.msk [vmem:[#allocation0 + $0xc1] sm:$0x1] %vm34_vm0, %v623_v46   ;;  %628 = vst.msk [vmem:[#allocation0 + $0x2c0] sm:$0x2] %vm34_vm0, %v623_v46  }
 0x10c   :  { %630 = vst.msk [vmem:[#allocation0 + $0x1bf] sm:$0x4] %vm34_vm0, %v623_v46   ;;  %632 = vst.msk [vmem:[#allocation0 + $0x3be] sm:$0x8] %vm34_vm0, %v623_v46   ;;  %v963_v53 = vld [vmem:[#allocation0 + $0xb8] sm:$0x3] }
 0x10d   :  { %638 = vst.msk [vmem:[#allocation0 + $0xc8] sm:$0x1] %vm34_vm0, %v635_v47   ;;  %640 = vst.msk [vmem:[#allocation0 + $0x2c7] sm:$0x2] %vm34_vm0, %v635_v47   ;;  %v1187_v54 = vld [vmem:[#allocation0 + $0x1b8] sm:$0x3]  ;;  %v964_v58 = vpack.c.bf16 %v2077_v16, %v963_v53  ;;  %v791_v53 = vpop.permute.xlu0 %790  }
 0x10e   :  { %642 = vst.msk [vmem:[#allocation0 + $0x1c6] sm:$0x4] %vm34_vm0, %v635_v47   ;;  %644 = vst.msk [vmem:[#allocation0 + $0x3c5] sm:$0x8] %vm34_vm0, %v635_v47   ;;  %v1411_v55 = vld [vmem:[#allocation0 + $0x2b8] sm:$0x3]  ;;  %v1188_v59 = vpack.c.bf16 %v2077_v16, %v1187_v54 }
 0x10f   :  { %1845 = vst [vmem:[%s2929_s1 + $0x16] sm:$0x1] %v957_v48  ;;  %1877 = vst [vmem:[%s2929_s1 + $0x36] sm:$0x1] %v1181_v49  ;;  %v1635_v60 = vld [vmem:[#allocation0 + $0x3b8] sm:$0x3]  ;;  %v1412_v61 = vpack.c.bf16 %v2077_v16, %v1411_v55 }
 0x110   :  { %1941 = vst [vmem:[%s2929_s1 + $0x76] sm:$0x1] %v1629_v50  ;;  %1909 = vst [vmem:[%s2929_s1 + $0x56] sm:$0x1] %v1405_v52  ;;  %v1636_v62 = vpack.c.bf16 %v2077_v16, %v1635_v60 }
 0x111   :  { %650 = vst.msk [vmem:[#allocation0 + $0xc9] sm:$0x1] %vm34_vm0, %v647_v56   ;;  %652 = vst.msk [vmem:[#allocation0 + $0x2c8] sm:$0x2] %vm34_vm0, %v647_v56  }
 0x112   :  { %654 = vst.msk [vmem:[#allocation0 + $0x1c7] sm:$0x4] %vm34_vm0, %v647_v56   ;;  %656 = vst.msk [vmem:[#allocation0 + $0x3c6] sm:$0x8] %vm34_vm0, %v647_v56   ;;  %v1418_v63 = vld [vmem:[#allocation0 + $0x2c0] sm:$0x3] }
 0x113   :  { %662 = vst.msk [vmem:[#allocation0 + $0xd0] sm:$0x1] %vm34_vm0, %v659_v57   ;;  %664 = vst.msk [vmem:[#allocation0 + $0x2cf] sm:$0x2] %vm34_vm0, %v659_v57   ;;  %v970_v0 = vld [vmem:[#allocation0 + $0xc0] sm:$0x3]  ;;  %v1419_v4 = vpack.c.bf16 %v2077_v16, %v1418_v63 }
 0x114   :  { %666 = vst.msk [vmem:[#allocation0 + $0x1ce] sm:$0x4] %vm34_vm0, %v659_v57   ;;  %668 = vst.msk [vmem:[#allocation0 + $0x3cd] sm:$0x8] %vm34_vm0, %v659_v57   ;;  %v1194_v1 = vld [vmem:[#allocation0 + $0x1c0] sm:$0x3]  ;;  %v971_v6 = vpack.c.bf16 %v2077_v16, %v970_v0 }
 0x115   :  { %1846 = vst [vmem:[%s2929_s1 + $0x17] sm:$0x1] %v964_v58  ;;  %1878 = vst [vmem:[%s2929_s1 + $0x37] sm:$0x1] %v1188_v59  ;;  %v1642_v5 = vld [vmem:[#allocation0 + $0x3c0] sm:$0x3]  ;;  %v1195_v7 = vpack.c.bf16 %v2077_v16, %v1194_v1 }
 0x116   :  { %1910 = vst [vmem:[%s2929_s1 + $0x57] sm:$0x1] %v1412_v61  ;;  %1942 = vst [vmem:[%s2929_s1 + $0x77] sm:$0x1] %v1636_v62  ;;  %v1643_v8 = vpack.c.bf16 %v2077_v16, %v1642_v5 }
 0x117   :  { %674 = vst.msk [vmem:[#allocation0 + $0xd1] sm:$0x1] %vm34_vm0, %v671_v2   ;;  %676 = vst.msk [vmem:[#allocation0 + $0x2d0] sm:$0x2] %vm34_vm0, %v671_v2  }
 0x118   :  { %678 = vst.msk [vmem:[#allocation0 + $0x1cf] sm:$0x4] %vm34_vm0, %v671_v2   ;;  %680 = vst.msk [vmem:[#allocation0 + $0x3ce] sm:$0x8] %vm34_vm0, %v671_v2   ;;  %v977_v9 = vld [vmem:[#allocation0 + $0xc8] sm:$0x3] }
 0x119   :  { %686 = vst.msk [vmem:[#allocation0 + $0xd8] sm:$0x1] %vm34_vm0, %v683_v3   ;;  %688 = vst.msk [vmem:[#allocation0 + $0x2d7] sm:$0x2] %vm34_vm0, %v683_v3   ;;  %v1201_v10 = vld [vmem:[#allocation0 + $0x1c8] sm:$0x3]  ;;  %v978_v14 = vpack.c.bf16 %v2077_v16, %v977_v9 }
 0x11a   :  { %690 = vst.msk [vmem:[#allocation0 + $0x1d6] sm:$0x4] %vm34_vm0, %v683_v3   ;;  %692 = vst.msk [vmem:[#allocation0 + $0x3d5] sm:$0x8] %vm34_vm0, %v683_v3   ;;  %v1425_v11 = vld [vmem:[#allocation0 + $0x2c8] sm:$0x3]  ;;  %v1202_v17 = vpack.c.bf16 %v2077_v16, %v1201_v10 }
 0x11b   :  { %1911 = vst [vmem:[%s2929_s1 + $0x58] sm:$0x1] %v1419_v4  ;;  %1847 = vst [vmem:[%s2929_s1 + $0x18] sm:$0x1] %v971_v6  ;;  %v1649_v15 = vld [vmem:[#allocation0 + $0x3c8] sm:$0x3]  ;;  %v1426_v18 = vpack.c.bf16 %v2077_v16, %v1425_v11 }
 0x11c   :  { %1879 = vst [vmem:[%s2929_s1 + $0x38] sm:$0x1] %v1195_v7  ;;  %1943 = vst [vmem:[%s2929_s1 + $0x78] sm:$0x1] %v1643_v8  ;;  %v1650_v19 = vpack.c.bf16 %v2077_v16, %v1649_v15 }
 0x11d   :  { %698 = vst.msk [vmem:[#allocation0 + $0xd9] sm:$0x1] %vm34_vm0, %v695_v12   ;;  %700 = vst.msk [vmem:[#allocation0 + $0x2d8] sm:$0x2] %vm34_vm0, %v695_v12  }
 0x11e   :  { %702 = vst.msk [vmem:[#allocation0 + $0x1d7] sm:$0x4] %vm34_vm0, %v695_v12   ;;  %704 = vst.msk [vmem:[#allocation0 + $0x3d6] sm:$0x8] %vm34_vm0, %v695_v12   ;;  %v984_v20 = vld [vmem:[#allocation0 + $0xd0] sm:$0x3] }
 0x11f   :  { %710 = vst.msk [vmem:[#allocation0 + $0xe0] sm:$0x1] %vm34_vm0, %v707_v13   ;;  %712 = vst.msk [vmem:[#allocation0 + $0x2df] sm:$0x2] %vm34_vm0, %v707_v13   ;;  %v1208_v21 = vld [vmem:[#allocation0 + $0x1d0] sm:$0x3]  ;;  %v985_v25 = vpack.c.bf16 %v2077_v16, %v984_v20 }
 0x120   :  { %714 = vst.msk [vmem:[#allocation0 + $0x1de] sm:$0x4] %vm34_vm0, %v707_v13   ;;  %716 = vst.msk [vmem:[#allocation0 + $0x3dd] sm:$0x8] %vm34_vm0, %v707_v13   ;;  %v1656_v22 = vld [vmem:[#allocation0 + $0x3d0] sm:$0x3]  ;;  %v1209_v26 = vpack.c.bf16 %v2077_v16, %v1208_v21 }
 0x121   :  { %1848 = vst [vmem:[%s2929_s1 + $0x19] sm:$0x1] %v978_v14  ;;  %1880 = vst [vmem:[%s2929_s1 + $0x39] sm:$0x1] %v1202_v17  ;;  %v1657_v27 = vpack.c.bf16 %v2077_v16, %v1656_v22  ;;  %v1432_v28 = vld [vmem:[#allocation0 + $0x2d0] sm:$0x3] }
 0x122   :  { %1912 = vst [vmem:[%s2929_s1 + $0x59] sm:$0x1] %v1426_v18  ;;  %1944 = vst [vmem:[%s2929_s1 + $0x79] sm:$0x1] %v1650_v19  ;;  %v1433_v29 = vpack.c.bf16 %v2077_v16, %v1432_v28 }
 0x123   :  { %722 = vst.msk [vmem:[#allocation0 + $0xe1] sm:$0x1] %vm34_vm0, %v719_v23   ;;  %724 = vst.msk [vmem:[#allocation0 + $0x2e0] sm:$0x2] %vm34_vm0, %v719_v23  }
 0x124   :  { %726 = vst.msk [vmem:[#allocation0 + $0x1df] sm:$0x4] %vm34_vm0, %v719_v23   ;;  %728 = vst.msk [vmem:[#allocation0 + $0x3de] sm:$0x8] %vm34_vm0, %v719_v23   ;;  %v991_v30 = vld [vmem:[#allocation0 + $0xd8] sm:$0x3] }
 0x125   :  { %734 = vst.msk [vmem:[#allocation0 + $0xe8] sm:$0x1] %vm34_vm0, %v731_v24   ;;  %736 = vst.msk [vmem:[#allocation0 + $0x2e7] sm:$0x2] %vm34_vm0, %v731_v24   ;;  %v1439_v31 = vld [vmem:[#allocation0 + $0x2d8] sm:$0x3]  ;;  %v992_v35 = vpack.c.bf16 %v2077_v16, %v991_v30 }
 0x126   :  { %738 = vst.msk [vmem:[#allocation0 + $0x1e6] sm:$0x4] %vm34_vm0, %v731_v24   ;;  %740 = vst.msk [vmem:[#allocation0 + $0x3e5] sm:$0x8] %vm34_vm0, %v731_v24   ;;  %v1663_v32 = vld [vmem:[#allocation0 + $0x3d8] sm:$0x3]  ;;  %v1440_v36 = vpack.c.bf16 %v2077_v16, %v1439_v31 }
 0x127   :  { %1849 = vst [vmem:[%s2929_s1 + $0x1a] sm:$0x1] %v985_v25  ;;  %1881 = vst [vmem:[%s2929_s1 + $0x3a] sm:$0x1] %v1209_v26  ;;  %v1664_v37 = vpack.c.bf16 %v2077_v16, %v1663_v32  ;;  %v1215_v38 = vld [vmem:[#allocation0 + $0x1d8] sm:$0x3] }
 0x128   :  { %1945 = vst [vmem:[%s2929_s1 + $0x7a] sm:$0x1] %v1657_v27  ;;  %1913 = vst [vmem:[%s2929_s1 + $0x5a] sm:$0x1] %v1433_v29  ;;  %v1216_v39 = vpack.c.bf16 %v2077_v16, %v1215_v38 }
 0x129   :  { %746 = vst.msk [vmem:[#allocation0 + $0xe9] sm:$0x1] %vm34_vm0, %v743_v33   ;;  %748 = vst.msk [vmem:[#allocation0 + $0x2e8] sm:$0x2] %vm34_vm0, %v743_v33  }
 0x12a   :  { %750 = vst.msk [vmem:[#allocation0 + $0x1e7] sm:$0x4] %vm34_vm0, %v743_v33   ;;  %752 = vst.msk [vmem:[#allocation0 + $0x3e6] sm:$0x8] %vm34_vm0, %v743_v33   ;;  %v998_v42 = vld [vmem:[#allocation0 + $0xe0] sm:$0x3] }
 0x12b   :  { %758 = vst.msk [vmem:[#allocation0 + $0xf0] sm:$0x1] %vm34_vm0, %v755_v34   ;;  %760 = vst.msk [vmem:[#allocation0 + $0x2ef] sm:$0x2] %vm34_vm0, %v755_v34   ;;  %v1222_v40 = vld [vmem:[#allocation0 + $0x1e0] sm:$0x3]  ;;  %v999_v48 = vpack.c.bf16 %v2077_v16, %v998_v42 }
 0x12c   :  { %762 = vst.msk [vmem:[#allocation0 + $0x1ee] sm:$0x4] %vm34_vm0, %v755_v34   ;;  %764 = vst.msk [vmem:[#allocation0 + $0x3ed] sm:$0x8] %vm34_vm0, %v755_v34   ;;  %v1670_v41 = vld [vmem:[#allocation0 + $0x3e0] sm:$0x3]  ;;  %v1223_v45 = vpack.c.bf16 %v2077_v16, %v1222_v40 }
 0x12d   :  { %1850 = vst [vmem:[%s2929_s1 + $0x1b] sm:$0x1] %v992_v35  ;;  %1914 = vst [vmem:[%s2929_s1 + $0x5b] sm:$0x1] %v1440_v36  ;;  %v1671_v46 = vpack.c.bf16 %v2077_v16, %v1670_v41  ;;  %v1446_v47 = vld [vmem:[#allocation0 + $0x2e0] sm:$0x3] }
 0x12e   :  { %1946 = vst [vmem:[%s2929_s1 + $0x7b] sm:$0x1] %v1664_v37  ;;  %1882 = vst [vmem:[%s2929_s1 + $0x3b] sm:$0x1] %v1216_v39  ;;  %v1447_v49 = vpack.c.bf16 %v2077_v16, %v1446_v47 }
 0x12f   :  { %770 = vst.msk [vmem:[#allocation0 + $0xf1] sm:$0x1] %vm34_vm0, %v767_v43   ;;  %772 = vst.msk [vmem:[#allocation0 + $0x2f0] sm:$0x2] %vm34_vm0, %v767_v43  }
 0x130   :  { %774 = vst.msk [vmem:[#allocation0 + $0x1ef] sm:$0x4] %vm34_vm0, %v767_v43   ;;  %776 = vst.msk [vmem:[#allocation0 + $0x3ee] sm:$0x8] %vm34_vm0, %v767_v43   ;;  %v1453_v50 = vld [vmem:[#allocation0 + $0x2e8] sm:$0x3] }
 0x131   :  { %782 = vst.msk [vmem:[#allocation0 + $0xf8] sm:$0x1] %vm34_vm0, %v779_v44   ;;  %784 = vst.msk [vmem:[#allocation0 + $0x2f7] sm:$0x2] %vm34_vm0, %v779_v44   ;;  %v1005_v51 = vld [vmem:[#allocation0 + $0xe8] sm:$0x3]  ;;  %v1454_v54 = vpack.c.bf16 %v2077_v16, %v1453_v50 }
 0x132   :  { %786 = vst.msk [vmem:[#allocation0 + $0x1f6] sm:$0x4] %vm34_vm0, %v779_v44   ;;  %788 = vst.msk [vmem:[#allocation0 + $0x3f5] sm:$0x8] %vm34_vm0, %v779_v44   ;;  %v1229_v52 = vld [vmem:[#allocation0 + $0x1e8] sm:$0x3]  ;;  %v1006_v56 = vpack.c.bf16 %v2077_v16, %v1005_v51 }
 0x133   :  { %1883 = vst [vmem:[%s2929_s1 + $0x3c] sm:$0x1] %v1223_v45  ;;  %1947 = vst [vmem:[%s2929_s1 + $0x7c] sm:$0x1] %v1671_v46  ;;  %v1677_v55 = vld [vmem:[#allocation0 + $0x3e8] sm:$0x3]  ;;  %v1230_v57 = vpack.c.bf16 %v2077_v16, %v1229_v52 }
 0x134   :  { %1851 = vst [vmem:[%s2929_s1 + $0x1c] sm:$0x1] %v999_v48  ;;  %1915 = vst [vmem:[%s2929_s1 + $0x5c] sm:$0x1] %v1447_v49  ;;  %v1678_v58 = vpack.c.bf16 %v2077_v16, %v1677_v55 }
 0x135   :  { %794 = vst.msk [vmem:[#allocation0 + $0xf9] sm:$0x1] %vm34_vm0, %v791_v53   ;;  %796 = vst.msk [vmem:[#allocation0 + $0x2f8] sm:$0x2] %vm34_vm0, %v791_v53  }
 0x136   :  { %798 = vst.msk [vmem:[#allocation0 + $0x1f7] sm:$0x4] %vm34_vm0, %v791_v53   ;;  %800 = vst.msk [vmem:[#allocation0 + $0x3f6] sm:$0x8] %vm34_vm0, %v791_v53   ;;  %v1012_v60 = vld [vmem:[#allocation0 + $0xf0] sm:$0x3] }
 0x137   :  { %1916 = vst [vmem:[%s2929_s1 + $0x5d] sm:$0x1] %v1454_v54  ;;  %1852 = vst [vmem:[%s2929_s1 + $0x1d] sm:$0x1] %v1006_v56  ;;  %v1684_v59 = vld [vmem:[#allocation0 + $0x3f0] sm:$0x3]  ;;  %v1013_v0 = vpack.c.bf16 %v2077_v16, %v1012_v60 }
 0x138   :  { %1884 = vst [vmem:[%s2929_s1 + $0x3d] sm:$0x1] %v1230_v57  ;;  %v1236_v61 = vld [vmem:[#allocation0 + $0x1f0] sm:$0x3]  ;;  %1948 = vst [vmem:[%s2929_s1 + $0x7d] sm:$0x1] %v1678_v58  ;;  %v1685_v62 = vpack.c.bf16 %v2077_v16, %v1684_v59 }
 0x139   :  { %v1460_v63 = vld [vmem:[#allocation0 + $0x2f0] sm:$0x3]  ;;  %v1237_v1 = vpack.c.bf16 %v2077_v16, %v1236_v61  ;;  %1853 = vst [vmem:[%s2929_s1 + $0x1e] sm:$0x1] %v1013_v0 }
 0x13a   :  { %v1461_v2 = vpack.c.bf16 %v2077_v16, %v1460_v63  ;;  %1949 = vst [vmem:[%s2929_s1 + $0x7e] sm:$0x1] %v1685_v62 }
 0x13b   :  { %1885 = vst [vmem:[%s2929_s1 + $0x3e] sm:$0x1] %v1237_v1 }
 0x13c   :  { %v1019_v3 = vld [vmem:[#allocation0 + $0xf8] sm:$0x3]  ;;  %1917 = vst [vmem:[%s2929_s1 + $0x5e] sm:$0x1] %v1461_v2 }
 0x13d   :  { %v1243_v4 = vld [vmem:[#allocation0 + $0x1f8] sm:$0x3]  ;;  %v1020_v6 = vpack.c.bf16 %v2077_v16, %v1019_v3 }
 0x13e   :  { %v1467_v5 = vld [vmem:[#allocation0 + $0x2f8] sm:$0x3]  ;;  %v1244_v7 = vpack.c.bf16 %v2077_v16, %v1243_v4 }
 0x13f   :  { %v1468_v8 = vpack.c.bf16 %v2077_v16, %v1467_v5  ;;  %v1691_v9 = vld [vmem:[#allocation0 + $0x3f8] sm:$0x3]  ;;  %1854 = vst [vmem:[%s2929_s1 + $0x1f] sm:$0x1] %v1020_v6 }
 0x140   :  { %v1692_v16 = vpack.c.bf16 %v2077_v16, %v1691_v9  ;;  %1886 = vst [vmem:[%s2929_s1 + $0x3f] sm:$0x1] %v1244_v7 }
 0x141   :  { %1918 = vst [vmem:[%s2929_s1 + $0x5f] sm:$0x1] %v1468_v8 }
 0x142   :  { %1950 = vst [vmem:[%s2929_s1 + $0x7f] sm:$0x1] %v1692_v16 }

// kernel: generator_forward.7
= control target key start
LH: loop header
LB: loop body
LE: loop exit
PB: predicated region body
PF: predicated region fallthrough
CT: control target
= control target key end

     0   :  { %8 = vsyncpa [#allocation3], 0  ;;  %s1492_s0 = inlined_call_operand.vmem [shape: bf16[2,4], index: 0, kind: input, shape index: {}]   ;;  %s1493_s1 = inlined_call_operand.hbm [shape: bf16[3,4,2048], index: 1, kind: input, shape index: {}]   ;;  %s1494_s2 = inlined_call_operand.hbm [shape: f32[3,1,2048], index: 2, kind: input, shape index: {}]   ;;  %s1495_s3 = inlined_call_operand.vmem [shape: bf16[3,2,2048], index: 3, kind: output, shape index: {}]  }
   0x1   :  { %10 = vsyncpa [#allocation3 + $0x1], 0 }
   0x2   :  { %11 = vsyncpa [#allocation5], 0 }
   0x3   :  { %13 = vsyncpa [#allocation5 + $0x1], 0  ;;  %s1255_s12 = smov 0   ;;  %s1257_s13 = smov 0  }
   0x4   :  { %s1259_s14 = smov 0   ;;  %s1261_s15 = smov 0  }
   0x5 LB: > { %s1274_s16 = sadd.s32 4294967295, %s1228_s15   ;;  %s1277_s17 = sadd.s32 1, %s1228_s15   ;;  %s1228_s15 = sphi %s1261_s15, %s1507_s15   ;;  %s1224_s14 = sphi %s1259_s14, %s1506_s14   ;;  %s1220_s13 = sphi %s1257_s13, %s1505_s13   ;;  %s1216_s12 = sphi %s1255_s12, %s1504_s12  }
   0x6   : > { %s44_s18 = ssub.s32 %s1228_s15, %s1277_s17  ;;  %s47_s19 = sadd.s32 1, %s1224_s14 }
   0x7   : > { %p45_p0 = scmp.eq.s32.totalorder %s44_s18, 0  ;;  %p54_p1 = scmp.ne.s32.totalorder %s1224_s14, %s1220_s13 }
   0x8   : > { %p55_p2 = scmp.eq.s32.totalorder %s1228_s15, 0  ;;  %p60_p3 = scmp.ne.s32.totalorder %s1220_s13, %s1216_s12 }
   0x9   : > { %s1287_s20 = scalar_select %p45_p0, %s1224_s14, %s47_s19  }
   0xa   : > { %p56_p4 = por %p55_p2, %p54_p1  ;;  %p61_p5 = scmp.eq.s32.totalorder %s1274_s16, 0 }
   0xb   : > { %p1058_p6 = scmp.lt.s32.totalorder %s1228_s15, 3  ;;  %s1296_s22 = sand.u32 1, %s1224_s14  }
   0xc   : > { %p1291_p7 = por %p61_p5, %p60_p3  ;;  %s1009_s23 = sshll.u32 %s1296_s22, 5 }
   0xd   : > { %s1045_s24 = sshll.u32 %s1228_s15, 9  ;;  %s143_s28 = scalar_lea.vmem [#allocation2], %s1009_s23 }
   0xe   : > { %s1497_s21 = scalar_select %p1291_p7, 1, 0 }
   0xf   : > { %s1303_s27 = scalar_lea.hbm %s1493_s1, %s1045_s24  ;;  %s151_s29 = sshll.u32 %s143_s28, 4  ;;  %s1305_s29 = int_to_ptr.vmem [resolvable:$true] %s151_s29 }
  0x10   : > { %p1307_p8 = pnand %p1058_p6, %p56_p4  ;;  %s140_s4 = scalar_lea.sflag [#allocation3], %s1296_s22 }
  0x11   : > { %s1130_s5 = scalar_lea.hbm %s1303_s27, 512  ;;  %s1135_s8 = scalar_lea.hbm %s1493_s1, 1536 }
  0x12   : > { %p1131_p11 = scmp.ne.s32.totalorder %s1303_s27, %s1130_s5  ;;  %p1132_p12 = pneg %p1307_p8 }
  0x13   : > { %p1136_p1 = scmp.lt.u32.totalorder %s1303_s27, %s1493_s1  ;;  %p1137_p2 = scmp.lt.u32.totalorder %s1135_s8, %s1130_s5 }
  0x14   : > { %p1133_p13 = pnand %p1132_p12, %p1131_p11  ;;  %p1139_p4 = scmp.lt.u32.totalorder %s1130_s5, %s1303_s27 }
  0x15   : > { %p1138_p3 = por %p1137_p2, %p1136_p1 }
  0x16   : > { %p1134_p0 = pneg %p1133_p13 }
  0x17   : > { %p1140_p5 = por %p1139_p4, %p1138_p3 }
  0x19   : > { %p1141_p6 = pnand %p1140_p5, %p1134_p0 }
  0x1b   : > { %1144 = shalt.err (!%p1141_p6)
}
  0x1c   : > { %s1145_s11 = scalar_lea.vmem %s1305_s29, 512  ;;  %s1230_s12 = smov [#allocation2]  }
  0x1d   : > { %p1146_p11 = scmp.ne.s32.totalorder %s1305_s29, %s1145_s11  ;;  %s1150_s18 = sshll.u32 %s1230_s12, 4  ;;  %s1151_s18 = int_to_ptr.vmem [resolvable:$false] %s1150_s18 }
  0x1e   : > { %s1152_s19 = scalar_lea.vmem %s1151_s18, 1024  ;;  %p1153_p10 = scmp.lt.s32.totalorder %s1305_s29, %s1151_s18 }
  0x1f   : > { %p1148_p13 = pnand %p1146_p11, %p1132_p12  ;;  %p1154_p1 = scmp.lt.s32.totalorder %s1152_s19, %s1145_s11 }
  0x21   : > { %p1149_p9 = pneg %p1148_p13  ;;  %p1155_p2 = por %p1154_p1, %p1153_p10 }
  0x23   : > { %p1156_p3 = pnand %p1155_p2, %p1149_p9 }
  0x25   : > { %1159 = shalt.err (!%p1156_p3)
}
  0x26   : > { %1054 = dma.hbm_to_vmem [thread:$0]  (!%p1307_p8), %s1303_s27, 512, %s1305_s29, %s140_s4  }
  0x27   : > { %p1499_p0 = scmp.lt.s32.totalorder %s1228_s15, 4  ;;  %p1500_p4 = scmp.ge.s32.totalorder %s1228_s15, 1 }
  0x28   : > { %s1012_s24 = sshll.u32 %s1296_s22, 4  ;;  %s1046_s25 = sshll.u32 %s1228_s15, 8 }
  0x29   : > { %p1343_p5 = pnand %p1500_p4, %p1499_p0  ;;  %s1352_s5 = scalar_lea.hbm %s1494_s2, %s1046_s25 }
  0x2a   : > { %s162_s6 = scalar_lea.vmem [#allocation4], %s1012_s24  ;;  %s159_s27 = scalar_lea.sflag [#allocation5], %s1296_s22 }
  0x2b   : > { %s1501_s23 = scalar_select %p1343_p5, 1, 0 }
  0x2c   : > { %s170_s7 = sshll.u32 %s162_s6, 4  ;;  %s1160_s29 = scalar_lea.hbm %s1352_s5, 256  ;;  %s171_s7 = int_to_ptr.vmem [resolvable:$true] %s170_s7 }
  0x2d   : > { %p1161_p9 = scmp.ne.s32.totalorder %s1352_s5, %s1160_s29  ;;  %s1165_s8 = scalar_lea.hbm %s1494_s2, 768 }
  0x2e   : > { %p1166_p11 = scmp.lt.u32.totalorder %s1352_s5, %s1494_s2  ;;  %p1167_p13 = scmp.lt.u32.totalorder %s1165_s8, %s1160_s29 }
  0x2f   : > { %p1163_p10 = pnand %p1161_p9, %p1132_p12  ;;  %p1169_p2 = scmp.lt.u32.totalorder %s1160_s29, %s1352_s5 }
  0x30   : > { %p1168_p1 = por %p1167_p13, %p1166_p11 }
  0x31   : > { %p1164_p6 = pneg %p1163_p10 }
  0x32   : > { %p1170_p3 = por %p1169_p2, %p1168_p1 }
  0x34   : > { %p1171_p0 = pnand %p1170_p3, %p1164_p6 }
  0x36   : > { %1174 = shalt.err (!%p1171_p0)
}
  0x37   : > { %s1175_s22 = scalar_lea.vmem %s171_s7, 256  ;;  %s1231_s11 = smov [#allocation4]  }
  0x38   : > { %p1176_p4 = scmp.ne.s32.totalorder %s171_s7, %s1175_s22  ;;  %s1180_s12 = sshll.u32 %s1231_s11, 4  ;;  %s1181_s12 = int_to_ptr.vmem [resolvable:$false] %s1180_s12 }
  0x39   : > { %s1182_s18 = scalar_lea.vmem %s1181_s12, 512  ;;  %p1183_p7 = scmp.lt.s32.totalorder %s171_s7, %s1181_s12 }
  0x3a   : > { %p1178_p9 = pnand %p1176_p4, %p1132_p12  ;;  %p1184_p5 = scmp.lt.s32.totalorder %s1182_s18, %s1175_s22 }
  0x3c   : > { %p1179_p10 = pneg %p1178_p9  ;;  %p1185_p11 = por %p1184_p5, %p1183_p7 }
  0x3e   : > { %p1186_p13 = pnand %p1185_p11, %p1179_p10 }
  0x40   : > { %1189 = shalt.err (!%p1186_p13)
}
  0x41   : > { %1057 = dma.hbm_to_vmem [thread:$0]  (!%p1307_p8), %s1352_s5, 256, %s171_s7, %s159_s27  }
  0x42   : > { %p1502_p6 = scmp.ne.s32.totalorder %s1501_s23, 0 }
  0x43   : > { %s181_s19 = sand.u32 (!%p1502_p6), 1, %s1220_s13   ;;  %p1503_p12 = scmp.ne.s32.totalorder (!%p1502_p6), %s1497_s21, 0 }
  0x44   : > { %179 = sbr.rel (%p1502_p6) target bundleno = 357 (0x165), region = 32  ;;  %s1016_s24 = sshll.u32 (!%p1502_p6), %s181_s19, 5 }
  0x45   : > { %s182_s25 = scalar_lea.sflag (!%p1502_p6), [#allocation3], %s181_s19  ;;  %s1377_s26 = scalar_lea.vmem (!%p1502_p6), [#allocation2], %s1016_s24 }
  0x4b   : > { %1207 = dma.done.wait (%p1503_p12), %s182_s25, 512  }
  0x4c   : > { %1209 = vsyncadd (%p1503_p12), %s182_s25, 4294966784  ;;  %s1017_s28 = sshll.u32 %s181_s19, 4  ;;  %s191_s30 = scalar_lea.sflag [#allocation5], %s181_s19 }
  0x4d   : > { %s1383_s6 = scalar_lea.vmem [#allocation4], %s1017_s28 }
  0x4e   : > { %1211 = dma.done.wait (%p1503_p12), %s191_s30, 256  }
  0x4f   : > { %1213 = vsyncadd (%p1503_p12), %s191_s30, 4294967040  ;;  %v235_v0 = vlaneseq  ;;  %v1232_v1 = vmov 1983009808   ;;  %v1233_v3 = vmov 0   ;;  %v227_v7 = vld [vmem:[%s1377_s26] sm:$0xff]  ;;  %vm391_vm0 = vcmask 1041408  }
  0x50   : > { %v321_v2 = vunpack.c.l.s4 %v1232_v1  ;;  %472 = vmatprep.mubr.bf16.mxu0 %v1233_v3  ;;  %513 = vmatprep.mubr.bf16.mxu1 %v1233_v3  ;;  %v228_v8 = vld [vmem:[%s1377_s26 + $0x8] sm:$0xff]  ;;  %v319_v10 = vcombine.high %v227_v7, %v227_v7  ;;  %v229_v13 = vld [vmem:[%s1377_s26 + $0x10] sm:$0xff]  ;;  %v226_v24 = vld [vmem:[%s1492_s0] sm:$0x1]  ;;  %vm387_vm1 = vcmask 31744   ;;  %p221_p7 = scmp.lt.s32.totalorder %s1274_s16, 2 }
  0x51   : > { %v1391_v4 = vshrl.u32 %v235_v0, 7  ;;  %v336_v12 = vcombine.high %v228_v8, %v228_v8  ;;  %v353_v15 = vcombine.high %v229_v13, %v229_v13  ;;  %v230_v26 = vld [vmem:[%s1377_s26 + $0x18] sm:$0xff]  ;;  %v231_v41 = vld [vmem:[%s1383_s6] sm:$0xff]  ;;  %v1234_v0 = vmov 1966171168  }
  0x52   : > { %v322_v5 = vunpack.c.0.s8 %v321_v2  ;;  %v370_v31 = vcombine.high %v230_v26, %v230_v26  ;;  %v821_v1 = vunpack.c.l.s4 %v1234_v0  ;;  %s1509_s16 = smov (!%p221_p7, %s1274_s16), 2 }
  0x53   : > { %v237_v40 = vsub.s32 0, %v1391_v4  ;;  %v241_v42 = vsub.s32 1, %v1391_v4  ;;  %v245_v43 = vsub.s32 2, %v1391_v4  ;;  %v249_v44 = vsub.s32 3, %v1391_v4  ;;  %s1018_s5 = sshll.u32 %s1509_s16, 4 }
  0x54   : > { %v325_v6 = vsub.s32 %v322_v5, %v1391_v4  ;;  %v253_v52 = vsub.s32 4, %v1391_v4  ;;  %v257_v56 = vsub.s32 5, %v1391_v4  ;;  %v261_v60 = vsub.s32 6, %v1391_v4  ;;  %s224_s29 = scalar_lea.vmem %s1495_s3, %s1018_s5 }
  0x55   : > { %v238_v45 = vrot.slane %v231_v41, %v237_v40  ;;  %v242_v46 = vrot.slane %v231_v41, %v241_v42  ;;  %v246_v47 = vrot.slane %v231_v41, %v245_v43  ;;  %v250_v49 = vrot.slane %v231_v41, %v249_v44 }
  0x56   : > { %v326_v9 = vrot.slane %v227_v7, %v325_v6  ;;  %v343_v11 = vrot.slane %v228_v8, %v325_v6  ;;  %v360_v14 = vrot.slane %v229_v13, %v325_v6  ;;  %v333_v18 = vrot.slane %v319_v10, %v325_v6 }
  0x57   : > { %v350_v20 = vrot.slane %v336_v12, %v325_v6  ;;  %v367_v23 = vrot.slane %v353_v15, %v325_v6  ;;  %v377_v32 = vrot.slane %v230_v26, %v325_v6  ;;  %v384_v33 = vrot.slane %v370_v31, %v325_v6  ;;  %v232_v15 = vld [vmem:[%s1383_s6 + $0x8] sm:$0xff] }
  0x58   : > { %v334_v16 = vcombine.high %v326_v9, %v326_v9  ;;  %v393_v17 = vsel %vm391_vm0, %v326_v9, 0  ;;  %v351_v19 = vcombine.high %v343_v11, %v343_v11  ;;  %v335_v21 = vcombine.high %v333_v18, %v333_v18 }
  0x59   : > { %v399_v22 = vsel %vm391_vm0, %v333_v18, 0  ;;  %v352_v25 = vcombine.high %v350_v20, %v350_v20  ;;  %v405_v27 = vsel %vm391_vm0, %v343_v11, 0  ;;  %v368_v28 = vcombine.high %v360_v14, %v360_v14 }
  0x5a   : > { %1019 = vmatprep.subr.msk.bf16.mxu0 %vm391_vm0, %v334_v16  ;;  %1021 = vmatprep.subr.msk.bf16.mxu1 %vm391_vm0, %v335_v21  ;;  %v411_v29 = vsel %vm391_vm0, %v350_v20, 0  ;;  %v369_v30 = vcombine.high %v367_v23, %v367_v23  ;;  %v417_v34 = vsel %vm391_vm0, %v360_v14, 0  ;;  %v385_v35 = vcombine.high %v377_v32, %v377_v32 }
  0x5b   : > { %441 = vmatpush1.bf16.msra.mxu0 %v393_v17  ;;  %482 = vmatpush1.bf16.msra.mxu1 %v399_v22  ;;  %v423_v36 = vsel %vm391_vm0, %v367_v23, 0  ;;  %v386_v37 = vcombine.high %v384_v33, %v384_v33  ;;  %v429_v38 = vsel %vm391_vm0, %v377_v32, 0  ;;  %v435_v39 = vsel %vm391_vm0, %v384_v33, 0 }
  0x5c   : > { %1023 = vmatprep.subr.msk.bf16.mxu0 %vm391_vm0, %v351_v19  ;;  %1025 = vmatprep.subr.msk.bf16.mxu1 %vm391_vm0, %v352_v25  ;;  %v265_v63 = vsub.s32 7, %v1391_v4  ;;  %v258_v5 = vrot.slane %v231_v41, %v257_v56  ;;  %v262_v6 = vrot.slane %v231_v41, %v261_v60  ;;  %v822_v9 = vunpack.c.0.s8 %v821_v1 }
  0x5d   : > { %v274_v26 = vrot.slane %v232_v15, %v241_v42  ;;  %v282_v32 = vrot.slane %v232_v15, %v249_v44 }
  0x5e   : > { %1020 = vmatmul.mubr.msk.bf16.vlgmr.msra.gmra.mrb[0].mxu0 %vm387_vm1, %v226_v24  ;;  %1022 = vmatmul.mubr.msk.bf16.vlgmr.msra.gmra.mrb[0].mxu1 %vm387_vm1, %v226_v24  ;;  %v266_v8 = vrot.slane %v231_v41, %v265_v63  ;;  %v1450_v22 = vsub.s32 %v822_v9, %v1391_v4 }
  0x5f   : > { %523 = vmatpush1.bf16.msra.mxu0 %v405_v27  ;;  %554 = vmatprep.mubr.bf16.mxu0 %v1233_v3 }
  0x60   : > { %1027 = vmatprep.subr.msk.bf16.mxu0 %vm391_vm0, %v368_v28  ;;  %564 = vmatpush1.bf16.msra.mxu1 %v411_v29  ;;  %v278_v29 = vrot.slane %v232_v15, %v245_v43 }
  0x61   : > { %595 = vmatprep.mubr.bf16.mxu1 %v1233_v3  ;;  %1029 = vmatprep.subr.msk.bf16.mxu1 %vm391_vm0, %v369_v30 }
  0x66   : > { %1024 = vmatmul.mubr.msk.bf16.vlgmr.msra.gmra.mrb[4].mxu0 %vm387_vm1, %v226_v24  ;;  %1026 = vmatmul.mubr.msk.bf16.vlgmr.msra.gmra.mrb[4].mxu1 %vm387_vm1, %v226_v24 }
  0x67   : > { %605 = vmatpush1.bf16.msra.mxu0 %v417_v34  ;;  %636 = vmatprep.mubr.bf16.mxu0 %v1233_v3 }
  0x68   : > { %1031 = vmatprep.subr.msk.bf16.mxu0 %vm391_vm0, %v385_v35  ;;  %646 = vmatpush1.bf16.msra.mxu1 %v423_v36 }
  0x69   : > { %677 = vmatprep.mubr.bf16.mxu1 %v1233_v3  ;;  %1033 = vmatprep.subr.msk.bf16.mxu1 %vm391_vm0, %v386_v37 }
  0x6e   : > { %1028 = vmatmul.mubr.msk.bf16.vlgmr.msra.gmra.mrb[8].mxu0 %vm387_vm1, %v226_v24  ;;  %1030 = vmatmul.mubr.msk.bf16.vlgmr.msra.gmra.mrb[8].mxu1 %vm387_vm1, %v226_v24 }
  0x6f   : > { %687 = vmatpush1.bf16.msra.mxu0 %v429_v38  ;;  %718 = vmatprep.mubr.bf16.mxu0 %v1233_v3 }
  0x70   : > { %728 = vmatpush1.bf16.msra.mxu1 %v435_v39  ;;  %759 = vmatprep.mubr.bf16.mxu1 %v1233_v3  ;;  %v254_v3 = vrot.slane %v231_v41, %v253_v52 }
  0x76   : > { %1032 = vmatmul.mubr.msk.bf16.vlgmr.msra.gmra.mrb[12].mxu0 %vm387_vm1, %v226_v24  ;;  %1034 = vmatmul.mubr.msk.bf16.vlgmr.msra.gmra.mrb[12].mxu1 %vm387_vm1, %v226_v24  ;;  %v270_v24 = vrot.slane %v232_v15, %v237_v40 }
 0x131   : > { %v474_v48 = vpop.f32.mrb[0].mxu0  ;;  %v515_v55 = vpop.f32.mrb[0].mxu1 }
 0x132   : > { %v475_v50 = vadd.f32 %v474_v48, %v238_v45  ;;  %v476_v51 = vpop.f32.mrb[1].mxu0  ;;  %v516_v57 = vadd.f32 %v515_v55, %v246_v47  ;;  %v517_v59 = vpop.f32.mrb[1].mxu1  ;;  %v294_v55 = vrot.slane %v232_v15, %v261_v60 }
 0x133   : > { %v477_v53 = vadd.f32 %v476_v51, %v242_v46  ;;  %v478_v54 = vpop.f32.mrb[2].mxu0  ;;  %v518_v61 = vadd.f32 %v517_v59, %v250_v49  ;;  %v519_v62 = vpop.f32.mrb[2].mxu1  ;;  %v286_v49 = vrot.slane %v232_v15, %v253_v52  ;;  %v290_v51 = vrot.slane %v232_v15, %v257_v56 }
 0x134   : > { %1098 = vtanh.f32 %v475_v50  ;;  %v479_v58 = vpop.f32.mrb[3].mxu0  ;;  %v520_v2 = vpop.f32.mrb[3].mxu1  ;;  %v298_v59 = vrot.slane %v232_v15, %v265_v63 }
 0x135   : > { %1100 = vtanh.f32 %v477_v53 }
 0x136   : > { %1102 = vtanh.f32 %v516_v57 }
 0x137   : > { %1104 = vtanh.f32 %v518_v61 }
 0x139   : > { %v556_v7 = vpop.f32.mrb[4].mxu0  ;;  %v597_v14 = vpop.f32.mrb[4].mxu1 }
 0x13a   : > { %v557_v10 = vadd.f32 %v556_v7, %v254_v3  ;;  %v558_v11 = vpop.f32.mrb[5].mxu0  ;;  %v598_v16 = vadd.f32 %v597_v14, %v262_v6  ;;  %v599_v18 = vpop.f32.mrb[5].mxu1 }
 0x13b   : > { %v559_v12 = vadd.f32 %v558_v11, %v258_v5  ;;  %v560_v13 = vpop.f32.mrb[6].mxu0  ;;  %v600_v19 = vadd.f32 %v599_v18, %v266_v8  ;;  %v601_v20 = vpop.f32.mrb[6].mxu1 }
 0x13c   : > { %1106 = vtanh.f32 %v557_v10  ;;  %v561_v17 = vpop.f32.mrb[7].mxu0  ;;  %v602_v23 = vpop.f32.mrb[7].mxu1 }
 0x13d   : > { %1108 = vtanh.f32 %v559_v12 }
 0x13e   : > { %v1099_v21 = vpop.eup %1098  ;;  %1110 = vtanh.f32 %v598_v16 }
 0x13f   : > { %v1101_v25 = vpop.eup %1100  ;;  %1112 = vtanh.f32 %v600_v19 }
 0x140   : > { %v1103_v27 = vpop.eup %1102  ;;  %v1035_v28 = vpack.c.bf16 %v1101_v25, %v1099_v21 }
 0x141   : > { %v1105_v30 = vpop.eup %1104  ;;  %v638_v31 = vpop.f32.mrb[8].mxu0 }
 0x142   : > { %v826_v33 = vrot.slane %v1035_v28, %v1450_v22  ;;  %v1036_v34 = vpack.c.bf16 %v1105_v30, %v1103_v27  ;;  %v639_v35 = vadd.f32 %v638_v31, %v270_v24  ;;  %v640_v36 = vpop.f32.mrb[9].mxu0  ;;  %v679_v39 = vpop.f32.mrb[8].mxu1 }
 0x143   : > { %v641_v37 = vadd.f32 %v640_v36, %v274_v26  ;;  %v642_v38 = vpop.f32.mrb[10].mxu0  ;;  %v680_v41 = vadd.f32 %v679_v39, %v278_v29  ;;  %v681_v45 = vpop.f32.mrb[9].mxu1 }
 0x144   : > { %v833_v40 = vrot.slane %v1036_v34, %v1450_v22  ;;  %1114 = vtanh.f32 %v639_v35  ;;  %v643_v42 = vpop.f32.mrb[11].mxu0  ;;  %v682_v43 = vadd.f32 %v681_v45, %v282_v32  ;;  %v683_v46 = vpop.f32.mrb[10].mxu1 }
 0x145   : > { %1116 = vtanh.f32 %v641_v37  ;;  %v684_v48 = vpop.f32.mrb[11].mxu1 }
 0x146   : > { %v1107_v47 = vpop.eup %1106  ;;  %v848_v44 = vcombine.low %v826_v33, %v833_v40  ;;  %1118 = vtanh.f32 %v680_v41 }
 0x147   : > { %v1109_v50 = vpop.eup %1108  ;;  %1120 = vtanh.f32 %v682_v43 }
 0x148   : > { %v1111_v53 = vpop.eup %1110  ;;  %v1037_v54 = vpack.c.bf16 %v1109_v50, %v1107_v47  ;;  %v856_v12 = vrot.slane %v848_v44, %v1450_v22 }
 0x149   : > { %v1113_v57 = vpop.eup %1112  ;;  %v720_v58 = vpop.f32.mrb[12].mxu0 }
 0x14a   : > { %v840_v61 = vrot.slane %v1037_v54, %v1450_v22  ;;  %v1038_v52 = vpack.c.bf16 %v1113_v57, %v1111_v53  ;;  %v721_v62 = vadd.f32 %v720_v58, %v286_v49  ;;  %v722_v0 = vpop.f32.mrb[13].mxu0  ;;  %v761_v56 = vpop.f32.mrb[12].mxu1 }
 0x14b   : > { %v723_v1 = vadd.f32 %v722_v0, %v290_v51  ;;  %v724_v2 = vpop.f32.mrb[14].mxu0  ;;  %v762_v5 = vadd.f32 %v761_v56, %v294_v55  ;;  %v763_v6 = vpop.f32.mrb[13].mxu1 }
 0x14c   : > { %v847_v3 = vrot.slane %v1038_v52, %v1450_v22  ;;  %1122 = vtanh.f32 %v721_v62  ;;  %v725_v60 = vpop.f32.mrb[15].mxu0  ;;  %v764_v7 = vadd.f32 %v763_v6, %v298_v59  ;;  %v765_v4 = vpop.f32.mrb[14].mxu1 }
 0x14d   : > { %1124 = vtanh.f32 %v723_v1  ;;  %v766_v9 = vpop.f32.mrb[15].mxu1 }
 0x14e   : > { %v1115_v63 = vpop.eup %1114  ;;  %v849_v8 = vcombine.low %v840_v61, %v847_v3  ;;  %1126 = vtanh.f32 %v762_v5 }
 0x14f   : > { %v1117_v10 = vpop.eup %1116  ;;  %1128 = vtanh.f32 %v764_v7 }
 0x150   : > { %v1119_v11 = vpop.eup %1118  ;;  %v863_v13 = vrot.slane %v849_v8, %v1450_v22  ;;  %v1039_v14 = vpack.c.bf16 %v1117_v10, %v1115_v63 }
 0x151   : > { %v1121_v15 = vpop.eup %1120 }
 0x152   : > { %v864_v16 = vcombine.low %v856_v12, %v863_v13  ;;  %v875_v17 = vrot.slane %v1039_v14, %v1450_v22  ;;  %v1040_v18 = vpack.c.bf16 %v1121_v15, %v1119_v11 }
 0x154   : > { %916 = vst [vmem:[%s224_s29] sm:$0xff] %v864_v16  ;;  %v882_v19 = vrot.slane %v1040_v18, %v1450_v22 }
 0x156   : > { %v1123_v20 = vpop.eup %1122  ;;  %v897_v21 = vcombine.low %v875_v17, %v882_v19 }
 0x157   : > { %v1125_v23 = vpop.eup %1124 }
 0x158   : > { %v1127_v24 = vpop.eup %1126  ;;  %v1041_v25 = vpack.c.bf16 %v1125_v23, %v1123_v20  ;;  %v905_v31 = vrot.slane %v897_v21, %v1450_v22 }
 0x159   : > { %v1129_v26 = vpop.eup %1128 }
 0x15a   : > { %v889_v27 = vrot.slane %v1041_v25, %v1450_v22  ;;  %v1042_v28 = vpack.c.bf16 %v1129_v26, %v1127_v24 }
 0x15c   : > { %v896_v29 = vrot.slane %v1042_v28, %v1450_v22 }
 0x15e   : > { %v898_v30 = vcombine.low %v889_v27, %v896_v29 }
 0x160   : > { %v912_v32 = vrot.slane %v898_v30, %v1450_v22 }
 0x162   : > { %v913_v33 = vcombine.low %v905_v31, %v912_v32 }
 0x164   : > { %917 = vst [vmem:[%s224_s29 + $0x8] sm:$0xff] %v913_v33 }
 0x165 PF: > { %p16_p8 = scmp.ge.s32.totalorder %s1277_s17, 5   ;;  %s1504_s12 = smov %s1220_s13 }
 0x166   : > { %s1505_s13 = smov %s1224_s14  ;;  %s1506_s14 = smov %s1287_s20 }
 0x167   : > { %s1507_s15 = smov %s1277_s17  ;;  %18 = sbr.rel (!%p16_p8) target bundleno = 5 (0x5), region = 85 }
 0x16e   :  { %937 = vsyncpa [#allocation3], 1 }
 0x16f   :  { %939 = vsyncpa [#allocation3 + $0x1], 1 }
 0x170   :  { %940 = vsyncpa [#allocation5], 1 }
 0x171   :  { %942 = vsyncpa [#allocation5 + $0x1], 1 }

// kernel: generator_forward.6
= control target key start
LH: loop header
LB: loop body
LE: loop exit
PB: predicated region body
PF: predicated region fallthrough
CT: control target
= control target key end

     0   :  { %8 = vsyncpa [#allocation3], 0  ;;  %s280_s0 = inlined_call_operand.vmem [shape: bf16[2,20], index: 0, kind: input, shape index: {}]   ;;  %s281_s1 = inlined_call_operand.hbm [shape: bf16[1,20,256], index: 1, kind: input, shape index: {}]   ;;  %s282_s2 = inlined_call_operand.hbm [shape: f32[1,1,256], index: 2, kind: input, shape index: {}]   ;;  %s283_s3 = inlined_call_operand.vmem [shape: bf16[1,2,256], index: 3, kind: output, shape index: {}]  }
   0x1   :  { %9 = vsyncpa [#allocation5], 0  ;;  %s224_s12 = smov [#allocation2]   ;;  %s176_s16 = scalar_lea.hbm %s281_s1, 384 }
   0x2   :  { %s17_s13 = sshll.u32 %s224_s12, 4  ;;  %p177_p0 = scmp.ne.s32.totalorder %s281_s1, %s176_s16  ;;  %s18_s13 = int_to_ptr.vmem [resolvable:$true] %s17_s13 }
   0x3   :  { %p180_p1 = scmp.lt.u32.totalorder %s176_s16, %s281_s1 }
   0x5   :  { %p182_p2 = pnand %p180_p1, %p177_p0 }
   0x7   :  { %185 = shalt.err (!%p182_p2)
}
   0x8   :  { %s186_s21 = scalar_lea.vmem %s18_s13, 384  ;;  %p191_p4 = scmp.lt.s32.totalorder %s18_s13, %s18_s13 }
   0x9   :  { %p187_p3 = scmp.ne.s32.totalorder %s18_s13, %s186_s21  ;;  %p192_p5 = scmp.lt.s32.totalorder %s186_s21, %s186_s21 }
   0xb   :  { %p193_p6 = por %p192_p5, %p191_p4 }
   0xd   :  { %p194_p7 = pnand %p193_p6, %p187_p3 }
   0xf   :  { %197 = shalt.err (!%p194_p7)
}
  0x10   :  { %s225_s22 = smov 128   ;;  %s226_s23 = smov 8  }
  0x11   :  { %23 = dma.hbm_to_vmem [thread:$0]  %s281_s1, 384, %s18_s13, [#allocation3], %s225_s22, %s225_s22, %s226_s23  }
  0x12   :  { %s227_s26 = smov [#allocation4]   ;;  %s198_s30 = scalar_lea.hbm %s282_s2, 32 }
  0x13   :  { %s30_s27 = sshll.u32 %s227_s26, 4  ;;  %p199_p8 = scmp.ne.s32.totalorder %s282_s2, %s198_s30  ;;  %s31_s27 = int_to_ptr.vmem [resolvable:$true] %s30_s27 }
  0x14   :  { %p202_p9 = scmp.lt.u32.totalorder %s198_s30, %s282_s2 }
  0x16   :  { %p204_p10 = pnand %p202_p9, %p199_p8 }
  0x18   :  { %207 = shalt.err (!%p204_p10)
}
  0x19   :  { %s208_s8 = scalar_lea.vmem %s31_s27, 32  ;;  %p213_p12 = scmp.lt.s32.totalorder %s31_s27, %s31_s27 }
  0x1a   :  { %p209_p11 = scmp.ne.s32.totalorder %s31_s27, %s208_s8  ;;  %p214_p13 = scmp.lt.s32.totalorder %s208_s8, %s208_s8 }
  0x1c   :  { %p215_p0 = por %p214_p13, %p213_p12 }
  0x1e   :  { %p216_p1 = pnand %p215_p0, %p209_p11 }
  0x20   :  { %219 = shalt.err (!%p216_p1)
}
  0x21   :  { %33 = dma.hbm_to_vmem [thread:$0]  %s282_s2, 32, %s31_s27, [#allocation5]  }
  0x22   :  { %220 = dma.done.wait [#allocation3], 384  }
  0x23   :  { %221 = vsyncadd [#allocation3], 4294966912 }
  0x24   :  { %222 = dma.done.wait [#allocation5], 32  }
  0x25   :  { %223 = vsyncadd [#allocation5], 4294967264  ;;  %v228_v0 = vmov 0   ;;  %v171_v1 = vld [vmem:[#allocation2 + $0x4] ss:$8 sps:$4 sm:$0xff]   ;;  %vm76_vm0 = vcmask 1041408   ;;  %v47_v8 = vlaneseq }
  0x26   :  { %115 = vmatprep.mubr.bf16.mxu0 %v228_v0  ;;  %v173_v2 = vld [vmem:[#allocation2] ss:$8 sps:$4 sm:$0xff]   ;;  %v44_v3 = vld [vmem:[#allocation2 + $0x10] sm:$0x33]  ;;  %83 = vmatprep.subr.bf16.mxu0 %v171_v1  ;;  %vm72_vm1 = vcmask 162816  }
  0x27   :  { %v160_v4 = vcombine.high %v44_v3, %v44_v3  ;;  %v159_v5 = vcombine.low %v44_v3, %v44_v3  ;;  %84 = vmatpush1.bf16.msra.mxu0 %v173_v2  ;;  %v41_v7 = vld [vmem:[%s280_s0] sm:$0x1]  ;;  %v48_v9 = vshrl.u32 %v47_v8, 7  ;;  %v45_v11 = vld [vmem:[#allocation4] sm:$0x3] }
  0x28   :  { %v229_v14 = vmov 1966171168  }
  0x29   :  { %161 = vmatprep.subr.msk.bf16.mxu0 %vm76_vm0, %v160_v4  ;;  %v78_v6 = vsel %vm76_vm0, %v159_v5, 0  ;;  %v49_v10 = vsub.s32 0, %v48_v9  ;;  %v53_v12 = vsub.s32 1, %v48_v9  ;;  %v136_v15 = vunpack.c.l.s4 %v229_v14 }
  0x2b   :  { %86 = vmatpush1.bf16.msra.mxu0 %v78_v6  ;;  %v50_v13 = vrot.slane %v45_v11, %v49_v10  ;;  %v54_v16 = vrot.slane %v45_v11, %v53_v12  ;;  %v137_v20 = vunpack.c.0.s8 %v136_v15 }
  0x2d   :  { %v140_v27 = vsub.s32 %v137_v20, %v48_v9 }
  0x2e   :  { %162 = vmatmul.mubr.msk.bf16.vlgmr.msra.gmra.mrb[0].mxu0 %vm72_vm1, %v41_v7 }
 0x101   :  { %v117_v17 = vpop.f32.mrb[0].mxu0 }
 0x102   :  { %v118_v18 = vadd.f32 %v117_v17, %v50_v13  ;;  %v119_v19 = vpop.f32.mrb[1].mxu0 }
 0x103   :  { %v120_v21 = vadd.f32 %v119_v19, %v54_v16  ;;  %v121_v22 = vpop.f32.mrb[2].mxu0 }
 0x104   :  { %vm124_vm2 = vcmp.ge.f32.partialorder %v118_v18, 0.0  ;;  %v126_v23 = vmul.f32 0.01, %v118_v18  ;;  %v122_v24 = vpop.f32.mrb[3].mxu0 }
 0x105   :  { %vm125_vm3 = vcmp.ge.f32.partialorder %v120_v21, 0.0  ;;  %v127_v25 = vmul.f32 0.01, %v120_v21 }
 0x106   :  { %v128_v26 = vsel %vm124_vm2, %v118_v18, %v126_v23 }
 0x107   :  { %v129_v28 = vsel %vm125_vm3, %v120_v21, %v127_v25 }
 0x108   :  { %v163_v29 = vpack.c.bf16 %v129_v28, %v128_v26 }
 0x10a   :  { %v141_v30 = vrot.slane %v163_v29, %v140_v27 }
 0x10c   :  { %164 = vst.sshfl [vmem:[%s283_s3] sm:$0x5 pattern:$0x73625140] %v141_v30 }
 0x10d   :  { %155 = vsyncpa [#allocation3], 1 }
 0x10e   :  { %156 = vsyncpa [#allocation5], 1 }

// kernel: squeeze.7
= control target key start
LH: loop header
LB: loop body
LE: loop exit
PB: predicated region body
PF: predicated region fallthrough
CT: control target
= control target key end

     0   :  { %s736_s10 = smov 116   ;;  %vm34_vm0 = vcmask 31744   ;;  %s737_s11 = smov 120   ;;  %v766_v19 = vmov 0.0   ;;  %s1072_s0 = inlined_call_operand.vmem [shape: bf16[1,2,256], index: 0, kind: input, shape index: {}]   ;;  %s1073_s1 = inlined_call_operand.vmem [shape: bf16[2,4,4,4,4], index: 1, kind: output, shape index: {}]  }
   0x1   :  { %v671_v0 = vld [vmem:[%s1072_s0 + $0x1] sm:$0x1]  ;;  %v29_v1 = vld [vmem:[%s1072_s0] sm:$0x1]  ;;  %s735_s0 = smov 124   ;;  %s738_s12 = smov 112  }
   0x2   :  { %v16_v2 = vunpack.c.l.bf16 %v671_v0  ;;  %v30_v3 = vunpack.c.l.bf16 %v29_v1  ;;  %s739_s13 = smov 108   ;;  %s740_s14 = smov 104  }
   0x3   :  { %s741_s15 = smov 100   ;;  %s742_s16 = smov 96  }
   0x4   :  { %19 = vst [vmem:[#allocation1 + $0x8] sm:$0x3] %v16_v2  ;;  %32 = vst [vmem:[#allocation1] sm:$0x3] %v30_v3  ;;  %s743_s17 = smov 92   ;;  %s744_s18 = smov 88  }
   0x5   :  { %s745_s19 = smov 84   ;;  %s746_s20 = smov 80  }
   0x6   :  { %s747_s21 = smov 76   ;;  %s748_s22 = smov 72  }
   0x7   :  { %s749_s23 = smov 68   ;;  %s750_s24 = smov 64  }
   0x8   :  { %s751_s25 = smov 60   ;;  %s752_s26 = smov 56  }
   0x9   :  { %s753_s27 = smov 52   ;;  %s754_s28 = smov 48  }
   0xa   :  { %s755_s29 = smov 44   ;;  %s756_s30 = smov 40  }
   0xb   :  { %v783_v4 = vld.sshfl [vmem:[#allocation1] sm:$0xff pattern:$0x99999810]   ;;  %s757_s2 = smov 36   ;;  %s758_s3 = smov 32  }
   0xc   :  { %46 = vrot.lane.b32.xlu0 %v783_v4, %s735_s0  ;;  %70 = vrot.lane.b32.xlu1 %v783_v4, %s736_s10  ;;  %v39_v5 = vld [vmem:[#allocation1 + $0x8] sm:$0x3]   ;;  %v33_v6 = vld [vmem:[#allocation1] sm:$0x3]   ;;  %s759_s4 = smov 28   ;;  %s760_s5 = smov 24  }
   0xd   :  { %42 = vst.msk [vmem:[#allocation0 + $0x40] sm:$0x1] %vm34_vm0, %v39_v5   ;;  %44 = vst.msk [vmem:[#allocation0 + $0xbf] sm:$0x2] %vm34_vm0, %v39_v5   ;;  %s761_s6 = smov 20   ;;  %s762_s7 = smov 16  }
   0xe   :  { %35 = vst.msk [vmem:[#allocation0] sm:$0x1] %vm34_vm0, %v33_v6   ;;  %37 = vst.msk [vmem:[#allocation0 + $0x7f] sm:$0x2] %vm34_vm0, %v33_v6   ;;  %s763_s8 = smov 12   ;;  %s764_s9 = smov 8  }
   0xf   :  { %s765_s0 = smov 4  }
  0x10   :  { %58 = vrot.lane.b32.xlu0 %v783_v4, %s737_s11  ;;  %82 = vrot.lane.b32.xlu1 %v783_v4, %s738_s12 }
  0x14   :  { %94 = vrot.lane.b32.xlu0 %v783_v4, %s739_s13  ;;  %106 = vrot.lane.b32.xlu1 %v783_v4, %s740_s14 }
  0x18   :  { %118 = vrot.lane.b32.xlu0 %v783_v4, %s741_s15  ;;  %130 = vrot.lane.b32.xlu1 %v783_v4, %s742_s16 }
  0x1c   :  { %142 = vrot.lane.b32.xlu0 %v783_v4, %s743_s17  ;;  %154 = vrot.lane.b32.xlu1 %v783_v4, %s744_s18 }
  0x20   :  { %166 = vrot.lane.b32.xlu0 %v783_v4, %s745_s19  ;;  %178 = vrot.lane.b32.xlu1 %v783_v4, %s746_s20 }
  0x24   :  { %190 = vrot.lane.b32.xlu0 %v783_v4, %s747_s21  ;;  %202 = vrot.lane.b32.xlu1 %v783_v4, %s748_s22 }
  0x28   :  { %214 = vrot.lane.b32.xlu0 %v783_v4, %s749_s23  ;;  %226 = vrot.lane.b32.xlu1 %v783_v4, %s750_s24 }
  0x2c   :  { %238 = vrot.lane.b32.xlu0 %v783_v4, %s751_s25  ;;  %250 = vrot.lane.b32.xlu1 %v783_v4, %s752_s26 }
  0x30   :  { %262 = vrot.lane.b32.xlu0 %v783_v4, %s753_s27  ;;  %274 = vrot.lane.b32.xlu1 %v783_v4, %s754_s28 }
  0x34   :  { %286 = vrot.lane.b32.xlu0 %v783_v4, %s755_s29  ;;  %298 = vrot.lane.b32.xlu1 %v783_v4, %s756_s30 }
  0x38   :  { %310 = vrot.lane.b32.xlu0 %v783_v4, %s757_s2  ;;  %322 = vrot.lane.b32.xlu1 %v783_v4, %s758_s3 }
  0x3c   :  { %334 = vrot.lane.b32.xlu0 %v783_v4, %s759_s4  ;;  %346 = vrot.lane.b32.xlu1 %v783_v4, %s760_s5 }
  0x40   :  { %358 = vrot.lane.b32.xlu0 %v783_v4, %s761_s6  ;;  %370 = vrot.lane.b32.xlu1 %v783_v4, %s762_s7 }
  0x44   :  { %382 = vrot.lane.b32.xlu0 %v783_v4, %s763_s8  ;;  %394 = vrot.lane.b32.xlu1 %v783_v4, %s764_s9 }
  0x48   :  { %406 = vrot.lane.b32.xlu0 %v783_v4, %s765_s0 }
  0x7e   :  { %v47_v7 = vpop.permute.xlu0 %46   ;;  %v71_v8 = vpop.permute.xlu1 %70  }
  0x7f   :  { %50 = vst.msk [vmem:[#allocation0 + $0x1] sm:$0x1] %vm34_vm0, %v47_v7   ;;  %52 = vst.msk [vmem:[#allocation0 + $0x80] sm:$0x2] %vm34_vm0, %v47_v7  }
  0x80   :  { %54 = vst.msk [vmem:[#allocation0 + $0x3f] sm:$0x4] %vm34_vm0, %v47_v7   ;;  %56 = vst.msk [vmem:[#allocation0 + $0xbe] sm:$0x8] %vm34_vm0, %v47_v7  }
  0x81   :  { %74 = vst.msk [vmem:[#allocation0 + $0x3] sm:$0x1] %vm34_vm0, %v71_v8   ;;  %76 = vst.msk [vmem:[#allocation0 + $0x82] sm:$0x2] %vm34_vm0, %v71_v8  }
  0x82   :  { %78 = vst.msk [vmem:[#allocation0 + $0x41] sm:$0x4] %vm34_vm0, %v71_v8   ;;  %80 = vst.msk [vmem:[#allocation0 + $0xc0] sm:$0x8] %vm34_vm0, %v71_v8   ;;  %v59_v9 = vpop.permute.xlu0 %58   ;;  %v83_v10 = vpop.permute.xlu1 %82  }
  0x83   :  { %62 = vst.msk [vmem:[#allocation0 + $0x2] sm:$0x1] %vm34_vm0, %v59_v9   ;;  %64 = vst.msk [vmem:[#allocation0 + $0x81] sm:$0x2] %vm34_vm0, %v59_v9  }
  0x84   :  { %66 = vst.msk [vmem:[#allocation0 + $0x40] sm:$0x4] %vm34_vm0, %v59_v9   ;;  %68 = vst.msk [vmem:[#allocation0 + $0xbf] sm:$0x8] %vm34_vm0, %v59_v9  }
  0x85   :  { %86 = vst.msk [vmem:[#allocation0 + $0x8] sm:$0x1] %vm34_vm0, %v83_v10   ;;  %88 = vst.msk [vmem:[#allocation0 + $0x87] sm:$0x2] %vm34_vm0, %v83_v10  }
  0x86   :  { %90 = vst.msk [vmem:[#allocation0 + $0x46] sm:$0x4] %vm34_vm0, %v83_v10   ;;  %92 = vst.msk [vmem:[#allocation0 + $0xc5] sm:$0x8] %vm34_vm0, %v83_v10   ;;  %v95_v11 = vpop.permute.xlu0 %94   ;;  %v107_v12 = vpop.permute.xlu1 %106  }
  0x87   :  { %98 = vst.msk [vmem:[#allocation0 + $0x9] sm:$0x1] %vm34_vm0, %v95_v11   ;;  %100 = vst.msk [vmem:[#allocation0 + $0x88] sm:$0x2] %vm34_vm0, %v95_v11  }
  0x88   :  { %102 = vst.msk [vmem:[#allocation0 + $0x47] sm:$0x4] %vm34_vm0, %v95_v11   ;;  %104 = vst.msk [vmem:[#allocation0 + $0xc6] sm:$0x8] %vm34_vm0, %v95_v11  }
  0x89   :  { %110 = vst.msk [vmem:[#allocation0 + $0xa] sm:$0x1] %vm34_vm0, %v107_v12   ;;  %112 = vst.msk [vmem:[#allocation0 + $0x89] sm:$0x2] %vm34_vm0, %v107_v12  }
  0x8a   :  { %114 = vst.msk [vmem:[#allocation0 + $0x48] sm:$0x4] %vm34_vm0, %v107_v12   ;;  %116 = vst.msk [vmem:[#allocation0 + $0xc7] sm:$0x8] %vm34_vm0, %v107_v12   ;;  %v421_v13 = vld [vmem:[#allocation0] sm:$0xf]  ;;  %v119_v16 = vpop.permute.xlu0 %118   ;;  %v131_v17 = vpop.permute.xlu1 %130  }
  0x8b   :  { %v474_v14 = vld [vmem:[#allocation0 + $0x40] sm:$0xf]  ;;  %122 = vst.msk [vmem:[#allocation0 + $0xb] sm:$0x1] %vm34_vm0, %v119_v16   ;;  %124 = vst.msk [vmem:[#allocation0 + $0x8a] sm:$0x2] %vm34_vm0, %v119_v16   ;;  %v422_v20 = vpack.c.bf16 %v766_v19, %v421_v13 }
  0x8c   :  { %v530_v15 = vld [vmem:[#allocation0 + $0x80] sm:$0xf]  ;;  %126 = vst.msk [vmem:[#allocation0 + $0x49] sm:$0x4] %vm34_vm0, %v119_v16   ;;  %128 = vst.msk [vmem:[#allocation0 + $0xc8] sm:$0x8] %vm34_vm0, %v119_v16   ;;  %v475_v21 = vpack.c.bf16 %v766_v19, %v474_v14 }
  0x8d   :  { %v586_v18 = vld [vmem:[#allocation0 + $0xc0] sm:$0xf]  ;;  %v531_v22 = vpack.c.bf16 %v766_v19, %v530_v15  ;;  %134 = vst.msk [vmem:[#allocation0 + $0x10] sm:$0x1] %vm34_vm0, %v131_v17   ;;  %136 = vst.msk [vmem:[#allocation0 + $0x8f] sm:$0x2] %vm34_vm0, %v131_v17  }
  0x8e   :  { %138 = vst.msk [vmem:[#allocation0 + $0x4e] sm:$0x4] %vm34_vm0, %v131_v17   ;;  %140 = vst.msk [vmem:[#allocation0 + $0xcd] sm:$0x8] %vm34_vm0, %v131_v17   ;;  %v587_v23 = vpack.c.bf16 %v766_v19, %v586_v18  ;;  %v143_v24 = vpop.permute.xlu0 %142   ;;  %v155_v25 = vpop.permute.xlu1 %154  }
  0x8f   :  { %424 = vst [vmem:[%s1073_s1] sm:$0x3] %v422_v20  ;;  %679 = vst [vmem:[%s1073_s1 + $0x10] sm:$0x3] %v475_v21 }
  0x90   :  { %687 = vst [vmem:[%s1073_s1 + $0x20] sm:$0x3] %v531_v22  ;;  %695 = vst [vmem:[%s1073_s1 + $0x30] sm:$0x3] %v587_v23 }
  0x91   :  { %146 = vst.msk [vmem:[#allocation0 + $0x11] sm:$0x1] %vm34_vm0, %v143_v24   ;;  %148 = vst.msk [vmem:[#allocation0 + $0x90] sm:$0x2] %vm34_vm0, %v143_v24  }
  0x92   :  { %150 = vst.msk [vmem:[#allocation0 + $0x4f] sm:$0x4] %vm34_vm0, %v143_v24   ;;  %152 = vst.msk [vmem:[#allocation0 + $0xce] sm:$0x8] %vm34_vm0, %v143_v24   ;;  %v537_v27 = vld [vmem:[#allocation0 + $0x88] sm:$0xf]  ;;  %v167_v29 = vpop.permute.xlu0 %166   ;;  %v179_v30 = vpop.permute.xlu1 %178  }
  0x93   :  { %158 = vst.msk [vmem:[#allocation0 + $0x12] sm:$0x1] %vm34_vm0, %v155_v25   ;;  %160 = vst.msk [vmem:[#allocation0 + $0x91] sm:$0x2] %vm34_vm0, %v155_v25   ;;  %v481_v26 = vld [vmem:[#allocation0 + $0x48] sm:$0xf]  ;;  %v538_v32 = vpack.c.bf16 %v766_v19, %v537_v27 }
  0x94   :  { %162 = vst.msk [vmem:[#allocation0 + $0x50] sm:$0x4] %vm34_vm0, %v155_v25   ;;  %164 = vst.msk [vmem:[#allocation0 + $0xcf] sm:$0x8] %vm34_vm0, %v155_v25   ;;  %v593_v28 = vld [vmem:[#allocation0 + $0xc8] sm:$0xf]  ;;  %v482_v31 = vpack.c.bf16 %v766_v19, %v481_v26 }
  0x95   :  { %v594_v33 = vpack.c.bf16 %v766_v19, %v593_v28  ;;  %v426_v34 = vld [vmem:[#allocation0 + $0x8] sm:$0xf]  ;;  %170 = vst.msk [vmem:[#allocation0 + $0x13] sm:$0x1] %vm34_vm0, %v167_v29   ;;  %172 = vst.msk [vmem:[#allocation0 + $0x92] sm:$0x2] %vm34_vm0, %v167_v29  }
  0x96   :  { %174 = vst.msk [vmem:[#allocation0 + $0x51] sm:$0x4] %vm34_vm0, %v167_v29   ;;  %176 = vst.msk [vmem:[#allocation0 + $0xd0] sm:$0x8] %vm34_vm0, %v167_v29   ;;  %v427_v35 = vpack.c.bf16 %v766_v19, %v426_v34  ;;  %v191_v36 = vpop.permute.xlu0 %190   ;;  %v203_v37 = vpop.permute.xlu1 %202  }
  0x97   :  { %182 = vst.msk [vmem:[#allocation0 + $0x18] sm:$0x1] %vm34_vm0, %v179_v30   ;;  %184 = vst.msk [vmem:[#allocation0 + $0x97] sm:$0x2] %vm34_vm0, %v179_v30  }
  0x98   :  { %186 = vst.msk [vmem:[#allocation0 + $0x56] sm:$0x4] %vm34_vm0, %v179_v30   ;;  %188 = vst.msk [vmem:[#allocation0 + $0xd5] sm:$0x8] %vm34_vm0, %v179_v30  }
  0x99   :  { %680 = vst [vmem:[%s1073_s1 + $0x12] sm:$0x3] %v482_v31  ;;  %688 = vst [vmem:[%s1073_s1 + $0x22] sm:$0x3] %v538_v32 }
  0x9a   :  { %696 = vst [vmem:[%s1073_s1 + $0x32] sm:$0x3] %v594_v33  ;;  %672 = vst [vmem:[%s1073_s1 + $0x2] sm:$0x3] %v427_v35  ;;  %v215_v41 = vpop.permute.xlu0 %214   ;;  %v227_v42 = vpop.permute.xlu1 %226  }
  0x9b   :  { %194 = vst.msk [vmem:[#allocation0 + $0x19] sm:$0x1] %vm34_vm0, %v191_v36   ;;  %196 = vst.msk [vmem:[#allocation0 + $0x98] sm:$0x2] %vm34_vm0, %v191_v36  }
  0x9c   :  { %198 = vst.msk [vmem:[#allocation0 + $0x57] sm:$0x4] %vm34_vm0, %v191_v36   ;;  %200 = vst.msk [vmem:[#allocation0 + $0xd6] sm:$0x8] %vm34_vm0, %v191_v36   ;;  %v432_v39 = vld [vmem:[#allocation0 + $0x10] sm:$0xf] }
  0x9d   :  { %206 = vst.msk [vmem:[#allocation0 + $0x1a] sm:$0x1] %vm34_vm0, %v203_v37   ;;  %208 = vst.msk [vmem:[#allocation0 + $0x99] sm:$0x2] %vm34_vm0, %v203_v37   ;;  %v488_v38 = vld [vmem:[#allocation0 + $0x50] sm:$0xf]  ;;  %v433_v45 = vpack.c.bf16 %v766_v19, %v432_v39 }
  0x9e   :  { %210 = vst.msk [vmem:[#allocation0 + $0x58] sm:$0x4] %vm34_vm0, %v203_v37   ;;  %212 = vst.msk [vmem:[#allocation0 + $0xd7] sm:$0x8] %vm34_vm0, %v203_v37   ;;  %v544_v40 = vld [vmem:[#allocation0 + $0x90] sm:$0xf]  ;;  %v489_v43 = vpack.c.bf16 %v766_v19, %v488_v38  ;;  %v239_v48 = vpop.permute.xlu0 %238   ;;  %v251_v49 = vpop.permute.xlu1 %250  }
  0x9f   :  { %v600_v44 = vld [vmem:[#allocation0 + $0xd0] sm:$0xf]  ;;  %v545_v46 = vpack.c.bf16 %v766_v19, %v544_v40  ;;  %218 = vst.msk [vmem:[#allocation0 + $0x1b] sm:$0x1] %vm34_vm0, %v215_v41   ;;  %220 = vst.msk [vmem:[#allocation0 + $0x9a] sm:$0x2] %vm34_vm0, %v215_v41  }
  0xa0   :  { %222 = vst.msk [vmem:[#allocation0 + $0x59] sm:$0x4] %vm34_vm0, %v215_v41   ;;  %224 = vst.msk [vmem:[#allocation0 + $0xd8] sm:$0x8] %vm34_vm0, %v215_v41   ;;  %v601_v47 = vpack.c.bf16 %v766_v19, %v600_v44 }
  0xa1   :  { %230 = vst.msk [vmem:[#allocation0 + $0x20] sm:$0x1] %vm34_vm0, %v227_v42   ;;  %232 = vst.msk [vmem:[#allocation0 + $0x9f] sm:$0x2] %vm34_vm0, %v227_v42  }
  0xa2   :  { %234 = vst.msk [vmem:[#allocation0 + $0x5e] sm:$0x4] %vm34_vm0, %v227_v42   ;;  %236 = vst.msk [vmem:[#allocation0 + $0xdd] sm:$0x8] %vm34_vm0, %v227_v42   ;;  %v263_v53 = vpop.permute.xlu0 %262   ;;  %v275_v54 = vpop.permute.xlu1 %274  }
  0xa3   :  { %681 = vst [vmem:[%s1073_s1 + $0x14] sm:$0x3] %v489_v43  ;;  %673 = vst [vmem:[%s1073_s1 + $0x4] sm:$0x3] %v433_v45 }
  0xa4   :  { %689 = vst [vmem:[%s1073_s1 + $0x24] sm:$0x3] %v545_v46  ;;  %697 = vst [vmem:[%s1073_s1 + $0x34] sm:$0x3] %v601_v47 }
  0xa5   :  { %242 = vst.msk [vmem:[#allocation0 + $0x21] sm:$0x1] %vm34_vm0, %v239_v48   ;;  %244 = vst.msk [vmem:[#allocation0 + $0xa0] sm:$0x2] %vm34_vm0, %v239_v48  }
  0xa6   :  { %246 = vst.msk [vmem:[#allocation0 + $0x5f] sm:$0x4] %vm34_vm0, %v239_v48   ;;  %248 = vst.msk [vmem:[#allocation0 + $0xde] sm:$0x8] %vm34_vm0, %v239_v48   ;;  %v551_v50 = vld [vmem:[#allocation0 + $0x98] sm:$0xf]  ;;  %v287_v60 = vpop.permute.xlu0 %286   ;;  %v299_v61 = vpop.permute.xlu1 %298  }
  0xa7   :  { %254 = vst.msk [vmem:[#allocation0 + $0x22] sm:$0x1] %vm34_vm0, %v251_v49   ;;  %256 = vst.msk [vmem:[#allocation0 + $0xa1] sm:$0x2] %vm34_vm0, %v251_v49   ;;  %v607_v51 = vld [vmem:[#allocation0 + $0xd8] sm:$0xf]  ;;  %v552_v55 = vpack.c.bf16 %v766_v19, %v551_v50 }
  0xa8   :  { %258 = vst.msk [vmem:[#allocation0 + $0x60] sm:$0x4] %vm34_vm0, %v251_v49   ;;  %260 = vst.msk [vmem:[#allocation0 + $0xdf] sm:$0x8] %vm34_vm0, %v251_v49   ;;  %v439_v52 = vld [vmem:[#allocation0 + $0x18] sm:$0xf]  ;;  %v608_v56 = vpack.c.bf16 %v766_v19, %v607_v51 }
  0xa9   :  { %v495_v57 = vld [vmem:[#allocation0 + $0x58] sm:$0xf]  ;;  %v440_v58 = vpack.c.bf16 %v766_v19, %v439_v52  ;;  %266 = vst.msk [vmem:[#allocation0 + $0x23] sm:$0x1] %vm34_vm0, %v263_v53   ;;  %268 = vst.msk [vmem:[#allocation0 + $0xa2] sm:$0x2] %vm34_vm0, %v263_v53  }
  0xaa   :  { %270 = vst.msk [vmem:[#allocation0 + $0x61] sm:$0x4] %vm34_vm0, %v263_v53   ;;  %272 = vst.msk [vmem:[#allocation0 + $0xe0] sm:$0x8] %vm34_vm0, %v263_v53   ;;  %v496_v59 = vpack.c.bf16 %v766_v19, %v495_v57  ;;  %v311_v1 = vpop.permute.xlu0 %310   ;;  %v323_v2 = vpop.permute.xlu1 %322  }
  0xab   :  { %278 = vst.msk [vmem:[#allocation0 + $0x28] sm:$0x1] %vm34_vm0, %v275_v54   ;;  %280 = vst.msk [vmem:[#allocation0 + $0xa7] sm:$0x2] %vm34_vm0, %v275_v54  }
  0xac   :  { %282 = vst.msk [vmem:[#allocation0 + $0x66] sm:$0x4] %vm34_vm0, %v275_v54   ;;  %284 = vst.msk [vmem:[#allocation0 + $0xe5] sm:$0x8] %vm34_vm0, %v275_v54  }
  0xad   :  { %690 = vst [vmem:[%s1073_s1 + $0x26] sm:$0x3] %v552_v55  ;;  %698 = vst [vmem:[%s1073_s1 + $0x36] sm:$0x3] %v608_v56 }
  0xae   :  { %674 = vst [vmem:[%s1073_s1 + $0x6] sm:$0x3] %v440_v58  ;;  %682 = vst [vmem:[%s1073_s1 + $0x16] sm:$0x3] %v496_v59  ;;  %v335_v8 = vpop.permute.xlu0 %334   ;;  %v347_v9 = vpop.permute.xlu1 %346  }
  0xaf   :  { %290 = vst.msk [vmem:[#allocation0 + $0x29] sm:$0x1] %vm34_vm0, %v287_v60   ;;  %292 = vst.msk [vmem:[#allocation0 + $0xa8] sm:$0x2] %vm34_vm0, %v287_v60  }
  0xb0   :  { %294 = vst.msk [vmem:[#allocation0 + $0x67] sm:$0x4] %vm34_vm0, %v287_v60   ;;  %296 = vst.msk [vmem:[#allocation0 + $0xe6] sm:$0x8] %vm34_vm0, %v287_v60   ;;  %v446_v63 = vld [vmem:[#allocation0 + $0x20] sm:$0xf] }
  0xb1   :  { %302 = vst.msk [vmem:[#allocation0 + $0x2a] sm:$0x1] %vm34_vm0, %v299_v61   ;;  %304 = vst.msk [vmem:[#allocation0 + $0xa9] sm:$0x2] %vm34_vm0, %v299_v61   ;;  %v614_v62 = vld [vmem:[#allocation0 + $0xe0] sm:$0xf]  ;;  %v447_v5 = vpack.c.bf16 %v766_v19, %v446_v63 }
  0xb2   :  { %306 = vst.msk [vmem:[#allocation0 + $0x68] sm:$0x4] %vm34_vm0, %v299_v61   ;;  %308 = vst.msk [vmem:[#allocation0 + $0xe7] sm:$0x8] %vm34_vm0, %v299_v61   ;;  %v502_v0 = vld [vmem:[#allocation0 + $0x60] sm:$0xf]  ;;  %v615_v3 = vpack.c.bf16 %v766_v19, %v614_v62  ;;  %v359_v13 = vpop.permute.xlu0 %358   ;;  %v371_v14 = vpop.permute.xlu1 %370  }
  0xb3   :  { %v558_v4 = vld [vmem:[#allocation0 + $0xa0] sm:$0xf]  ;;  %v503_v6 = vpack.c.bf16 %v766_v19, %v502_v0  ;;  %314 = vst.msk [vmem:[#allocation0 + $0x2b] sm:$0x1] %vm34_vm0, %v311_v1   ;;  %316 = vst.msk [vmem:[#allocation0 + $0xaa] sm:$0x2] %vm34_vm0, %v311_v1  }
  0xb4   :  { %318 = vst.msk [vmem:[#allocation0 + $0x69] sm:$0x4] %vm34_vm0, %v311_v1   ;;  %320 = vst.msk [vmem:[#allocation0 + $0xe8] sm:$0x8] %vm34_vm0, %v311_v1   ;;  %v559_v7 = vpack.c.bf16 %v766_v19, %v558_v4 }
  0xb5   :  { %326 = vst.msk [vmem:[#allocation0 + $0x30] sm:$0x1] %vm34_vm0, %v323_v2   ;;  %328 = vst.msk [vmem:[#allocation0 + $0xaf] sm:$0x2] %vm34_vm0, %v323_v2  }
  0xb6   :  { %330 = vst.msk [vmem:[#allocation0 + $0x6e] sm:$0x4] %vm34_vm0, %v323_v2   ;;  %332 = vst.msk [vmem:[#allocation0 + $0xed] sm:$0x8] %vm34_vm0, %v323_v2   ;;  %v383_v21 = vpop.permute.xlu0 %382   ;;  %v395_v22 = vpop.permute.xlu1 %394  }
  0xb7   :  { %699 = vst [vmem:[%s1073_s1 + $0x38] sm:$0x3] %v615_v3  ;;  %675 = vst [vmem:[%s1073_s1 + $0x8] sm:$0x3] %v447_v5 }
  0xb8   :  { %683 = vst [vmem:[%s1073_s1 + $0x18] sm:$0x3] %v503_v6  ;;  %691 = vst [vmem:[%s1073_s1 + $0x28] sm:$0x3] %v559_v7 }
  0xb9   :  { %338 = vst.msk [vmem:[#allocation0 + $0x31] sm:$0x1] %vm34_vm0, %v335_v8   ;;  %340 = vst.msk [vmem:[#allocation0 + $0xb0] sm:$0x2] %vm34_vm0, %v335_v8  }
  0xba   :  { %342 = vst.msk [vmem:[#allocation0 + $0x6f] sm:$0x4] %vm34_vm0, %v335_v8   ;;  %344 = vst.msk [vmem:[#allocation0 + $0xee] sm:$0x8] %vm34_vm0, %v335_v8   ;;  %v565_v11 = vld [vmem:[#allocation0 + $0xa8] sm:$0xf]  ;;  %v407_v26 = vpop.permute.xlu0 %406  }
  0xbb   :  { %350 = vst.msk [vmem:[#allocation0 + $0x32] sm:$0x1] %vm34_vm0, %v347_v9   ;;  %352 = vst.msk [vmem:[#allocation0 + $0xb1] sm:$0x2] %vm34_vm0, %v347_v9   ;;  %v509_v10 = vld [vmem:[#allocation0 + $0x68] sm:$0xf]  ;;  %v566_v16 = vpack.c.bf16 %v766_v19, %v565_v11 }
  0xbc   :  { %354 = vst.msk [vmem:[#allocation0 + $0x70] sm:$0x4] %vm34_vm0, %v347_v9   ;;  %356 = vst.msk [vmem:[#allocation0 + $0xef] sm:$0x8] %vm34_vm0, %v347_v9   ;;  %v453_v12 = vld [vmem:[#allocation0 + $0x28] sm:$0xf]  ;;  %v510_v15 = vpack.c.bf16 %v766_v19, %v509_v10 }
  0xbd   :  { %v621_v17 = vld [vmem:[#allocation0 + $0xe8] sm:$0xf]  ;;  %v454_v18 = vpack.c.bf16 %v766_v19, %v453_v12  ;;  %362 = vst.msk [vmem:[#allocation0 + $0x33] sm:$0x1] %vm34_vm0, %v359_v13   ;;  %364 = vst.msk [vmem:[#allocation0 + $0xb2] sm:$0x2] %vm34_vm0, %v359_v13  }
  0xbe   :  { %366 = vst.msk [vmem:[#allocation0 + $0x71] sm:$0x4] %vm34_vm0, %v359_v13   ;;  %368 = vst.msk [vmem:[#allocation0 + $0xf0] sm:$0x8] %vm34_vm0, %v359_v13   ;;  %v622_v20 = vpack.c.bf16 %v766_v19, %v621_v17 }
  0xbf   :  { %374 = vst.msk [vmem:[#allocation0 + $0x38] sm:$0x1] %vm34_vm0, %v371_v14   ;;  %376 = vst.msk [vmem:[#allocation0 + $0xb7] sm:$0x2] %vm34_vm0, %v371_v14  }
  0xc0   :  { %378 = vst.msk [vmem:[#allocation0 + $0x76] sm:$0x4] %vm34_vm0, %v371_v14   ;;  %380 = vst.msk [vmem:[#allocation0 + $0xf5] sm:$0x8] %vm34_vm0, %v371_v14  }
  0xc1   :  { %684 = vst [vmem:[%s1073_s1 + $0x1a] sm:$0x3] %v510_v15  ;;  %692 = vst [vmem:[%s1073_s1 + $0x2a] sm:$0x3] %v566_v16 }
  0xc2   :  { %676 = vst [vmem:[%s1073_s1 + $0xa] sm:$0x3] %v454_v18  ;;  %700 = vst [vmem:[%s1073_s1 + $0x3a] sm:$0x3] %v622_v20 }
  0xc3   :  { %386 = vst.msk [vmem:[#allocation0 + $0x39] sm:$0x1] %vm34_vm0, %v383_v21   ;;  %388 = vst.msk [vmem:[#allocation0 + $0xb8] sm:$0x2] %vm34_vm0, %v383_v21  }
  0xc4   :  { %390 = vst.msk [vmem:[#allocation0 + $0x77] sm:$0x4] %vm34_vm0, %v383_v21   ;;  %392 = vst.msk [vmem:[#allocation0 + $0xf6] sm:$0x8] %vm34_vm0, %v383_v21   ;;  %v460_v23 = vld [vmem:[#allocation0 + $0x30] sm:$0xf] }
  0xc5   :  { %398 = vst.msk [vmem:[#allocation0 + $0x3a] sm:$0x1] %vm34_vm0, %v395_v22   ;;  %400 = vst.msk [vmem:[#allocation0 + $0xb9] sm:$0x2] %vm34_vm0, %v395_v22   ;;  %v516_v24 = vld [vmem:[#allocation0 + $0x70] sm:$0xf]  ;;  %v461_v27 = vpack.c.bf16 %v766_v19, %v460_v23 }
  0xc6   :  { %402 = vst.msk [vmem:[#allocation0 + $0x78] sm:$0x4] %vm34_vm0, %v395_v22   ;;  %404 = vst.msk [vmem:[#allocation0 + $0xf7] sm:$0x8] %vm34_vm0, %v395_v22   ;;  %v572_v25 = vld [vmem:[#allocation0 + $0xb0] sm:$0xf]  ;;  %v517_v28 = vpack.c.bf16 %v766_v19, %v516_v24 }
  0xc7   :  { %v628_v29 = vld [vmem:[#allocation0 + $0xf0] sm:$0xf]  ;;  %v573_v30 = vpack.c.bf16 %v766_v19, %v572_v25  ;;  %410 = vst.msk [vmem:[#allocation0 + $0x3b] sm:$0x1] %vm34_vm0, %v407_v26   ;;  %412 = vst.msk [vmem:[#allocation0 + $0xba] sm:$0x2] %vm34_vm0, %v407_v26  }
  0xc8   :  { %414 = vst.msk [vmem:[#allocation0 + $0x79] sm:$0x4] %vm34_vm0, %v407_v26   ;;  %416 = vst.msk [vmem:[#allocation0 + $0xf8] sm:$0x8] %vm34_vm0, %v407_v26   ;;  %v629_v31 = vpack.c.bf16 %v766_v19, %v628_v29 }
  0xc9   :  { %677 = vst [vmem:[%s1073_s1 + $0xc] sm:$0x3] %v461_v27  ;;  %685 = vst [vmem:[%s1073_s1 + $0x1c] sm:$0x3] %v517_v28 }
  0xca   :  { %693 = vst [vmem:[%s1073_s1 + $0x2c] sm:$0x3] %v573_v30  ;;  %701 = vst [vmem:[%s1073_s1 + $0x3c] sm:$0x3] %v629_v31 }
  0xce   :  { %v467_v32 = vld [vmem:[#allocation0 + $0x38] sm:$0xf] }
  0xcf   :  { %v523_v33 = vld [vmem:[#allocation0 + $0x78] sm:$0xf]  ;;  %v468_v35 = vpack.c.bf16 %v766_v19, %v467_v32 }
  0xd0   :  { %v579_v34 = vld [vmem:[#allocation0 + $0xb8] sm:$0xf]  ;;  %v524_v36 = vpack.c.bf16 %v766_v19, %v523_v33 }
  0xd1   :  { %v580_v37 = vpack.c.bf16 %v766_v19, %v579_v34  ;;  %v635_v38 = vld [vmem:[#allocation0 + $0xf8] sm:$0xf]  ;;  %678 = vst [vmem:[%s1073_s1 + $0xe] sm:$0x3] %v468_v35 }
  0xd2   :  { %v636_v19 = vpack.c.bf16 %v766_v19, %v635_v38  ;;  %686 = vst [vmem:[%s1073_s1 + $0x1e] sm:$0x3] %v524_v36 }
  0xd3   :  { %694 = vst [vmem:[%s1073_s1 + $0x2e] sm:$0x3] %v580_v37 }
  0xd4   :  { %702 = vst [vmem:[%s1073_s1 + $0x3e] sm:$0x3] %v636_v19 }

// kernel: generator_forward.8
= control target key start
LH: loop header
LB: loop body
LE: loop exit
PB: predicated region body
PF: predicated region fallthrough
CT: control target
= control target key end

     0   :  { %v3470_v0 = vmov 0.0   ;;  %vm3471_vm0 = vmmov 0   ;;  %v3472_v3 = vmov 0   ;;  %vm195_vm1 = vcmask 261120   ;;  %s4187_s0 = inlined_call_operand.vmem [shape: bf16[8,288,128], index: 0, kind: input, shape index: {}]   ;;  %s4188_s1 = inlined_call_operand.vmem [shape: bf16[8,16,288], index: 1, kind: input, shape index: {}]   ;;  %s4189_s2 = inlined_call_operand.vmem [shape: f32[16,1], index: 2, kind: input, shape index: {}]   ;;  %s4190_s3 = inlined_call_operand.vmem [shape: bf16[8,16,128], index: 3, kind: output, shape index: {}]  }
   0x1   :  { %3221 = vmatprep.subr.bf16.mxu1 %v3470_v0  ;;  %v3290_v1 = vld [vmem:[%s4187_s0 + $0x40] sm:$0xff]   ;;  %3225 = vmatprep.mubr.msk.bf16.mxu1 %vm3471_vm0, %v3470_v0  ;;  %v3293_v5 = vld [vmem:[%s4187_s0 + $0x48] sm:$0xff]   ;;  %v3297_v9 = vld [vmem:[%s4187_s0 + $0xd0] sm:$0xff]  }
   0x2   :  { %v3291_v2 = vld [vmem:[%s4187_s0 + $0x80] sm:$0xff]   ;;  %3288 = vset.pattern.permute.xlu0 %v3472_v3  ;;  %3289 = vset.pattern.permute.xlu1 %v3472_v3  ;;  %v3294_v6 = vld [vmem:[%s4187_s0 + $0x88] sm:$0xff]   ;;  %v3298_v10 = vld [vmem:[%s4187_s0 + $0x50] sm:$0xff]  }
   0x3   :  { %3021 = vmatprep.subr.bf16.mxu0 %v3290_v1  ;;  %v3292_v4 = vld [vmem:[%s4187_s0] sm:$0xff]   ;;  %3222 = vmatpush3.bf16.msra.mxu1 %v3291_v2  ;;  %v3295_v7 = vld [vmem:[%s4187_s0 + $0x8] sm:$0xff]   ;;  %v3299_v11 = vld [vmem:[%s4187_s0 + $0x90] sm:$0xff]  }
   0x4   :  { %3022 = vmatpush3.bf16.msra.mxu0 %v3292_v4  ;;  %3223 = vmatprep.subr.bf16.mxu1 %v3470_v0  ;;  %v3296_v8 = vld [vmem:[%s4188_s1 + $0x8] ss:$12 sps:$4 sm:$0xff]   ;;  %v3301_v13 = vld [vmem:[%s4187_s0 + $0xd8] sm:$0xff]   ;;  %v3305_v17 = vld [vmem:[%s4187_s0 + $0xe0] sm:$0xff]  }
   0x5   :  { %3023 = vmatprep.subr.bf16.mxu0 %v3293_v5  ;;  %v3300_v12 = vld [vmem:[%s4187_s0 + $0x10] sm:$0xff]   ;;  %v3302_v14 = vld [vmem:[%s4187_s0 + $0x58] sm:$0xff]   ;;  %v3306_v18 = vld [vmem:[%s4187_s0 + $0x60] sm:$0xff]  }
   0x6   :  { %v3303_v15 = vld [vmem:[%s4187_s0 + $0x98] sm:$0xff]   ;;  %v3307_v19 = vld [vmem:[%s4187_s0 + $0xa0] sm:$0xff]   ;;  %v3309_v21 = vld [vmem:[%s4187_s0 + $0xe8] sm:$0xff]  }
   0x7   :  { %3224 = vmatpush3.bf16.msra.mxu1 %v3294_v6  ;;  %v3304_v16 = vld [vmem:[%s4187_s0 + $0x18] sm:$0xff]   ;;  %v3308_v20 = vld [vmem:[%s4187_s0 + $0x20] sm:$0xff]   ;;  %v3310_v22 = vld [vmem:[%s4187_s0 + $0x68] sm:$0xff]  }
   0x8   :  { %3024 = vmatpush3.bf16.msra.mxu0 %v3295_v7  ;;  %3046 = vmatprep.subr.bf16.mxu1 %v3297_v9  ;;  %v3311_v23 = vld [vmem:[%s4187_s0 + $0xa8] sm:$0xff]   ;;  %v3313_v25 = vld [vmem:[%s4187_s0 + $0xf0] sm:$0xff]   ;;  %v3317_v29 = vld [vmem:[%s4187_s0 + $0xf8] sm:$0xff]  }
   0x9   :  { %3025 = vmatprep.subr.bf16.mxu0 %v3298_v10  ;;  %v3312_v24 = vld [vmem:[%s4187_s0 + $0x28] sm:$0xff]   ;;  %v3314_v26 = vld [vmem:[%s4187_s0 + $0x70] sm:$0xff]   ;;  %v3318_v30 = vld [vmem:[%s4187_s0 + $0x78] sm:$0xff]  }
   0xa   :  { %3226 = vmatmul.mubr.msk.bf16.vlgmr.msra.gmra.mrb[0].mxu1 %vm195_vm1, %v3296_v8  ;;  %v3315_v27 = vld [vmem:[%s4187_s0 + $0xb0] sm:$0xff]   ;;  %v3319_v31 = vld [vmem:[%s4187_s0 + $0xb8] sm:$0xff]   ;;  %v3321_v33 = vld [vmem:[%s4188_s1] ss:$12 sps:$4 sm:$0xff]  }
   0xb   :  { %3047 = vmatpush3.bf16.msra.mxu1 %v3299_v11  ;;  %v3316_v28 = vld [vmem:[%s4187_s0 + $0x30] sm:$0xff]   ;;  %v3320_v32 = vld [vmem:[%s4187_s0 + $0x38] sm:$0xff]   ;;  %v3324_v35 = vld [vmem:[%s4187_s0 + $0x100] sm:$0xff]  }
   0xc   :  { %3026 = vmatpush3.bf16.msra.mxu0 %v3300_v12  ;;  %3048 = vmatprep.subr.bf16.mxu1 %v3301_v13  ;;  %v3323_v34 = vld [vmem:[%s4188_s1 + $0x4] ss:$12 sps:$4 sm:$0xff]   ;;  %v3327_v38 = vld [vmem:[%s4187_s0 + $0x108] sm:$0xff]   ;;  %v3329_v40 = vld [vmem:[%s4187_s0 + $0x118] sm:$0xff]  }
   0xd   :  { %3027 = vmatprep.subr.bf16.mxu0 %v3302_v14  ;;  %231 = vmatprep.mubr.bf16.mxu0 %v3323_v34  ;;  %v3325_v36 = vld [vmem:[%s4187_s0 + $0xc0] sm:$0xff]   ;;  %v3326_v37 = vld [vmem:[%s4187_s0 + $0x110] sm:$0xff]   ;;  %v3328_v39 = vld [vmem:[%s4187_s0 + $0xc8] sm:$0xff]  }
   0xe   :  { %v3330_v41 = vld [vmem:[%s4188_s1 + $0x18] ss:$12 sps:$4 sm:$0xff]   ;;  %v3332_v42 = vld [vmem:[%s4188_s1 + $0x1c] ss:$12 sps:$4 sm:$0xff]   ;;  %v3333_v43 = vld [vmem:[%s4188_s1 + $0x20] ss:$12 sps:$4 sm:$0xff]  }
   0xf   :  { %3049 = vmatpush3.bf16.msra.mxu1 %v3303_v15  ;;  %511 = vmatprep.mubr.bf16.mxu1 %v3332_v42  ;;  %v3334_v44 = vld [vmem:[%s4187_s0 + $0x160] sm:$0xff]   ;;  %v3337_v47 = vld [vmem:[%s4187_s0 + $0x168] sm:$0xff]   ;;  %v3341_v51 = vld [vmem:[%s4187_s0 + $0x1f0] sm:$0xff]  }
  0x10   :  { %3028 = vmatpush3.bf16.msra.mxu0 %v3304_v16  ;;  %3050 = vmatprep.subr.bf16.mxu1 %v3305_v17  ;;  %v3335_v45 = vld [vmem:[%s4187_s0 + $0x1a0] sm:$0xff]   ;;  %v3338_v48 = vld [vmem:[%s4187_s0 + $0x1a8] sm:$0xff]   ;;  %v3342_v52 = vld [vmem:[%s4187_s0 + $0x170] sm:$0xff]  }
  0x11   :  { %3029 = vmatprep.subr.bf16.mxu0 %v3306_v18  ;;  %v3336_v46 = vld [vmem:[%s4187_s0 + $0x120] sm:$0xff]   ;;  %v3339_v49 = vld [vmem:[%s4187_s0 + $0x128] sm:$0xff]   ;;  %v3343_v53 = vld [vmem:[%s4187_s0 + $0x1b0] sm:$0xff]  }
  0x12   :  { %v3340_v50 = vld [vmem:[%s4188_s1 + $0x38] ss:$12 sps:$4 sm:$0xff]   ;;  %v3344_v54 = vld [vmem:[%s4187_s0 + $0x130] sm:$0xff]   ;;  %v3353_v63 = vld [vmem:[%s4187_s0 + $0x208] sm:$0xff]  }
  0x13   :  { %3051 = vmatpush3.bf16.msra.mxu1 %v3307_v19  ;;  %v3345_v55 = vld [vmem:[%s4187_s0 + $0x1f8] sm:$0xff]   ;;  %v3349_v59 = vld [vmem:[%s4187_s0 + $0x200] sm:$0xff]   ;;  %v3354_v1 = vld [vmem:[%s4187_s0 + $0x188] sm:$0xff]  }
  0x14   :  { %3030 = vmatpush3.bf16.msra.mxu0 %v3308_v20  ;;  %3052 = vmatprep.subr.bf16.mxu1 %v3309_v21  ;;  %v3346_v56 = vld [vmem:[%s4187_s0 + $0x178] sm:$0xff]   ;;  %v3350_v60 = vld [vmem:[%s4187_s0 + $0x180] sm:$0xff]   ;;  %v3355_v2 = vld [vmem:[%s4187_s0 + $0x1c8] sm:$0xff]  }
  0x15   :  { %3031 = vmatprep.subr.bf16.mxu0 %v3310_v22  ;;  %v3347_v57 = vld [vmem:[%s4187_s0 + $0x1b8] sm:$0xff]   ;;  %v3351_v61 = vld [vmem:[%s4187_s0 + $0x1c0] sm:$0xff]   ;;  %v3356_v3 = vld [vmem:[%s4187_s0 + $0x148] sm:$0xff]  }
  0x16   :  { %v3348_v58 = vld [vmem:[%s4187_s0 + $0x138] sm:$0xff]   ;;  %v3352_v62 = vld [vmem:[%s4187_s0 + $0x140] sm:$0xff]   ;;  %v3357_v4 = vld [vmem:[%s4187_s0 + $0x210] sm:$0xff]  }
  0x17   :  { %3053 = vmatpush3.bf16.msra.mxu1 %v3311_v23  ;;  %v3358_v5 = vld [vmem:[%s4187_s0 + $0x190] sm:$0xff]   ;;  %v3361_v8 = vld [vmem:[%s4187_s0 + $0x218] sm:$0xff]   ;;  %v3368_v14 = vld [vmem:[%s4187_s0 + $0x220] sm:$0xff]  }
  0x18   :  { %3032 = vmatpush3.bf16.msra.mxu0 %v3312_v24  ;;  %3054 = vmatprep.subr.bf16.mxu1 %v3313_v25  ;;  %v3359_v6 = vld [vmem:[%s4187_s0 + $0x1d0] sm:$0xff]   ;;  %v3362_v9 = vld [vmem:[%s4187_s0 + $0x198] sm:$0xff]   ;;  %v3369_v15 = vld [vmem:[%s4187_s0 + $0x1e0] sm:$0xff]  }
  0x19   :  { %3033 = vmatprep.subr.bf16.mxu0 %v3314_v26  ;;  %v3360_v7 = vld [vmem:[%s4187_s0 + $0x150] sm:$0xff]   ;;  %v3363_v10 = vld [vmem:[%s4187_s0 + $0x1d8] sm:$0xff]   ;;  %v3371_v17 = vld [vmem:[%s4187_s0 + $0x228] sm:$0xff]  }
  0x1a   :  { %v3364_v11 = vld [vmem:[%s4187_s0 + $0x158] sm:$0xff]   ;;  %v3367_v13 = vld [vmem:[%s4188_s1 + $0x34] ss:$12 sps:$4 sm:$0xff]   ;;  %v3372_v18 = vld [vmem:[%s4187_s0 + $0x1e8] sm:$0xff]  }
  0x1b   :  { %3055 = vmatpush3.bf16.msra.mxu1 %v3315_v27  ;;  %v3365_v12 = vld [vmem:[%s4188_s1 + $0x30] ss:$12 sps:$4 sm:$0xff]   ;;  %v3374_v20 = vld [vmem:[%s4188_s1 + $0x48] ss:$12 sps:$4 sm:$0xff]   ;;  %v3376_v21 = vld [vmem:[%s4188_s1 + $0x4c] ss:$12 sps:$4 sm:$0xff]  }
  0x1c   :  { %3034 = vmatpush3.bf16.msra.mxu0 %v3316_v28  ;;  %3056 = vmatprep.subr.bf16.mxu1 %v3317_v29  ;;  %v3370_v16 = vld [vmem:[%s4187_s0 + $0x230] sm:$0xff]   ;;  %v3373_v19 = vld [vmem:[%s4187_s0 + $0x238] sm:$0xff]   ;;  %v3378_v23 = vld [vmem:[%s4187_s0 + $0x280] sm:$0xff]  }
  0x1d   :  { %3035 = vmatprep.subr.bf16.mxu0 %v3318_v30  ;;  %v3377_v22 = vld [vmem:[%s4188_s1 + $0x50] ss:$12 sps:$4 sm:$0xff]   ;;  %v3379_v24 = vld [vmem:[%s4187_s0 + $0x2c0] sm:$0xff]   ;;  %v3381_v26 = vld [vmem:[%s4187_s0 + $0x288] sm:$0xff]  }
  0x1e   :  { %v3380_v25 = vld [vmem:[%s4187_s0 + $0x240] sm:$0xff]   ;;  %v3382_v27 = vld [vmem:[%s4187_s0 + $0x2c8] sm:$0xff]   ;;  %v3385_v30 = vld [vmem:[%s4187_s0 + $0x310] sm:$0xff]  }
  0x1f   :  { %3057 = vmatpush3.bf16.msra.mxu1 %v3319_v31  ;;  %v3383_v28 = vld [vmem:[%s4187_s0 + $0x248] sm:$0xff]   ;;  %v3386_v31 = vld [vmem:[%s4187_s0 + $0x290] sm:$0xff]   ;;  %v3389_v34 = vld [vmem:[%s4187_s0 + $0x318] sm:$0xff]  }
  0x20   :  { %3036 = vmatpush3.bf16.msra.mxu0 %v3320_v32  ;;  %3058 = vmatprep.subr.bf16.mxu1 %v3324_v35  ;;  %v3384_v29 = vld [vmem:[%s4188_s1 + $0x68] ss:$12 sps:$4 sm:$0xff]   ;;  %v3390_v35 = vld [vmem:[%s4187_s0 + $0x298] sm:$0xff]  }
  0x21   :  { %3229 = vmatprep.subr.bf16.mxu0 %v3470_v0  ;;  %v3387_v32 = vld [vmem:[%s4187_s0 + $0x2d0] sm:$0xff]   ;;  %v3397_v42 = vld [vmem:[%s4187_s0 + $0x328] sm:$0xff]  }
  0x23   :  { %232 = vmatmul.mubr.bf16.vlgmr.msra.gmra.mrb[0].mxu0 %v3321_v33  ;;  %3059 = vmatpush3.bf16.msra.mxu1 %v3325_v36  ;;  %v3388_v33 = vld [vmem:[%s4187_s0 + $0x250] sm:$0xff]   ;;  %v3391_v36 = vld [vmem:[%s4187_s0 + $0x2d8] sm:$0xff]  }
  0x24   :  { %3233 = vmatprep.mubr.msk.bf16.mxu0 %vm3471_vm0, %v3470_v0  ;;  %3230 = vmatpush3.bf16.msra.mxu0 %v3326_v37  ;;  %v3392_v37 = vld [vmem:[%s4187_s0 + $0x258] sm:$0xff]  }
  0x25   :  { %3060 = vmatprep.subr.bf16.mxu1 %v3327_v38  ;;  %3231 = vmatprep.subr.bf16.mxu0 %v3470_v0  ;;  %v3393_v38 = vld [vmem:[%s4187_s0 + $0x320] sm:$0xff]  }
  0x27   :  { %3061 = vmatpush3.bf16.msra.mxu1 %v3328_v39  ;;  %v3394_v39 = vld [vmem:[%s4187_s0 + $0x2a0] sm:$0xff]  }
  0x28   :  { %3232 = vmatpush3.bf16.msra.mxu0 %v3329_v40  ;;  %3237 = vmatprep.subr.bf16.mxu1 %v3470_v0  ;;  %v3395_v40 = vld [vmem:[%s4187_s0 + $0x2e0] sm:$0xff]  }
  0x29   :  { %3071 = vmatprep.subr.bf16.mxu0 %v3334_v44  ;;  %v3399_v44 = vld [vmem:[%s4187_s0 + $0x2e8] sm:$0xff]  }
  0x2a   :  { %512 = vmatmul.mubr.bf16.vlgmr.msra.gmra.mrb[4].mxu1 %v3330_v41  ;;  %v3396_v41 = vld [vmem:[%s4187_s0 + $0x260] sm:$0xff]  }
  0x2b   :  { %3234 = vmatmul.mubr.msk.bf16.vlgmr.msra.gmra.mrb[4].mxu0 %vm195_vm1, %v3333_v43  ;;  %3238 = vmatpush3.bf16.msra.mxu1 %v3335_v45  ;;  %v3398_v43 = vld [vmem:[%s4187_s0 + $0x2a8] sm:$0xff]  }
  0x2c   :  { %3072 = vmatpush3.bf16.msra.mxu0 %v3336_v46  ;;  %3239 = vmatprep.subr.bf16.mxu1 %v3470_v0  ;;  %v3400_v45 = vld [vmem:[%s4187_s0 + $0x268] sm:$0xff]   ;;  %v3401_v46 = vld [vmem:[%s4187_s0 + $0x330] sm:$0xff]  }
  0x2d   :  { %3073 = vmatprep.subr.bf16.mxu0 %v3337_v47  ;;  %3241 = vmatprep.mubr.msk.bf16.mxu1 %vm3471_vm0, %v3470_v0  ;;  %v3402_v47 = vld [vmem:[%s4187_s0 + $0x2b0] sm:$0xff]  }
  0x2e   :  { %792 = vmatprep.mubr.bf16.mxu0 %v3367_v13  ;;  %v3431_v13 = vld [vmem:[%s4187_s0 + $0x3f0] sm:$0xff]  }
  0x2f   :  { %3240 = vmatpush3.bf16.msra.mxu1 %v3338_v48  ;;  %v3403_v48 = vld [vmem:[%s4187_s0 + $0x2f0] sm:$0xff]  }
  0x30   :  { %3074 = vmatpush3.bf16.msra.mxu0 %v3339_v49  ;;  %3096 = vmatprep.subr.bf16.mxu1 %v3341_v51  ;;  %v3404_v49 = vld [vmem:[%s4187_s0 + $0x270] sm:$0xff]   ;;  %v3406_v51 = vld [vmem:[%s4187_s0 + $0x2b8] sm:$0xff]  }
  0x31   :  { %3075 = vmatprep.subr.bf16.mxu0 %v3342_v52  ;;  %v3407_v52 = vld [vmem:[%s4187_s0 + $0x2f8] sm:$0xff]  }
  0x32   :  { %3242 = vmatmul.mubr.msk.bf16.vlgmr.msra.gmra.mrb[8].mxu1 %vm195_vm1, %v3340_v50  ;;  %v3405_v50 = vld [vmem:[%s4187_s0 + $0x338] sm:$0xff]  }
  0x33   :  { %3097 = vmatpush3.bf16.msra.mxu1 %v3343_v53  ;;  %1073 = vmatprep.mubr.bf16.mxu1 %v3376_v21  ;;  %v3408_v53 = vld [vmem:[%s4187_s0 + $0x278] sm:$0xff]   ;;  %v3439_v21 = vld [vmem:[%s4187_s0 + $0x400] sm:$0xff]  }
  0x34   :  { %3076 = vmatpush3.bf16.msra.mxu0 %v3344_v54  ;;  %3098 = vmatprep.subr.bf16.mxu1 %v3345_v55  ;;  %v3409_v54 = vld [vmem:[%s4188_s1 + $0x60] ss:$12 sps:$4 sm:$0xff]   ;;  %v3411_v55 = vld [vmem:[%s4188_s1 + $0x64] ss:$12 sps:$4 sm:$0xff]  }
  0x35   :  { %3077 = vmatprep.subr.bf16.mxu0 %v3346_v56  ;;  %v3412_v56 = vld [vmem:[%s4187_s0 + $0x340] sm:$0xff]  }
  0x37   :  { %3099 = vmatpush3.bf16.msra.mxu1 %v3347_v57  ;;  %v3413_v57 = vld [vmem:[%s4187_s0 + $0x300] sm:$0xff]  }
  0x38   :  { %3078 = vmatpush3.bf16.msra.mxu0 %v3348_v58  ;;  %3100 = vmatprep.subr.bf16.mxu1 %v3349_v59  ;;  %v3414_v58 = vld [vmem:[%s4187_s0 + $0x350] sm:$0xff]   ;;  %v3415_v59 = vld [vmem:[%s4187_s0 + $0x348] sm:$0xff]  }
  0x39   :  { %3079 = vmatprep.subr.bf16.mxu0 %v3350_v60  ;;  %v3416_v60 = vld [vmem:[%s4187_s0 + $0x308] sm:$0xff]  }
  0x3b   :  { %3101 = vmatpush3.bf16.msra.mxu1 %v3351_v61  ;;  %v3888_v61 = vld [vmem:[%s4189_s2] sm:$0xff] }
  0x3c   :  { %3080 = vmatpush3.bf16.msra.mxu0 %v3352_v62  ;;  %3102 = vmatprep.subr.bf16.mxu1 %v3353_v63  ;;  %v3417_v62 = vld [vmem:[%s4187_s0 + $0x358] sm:$0xff]  }
  0x3d   :  { %3081 = vmatprep.subr.bf16.mxu0 %v3354_v1  ;;  %64 = vperm.xlu0 %3288, %v3888_v61   ;;  %v3418_v63 = vld [vmem:[%s4188_s1 + $0x78] ss:$12 sps:$4 sm:$0xff]   ;;  %v3420_v1 = vld [vmem:[%s4188_s1 + $0x7c] ss:$12 sps:$4 sm:$0xff]  }
  0x3e   :  { %345 = vperm.xlu1 %3289, %v3888_v61  }
  0x3f   :  { %3103 = vmatpush3.bf16.msra.mxu1 %v3355_v2  ;;  %v3421_v2 = vld [vmem:[%s4188_s1 + $0x80] ss:$12 sps:$4 sm:$0xff]  }
  0x40   :  { %3082 = vmatpush3.bf16.msra.mxu0 %v3356_v3  ;;  %3104 = vmatprep.subr.bf16.mxu1 %v3357_v4  ;;  %v3422_v3 = vld [vmem:[%s4187_s0 + $0x3a0] sm:$0xff]  }
  0x41   :  { %3083 = vmatprep.subr.bf16.mxu0 %v3358_v5  ;;  %v3423_v4 = vld [vmem:[%s4187_s0 + $0x3e0] sm:$0xff]   ;;  %v3917_v5 = vld [vmem:[%s4189_s2 + $0x8] sm:$0xff] }
  0x42   :  { %69 = vperm.xlu0 %3288, %v3917_v5   ;;  %350 = vperm.xlu1 %3289, %v3917_v5  }
  0x43   :  { %3105 = vmatpush3.bf16.msra.mxu1 %v3359_v6  ;;  %v3424_v6 = vld [vmem:[%s4187_s0 + $0x360] sm:$0xff]  }
  0x44   :  { %3084 = vmatpush3.bf16.msra.mxu0 %v3360_v7  ;;  %3106 = vmatprep.subr.bf16.mxu1 %v3361_v8  ;;  %v3425_v7 = vld [vmem:[%s4187_s0 + $0x3a8] sm:$0xff]  }
  0x45   :  { %3085 = vmatprep.subr.bf16.mxu0 %v3362_v9  ;;  %v3426_v8 = vld [vmem:[%s4187_s0 + $0x3e8] sm:$0xff]  }
  0x46   :  { %v3427_v9 = vld [vmem:[%s4187_s0 + $0x368] sm:$0xff]   ;;  %626 = vperm.xlu0 %3288, %v3888_v61   ;;  %631 = vperm.xlu1 %3289, %v3917_v5  }
  0x47   :  { %3107 = vmatpush3.bf16.msra.mxu1 %v3363_v10  ;;  %v3428_v10 = vld [vmem:[%s4188_s1 + $0x98] ss:$12 sps:$4 sm:$0xff]  }
  0x48   :  { %3086 = vmatpush3.bf16.msra.mxu0 %v3364_v11  ;;  %3108 = vmatprep.subr.bf16.mxu1 %v3368_v14  ;;  %v3429_v11 = vld [vmem:[%s4187_s0 + $0x430] sm:$0xff]  }
  0x49   :  { %3245 = vmatprep.subr.bf16.mxu0 %v3470_v0  ;;  %v3432_v14 = vld [vmem:[%s4187_s0 + $0x370] sm:$0xff]  }
  0x4a   :  { %907 = vperm.xlu0 %3288, %v3888_v61   ;;  %912 = vperm.xlu1 %3289, %v3917_v5  }
  0x4b   :  { %793 = vmatmul.mubr.bf16.vlgmr.msra.gmra.mrb[8].mxu0 %v3365_v12  ;;  %3109 = vmatpush3.bf16.msra.mxu1 %v3369_v15  ;;  %v3430_v12 = vld [vmem:[%s4187_s0 + $0x3b0] sm:$0xff]   ;;  %v3433_v15 = vld [vmem:[%s4187_s0 + $0x438] sm:$0xff]  }
  0x4c   :  { %3246 = vmatpush3.bf16.msra.mxu0 %v3370_v16  ;;  %3249 = vmatprep.mubr.msk.bf16.mxu0 %vm3471_vm0, %v3470_v0  ;;  %v3434_v16 = vld [vmem:[%s4187_s0 + $0x3b8] sm:$0xff]  }
  0x4d   :  { %3110 = vmatprep.subr.bf16.mxu1 %v3371_v17  ;;  %3247 = vmatprep.subr.bf16.mxu0 %v3470_v0  ;;  %v3435_v17 = vld [vmem:[%s4187_s0 + $0x3f8] sm:$0xff]  }
  0x4e   :  { %1188 = vperm.xlu0 %3288, %v3888_v61   ;;  %1193 = vperm.xlu1 %3289, %v3917_v5  }
  0x4f   :  { %3111 = vmatpush3.bf16.msra.mxu1 %v3372_v18  ;;  %v3436_v18 = vld [vmem:[%s4187_s0 + $0x378] sm:$0xff]  }
  0x50   :  { %3248 = vmatpush3.bf16.msra.mxu0 %v3373_v19  ;;  %3253 = vmatprep.subr.bf16.mxu1 %v3470_v0  ;;  %v3437_v19 = vld [vmem:[%s4187_s0 + $0x440] sm:$0xff]  }
  0x51   :  { %3121 = vmatprep.subr.bf16.mxu0 %v3378_v23  ;;  %v3441_v23 = vld [vmem:[%s4187_s0 + $0x448] sm:$0xff]  }
  0x52   :  { %1074 = vmatmul.mubr.bf16.vlgmr.msra.gmra.mrb[12].mxu1 %v3374_v20  ;;  %v3438_v20 = vld [vmem:[%s4187_s0 + $0x3c0] sm:$0xff]   ;;  %1474 = vperm.xlu0 %3288, %v3917_v5  }
  0x53   :  { %3250 = vmatmul.mubr.msk.bf16.vlgmr.msra.gmra.mrb[12].mxu0 %vm195_vm1, %v3377_v22  ;;  %3254 = vmatpush3.bf16.msra.mxu1 %v3379_v24  ;;  %v3440_v22 = vld [vmem:[%s4187_s0 + $0x380] sm:$0xff]   ;;  %v3442_v24 = vld [vmem:[%s4187_s0 + $0x3c8] sm:$0xff]  }
  0x54   :  { %3257 = vmatprep.mubr.msk.bf16.mxu1 %vm3471_vm0, %v3470_v0  ;;  %3122 = vmatpush3.bf16.msra.mxu0 %v3380_v25  ;;  %v3443_v25 = vld [vmem:[%s4187_s0 + $0x408] sm:$0xff]  }
  0x55   :  { %3255 = vmatprep.subr.bf16.mxu1 %v3470_v0  ;;  %3123 = vmatprep.subr.bf16.mxu0 %v3381_v26  ;;  %v3444_v26 = vld [vmem:[%s4187_s0 + $0x388] sm:$0xff]  }
  0x56   :  { %1354 = vmatprep.mubr.bf16.mxu0 %v3411_v55  ;;  %1469 = vperm.xlu1 %3289, %v3888_v61  }
  0x57   :  { %3256 = vmatpush3.bf16.msra.mxu1 %v3382_v27  ;;  %v3445_v27 = vld [vmem:[%s4187_s0 + $0x450] sm:$0xff]   ;;  %1755 = vperm.xlu0 %3288, %v3917_v5  }
  0x58   :  { %3124 = vmatpush3.bf16.msra.mxu0 %v3383_v28  ;;  %3146 = vmatprep.subr.bf16.mxu1 %v3385_v30  ;;  %v3446_v28 = vld [vmem:[%s4187_s0 + $0x3d0] sm:$0xff]  }
  0x59   :  { %3125 = vmatprep.subr.bf16.mxu0 %v3386_v31  ;;  %v3448_v30 = vld [vmem:[%s4187_s0 + $0x390] sm:$0xff]   ;;  %v3449_v31 = vld [vmem:[%s4187_s0 + $0x458] sm:$0xff]  }
  0x5a   :  { %3258 = vmatmul.mubr.msk.bf16.vlgmr.msra.gmra.mrb[16].mxu1 %vm195_vm1, %v3384_v29  ;;  %v3447_v29 = vld [vmem:[%s4187_s0 + $0x410] sm:$0xff]   ;;  %1750 = vperm.xlu1 %3289, %v3888_v61  }
  0x5b   :  { %3147 = vmatpush3.bf16.msra.mxu1 %v3387_v32  ;;  %1635 = vmatprep.mubr.bf16.mxu1 %v3420_v1  ;;  %v3450_v32 = vld [vmem:[%s4187_s0 + $0x3d8] sm:$0xff]  }
  0x5c   :  { %3126 = vmatpush3.bf16.msra.mxu0 %v3388_v33  ;;  %3148 = vmatprep.subr.bf16.mxu1 %v3389_v34  ;;  %v3451_v33 = vld [vmem:[%s4187_s0 + $0x418] sm:$0xff]  }
  0x5d   :  { %3127 = vmatprep.subr.bf16.mxu0 %v3390_v35  ;;  %2036 = vperm.xlu0 %3288, %v3917_v5   ;;  %v3452_v34 = vld [vmem:[%s4187_s0 + $0x398] sm:$0xff]  }
  0x5e   :  { %v3453_v35 = vld [vmem:[%s4188_s1 + $0x90] ss:$12 sps:$4 sm:$0xff]   ;;  %2031 = vperm.xlu1 %3289, %v3888_v61  }
  0x5f   :  { %3149 = vmatpush3.bf16.msra.mxu1 %v3391_v36  ;;  %v3455_v36 = vld [vmem:[%s4188_s1 + $0x94] ss:$12 sps:$4 sm:$0xff]  }
  0x60   :  { %3128 = vmatpush3.bf16.msra.mxu0 %v3392_v37  ;;  %3150 = vmatprep.subr.bf16.mxu1 %v3393_v38  ;;  %v3456_v37 = vld [vmem:[%s4187_s0 + $0x460] sm:$0xff]  }
  0x61   :  { %3129 = vmatprep.subr.bf16.mxu0 %v3394_v39  ;;  %v3457_v38 = vld [vmem:[%s4187_s0 + $0x420] sm:$0xff]   ;;  %v3458_v39 = vld [vmem:[%s4187_s0 + $0x468] sm:$0xff]  }
  0x63   :  { %3151 = vmatpush3.bf16.msra.mxu1 %v3395_v40  ;;  %v3459_v40 = vld [vmem:[%s4187_s0 + $0x470] sm:$0xff]  }
  0x64   :  { %3130 = vmatpush3.bf16.msra.mxu0 %v3396_v41  ;;  %3152 = vmatprep.subr.bf16.mxu1 %v3397_v42  ;;  %v3460_v41 = vld [vmem:[%s4187_s0 + $0x428] sm:$0xff]  }
  0x65   :  { %3131 = vmatprep.subr.bf16.mxu0 %v3398_v43  ;;  %v3461_v42 = vld [vmem:[%s4188_s1 + $0xa8] ss:$12 sps:$4 sm:$0xff]   ;;  %v3463_v43 = vld [vmem:[%s4188_s1 + $0xac] ss:$12 sps:$4 sm:$0xff]  }
  0x67   :  { %3153 = vmatpush3.bf16.msra.mxu1 %v3399_v44  ;;  %v3464_v44 = vld [vmem:[%s4187_s0 + $0x478] sm:$0xff]  }
  0x68   :  { %3132 = vmatpush3.bf16.msra.mxu0 %v3400_v45  ;;  %3154 = vmatprep.subr.bf16.mxu1 %v3401_v46  ;;  %v3465_v45 = vld [vmem:[%s4188_s1 + $0xb0] ss:$12 sps:$4 sm:$0xff]  }
  0x69   :  { %3133 = vmatprep.subr.bf16.mxu0 %v3402_v47 }
  0x6b   :  { %3155 = vmatpush3.bf16.msra.mxu1 %v3403_v48 }
  0x6c   :  { %3134 = vmatpush3.bf16.msra.mxu0 %v3404_v49  ;;  %3156 = vmatprep.subr.bf16.mxu1 %v3405_v50  ;;  %v15_v50 = vlaneseq }
  0x6d   :  { %3135 = vmatprep.subr.bf16.mxu0 %v3406_v51 }
  0x6e   :  { %v16_v51 = vand.u32 127, %v15_v50 }
  0x6f   :  { %3157 = vmatpush3.bf16.msra.mxu1 %v3407_v52 }
  0x70   :  { %3136 = vmatpush3.bf16.msra.mxu0 %v3408_v53  ;;  %3158 = vmatprep.subr.bf16.mxu1 %v3412_v56  ;;  %vm17_vm2 = vcmp.lt.s32.totalorder %v16_v51, 16 }
  0x71   :  { %3261 = vmatprep.subr.bf16.mxu0 %v3470_v0 }
  0x73   :  { %1355 = vmatmul.mubr.bf16.vlgmr.msra.gmra.mrb[16].mxu0 %v3409_v54  ;;  %3159 = vmatpush3.bf16.msra.mxu1 %v3413_v57 }
  0x74   :  { %3262 = vmatpush3.bf16.msra.mxu0 %v3414_v58  ;;  %3265 = vmatprep.mubr.msk.bf16.mxu0 %vm3471_vm0, %v3470_v0 }
  0x75   :  { %3160 = vmatprep.subr.bf16.mxu1 %v3415_v59  ;;  %3263 = vmatprep.subr.bf16.mxu0 %v3470_v0 }
  0x77   :  { %3161 = vmatpush3.bf16.msra.mxu1 %v3416_v60  ;;  %v4064_v60 = vsel %vm17_vm2, 1.0, %v3470_v0 }
  0x78   :  { %3264 = vmatpush3.bf16.msra.mxu0 %v3417_v62  ;;  %3269 = vmatprep.subr.bf16.mxu1 %v3470_v0 }
  0x79   :  { %3171 = vmatprep.subr.bf16.mxu0 %v3422_v3 }
  0x7a   :  { %1636 = vmatmul.mubr.bf16.vlgmr.msra.gmra.mrb[20].mxu1 %v3418_v63 }
  0x7b   :  { %3266 = vmatmul.mubr.msk.bf16.vlgmr.msra.gmra.mrb[20].mxu0 %vm195_vm1, %v3421_v2  ;;  %3270 = vmatpush3.bf16.msra.mxu1 %v3423_v4 }
  0x7c   :  { %3172 = vmatpush3.bf16.msra.mxu0 %v3424_v6  ;;  %3271 = vmatprep.subr.bf16.mxu1 %v3470_v0 }
  0x7d   :  { %3173 = vmatprep.subr.bf16.mxu0 %v3425_v7  ;;  %3273 = vmatprep.mubr.msk.bf16.mxu1 %vm3471_vm0, %v3470_v0 }
  0x7e   :  { %1916 = vmatprep.mubr.bf16.mxu0 %v3455_v36 }
  0x7f   :  { %3272 = vmatpush3.bf16.msra.mxu1 %v3426_v8 }
  0x80   :  { %3174 = vmatpush3.bf16.msra.mxu0 %v3427_v9  ;;  %3196 = vmatprep.subr.bf16.mxu1 %v3429_v11 }
  0x81   :  { %3175 = vmatprep.subr.bf16.mxu0 %v3430_v12 }
  0x82   :  { %3274 = vmatmul.mubr.msk.bf16.vlgmr.msra.gmra.mrb[24].mxu1 %vm195_vm1, %v3428_v10 }
  0x83   :  { %3197 = vmatpush3.bf16.msra.mxu1 %v3431_v13  ;;  %2197 = vmatprep.mubr.bf16.mxu1 %v3463_v43 }
  0x84   :  { %3176 = vmatpush3.bf16.msra.mxu0 %v3432_v14  ;;  %3198 = vmatprep.subr.bf16.mxu1 %v3433_v15 }
  0x85   :  { %3177 = vmatprep.subr.bf16.mxu0 %v3434_v16 }
  0x87   :  { %3199 = vmatpush3.bf16.msra.mxu1 %v3435_v17 }
  0x88   :  { %3178 = vmatpush3.bf16.msra.mxu0 %v3436_v18  ;;  %3200 = vmatprep.subr.bf16.mxu1 %v3437_v19 }
  0x89   :  { %3179 = vmatprep.subr.bf16.mxu0 %v3438_v20 }
  0x8b   :  { %3201 = vmatpush3.bf16.msra.mxu1 %v3439_v21 }
  0x8c   :  { %3180 = vmatpush3.bf16.msra.mxu0 %v3440_v22  ;;  %3202 = vmatprep.subr.bf16.mxu1 %v3441_v23 }
  0x8d   :  { %3181 = vmatprep.subr.bf16.mxu0 %v3442_v24 }
  0x8f   :  { %3203 = vmatpush3.bf16.msra.mxu1 %v3443_v25 }
  0x90   :  { %3182 = vmatpush3.bf16.msra.mxu0 %v3444_v26  ;;  %3204 = vmatprep.subr.bf16.mxu1 %v3445_v27 }
  0x91   :  { %3183 = vmatprep.subr.bf16.mxu0 %v3446_v28 }
  0x93   :  { %3205 = vmatpush3.bf16.msra.mxu1 %v3447_v29 }
  0x94   :  { %3184 = vmatpush3.bf16.msra.mxu0 %v3448_v30  ;;  %3206 = vmatprep.subr.bf16.mxu1 %v3449_v31 }
  0x95   :  { %3185 = vmatprep.subr.bf16.mxu0 %v3450_v32 }
  0x97   :  { %3207 = vmatpush3.bf16.msra.mxu1 %v3451_v33 }
  0x98   :  { %3186 = vmatpush3.bf16.msra.mxu0 %v3452_v34  ;;  %3208 = vmatprep.subr.bf16.mxu1 %v3456_v37 }
  0x99   :  { %3277 = vmatprep.subr.bf16.mxu0 %v3470_v0 }
  0x9b   :  { %1917 = vmatmul.mubr.bf16.vlgmr.msra.gmra.mrb[24].mxu0 %v3453_v35  ;;  %3209 = vmatpush3.bf16.msra.mxu1 %v3457_v38 }
  0x9c   :  { %3210 = vmatprep.subr.bf16.mxu1 %v3458_v39  ;;  %3281 = vmatprep.mubr.msk.bf16.mxu0 %vm3471_vm0, %v3470_v0 }
  0x9d   :  { %3278 = vmatpush3.bf16.msra.mxu0 %v3459_v40 }
  0x9e   :  { %3279 = vmatprep.subr.bf16.mxu0 %v3470_v0 }
  0x9f   :  { %3211 = vmatpush3.bf16.msra.mxu1 %v3460_v41 }
  0xa1   :  { %3280 = vmatpush3.bf16.msra.mxu0 %v3464_v44 }
  0xa2   :  { %2198 = vmatmul.mubr.bf16.vlgmr.msra.gmra.mrb[28].mxu1 %v3461_v42 }
  0xa4   :  { %3282 = vmatmul.mubr.msk.bf16.vlgmr.msra.gmra.mrb[28].mxu0 %vm195_vm1, %v3465_v45 }
  0xbc   :  { %v65_v53 = vpop.permute.xlu0 %64 }
  0xbd   :  { %v346_v62 = vpop.permute.xlu1 %345 }
  0xc1   :  { %v70_v63 = vpop.permute.xlu0 %69  ;;  %v351_v15 = vpop.permute.xlu1 %350 }
  0xc5   :  { %v627_v31 = vpop.permute.xlu0 %626  ;;  %v632_v35 = vpop.permute.xlu1 %631 }
  0xc9   :  { %v908_v40 = vpop.permute.xlu0 %907  ;;  %v913_v42 = vpop.permute.xlu1 %912 }
  0xdd   :  { %v274_v46 = vpop.f32.mrb[0].mxu1 }
  0xde   :  { %v3227_v47 = vpop.f32.mrb[1].mxu1 }
  0xdf   :  { %v277_v48 = vpop.f32.mrb[2].mxu1 }
  0xe0   :  { %v3228_v49 = vpop.f32.mrb[3].mxu1 }
  0xf6   :  { %v3037_v52 = vpop.f32.mrb[0].mxu0 }
  0xf7   :  { %v3038_v54 = vpop.f32.mrb[1].mxu0 }
  0xf8   :  { %v3039_v55 = vadd.f32 %v3038_v54, %v3037_v52  ;;  %v3040_v56 = vpop.f32.mrb[2].mxu0 }
  0xf9   :  { %v3041_v57 = vpop.f32.mrb[3].mxu0 }
  0xfa   :  { %v234_v58 = vadd.f32 %v3039_v55, %v65_v53  ;;  %v3042_v59 = vadd.f32 %v3041_v57, %v3040_v56 }
  0xfc   :  { %v4066_v61 = vadd.f32 %v274_v46, %v234_v58  ;;  %v237_v1 = vadd.f32 %v3042_v59, %v70_v63 }
  0xfd   :  { %v3062_v2 = vpop.f32.mrb[4].mxu1 }
  0xfe   :  { %v283_v3 = vmul.f32 %v4064_v60, %v4066_v61  ;;  %v3063_v4 = vpop.f32.mrb[5].mxu1  ;;  %v554_v5 = vpop.f32.mrb[4].mxu0  ;;  %v4070_v6 = vadd.f32 %v277_v48, %v237_v1 }
  0xff   :  { %v3064_v7 = vadd.f32 %v3063_v4, %v3062_v2  ;;  %v3065_v8 = vpop.f32.mrb[6].mxu1  ;;  %v3235_v9 = vpop.f32.mrb[5].mxu0 }
 0x100   :  { %285 = vadd.xlane.f32.xlu1 %v283_v3  ;;  %v291_v0 = vmul.f32 %v283_v3, %v4066_v61  ;;  %v3066_v10 = vpop.f32.mrb[7].mxu1  ;;  %v557_v11 = vpop.f32.mrb[6].mxu0  ;;  %v284_v16 = vmul.f32 %v4064_v60, %v4070_v6 }
 0x101   :  { %v514_v12 = vadd.f32 %v3064_v7, %v346_v62  ;;  %v3067_v13 = vadd.f32 %v3066_v10, %v3065_v8  ;;  %v3236_v14 = vpop.f32.mrb[7].mxu0 }
 0x102   :  { %293 = vadd.xlane.f32.xlu0 %v291_v0  ;;  %v292_v21 = vmul.f32 %v284_v16, %v4070_v6  ;;  %v1194_v0 = vpop.permute.xlu1 %1193 }
 0x103   :  { %v4075_v17 = vadd.f32 %v554_v5, %v514_v12  ;;  %v517_v18 = vadd.f32 %v3067_v13, %v351_v15  ;;  %v1189_v13 = vpop.permute.xlu0 %1188 }
 0x104   :  { %287 = vadd.xlane.f32.xlu1 %v284_v16 }
 0x105   :  { %v4077_v19 = vadd.f32 %v557_v11, %v517_v18  ;;  %v835_v20 = vpop.f32.mrb[8].mxu1  ;;  %v564_v25 = vmul.f32 %v4064_v60, %v4075_v17 }
 0x106   :  { %v3243_v22 = vpop.f32.mrb[9].mxu1 }
 0x107   :  { %v838_v23 = vpop.f32.mrb[10].mxu1  ;;  %v565_v24 = vmul.f32 %v4064_v60, %v4077_v19  ;;  %v572_v27 = vmul.f32 %v564_v25, %v4075_v17 }
 0x108   :  { %295 = vadd.xlane.f32.xlu1 %v292_v21  ;;  %v3244_v26 = vpop.f32.mrb[11].mxu1  ;;  %v1470_v21 = vpop.permute.xlu1 %1469 }
 0x109   :  { %568 = vadd.xlane.f32.xlu0 %v565_v24  ;;  %v573_v28 = vmul.f32 %v565_v24, %v4077_v19 }
 0x10c   :  { %566 = vadd.xlane.f32.xlu1 %v564_v25 }
 0x10d   :  { %574 = vadd.xlane.f32.xlu0 %v572_v27 }
 0x111   :  { %576 = vadd.xlane.f32.xlu0 %v573_v28 }
 0x11e   :  { %v3087_v29 = vpop.f32.mrb[8].mxu0 }
 0x11f   :  { %v3088_v30 = vpop.f32.mrb[9].mxu0 }
 0x120   :  { %v3089_v32 = vadd.f32 %v3088_v30, %v3087_v29  ;;  %v3090_v33 = vpop.f32.mrb[10].mxu0 }
 0x121   :  { %v3091_v34 = vpop.f32.mrb[11].mxu0 }
 0x122   :  { %v795_v36 = vadd.f32 %v3089_v32, %v627_v31  ;;  %v3092_v37 = vadd.f32 %v3091_v34, %v3090_v33 }
 0x124   :  { %v4086_v38 = vadd.f32 %v835_v20, %v795_v36  ;;  %v798_v39 = vadd.f32 %v3092_v37, %v632_v35  ;;  %v1475_v36 = vpop.permute.xlu0 %1474 }
 0x125   :  { %v3112_v41 = vpop.f32.mrb[12].mxu1 }
 0x126   :  { %v4088_v43 = vadd.f32 %v838_v23, %v798_v39  ;;  %v3113_v44 = vpop.f32.mrb[13].mxu1  ;;  %v1116_v45 = vpop.f32.mrb[12].mxu0  ;;  %v845_v46 = vmul.f32 %v4064_v60, %v4086_v38 }
 0x127   :  { %v3114_v47 = vadd.f32 %v3113_v44, %v3112_v41  ;;  %v3115_v48 = vpop.f32.mrb[14].mxu1  ;;  %v3251_v49 = vpop.f32.mrb[13].mxu0 }
 0x128   :  { %v3116_v50 = vpop.f32.mrb[15].mxu1  ;;  %v1119_v51 = vpop.f32.mrb[14].mxu0  ;;  %847 = vadd.xlane.f32.xlu0 %v845_v46  ;;  %v846_v52 = vmul.f32 %v4064_v60, %v4088_v43  ;;  %v853_v56 = vmul.f32 %v845_v46, %v4086_v38 }
 0x129   :  { %v1076_v53 = vadd.f32 %v3114_v47, %v908_v40  ;;  %v3117_v54 = vadd.f32 %v3116_v50, %v3115_v48  ;;  %v3252_v55 = vpop.f32.mrb[15].mxu0 }
 0x12a   :  { %849 = vadd.xlane.f32.xlu1 %v846_v52  ;;  %v854_v63 = vmul.f32 %v846_v52, %v4088_v43 }
 0x12b   :  { %v4095_v57 = vadd.f32 %v1116_v45, %v1076_v53  ;;  %v1079_v58 = vadd.f32 %v3117_v54, %v913_v42  ;;  %v1751_v54 = vpop.permute.xlu1 %1750 }
 0x12c   :  { %855 = vadd.xlane.f32.xlu0 %v853_v56 }
 0x12d   :  { %v4097_v59 = vadd.f32 %v1119_v51, %v1079_v58  ;;  %v1397_v62 = vpop.f32.mrb[16].mxu1  ;;  %v1126_v5 = vmul.f32 %v4064_v60, %v4095_v57 }
 0x12e   :  { %v3259_v1 = vpop.f32.mrb[17].mxu1 }
 0x12f   :  { %v1127_v2 = vmul.f32 %v4064_v60, %v4097_v59  ;;  %v1400_v3 = vpop.f32.mrb[18].mxu1  ;;  %v1134_v7 = vmul.f32 %v1126_v5, %v4095_v57  ;;  %v1756_v1 = vpop.permute.xlu0 %1755 }
 0x130   :  { %857 = vadd.xlane.f32.xlu0 %v854_v63  ;;  %v3260_v4 = vpop.f32.mrb[19].mxu1 }
 0x131   :  { %1130 = vadd.xlane.f32.xlu1 %v1127_v2  ;;  %v1135_v8 = vmul.f32 %v1127_v2, %v4097_v59 }
 0x134   :  { %1128 = vadd.xlane.f32.xlu0 %v1126_v5  ;;  %v2032_v5 = vpop.permute.xlu1 %2031 }
 0x138   :  { %1136 = vadd.xlane.f32.xlu0 %v1134_v7 }
 0x13c   :  { %1138 = vadd.xlane.f32.xlu0 %v1135_v8 }
 0x146   :  { %v3137_v9 = vpop.f32.mrb[16].mxu0 }
 0x147   :  { %v3138_v10 = vpop.f32.mrb[17].mxu0 }
 0x148   :  { %v3139_v11 = vadd.f32 %v3138_v10, %v3137_v9  ;;  %v3140_v12 = vpop.f32.mrb[18].mxu0 }
 0x149   :  { %v3141_v14 = vpop.f32.mrb[19].mxu0 }
 0x14a   :  { %v1357_v15 = vadd.f32 %v3139_v11, %v1189_v13  ;;  %v3142_v16 = vadd.f32 %v3141_v14, %v3140_v12 }
 0x14c   :  { %v4106_v18 = vadd.f32 %v1397_v62, %v1357_v15  ;;  %v1360_v20 = vadd.f32 %v3142_v16, %v1194_v0 }
 0x14d   :  { %v3162_v22 = vpop.f32.mrb[20].mxu1 }
 0x14e   :  { %v4108_v23 = vadd.f32 %v1400_v3, %v1360_v20  ;;  %v3163_v24 = vpop.f32.mrb[21].mxu1  ;;  %v1678_v25 = vpop.f32.mrb[20].mxu0  ;;  %v1407_v26 = vmul.f32 %v4064_v60, %v4106_v18 }
 0x14f   :  { %v3164_v27 = vadd.f32 %v3163_v24, %v3162_v22  ;;  %v3165_v28 = vpop.f32.mrb[22].mxu1  ;;  %v3267_v29 = vpop.f32.mrb[21].mxu0 }
 0x150   :  { %v3166_v30 = vpop.f32.mrb[23].mxu1  ;;  %v1681_v31 = vpop.f32.mrb[22].mxu0  ;;  %1409 = vadd.xlane.f32.xlu1 %v1407_v26  ;;  %v1408_v32 = vmul.f32 %v4064_v60, %v4108_v23  ;;  %v1415_v41 = vmul.f32 %v1407_v26, %v4106_v18 }
 0x151   :  { %v1638_v33 = vadd.f32 %v3164_v27, %v1470_v21  ;;  %v3167_v34 = vadd.f32 %v3166_v30, %v3165_v28  ;;  %v3268_v35 = vpop.f32.mrb[23].mxu0  ;;  %v2037_v21 = vpop.permute.xlu0 %2036 }
 0x152   :  { %1411 = vadd.xlane.f32.xlu0 %v1408_v32  ;;  %v1416_v37 = vmul.f32 %v1408_v32, %v4108_v23 }
 0x153   :  { %v4115_v39 = vadd.f32 %v1678_v25, %v1638_v33  ;;  %v1641_v40 = vadd.f32 %v3167_v34, %v1475_v36 }
 0x154   :  { %1419 = vadd.xlane.f32.xlu1 %v1416_v37 }
 0x155   :  { %v4118_v42 = vadd.f32 %v1681_v31, %v1641_v40  ;;  %v1959_v44 = vpop.f32.mrb[24].mxu1  ;;  %v1688_v48 = vmul.f32 %v4064_v60, %v4115_v39 }
 0x156   :  { %1417 = vadd.xlane.f32.xlu0 %v1415_v41  ;;  %v3275_v45 = vpop.f32.mrb[25].mxu1 }
 0x157   :  { %v1689_v46 = vmul.f32 %v4064_v60, %v4118_v42  ;;  %v1962_v47 = vpop.f32.mrb[26].mxu1  ;;  %v1696_v51 = vmul.f32 %v1688_v48, %v4115_v39 }
 0x158   :  { %v3276_v49 = vpop.f32.mrb[27].mxu1 }
 0x159   :  { %1692 = vadd.xlane.f32.xlu1 %v1689_v46  ;;  %v1697_v50 = vmul.f32 %v1689_v46, %v4118_v42 }
 0x15a   :  { %1690 = vadd.xlane.f32.xlu0 %v1688_v48 }
 0x15d   :  { %1700 = vadd.xlane.f32.xlu1 %v1697_v50 }
 0x15e   :  { %1698 = vadd.xlane.f32.xlu0 %v1696_v51 }
 0x16e   :  { %v3187_v52 = vpop.f32.mrb[24].mxu0 }
 0x16f   :  { %v3188_v53 = vpop.f32.mrb[25].mxu0 }
 0x170   :  { %v3189_v55 = vadd.f32 %v3188_v53, %v3187_v52  ;;  %v3190_v56 = vpop.f32.mrb[26].mxu0 }
 0x171   :  { %v3191_v58 = vpop.f32.mrb[27].mxu0 }
 0x172   :  { %v1919_v62 = vadd.f32 %v3189_v55, %v1751_v54  ;;  %v3192_v63 = vadd.f32 %v3191_v58, %v3190_v56 }
 0x174   :  { %v4126_v2 = vadd.f32 %v1959_v44, %v1919_v62  ;;  %v1922_v3 = vadd.f32 %v3192_v63, %v1756_v1 }
 0x175   :  { %v3212_v4 = vpop.f32.mrb[28].mxu1 }
 0x176   :  { %v4128_v7 = vadd.f32 %v1962_v47, %v1922_v3  ;;  %v3213_v8 = vpop.f32.mrb[29].mxu1  ;;  %v1969_v9 = vmul.f32 %v4064_v60, %v4126_v2 }
 0x177   :  { %v3214_v0 = vadd.f32 %v3213_v8, %v3212_v4  ;;  %v3215_v10 = vpop.f32.mrb[30].mxu1  ;;  %v2240_v11 = vpop.f32.mrb[28].mxu0 }
 0x178   :  { %v3216_v12 = vpop.f32.mrb[31].mxu1  ;;  %1971 = vadd.xlane.f32.xlu0 %v1969_v9  ;;  %v3283_v13 = vpop.f32.mrb[29].mxu0  ;;  %v1970_v14 = vmul.f32 %v4064_v60, %v4128_v7  ;;  %v1977_v24 = vmul.f32 %v1969_v9, %v4126_v2 }
 0x179   :  { %v3217_v15 = vadd.f32 %v3216_v12, %v3215_v10  ;;  %v2200_v16 = vadd.f32 %v3214_v0, %v2032_v5  ;;  %v2243_v20 = vpop.f32.mrb[30].mxu0 }
 0x17a   :  { %1973 = vadd.xlane.f32.xlu1 %v1970_v14  ;;  %v3284_v22 = vpop.f32.mrb[31].mxu0  ;;  %v1978_v27 = vmul.f32 %v1970_v14, %v4128_v7 }
 0x17b   :  { %v4135_v25 = vadd.f32 %v2240_v11, %v2200_v16  ;;  %v2203_v26 = vadd.f32 %v3217_v15, %v2037_v21 }
 0x17c   :  { %1979 = vadd.xlane.f32.xlu0 %v1977_v24 }
 0x17d   :  { %v4138_v28 = vadd.f32 %v2243_v20, %v2203_v26  ;;  %v2250_v29 = vmul.f32 %v4064_v60, %v4135_v25 }
 0x17e   :  { %1981 = vadd.xlane.f32.xlu1 %v1978_v27 }
 0x17f   :  { %v2251_v30 = vmul.f32 %v4064_v60, %v4138_v28  ;;  %v2258_v31 = vmul.f32 %v2250_v29, %v4135_v25 }
 0x180   :  { %2252 = vadd.xlane.f32.xlu0 %v2250_v29 }
 0x181   :  { %v2259_v32 = vmul.f32 %v2251_v30, %v4138_v28 }
 0x182   :  { %2254 = vadd.xlane.f32.xlu1 %v2251_v30 }
 0x184   :  { %2260 = vadd.xlane.f32.xlu0 %v2258_v31 }
 0x186   :  { %2262 = vadd.xlane.f32.xlu1 %v2259_v32 }
 0x18d   :  { %v286_v40 = vpop.xlane.xlu1 %285 }
 0x18f   :  { %v294_v33 = vpop.xlane.xlu0 %293 }
 0x191   :  { %v288_v44 = vpop.xlane.xlu1 %287 }
 0x195   :  { %v296_v46 = vpop.xlane.xlu1 %295 }
 0x196   :  { %v569_v34 = vpop.xlane.xlu0 %568 }
 0x197   :  { %v571_v3 = vadd.f32 %v569_v34, %v288_v44 }
 0x199   :  { %v567_v60 = vpop.xlane.xlu1 %566 }
 0x19a   :  { %v575_v35 = vpop.xlane.xlu0 %574  ;;  %v570_v63 = vadd.f32 %v567_v60, %v286_v40 }
 0x19b   :  { %v578_v8 = vadd.f32 %v575_v35, %v294_v33 }
 0x19e   :  { %v577_v36 = vpop.xlane.xlu0 %576 }
 0x19f   :  { %v579_v11 = vadd.f32 %v577_v36, %v296_v46 }
 0x1b5   :  { %v848_v37 = vpop.xlane.xlu0 %847 }
 0x1b6   :  { %v851_v4 = vadd.f32 %v848_v37, %v570_v63 }
 0x1b7   :  { %v850_v49 = vpop.xlane.xlu1 %849 }
 0x1b8   :  { %v852_v9 = vadd.f32 %v850_v49, %v571_v3 }
 0x1b9   :  { %v856_v41 = vpop.xlane.xlu0 %855 }
 0x1ba   :  { %v859_v12 = vadd.f32 %v856_v41, %v578_v8 }
 0x1bd   :  { %v858_v45 = vpop.xlane.xlu0 %857 }
 0x1be   :  { %v1131_v51 = vpop.xlane.xlu1 %1130  ;;  %v860_v16 = vadd.f32 %v858_v45, %v579_v11 }
 0x1bf   :  { %v1133_v13 = vadd.f32 %v1131_v51, %v852_v9 }
 0x1c1   :  { %v1129_v47 = vpop.xlane.xlu0 %1128 }
 0x1c2   :  { %v1132_v0 = vadd.f32 %v1129_v47, %v851_v4 }
 0x1c5   :  { %v1137_v48 = vpop.xlane.xlu0 %1136 }
 0x1c6   :  { %v1140_v20 = vadd.f32 %v1137_v48, %v859_v12 }
 0x1c9   :  { %v1139_v50 = vpop.xlane.xlu0 %1138 }
 0x1ca   :  { %v1141_v26 = vadd.f32 %v1139_v50, %v860_v16 }
 0x1dd   :  { %v1410_v53 = vpop.xlane.xlu1 %1409 }
 0x1de   :  { %v1413_v14 = vadd.f32 %v1410_v53, %v1132_v0 }
 0x1df   :  { %v1412_v52 = vpop.xlane.xlu0 %1411 }
 0x1e0   :  { %v1414_v21 = vadd.f32 %v1412_v52, %v1133_v13 }
 0x1e1   :  { %v1420_v55 = vpop.xlane.xlu1 %1419 }
 0x1e2   :  { %v1422_v32 = vadd.f32 %v1420_v55, %v1141_v26 }
 0x1e3   :  { %v1418_v54 = vpop.xlane.xlu0 %1417 }
 0x1e4   :  { %v1421_v27 = vadd.f32 %v1418_v54, %v1140_v20 }
 0x1e6   :  { %v1693_v58 = vpop.xlane.xlu1 %1692 }
 0x1e7   :  { %v1691_v56 = vpop.xlane.xlu0 %1690  ;;  %v1695_v29 = vadd.f32 %v1693_v58, %v1414_v21 }
 0x1e8   :  { %v1694_v22 = vadd.f32 %v1691_v56, %v1413_v14 }
 0x1ea   :  { %v1701_v1 = vpop.xlane.xlu1 %1700 }
 0x1eb   :  { %v1699_v62 = vpop.xlane.xlu0 %1698  ;;  %v1703_v36 = vadd.f32 %v1701_v1, %v1422_v32 }
 0x1ec   :  { %v1702_v33 = vadd.f32 %v1699_v62, %v1421_v27 }
 0x205   :  { %v1972_v5 = vpop.xlane.xlu0 %1971 }
 0x206   :  { %v1975_v30 = vadd.f32 %v1972_v5, %v1694_v22 }
 0x207   :  { %v1974_v10 = vpop.xlane.xlu1 %1973 }
 0x208   :  { %v1976_v34 = vadd.f32 %v1974_v10, %v1695_v29 }
 0x209   :  { %v1980_v15 = vpop.xlane.xlu0 %1979 }
 0x20a   :  { %v1983_v40 = vadd.f32 %v1980_v15, %v1702_v33 }
 0x20b   :  { %v1982_v24 = vpop.xlane.xlu1 %1981 }
 0x20c   :  { %v1984_v45 = vadd.f32 %v1982_v24, %v1703_v36 }
 0x20d   :  { %v2253_v31 = vpop.xlane.xlu0 %2252 }
 0x20e   :  { %v2256_v35 = vadd.f32 %v2253_v31, %v1975_v30 }
 0x20f   :  { %v2255_v37 = vpop.xlane.xlu1 %2254 }
 0x210   :  { %v2266_v41 = vmul.f32 0.0078125, %v2256_v35  ;;  %v2257_v44 = vadd.f32 %v2255_v37, %v1976_v34 }
 0x211   :  { %v2261_v46 = vpop.xlane.xlu0 %2260 }
 0x212   :  { %v2267_v47 = vmul.f32 0.0078125, %v2257_v44  ;;  %v2264_v60 = vadd.f32 %v2261_v46, %v1983_v40  ;;  %v2270_v49 = vmul.f32 %v2266_v41, %v2266_v41  ;;  %v2280_v1 = vsub.f32 0.0, %v2266_v41 }
 0x213   :  { %v2263_v48 = vpop.xlane.xlu1 %2262 }
 0x214   :  { %v2268_v50 = vmul.f32 0.0078125, %v2264_v60  ;;  %v2265_v51 = vadd.f32 %v2263_v48, %v1984_v45  ;;  %v2271_v52 = vmul.f32 %v2267_v47, %v2267_v47  ;;  %v2281_v26 = vsub.f32 0.0, %v2267_v47 }
 0x216   :  { %v2272_v53 = vsub.f32 %v2268_v50, %v2270_v49  ;;  %v2269_v54 = vmul.f32 0.0078125, %v2265_v51 }
 0x218   :  { %v2274_v55 = vmax.f32 %v2272_v53, 0.0  ;;  %v2273_v56 = vsub.f32 %v2269_v54, %v2271_v52 }
 0x21a   :  { %v2276_v58 = vadd.f32 1e-05, %v2274_v55  ;;  %v2275_v62 = vmax.f32 %v2273_v56, 0.0 }
 0x21c   :  { %3466 = vrsqrt.f32 %v2276_v58  ;;  %v2277_v63 = vadd.f32 1e-05, %v2275_v62 }
 0x21e   :  { %3468 = vrsqrt.f32 %v2277_v63 }
 0x226   :  { %v3467_v3 = vpop.eup %3466 }
 0x227   :  { %v2282_v4 = vmul.f32 %v3467_v3, %v2280_v1  ;;  %v2286_v5 = vmul.f32 %v3467_v3, %v4066_v61  ;;  %v2308_v8 = vmul.f32 %v3467_v3, %v4075_v17  ;;  %v2331_v9 = vmul.f32 %v3467_v3, %v4086_v38 }
 0x228   :  { %v2354_v0 = vmul.f32 %v3467_v3, %v4095_v57  ;;  %v2377_v10 = vmul.f32 %v3467_v3, %v4106_v18  ;;  %v2400_v11 = vmul.f32 %v3467_v3, %v4115_v39  ;;  %v2423_v15 = vmul.f32 %v3467_v3, %v4126_v2  ;;  %v3469_v22 = vpop.eup %3468 }
 0x229   :  { %v2288_v12 = vadd.f32 %v2286_v5, %v2282_v4  ;;  %v2310_v13 = vadd.f32 %v2308_v8, %v2282_v4  ;;  %v2333_v14 = vadd.f32 %v2331_v9, %v2282_v4  ;;  %v2446_v24 = vmul.f32 %v3467_v3, %v4135_v25 }
 0x22a   :  { %v2356_v16 = vadd.f32 %v2354_v0, %v2282_v4  ;;  %v2379_v20 = vadd.f32 %v2377_v10, %v2282_v4  ;;  %v2402_v21 = vadd.f32 %v2400_v11, %v2282_v4  ;;  %v2425_v39 = vadd.f32 %v2423_v15, %v2282_v4 }
 0x22b   :  { %vm2290_vm3 = vcmp.ge.f32.partialorder %v2288_v12, 0.0  ;;  %v2292_v61 = vmul.f32 0.01, %v2288_v12  ;;  %vm2312_vm4 = vcmp.ge.f32.partialorder %v2310_v13, 0.0  ;;  %v2314_v17 = vmul.f32 0.01, %v2310_v13 }
 0x22c   :  { %vm2335_vm5 = vcmp.ge.f32.partialorder %v2333_v14, 0.0  ;;  %v2337_v38 = vmul.f32 0.01, %v2333_v14  ;;  %vm2358_vm6 = vcmp.ge.f32.partialorder %v2356_v16, 0.0  ;;  %v2360_v57 = vmul.f32 0.01, %v2356_v16 }
 0x22d   :  { %vm2381_vm7 = vcmp.ge.f32.partialorder %v2379_v20, 0.0  ;;  %v2383_v18 = vmul.f32 0.01, %v2379_v20  ;;  %v2294_v27 = vsel %vm2290_vm3, %v2288_v12, %v2292_v61  ;;  %v2316_v2 = vsel %vm2312_vm4, %v2310_v13, %v2314_v17 }
 0x22e   :  { %v2339_v29 = vsel %vm2335_vm5, %v2333_v14, %v2337_v38  ;;  %v2362_v30 = vsel %vm2358_vm6, %v2356_v16, %v2360_v57  ;;  %vm2404_vm8 = vcmp.ge.f32.partialorder %v2402_v21, 0.0  ;;  %v2406_v31 = vmul.f32 0.01, %v2402_v21 }
 0x22f   :  { %v2385_v32 = vsel %vm2381_vm7, %v2379_v20, %v2383_v18  ;;  %v2283_v33 = vmul.f32 %v3469_v22, %v2281_v26  ;;  %v2287_v34 = vmul.f32 %v3469_v22, %v4070_v6  ;;  %v2309_v35 = vmul.f32 %v3469_v22, %v4077_v19 }
 0x230   :  { %vm2427_vm9 = vcmp.ge.f32.partialorder %v2425_v39, 0.0  ;;  %v2429_v37 = vmul.f32 0.01, %v2425_v39  ;;  %v2448_v36 = vadd.f32 %v2446_v24, %v2282_v4  ;;  %v2332_v40 = vmul.f32 %v3469_v22, %v4088_v43 }
 0x231   :  { %v2289_v41 = vadd.f32 %v2287_v34, %v2283_v33  ;;  %v2311_v25 = vadd.f32 %v2309_v35, %v2283_v33  ;;  %v2355_v44 = vmul.f32 %v3469_v22, %v4097_v59  ;;  %v2378_v46 = vmul.f32 %v3469_v22, %v4108_v23 }
 0x232   :  { %v2408_v45 = vsel %vm2404_vm8, %v2402_v21, %v2406_v31  ;;  %v2334_v47 = vadd.f32 %v2332_v40, %v2283_v33  ;;  %v2401_v60 = vmul.f32 %v3469_v22, %v4118_v42  ;;  %v2424_v48 = vmul.f32 %v3469_v22, %v4128_v7 }
 0x233   :  { %vm2291_vm10 = vcmp.ge.f32.partialorder %v2289_v41, 0.0  ;;  %v2293_v6 = vmul.f32 0.01, %v2289_v41  ;;  %vm2313_vm11 = vcmp.ge.f32.partialorder %v2311_v25, 0.0  ;;  %v2315_v19 = vmul.f32 0.01, %v2311_v25 }
 0x234   :  { %vm2336_vm12 = vcmp.ge.f32.partialorder %v2334_v47, 0.0  ;;  %v2338_v49 = vmul.f32 0.01, %v2334_v47  ;;  %v2357_v50 = vadd.f32 %v2355_v44, %v2283_v33  ;;  %v2380_v43 = vadd.f32 %v2378_v46, %v2283_v33 }
 0x235   :  { %v2295_v51 = vsel %vm2291_vm10, %v2289_v41, %v2293_v6  ;;  %v2317_v52 = vsel %vm2313_vm11, %v2311_v25, %v2315_v19  ;;  %v2403_v53 = vadd.f32 %v2401_v60, %v2283_v33  ;;  %v2426_v59 = vadd.f32 %v2424_v48, %v2283_v33 }
 0x236   :  { %v2977_v54 = vpack.c.bf16 %v2295_v51, %v2294_v27  ;;  %v2982_v23 = vpack.c.bf16 %v2317_v52, %v2316_v2  ;;  %v2340_v55 = vsel %vm2336_vm12, %v2334_v47, %v2338_v49  ;;  %vm2359_vm13 = vcmp.ge.f32.partialorder %v2357_v50, 0.0 }
 0x237   :  { %v2987_v56 = vpack.c.bf16 %v2340_v55, %v2339_v29  ;;  %v2361_v42 = vmul.f32 0.01, %v2357_v50  ;;  %vm2382_vm14 = vcmp.ge.f32.partialorder %v2380_v43, 0.0  ;;  %v2384_v7 = vmul.f32 0.01, %v2380_v43 }
 0x238   :  { %2978 = vst [vmem:[%s4190_s3] sm:$0xff] %v2977_v54   ;;  %3014 = vst [vmem:[%s4190_s3 + $0x8] sm:$0xff] %v2982_v23   ;;  %vm2405_vm15 = vcmp.ge.f32.partialorder %v2403_v53, 0.0  ;;  %v2407_v58 = vmul.f32 0.01, %v2403_v53  ;;  %vm2428_vm0 = vcmp.ge.f32.partialorder %v2426_v59, 0.0  ;;  %v2431_v63 = vsel %vm2427_vm9, %v2425_v39, %v2429_v37 }
 0x239   :  { %v2430_v62 = vmul.f32 0.01, %v2426_v59  ;;  %3015 = vst [vmem:[%s4190_s3 + $0x10] sm:$0xff] %v2987_v56   ;;  %v2363_v1 = vsel %vm2359_vm13, %v2357_v50, %v2361_v42  ;;  %v2386_v3 = vsel %vm2382_vm14, %v2380_v43, %v2384_v7  ;;  %v2447_v4 = vmul.f32 %v3469_v22, %v4138_v28 }
 0x23a   :  { %v2992_v5 = vpack.c.bf16 %v2363_v1, %v2362_v30  ;;  %v2997_v8 = vpack.c.bf16 %v2386_v3, %v2385_v32  ;;  %v2409_v9 = vsel %vm2405_vm15, %v2403_v53, %v2407_v58  ;;  %v2452_v10 = vmul.f32 0.01, %v2448_v36 }
 0x23b   :  { %v2432_v0 = vsel %vm2428_vm0, %v2426_v59, %v2430_v62  ;;  %v3002_v11 = vpack.c.bf16 %v2409_v9, %v2408_v45  ;;  %v2449_v13 = vadd.f32 %v2447_v4, %v2283_v33  ;;  %vm2450_vm1 = vcmp.ge.f32.partialorder %v2448_v36, 0.0 }
 0x23c   :  { %v3007_v12 = vpack.c.bf16 %v2432_v0, %v2431_v63  ;;  %3016 = vst [vmem:[%s4190_s3 + $0x18] sm:$0xff] %v2992_v5   ;;  %3017 = vst [vmem:[%s4190_s3 + $0x20] sm:$0xff] %v2997_v8   ;;  %v2454_v14 = vsel %vm2450_vm1, %v2448_v36, %v2452_v10 }
 0x23d   :  { %3018 = vst [vmem:[%s4190_s3 + $0x28] sm:$0xff] %v3002_v11   ;;  %vm2451_vm2 = vcmp.ge.f32.partialorder %v2449_v13, 0.0  ;;  %v2453_v28 = vmul.f32 0.01, %v2449_v13 }
 0x23e   :  { %3019 = vst [vmem:[%s4190_s3 + $0x30] sm:$0xff] %v3007_v12  }
 0x23f   :  { %v2455_v15 = vsel %vm2451_vm2, %v2449_v13, %v2453_v28 }
 0x240   :  { %v3012_v16 = vpack.c.bf16 %v2455_v15, %v2454_v14 }
 0x242   :  { %3020 = vst [vmem:[%s4190_s3 + $0x38] sm:$0xff] %v3012_v16  }

// kernel: generator_forward.9
= control target key start
LH: loop header
LB: loop body
LE: loop exit
PB: predicated region body
PF: predicated region fallthrough
CT: control target
= control target key end

     0   :  { %v1632_v0 = vmov 0   ;;  %vm108_vm0 = vcmask 261120   ;;  %s2106_s0 = inlined_call_operand.vmem [shape: bf16[8,160,128], index: 0, kind: input, shape index: {}]   ;;  %s2107_s1 = inlined_call_operand.vmem [shape: bf16[8,8,160], index: 1, kind: input, shape index: {}]   ;;  %s2108_s2 = inlined_call_operand.vmem [shape: f32[8,1], index: 2, kind: input, shape index: {}]   ;;  %s2109_s3 = inlined_call_operand.vmem [shape: bf16[8,8,128], index: 3, kind: output, shape index: {}]  }
   0x1   :  { %112 = vmatprep.subr.bf16.mxu0 %v1632_v0  ;;  %258 = vmatprep.subr.bf16.mxu1 %v1632_v0  ;;  %v1534_v1 = vld [vmem:[%s2106_s0] sm:$0xff]   ;;  %v1535_v2 = vld [vmem:[%s2106_s0 + $0x50] sm:$0xff]   ;;  %v1536_v3 = vld [vmem:[%s2106_s0 + $0x8] sm:$0xff]  }
   0x2   :  { %1533 = vset.pattern.permute.xlu1 %v1632_v0  ;;  %1532 = vset.pattern.permute.xlu0 %v1632_v0  ;;  %v1537_v4 = vld [vmem:[%s2106_s0 + $0x58] sm:$0xff]   ;;  %v1538_v5 = vld [vmem:[%s2106_s0 + $0x10] sm:$0xff]   ;;  %v1539_v6 = vld [vmem:[%s2106_s0 + $0x60] sm:$0xff]  }
   0x3   :  { %113 = vmatpush1.bf16.msra.mxu0 %v1534_v1  ;;  %259 = vmatpush1.bf16.msra.mxu1 %v1535_v2  ;;  %v1540_v7 = vld [vmem:[%s2106_s0 + $0x18] sm:$0xff]   ;;  %v1541_v8 = vld [vmem:[%s2106_s0 + $0x68] sm:$0xff]   ;;  %v1542_v9 = vld [vmem:[%s2106_s0 + $0x20] sm:$0xff]  }
   0x4   :  { %114 = vmatprep.subr.bf16.mxu0 %v1632_v0  ;;  %260 = vmatprep.subr.bf16.mxu1 %v1632_v0  ;;  %v1543_v10 = vld [vmem:[%s2106_s0 + $0x70] sm:$0xff]   ;;  %v1544_v11 = vld [vmem:[%s2106_s0 + $0x28] sm:$0xff]   ;;  %v1545_v12 = vld [vmem:[%s2106_s0 + $0x78] sm:$0xff]  }
   0x5   :  { %v15_v13 = vld [vmem:[%s2107_s1] sm:$0xff]  ;;  %v1286_v14 = vld [vmem:[%s2107_s1 + $0x8] sm:$0xff]  ;;  %v1546_v17 = vld [vmem:[%s2106_s0 + $0x30] sm:$0xff]  }
   0x6   :  { %v1274_v15 = vcombine.high %v15_v13, %v15_v13  ;;  %v1308_v16 = vcombine.high %v1286_v14, %v1286_v14  ;;  %v1547_v18 = vld [vmem:[%s2106_s0 + $0x80] sm:$0xff]   ;;  %v1548_v19 = vld [vmem:[%s2106_s0 + $0x38] sm:$0xff]   ;;  %v1549_v20 = vld [vmem:[%s2106_s0 + $0x88] sm:$0xff]   ;;  %v1273_v25 = vcombine.low %v15_v13, %v15_v13  ;;  %v1307_v26 = vcombine.low %v1286_v14, %v1286_v14 }
   0x7   :  { %115 = vmatpush1.bf16.msra.mxu0 %v1536_v3  ;;  %261 = vmatpush1.bf16.msra.mxu1 %v1537_v4  ;;  %v1550_v21 = vld [vmem:[%s2106_s0 + $0x40] sm:$0xff]   ;;  %v1551_v22 = vld [vmem:[%s2106_s0 + $0x90] sm:$0xff]   ;;  %v1552_v23 = vld [vmem:[%s2106_s0 + $0x48] sm:$0xff]  }
   0x8   :  { %116 = vmatprep.subr.bf16.mxu0 %v1632_v0  ;;  %262 = vmatprep.subr.bf16.mxu1 %v1632_v0  ;;  %v1553_v24 = vld [vmem:[%s2106_s0 + $0x98] sm:$0xff]   ;;  %v1558_v27 = vld [vmem:[%s2106_s0 + $0xa0] sm:$0xff]   ;;  %v1559_v28 = vld [vmem:[%s2106_s0 + $0xf0] sm:$0xff]  }
   0x9   :  { %1285 = vmatprep.mubr.msk.bf16.mxu0 %vm108_vm0, %v1274_v15  ;;  %1319 = vmatprep.mubr.msk.bf16.mxu1 %vm108_vm0, %v1308_v16  ;;  %v1754_v29 = vld [vmem:[%s2107_s1 + $0x10] sm:$0xff]  ;;  %v1761_v31 = vld [vmem:[%s2107_s1 + $0x18] sm:$0xff]  ;;  %v1560_v32 = vld [vmem:[%s2106_s0 + $0xa8] sm:$0xff]  }
   0xa   :  { %v1342_v30 = vcombine.high %v1754_v29, %v1754_v29  ;;  %v1376_v33 = vcombine.high %v1761_v31, %v1761_v31  ;;  %v1561_v34 = vld [vmem:[%s2106_s0 + $0xf8] sm:$0xff]   ;;  %v1562_v35 = vld [vmem:[%s2106_s0 + $0xb0] sm:$0xff]   ;;  %v1563_v36 = vld [vmem:[%s2106_s0 + $0x100] sm:$0xff]   ;;  %v1341_v53 = vcombine.low %v1754_v29, %v1754_v29  ;;  %v1375_v55 = vcombine.low %v1761_v31, %v1761_v31 }
   0xb   :  { %117 = vmatpush1.bf16.msra.mxu0 %v1538_v5  ;;  %263 = vmatpush1.bf16.msra.mxu1 %v1539_v6  ;;  %v1564_v37 = vld [vmem:[%s2106_s0 + $0xb8] sm:$0xff]   ;;  %v1565_v38 = vld [vmem:[%s2106_s0 + $0x108] sm:$0xff]   ;;  %v1566_v39 = vld [vmem:[%s2106_s0 + $0xc0] sm:$0xff]  }
   0xc   :  { %118 = vmatprep.subr.bf16.mxu0 %v1632_v0  ;;  %264 = vmatprep.subr.bf16.mxu1 %v1632_v0  ;;  %v1567_v40 = vld [vmem:[%s2106_s0 + $0x110] sm:$0xff]   ;;  %v1568_v41 = vld [vmem:[%s2106_s0 + $0xc8] sm:$0xff]   ;;  %v1569_v42 = vld [vmem:[%s2106_s0 + $0x118] sm:$0xff]  }
   0xd   :  { %v1570_v43 = vld [vmem:[%s2106_s0 + $0xd0] sm:$0xff]   ;;  %v1571_v44 = vld [vmem:[%s2106_s0 + $0x120] sm:$0xff]   ;;  %v1572_v46 = vld [vmem:[%s2106_s0 + $0xd8] sm:$0xff]  }
   0xe   :  { %v183_v45 = vld [vmem:[%s2108_s2] sm:$0xff]  ;;  %v1573_v47 = vld [vmem:[%s2106_s0 + $0x128] sm:$0xff]   ;;  %v1575_v49 = vld [vmem:[%s2106_s0 + $0x130] sm:$0xff]  }
   0xf   :  { %119 = vmatpush1.bf16.msra.mxu0 %v1540_v7  ;;  %265 = vmatpush1.bf16.msra.mxu1 %v1541_v8  ;;  %v1574_v48 = vld [vmem:[%s2106_s0 + $0xe0] sm:$0xff]   ;;  %v1576_v50 = vld [vmem:[%s2106_s0 + $0xe8] sm:$0xff]   ;;  %v1577_v51 = vld [vmem:[%s2106_s0 + $0x138] sm:$0xff]  }
  0x10   :  { %120 = vmatprep.subr.bf16.mxu0 %v1632_v0  ;;  %266 = vmatprep.subr.bf16.mxu1 %v1632_v0  ;;  %v1582_v52 = vld [vmem:[%s2106_s0 + $0x140] sm:$0xff]   ;;  %v1857_v56 = vld [vmem:[%s2107_s1 + $0x28] sm:$0xff]  ;;  %v1583_v57 = vld [vmem:[%s2106_s0 + $0x190] sm:$0xff]  }
  0x11   :  { %186 = vperm.xlu1 %1533, %v183_v45   ;;  %39 = vperm.xlu0 %1532, %v183_v45   ;;  %v1850_v54 = vld [vmem:[%s2107_s1 + $0x20] sm:$0xff]  ;;  %v1444_v59 = vcombine.high %v1857_v56, %v1857_v56  ;;  %v1584_v60 = vld [vmem:[%s2106_s0 + $0x148] sm:$0xff]   ;;  %v1585_v61 = vld [vmem:[%s2106_s0 + $0x198] sm:$0xff]  }
  0x12   :  { %v1410_v58 = vcombine.high %v1850_v54, %v1850_v54  ;;  %v1586_v62 = vld [vmem:[%s2106_s0 + $0x150] sm:$0xff]   ;;  %v1587_v63 = vld [vmem:[%s2106_s0 + $0x1a0] sm:$0xff]   ;;  %v1588_v1 = vld [vmem:[%s2106_s0 + $0x158] sm:$0xff]   ;;  %v1409_v15 = vcombine.low %v1850_v54, %v1850_v54 }
  0x13   :  { %121 = vmatpush1.bf16.msra.mxu0 %v1542_v9  ;;  %267 = vmatpush1.bf16.msra.mxu1 %v1543_v10  ;;  %v1589_v2 = vld [vmem:[%s2106_s0 + $0x1a8] sm:$0xff]   ;;  %v1590_v3 = vld [vmem:[%s2106_s0 + $0x160] sm:$0xff]   ;;  %v1591_v4 = vld [vmem:[%s2106_s0 + $0x1b0] sm:$0xff]  }
  0x14   :  { %122 = vmatprep.subr.bf16.mxu0 %v1632_v0  ;;  %268 = vmatprep.subr.bf16.mxu1 %v1632_v0  ;;  %v1592_v5 = vld [vmem:[%s2106_s0 + $0x168] sm:$0xff]   ;;  %v1593_v6 = vld [vmem:[%s2106_s0 + $0x1b8] sm:$0xff]   ;;  %v1594_v7 = vld [vmem:[%s2106_s0 + $0x170] sm:$0xff]  }
  0x15   :  { %333 = vperm.xlu0 %1532, %v183_v45   ;;  %480 = vperm.xlu1 %1533, %v183_v45   ;;  %v1595_v8 = vld [vmem:[%s2106_s0 + $0x1c0] sm:$0xff]   ;;  %v1596_v9 = vld [vmem:[%s2106_s0 + $0x178] sm:$0xff]   ;;  %v1597_v10 = vld [vmem:[%s2106_s0 + $0x1c8] sm:$0xff]  }
  0x16   :  { %v1600_v13 = vld [vmem:[%s2106_s0 + $0x188] sm:$0xff]   ;;  %v1601_v14 = vld [vmem:[%s2106_s0 + $0x1d8] sm:$0xff]   ;;  %v1947_v16 = vld [vmem:[%s2107_s1 + $0x30] sm:$0xff] }
  0x17   :  { %123 = vmatpush1.bf16.msra.mxu0 %v1544_v11  ;;  %269 = vmatpush1.bf16.msra.mxu1 %v1545_v12  ;;  %v1598_v11 = vld [vmem:[%s2106_s0 + $0x180] sm:$0xff]   ;;  %v1599_v12 = vld [vmem:[%s2106_s0 + $0x1d0] sm:$0xff]   ;;  %v1616_v31 = vld [vmem:[%s2106_s0 + $0x208] sm:$0xff]  }
  0x18   :  { %124 = vmatprep.subr.bf16.mxu0 %v1632_v0  ;;  %270 = vmatprep.subr.bf16.mxu1 %v1632_v0  ;;  %v1614_v29 = vld [vmem:[%s2106_s0 + $0x200] sm:$0xff]  }
  0x19   :  { %627 = vperm.xlu0 %1532, %v183_v45   ;;  %921 = vperm.xlu1 %1533, %v183_v45  }
  0x1b   :  { %125 = vmatpush1.bf16.msra.mxu0 %v1546_v17  ;;  %271 = vmatpush1.bf16.msra.mxu1 %v1547_v18  ;;  %v1443_v17 = vcombine.low %v1857_v56, %v1857_v56  ;;  %v1606_v18 = vld [vmem:[%s2106_s0 + $0x1e0] sm:$0xff]  }
  0x1c   :  { %126 = vmatprep.subr.bf16.mxu0 %v1632_v0  ;;  %272 = vmatprep.subr.bf16.mxu1 %v1632_v0 }
  0x1d   :  { %774 = vperm.xlu0 %1532, %v183_v45  }
  0x1f   :  { %127 = vmatpush1.bf16.msra.mxu0 %v1548_v19  ;;  %273 = vmatpush1.bf16.msra.mxu1 %v1549_v20  ;;  %v1957_v19 = vld [vmem:[%s2107_s1 + $0x38] sm:$0xff]  ;;  %v1607_v20 = vld [vmem:[%s2106_s0 + $0x230] sm:$0xff]  }
  0x20   :  { %128 = vmatprep.subr.bf16.mxu0 %v1632_v0  ;;  %274 = vmatprep.subr.bf16.mxu1 %v1632_v0 }
  0x21   :  { %1068 = vperm.xlu0 %1532, %v183_v45  }
  0x23   :  { %129 = vmatpush1.bf16.msra.mxu0 %v1550_v21  ;;  %275 = vmatpush1.bf16.msra.mxu1 %v1551_v22  ;;  %v1478_v21 = vcombine.high %v1947_v16, %v1947_v16  ;;  %v1512_v22 = vcombine.high %v1957_v19, %v1957_v19 }
  0x24   :  { %130 = vmatprep.subr.bf16.mxu0 %v1632_v0  ;;  %276 = vmatprep.subr.bf16.mxu1 %v1632_v0 }
  0x27   :  { %131 = vmatpush1.bf16.msra.mxu0 %v1552_v23  ;;  %277 = vmatpush1.bf16.msra.mxu1 %v1553_v24  ;;  %v1608_v23 = vld [vmem:[%s2106_s0 + $0x1e8] sm:$0xff]   ;;  %v1609_v24 = vld [vmem:[%s2106_s0 + $0x238] sm:$0xff]  }
  0x28   :  { %405 = vmatprep.subr.bf16.mxu0 %v1632_v0  ;;  %552 = vmatprep.subr.bf16.mxu1 %v1632_v0 }
  0x2a   :  { %145 = vmatmul.mubr.bf16.vlgmr.msra.gmra.mrb[0].mxu0 %v1273_v25  ;;  %291 = vmatmul.mubr.bf16.vlgmr.msra.gmra.mrb[0].mxu1 %v1307_v26  ;;  %v1610_v25 = vld [vmem:[%s2106_s0 + $0x1f0] sm:$0xff]   ;;  %v1611_v26 = vld [vmem:[%s2106_s0 + $0x240] sm:$0xff]  }
  0x2b   :  { %406 = vmatpush1.bf16.msra.mxu0 %v1558_v27  ;;  %553 = vmatpush1.bf16.msra.mxu1 %v1559_v28  ;;  %v1612_v27 = vld [vmem:[%s2106_s0 + $0x1f8] sm:$0xff]   ;;  %v1613_v28 = vld [vmem:[%s2106_s0 + $0x248] sm:$0xff]  }
  0x2c   :  { %407 = vmatprep.subr.bf16.mxu0 %v1632_v0  ;;  %554 = vmatprep.subr.bf16.mxu1 %v1632_v0 }
  0x2d   :  { %1353 = vmatprep.mubr.msk.bf16.mxu0 %vm108_vm0, %v1342_v30  ;;  %1387 = vmatprep.mubr.msk.bf16.mxu1 %vm108_vm0, %v1376_v33  ;;  %v1615_v30 = vld [vmem:[%s2106_s0 + $0x250] sm:$0xff]  }
  0x2e   :  { %v1618_v33 = vld [vmem:[%s2106_s0 + $0x210] sm:$0xff]  }
  0x2f   :  { %408 = vmatpush1.bf16.msra.mxu0 %v1560_v32  ;;  %555 = vmatpush1.bf16.msra.mxu1 %v1561_v34  ;;  %v1617_v32 = vld [vmem:[%s2106_s0 + $0x258] sm:$0xff]   ;;  %v1619_v34 = vld [vmem:[%s2106_s0 + $0x260] sm:$0xff]  }
  0x30   :  { %409 = vmatprep.subr.bf16.mxu0 %v1632_v0  ;;  %556 = vmatprep.subr.bf16.mxu1 %v1632_v0 }
  0x33   :  { %410 = vmatpush1.bf16.msra.mxu0 %v1562_v35  ;;  %557 = vmatpush1.bf16.msra.mxu1 %v1563_v36  ;;  %v1620_v35 = vld [vmem:[%s2106_s0 + $0x218] sm:$0xff]   ;;  %v1621_v36 = vld [vmem:[%s2106_s0 + $0x268] sm:$0xff]  }
  0x34   :  { %411 = vmatprep.subr.bf16.mxu0 %v1632_v0  ;;  %558 = vmatprep.subr.bf16.mxu1 %v1632_v0 }
  0x37   :  { %412 = vmatpush1.bf16.msra.mxu0 %v1564_v37  ;;  %559 = vmatpush1.bf16.msra.mxu1 %v1565_v38  ;;  %v1622_v37 = vld [vmem:[%s2106_s0 + $0x220] sm:$0xff]   ;;  %v1623_v38 = vld [vmem:[%s2106_s0 + $0x270] sm:$0xff]  }
  0x38   :  { %413 = vmatprep.subr.bf16.mxu0 %v1632_v0  ;;  %560 = vmatprep.subr.bf16.mxu1 %v1632_v0 }
  0x3b   :  { %414 = vmatpush1.bf16.msra.mxu0 %v1566_v39  ;;  %561 = vmatpush1.bf16.msra.mxu1 %v1567_v40  ;;  %v1624_v39 = vld [vmem:[%s2106_s0 + $0x228] sm:$0xff]   ;;  %v1625_v40 = vld [vmem:[%s2106_s0 + $0x278] sm:$0xff]  }
  0x3c   :  { %415 = vmatprep.subr.bf16.mxu0 %v1632_v0  ;;  %562 = vmatprep.subr.bf16.mxu1 %v1632_v0 }
  0x3f   :  { %416 = vmatpush1.bf16.msra.mxu0 %v1568_v41  ;;  %563 = vmatpush1.bf16.msra.mxu1 %v1569_v42  ;;  %v1477_v41 = vcombine.low %v1947_v16, %v1947_v16  ;;  %v1511_v42 = vcombine.low %v1957_v19, %v1957_v19 }
  0x40   :  { %417 = vmatprep.subr.bf16.mxu0 %v1632_v0  ;;  %564 = vmatprep.subr.bf16.mxu1 %v1632_v0 }
  0x43   :  { %418 = vmatpush1.bf16.msra.mxu0 %v1570_v43  ;;  %565 = vmatpush1.bf16.msra.mxu1 %v1571_v44 }
  0x44   :  { %419 = vmatprep.subr.bf16.mxu0 %v1632_v0  ;;  %566 = vmatprep.subr.bf16.mxu1 %v1632_v0 }
  0x47   :  { %420 = vmatpush1.bf16.msra.mxu0 %v1572_v46  ;;  %567 = vmatpush1.bf16.msra.mxu1 %v1573_v47 }
  0x48   :  { %421 = vmatprep.subr.bf16.mxu0 %v1632_v0  ;;  %568 = vmatprep.subr.bf16.mxu1 %v1632_v0 }
  0x4b   :  { %422 = vmatpush1.bf16.msra.mxu0 %v1574_v48  ;;  %569 = vmatpush1.bf16.msra.mxu1 %v1575_v49 }
  0x4c   :  { %423 = vmatprep.subr.bf16.mxu0 %v1632_v0  ;;  %570 = vmatprep.subr.bf16.mxu1 %v1632_v0 }
  0x4f   :  { %424 = vmatpush1.bf16.msra.mxu0 %v1576_v50  ;;  %571 = vmatpush1.bf16.msra.mxu1 %v1577_v51 }
  0x50   :  { %699 = vmatprep.subr.bf16.mxu0 %v1632_v0  ;;  %846 = vmatprep.subr.bf16.mxu1 %v1632_v0 }
  0x52   :  { %438 = vmatmul.mubr.bf16.vlgmr.msra.gmra.mrb[4].mxu0 %v1341_v53  ;;  %585 = vmatmul.mubr.bf16.vlgmr.msra.gmra.mrb[4].mxu1 %v1375_v55 }
  0x53   :  { %700 = vmatpush1.bf16.msra.mxu0 %v1582_v52  ;;  %847 = vmatpush1.bf16.msra.mxu1 %v1583_v57 }
  0x54   :  { %701 = vmatprep.subr.bf16.mxu0 %v1632_v0  ;;  %848 = vmatprep.subr.bf16.mxu1 %v1632_v0 }
  0x55   :  { %1421 = vmatprep.mubr.msk.bf16.mxu0 %vm108_vm0, %v1410_v58  ;;  %1455 = vmatprep.mubr.msk.bf16.mxu1 %vm108_vm0, %v1444_v59 }
  0x57   :  { %702 = vmatpush1.bf16.msra.mxu0 %v1584_v60  ;;  %849 = vmatpush1.bf16.msra.mxu1 %v1585_v61 }
  0x58   :  { %703 = vmatprep.subr.bf16.mxu0 %v1632_v0  ;;  %850 = vmatprep.subr.bf16.mxu1 %v1632_v0 }
  0x5b   :  { %704 = vmatpush1.bf16.msra.mxu0 %v1586_v62  ;;  %851 = vmatpush1.bf16.msra.mxu1 %v1587_v63 }
  0x5c   :  { %705 = vmatprep.subr.bf16.mxu0 %v1632_v0  ;;  %852 = vmatprep.subr.bf16.mxu1 %v1632_v0 }
  0x5f   :  { %706 = vmatpush1.bf16.msra.mxu0 %v1588_v1  ;;  %853 = vmatpush1.bf16.msra.mxu1 %v1589_v2 }
  0x60   :  { %707 = vmatprep.subr.bf16.mxu0 %v1632_v0  ;;  %854 = vmatprep.subr.bf16.mxu1 %v1632_v0 }
  0x63   :  { %708 = vmatpush1.bf16.msra.mxu0 %v1590_v3  ;;  %855 = vmatpush1.bf16.msra.mxu1 %v1591_v4 }
  0x64   :  { %709 = vmatprep.subr.bf16.mxu0 %v1632_v0  ;;  %856 = vmatprep.subr.bf16.mxu1 %v1632_v0 }
  0x67   :  { %710 = vmatpush1.bf16.msra.mxu0 %v1592_v5  ;;  %857 = vmatpush1.bf16.msra.mxu1 %v1593_v6 }
  0x68   :  { %711 = vmatprep.subr.bf16.mxu0 %v1632_v0  ;;  %858 = vmatprep.subr.bf16.mxu1 %v1632_v0 }
  0x6b   :  { %712 = vmatpush1.bf16.msra.mxu0 %v1594_v7  ;;  %859 = vmatpush1.bf16.msra.mxu1 %v1595_v8 }
  0x6c   :  { %713 = vmatprep.subr.bf16.mxu0 %v1632_v0  ;;  %860 = vmatprep.subr.bf16.mxu1 %v1632_v0 }
  0x6f   :  { %714 = vmatpush1.bf16.msra.mxu0 %v1596_v9  ;;  %861 = vmatpush1.bf16.msra.mxu1 %v1597_v10 }
  0x70   :  { %715 = vmatprep.subr.bf16.mxu0 %v1632_v0  ;;  %862 = vmatprep.subr.bf16.mxu1 %v1632_v0 }
  0x73   :  { %716 = vmatpush1.bf16.msra.mxu0 %v1598_v11  ;;  %863 = vmatpush1.bf16.msra.mxu1 %v1599_v12 }
  0x74   :  { %717 = vmatprep.subr.bf16.mxu0 %v1632_v0  ;;  %864 = vmatprep.subr.bf16.mxu1 %v1632_v0 }
  0x77   :  { %718 = vmatpush1.bf16.msra.mxu0 %v1600_v13  ;;  %865 = vmatpush1.bf16.msra.mxu1 %v1601_v14 }
  0x78   :  { %993 = vmatprep.subr.bf16.mxu0 %v1632_v0  ;;  %1140 = vmatprep.subr.bf16.mxu1 %v1632_v0 }
  0x7a   :  { %732 = vmatmul.mubr.bf16.vlgmr.msra.gmra.mrb[8].mxu0 %v1409_v15  ;;  %879 = vmatmul.mubr.bf16.vlgmr.msra.gmra.mrb[8].mxu1 %v1443_v17 }
  0x7b   :  { %994 = vmatpush1.bf16.msra.mxu0 %v1606_v18  ;;  %1141 = vmatpush1.bf16.msra.mxu1 %v1607_v20 }
  0x7c   :  { %995 = vmatprep.subr.bf16.mxu0 %v1632_v0  ;;  %1142 = vmatprep.subr.bf16.mxu1 %v1632_v0 }
  0x7d   :  { %1489 = vmatprep.mubr.msk.bf16.mxu0 %vm108_vm0, %v1478_v21  ;;  %1523 = vmatprep.mubr.msk.bf16.mxu1 %vm108_vm0, %v1512_v22 }
  0x7f   :  { %996 = vmatpush1.bf16.msra.mxu0 %v1608_v23  ;;  %1143 = vmatpush1.bf16.msra.mxu1 %v1609_v24 }
  0x80   :  { %997 = vmatprep.subr.bf16.mxu0 %v1632_v0  ;;  %1144 = vmatprep.subr.bf16.mxu1 %v1632_v0 }
  0x83   :  { %998 = vmatpush1.bf16.msra.mxu0 %v1610_v25  ;;  %1145 = vmatpush1.bf16.msra.mxu1 %v1611_v26 }
  0x84   :  { %999 = vmatprep.subr.bf16.mxu0 %v1632_v0  ;;  %1146 = vmatprep.subr.bf16.mxu1 %v1632_v0 }
  0x87   :  { %1000 = vmatpush1.bf16.msra.mxu0 %v1612_v27  ;;  %1147 = vmatpush1.bf16.msra.mxu1 %v1613_v28 }
  0x88   :  { %1001 = vmatprep.subr.bf16.mxu0 %v1632_v0  ;;  %1148 = vmatprep.subr.bf16.mxu1 %v1632_v0 }
  0x8b   :  { %1002 = vmatpush1.bf16.msra.mxu0 %v1614_v29  ;;  %1149 = vmatpush1.bf16.msra.mxu1 %v1615_v30 }
  0x8c   :  { %1003 = vmatprep.subr.bf16.mxu0 %v1632_v0  ;;  %1150 = vmatprep.subr.bf16.mxu1 %v1632_v0 }
  0x8f   :  { %1004 = vmatpush1.bf16.msra.mxu0 %v1616_v31  ;;  %1151 = vmatpush1.bf16.msra.mxu1 %v1617_v32 }
  0x90   :  { %1005 = vmatprep.subr.bf16.mxu0 %v1632_v0  ;;  %1152 = vmatprep.subr.bf16.mxu1 %v1632_v0  ;;  %v40_v43 = vpop.permute.xlu0 %39  ;;  %v187_v44 = vpop.permute.xlu1 %186 }
  0x93   :  { %1006 = vmatpush1.bf16.msra.mxu0 %v1618_v33  ;;  %1153 = vmatpush1.bf16.msra.mxu1 %v1619_v34 }
  0x94   :  { %1007 = vmatprep.subr.bf16.mxu0 %v1632_v0  ;;  %1154 = vmatprep.subr.bf16.mxu1 %v1632_v0  ;;  %v334_v56 = vpop.permute.xlu0 %333  ;;  %v481_v57 = vpop.permute.xlu1 %480 }
  0x97   :  { %1008 = vmatpush1.bf16.msra.mxu0 %v1620_v35  ;;  %1155 = vmatpush1.bf16.msra.mxu1 %v1621_v36 }
  0x98   :  { %1009 = vmatprep.subr.bf16.mxu0 %v1632_v0  ;;  %1156 = vmatprep.subr.bf16.mxu1 %v1632_v0  ;;  %v628_v7 = vpop.permute.xlu0 %627  ;;  %v922_v22 = vpop.permute.xlu1 %921 }
  0x9b   :  { %1010 = vmatpush1.bf16.msra.mxu0 %v1622_v37  ;;  %1157 = vmatpush1.bf16.msra.mxu1 %v1623_v38 }
  0x9c   :  { %1011 = vmatprep.subr.bf16.mxu0 %v1632_v0  ;;  %1158 = vmatprep.subr.bf16.mxu1 %v1632_v0  ;;  %v775_v8 = vpop.permute.xlu0 %774 }
  0x9f   :  { %1012 = vmatpush1.bf16.msra.mxu0 %v1624_v39  ;;  %1159 = vmatpush1.bf16.msra.mxu1 %v1625_v40 }
  0xa0   :  { %v1069_v21 = vpop.permute.xlu0 %1068 }
  0xa2   :  { %1026 = vmatmul.mubr.bf16.vlgmr.msra.gmra.mrb[12].mxu0 %v1477_v41  ;;  %1173 = vmatmul.mubr.bf16.vlgmr.msra.gmra.mrb[12].mxu1 %v1511_v42 }
  0xfd   :  { %v146_v45 = vpop.f32.mrb[0].mxu0  ;;  %v292_v47 = vpop.f32.mrb[0].mxu1 }
  0xfe   :  { %v2046_v46 = vadd.f32 %v146_v45, %v40_v43  ;;  %v148_v48 = vpop.f32.mrb[1].mxu0  ;;  %v2048_v49 = vadd.f32 %v292_v47, %v187_v44  ;;  %v294_v50 = vpop.f32.mrb[1].mxu1 }
  0xff   :  { %v149_v0 = vpop.f32.mrb[2].mxu0  ;;  %v295_v52 = vpop.f32.mrb[2].mxu1 }
 0x100   :  { %v150_v51 = vpop.f32.mrb[3].mxu0  ;;  %153 = vadd.xlane.f32.xlu0 %v2046_v46  ;;  %300 = vadd.xlane.f32.xlu1 %v2048_v49  ;;  %v296_v53 = vpop.f32.mrb[3].mxu1  ;;  %v303_v54 = vmul.f32 %v2048_v49, %v2048_v49  ;;  %v156_v55 = vmul.f32 %v2046_v46, %v2046_v46 }
 0x104   :  { %304 = vadd.xlane.f32.xlu0 %v303_v54  ;;  %157 = vadd.xlane.f32.xlu1 %v156_v55 }
 0x125   :  { %v439_v58 = vpop.f32.mrb[4].mxu0  ;;  %v586_v61 = vpop.f32.mrb[4].mxu1 }
 0x126   :  { %v2056_v59 = vadd.f32 %v439_v58, %v334_v56  ;;  %v441_v60 = vpop.f32.mrb[5].mxu0  ;;  %v588_v63 = vpop.f32.mrb[5].mxu1  ;;  %v2058_v1 = vadd.f32 %v586_v61, %v481_v57 }
 0x127   :  { %v442_v62 = vpop.f32.mrb[6].mxu0  ;;  %v589_v3 = vpop.f32.mrb[6].mxu1 }
 0x128   :  { %v443_v2 = vpop.f32.mrb[7].mxu0  ;;  %447 = vadd.xlane.f32.xlu1 %v2056_v59  ;;  %v450_v4 = vmul.f32 %v2056_v59, %v2056_v59  ;;  %v590_v5 = vpop.f32.mrb[7].mxu1  ;;  %v597_v6 = vmul.f32 %v2058_v1, %v2058_v1 }
 0x12a   :  { %451 = vadd.xlane.f32.xlu0 %v450_v4 }
 0x12c   :  { %594 = vadd.xlane.f32.xlu1 %v2058_v1 }
 0x12e   :  { %598 = vadd.xlane.f32.xlu0 %v597_v6 }
 0x14d   :  { %v733_v9 = vpop.f32.mrb[8].mxu0  ;;  %v880_v11 = vpop.f32.mrb[8].mxu1 }
 0x14e   :  { %v2066_v10 = vadd.f32 %v733_v9, %v628_v7  ;;  %v735_v12 = vpop.f32.mrb[9].mxu0  ;;  %v2068_v13 = vadd.f32 %v880_v11, %v775_v8  ;;  %v882_v15 = vpop.f32.mrb[9].mxu1 }
 0x14f   :  { %v736_v14 = vpop.f32.mrb[10].mxu0  ;;  %v883_v17 = vpop.f32.mrb[10].mxu1 }
 0x150   :  { %v737_v16 = vpop.f32.mrb[11].mxu0  ;;  %741 = vadd.xlane.f32.xlu1 %v2066_v10  ;;  %888 = vadd.xlane.f32.xlu0 %v2068_v13  ;;  %v884_v18 = vpop.f32.mrb[11].mxu1  ;;  %v744_v19 = vmul.f32 %v2066_v10, %v2066_v10  ;;  %v891_v20 = vmul.f32 %v2068_v13, %v2068_v13 }
 0x154   :  { %745 = vadd.xlane.f32.xlu0 %v744_v19 }
 0x158   :  { %892 = vadd.xlane.f32.xlu0 %v891_v20 }
 0x175   :  { %v1027_v23 = vpop.f32.mrb[12].mxu0  ;;  %v1174_v25 = vpop.f32.mrb[12].mxu1 }
 0x176   :  { %v1028_v24 = vadd.f32 %v1027_v23, %v922_v22  ;;  %v1029_v26 = vpop.f32.mrb[13].mxu0  ;;  %v1176_v28 = vpop.f32.mrb[13].mxu1  ;;  %v1175_v29 = vadd.f32 %v1174_v25, %v1069_v21 }
 0x177   :  { %v1030_v27 = vpop.f32.mrb[14].mxu0  ;;  %v1177_v31 = vpop.f32.mrb[14].mxu1 }
 0x178   :  { %v1031_v30 = vpop.f32.mrb[15].mxu0  ;;  %1035 = vadd.xlane.f32.xlu0 %v1028_v24  ;;  %v1038_v32 = vmul.f32 %v1028_v24, %v1028_v24  ;;  %v1178_v33 = vpop.f32.mrb[15].mxu1  ;;  %v1185_v34 = vmul.f32 %v1175_v29, %v1175_v29 }
 0x17a   :  { %1039 = vadd.xlane.f32.xlu1 %v1038_v32 }
 0x17c   :  { %1182 = vadd.xlane.f32.xlu0 %v1175_v29 }
 0x17e   :  { %1186 = vadd.xlane.f32.xlu1 %v1185_v34 }
 0x18d   :  { %v154_v35 = vpop.xlane.xlu0 %153  ;;  %v301_v37 = vpop.xlane.xlu1 %300 }
 0x18e   :  { %v302_v45 = vadd.f32 %v301_v37, %v154_v35 }
 0x191   :  { %v305_v36 = vpop.xlane.xlu0 %304  ;;  %v158_v39 = vpop.xlane.xlu1 %157 }
 0x192   :  { %v306_v0 = vadd.f32 %v305_v36, %v158_v39 }
 0x1b5   :  { %v448_v41 = vpop.xlane.xlu1 %447 }
 0x1b6   :  { %v449_v47 = vadd.f32 %v448_v41, %v302_v45 }
 0x1b7   :  { %v452_v38 = vpop.xlane.xlu0 %451 }
 0x1b8   :  { %v453_v52 = vadd.f32 %v452_v38, %v306_v0 }
 0x1b9   :  { %v595_v43 = vpop.xlane.xlu1 %594 }
 0x1ba   :  { %v596_v50 = vadd.f32 %v595_v43, %v449_v47 }
 0x1bb   :  { %v599_v40 = vpop.xlane.xlu0 %598 }
 0x1bc   :  { %v600_v54 = vadd.f32 %v599_v40, %v453_v52 }
 0x1dd   :  { %v889_v42 = vpop.xlane.xlu0 %888  ;;  %v742_v48 = vpop.xlane.xlu1 %741 }
 0x1de   :  { %v743_v53 = vadd.f32 %v742_v48, %v596_v50 }
 0x1e0   :  { %v890_v57 = vadd.f32 %v889_v42, %v743_v53 }
 0x1e1   :  { %v746_v44 = vpop.xlane.xlu0 %745 }
 0x1e2   :  { %v747_v56 = vadd.f32 %v746_v44, %v600_v54 }
 0x1e5   :  { %v893_v51 = vpop.xlane.xlu0 %892 }
 0x1e6   :  { %v894_v60 = vadd.f32 %v893_v51, %v747_v56 }
 0x205   :  { %v1036_v55 = vpop.xlane.xlu0 %1035 }
 0x206   :  { %v1037_v61 = vadd.f32 %v1036_v55, %v890_v57 }
 0x207   :  { %v1040_v58 = vpop.xlane.xlu1 %1039 }
 0x208   :  { %v1041_v63 = vadd.f32 %v1040_v58, %v894_v60 }
 0x209   :  { %v1183_v62 = vpop.xlane.xlu0 %1182 }
 0x20a   :  { %v1184_v2 = vadd.f32 %v1183_v62, %v1037_v61 }
 0x20b   :  { %v1187_v3 = vpop.xlane.xlu1 %1186 }
 0x20c   :  { %v1189_v4 = vmul.f32 0.0009765625, %v1184_v2  ;;  %v1188_v5 = vadd.f32 %v1187_v3, %v1041_v63 }
 0x20e   :  { %v1191_v6 = vmul.f32 %v1189_v4, %v1189_v4  ;;  %v1190_v7 = vmul.f32 0.0009765625, %v1188_v5  ;;  %v1196_v12 = vsub.f32 0.0, %v1189_v4 }
 0x210   :  { %v1192_v8 = vsub.f32 %v1190_v7, %v1191_v6 }
 0x212   :  { %v1193_v9 = vmax.f32 %v1192_v8, 0.0 }
 0x214   :  { %v1194_v11 = vadd.f32 1e-05, %v1193_v9 }
 0x216   :  { %1630 = vrsqrt.f32 %v1194_v11 }
 0x220   :  { %v1631_v14 = vpop.eup %1630 }
 0x221   :  { %v1197_v15 = vmul.f32 %v1631_v14, %v1196_v12  ;;  %v1199_v16 = vmul.f32 %v1631_v14, %v2046_v46  ;;  %v1207_v17 = vmul.f32 %v1631_v14, %v2048_v49  ;;  %v1216_v18 = vmul.f32 %v1631_v14, %v2056_v59 }
 0x222   :  { %v1225_v19 = vmul.f32 %v1631_v14, %v2058_v1  ;;  %v1234_v20 = vmul.f32 %v1631_v14, %v2066_v10  ;;  %v1243_v21 = vmul.f32 %v1631_v14, %v2068_v13  ;;  %v1252_v22 = vmul.f32 %v1631_v14, %v1028_v24 }
 0x223   :  { %v1200_v23 = vadd.f32 %v1199_v16, %v1197_v15  ;;  %v1208_v25 = vadd.f32 %v1207_v17, %v1197_v15  ;;  %v1217_v26 = vadd.f32 %v1216_v18, %v1197_v15  ;;  %v1261_v27 = vmul.f32 %v1631_v14, %v1175_v29 }
 0x224   :  { %v1226_v28 = vadd.f32 %v1225_v19, %v1197_v15  ;;  %v1235_v30 = vadd.f32 %v1234_v20, %v1197_v15  ;;  %v1244_v31 = vadd.f32 %v1243_v21, %v1197_v15  ;;  %v1253_v32 = vadd.f32 %v1252_v22, %v1197_v15 }
 0x225   :  { %vm1201_vm1 = vcmp.ge.f32.partialorder %v1200_v23, 0.0  ;;  %v1202_v46 = vmul.f32 0.01, %v1200_v23  ;;  %vm1209_vm2 = vcmp.ge.f32.partialorder %v1208_v25, 0.0  ;;  %v1210_v49 = vmul.f32 0.01, %v1208_v25 }
 0x226   :  { %vm1218_vm3 = vcmp.ge.f32.partialorder %v1217_v26, 0.0  ;;  %v1219_v59 = vmul.f32 0.01, %v1217_v26  ;;  %vm1227_vm4 = vcmp.ge.f32.partialorder %v1226_v28, 0.0  ;;  %v1228_v1 = vmul.f32 0.01, %v1226_v28 }
 0x227   :  { %v1203_v10 = vsel %vm1201_vm1, %v1200_v23, %v1202_v46  ;;  %v1211_v33 = vsel %vm1209_vm2, %v1208_v25, %v1210_v49  ;;  %vm1236_vm5 = vcmp.ge.f32.partialorder %v1235_v30, 0.0  ;;  %v1237_v13 = vmul.f32 0.01, %v1235_v30 }
 0x228   :  { %v1204_v24 = vpack.c.bf16 %v1203_v10, %v1203_v10  ;;  %v1212_v34 = vpack.c.bf16 %v1211_v33, %v1211_v33  ;;  %v1220_v35 = vsel %vm1218_vm3, %v1217_v26, %v1219_v59  ;;  %v1229_v29 = vsel %vm1227_vm4, %v1226_v28, %v1228_v1 }
 0x229   :  { %v1221_v36 = vpack.c.bf16 %v1220_v35, %v1220_v35  ;;  %v1230_v37 = vpack.c.bf16 %v1229_v29, %v1229_v29  ;;  %v1238_v38 = vsel %vm1236_vm5, %v1235_v30, %v1237_v13  ;;  %vm1245_vm6 = vcmp.ge.f32.partialorder %v1244_v31, 0.0 }
 0x22a   :  { %1205 = vst [vmem:[%s2109_s3] sm:$0xf] %v1204_v24  ;;  %1524 = vst [vmem:[%s2109_s3 + $0x4] sm:$0xf] %v1212_v34  ;;  %v1239_v39 = vpack.c.bf16 %v1238_v38, %v1238_v38  ;;  %v1246_v40 = vmul.f32 0.01, %v1244_v31  ;;  %vm1254_vm7 = vcmp.ge.f32.partialorder %v1253_v32, 0.0  ;;  %v1262_v42 = vadd.f32 %v1261_v27, %v1197_v15 }
 0x22b   :  { %v1255_v41 = vmul.f32 0.01, %v1253_v32  ;;  %1525 = vst [vmem:[%s2109_s3 + $0x8] sm:$0xf] %v1221_v36  ;;  %1526 = vst [vmem:[%s2109_s3 + $0xc] sm:$0xf] %v1230_v37 }
 0x22c   :  { %1527 = vst [vmem:[%s2109_s3 + $0x10] sm:$0xf] %v1239_v39  ;;  %v1247_v43 = vsel %vm1245_vm6, %v1244_v31, %v1246_v40  ;;  %vm1263_vm8 = vcmp.ge.f32.partialorder %v1262_v42, 0.0  ;;  %v1264_v48 = vmul.f32 0.01, %v1262_v42 }
 0x22d   :  { %v1256_v44 = vsel %vm1254_vm7, %v1253_v32, %v1255_v41  ;;  %v1248_v45 = vpack.c.bf16 %v1247_v43, %v1247_v43 }
 0x22e   :  { %v1257_v47 = vpack.c.bf16 %v1256_v44, %v1256_v44  ;;  %v1265_v0 = vsel %vm1263_vm8, %v1262_v42, %v1264_v48 }
 0x22f   :  { %1528 = vst [vmem:[%s2109_s3 + $0x14] sm:$0xf] %v1248_v45  ;;  %v1266_v50 = vpack.c.bf16 %v1265_v0, %v1265_v0 }
 0x230   :  { %1529 = vst [vmem:[%s2109_s3 + $0x18] sm:$0xf] %v1257_v47 }
 0x231   :  { %1530 = vst [vmem:[%s2109_s3 + $0x1c] sm:$0xf] %v1266_v50 }

// kernel: squeeze.8
= control target key start
LH: loop header
LB: loop body
LE: loop exit
PB: predicated region body
PF: predicated region fallthrough
CT: control target
= control target key end

     0   :  { %vm370_vm0 = vcmask 1047556   ;;  %vm258_vm1 = vcmask 64512   ;;  %s2331_s9 = smov 120   ;;  %s2332_s10 = smov 104   ;;  %s2813_s0 = inlined_call_operand.vmem [shape: bf16[1,2,2048], index: 0, kind: input, shape index: {}]   ;;  %s2814_s1 = inlined_call_operand.vmem [shape: bf16[2,4,8,8,8], index: 1, kind: output, shape index: {}]  }
   0x1   :  { %v1904_v0 = vld [vmem:[%s2813_s0 + $0x7] sm:$0x1]  ;;  %v1905_v1 = vld [vmem:[%s2813_s0 + $0x6] sm:$0x1]  ;;  %v1906_v2 = vld [vmem:[%s2813_s0 + $0x5] sm:$0x1] }
   0x2   :  { %v145_v3 = vunpack.c.l.bf16 %v1904_v0  ;;  %v161_v4 = vunpack.c.l.bf16 %v1905_v1  ;;  %v177_v5 = vunpack.c.l.bf16 %v1906_v2  ;;  %v1907_v6 = vld [vmem:[%s2813_s0 + $0x4] sm:$0x1]  ;;  %v1908_v7 = vld [vmem:[%s2813_s0 + $0x3] sm:$0x1]  ;;  %v1909_v8 = vld [vmem:[%s2813_s0 + $0x2] sm:$0x1] }
   0x3   :  { %v193_v9 = vunpack.c.l.bf16 %v1907_v6  ;;  %v209_v10 = vunpack.c.l.bf16 %v1908_v7  ;;  %v225_v11 = vunpack.c.l.bf16 %v1909_v8  ;;  %v1910_v12 = vld [vmem:[%s2813_s0 + $0x1] sm:$0x1]  ;;  %v253_v13 = vld [vmem:[%s2813_s0] sm:$0x1]  ;;  %v1896_v16 = vld [vmem:[%s2813_s0 + $0xf] sm:$0x1] }
   0x4   :  { %148 = vst [vmem:[#allocation1 + $0x38] sm:$0x3] %v145_v3  ;;  %164 = vst [vmem:[#allocation1 + $0x30] sm:$0x3] %v161_v4  ;;  %v240_v14 = vunpack.c.l.bf16 %v1910_v12  ;;  %v254_v15 = vunpack.c.l.bf16 %v253_v13  ;;  %v1897_v17 = vld [vmem:[%s2813_s0 + $0xe] sm:$0x1]  ;;  %v17_v18 = vunpack.c.l.bf16 %v1896_v16 }
   0x5   :  { %180 = vst [vmem:[#allocation1 + $0x28] sm:$0x3] %v177_v5  ;;  %196 = vst [vmem:[#allocation1 + $0x20] sm:$0x3] %v193_v9  ;;  %v33_v19 = vunpack.c.l.bf16 %v1897_v17  ;;  %v1898_v20 = vld [vmem:[%s2813_s0 + $0xd] sm:$0x1] }
   0x6   :  { %212 = vst [vmem:[#allocation1 + $0x18] sm:$0x3] %v209_v10  ;;  %228 = vst [vmem:[#allocation1 + $0x10] sm:$0x3] %v225_v11  ;;  %v1899_v21 = vld [vmem:[%s2813_s0 + $0xc] sm:$0x1]  ;;  %v49_v23 = vunpack.c.l.bf16 %v1898_v20 }
   0x7   :  { %v1900_v22 = vld [vmem:[%s2813_s0 + $0xb] sm:$0x1]  ;;  %243 = vst [vmem:[#allocation1 + $0x8] sm:$0x3] %v240_v14  ;;  %256 = vst [vmem:[#allocation1] sm:$0x3] %v254_v15  ;;  %v65_v24 = vunpack.c.l.bf16 %v1899_v21 }
   0x8   :  { %v81_v25 = vunpack.c.l.bf16 %v1900_v22  ;;  %v1901_v26 = vld [vmem:[%s2813_s0 + $0xa] sm:$0x1]  ;;  %v1902_v27 = vld [vmem:[%s2813_s0 + $0x9] sm:$0x1]  ;;  %v1903_v28 = vld [vmem:[%s2813_s0 + $0x8] sm:$0x1] }
   0x9   :  { %20 = vst [vmem:[#allocation1 + $0x78] sm:$0x3] %v17_v18  ;;  %36 = vst [vmem:[#allocation1 + $0x70] sm:$0x3] %v33_v19  ;;  %v97_v29 = vunpack.c.l.bf16 %v1901_v26  ;;  %v113_v30 = vunpack.c.l.bf16 %v1902_v27  ;;  %v129_v31 = vunpack.c.l.bf16 %v1903_v28  ;;  %s2330_s0 = smov 112   ;;  %s2333_s11 = smov 96  }
   0xa   :  { %52 = vst [vmem:[#allocation1 + $0x68] sm:$0x3] %v49_v23  ;;  %68 = vst [vmem:[#allocation1 + $0x60] sm:$0x3] %v65_v24  ;;  %s2334_s12 = smov 88   ;;  %s2335_s13 = smov 80  }
   0xb   :  { %84 = vst [vmem:[#allocation1 + $0x58] sm:$0x3] %v81_v25  ;;  %100 = vst [vmem:[#allocation1 + $0x50] sm:$0x3] %v97_v29  ;;  %v298_v49 = vld [vmem:[#allocation1 + $0x30] sm:$0x3]  }
   0xc   :  { %116 = vst [vmem:[#allocation1 + $0x48] sm:$0x3] %v113_v30  ;;  %132 = vst [vmem:[#allocation1 + $0x40] sm:$0x3] %v129_v31  ;;  %v284_v47 = vld [vmem:[#allocation1 + $0x20] sm:$0x3]  }
   0xd   :  { %v453_v32 = vld.sshfl [vmem:[#allocation1 + $0x30] sm:$0xff pattern:$0x91800000]   ;;  %v451_v34 = vld.sshfl [vmem:[#allocation1 + $0x20] sm:$0xff pattern:$0x99999180]  }
   0xe   :  { %v436_v33 = vld.sshfl [vmem:[#allocation1 + $0x10] sm:$0xff pattern:$0x91800000]   ;;  %v434_v35 = vld.sshfl [vmem:[#allocation1] sm:$0xff pattern:$0x99999180]   ;;  %v455_v36 = vsel %vm370_vm0, %v453_v32, %v451_v34 }
   0xf   :  { %v438_v37 = vsel %vm370_vm0, %v436_v33, %v434_v35  ;;  %v257_v39 = vld [vmem:[#allocation1] sm:$0x3]   ;;  %v263_v42 = vld [vmem:[#allocation1 + $0x8] sm:$0x3]   ;;  %287 = vst.msk [vmem:[#allocation0 + $0x40] sm:$0x1] %vm258_vm1, %v284_v47  }
  0x10   :  { %v487_v38 = vld.sshfl [vmem:[#allocation1 + $0x70] sm:$0xff pattern:$0x91800000]   ;;  %v2405_v40 = vpack.i.bf16 %v455_v36, %v438_v37  ;;  %261 = vst.msk [vmem:[#allocation0 + $0xff] sm:$0x2] %vm258_vm1, %v257_v39   ;;  %s2336_s14 = smov 72  }
  0x11   :  { %v485_v41 = vld.sshfl [vmem:[#allocation1 + $0x60] sm:$0xff pattern:$0x99999180]   ;;  %259 = vst.msk [vmem:[#allocation0] sm:$0x1] %vm258_vm1, %v257_v39   ;;  %s2337_s15 = smov 64  }
  0x12   :  { %v470_v44 = vld.sshfl [vmem:[#allocation1 + $0x50] sm:$0xff pattern:$0x91800000]   ;;  %v489_v45 = vsel %vm370_vm0, %v487_v38, %v485_v41  ;;  %268 = vst.msk [vmem:[#allocation0 + $0x10f] sm:$0x2] %vm258_vm1, %v263_v42   ;;  %2191 = vrot.lane.b32.xlu1 %v2405_v40, %s2330_s0  ;;  %2181 = vrot.lane.b32.xlu0 %v2405_v40, %s2331_s9  ;;  %s2338_s16 = smov 56  }
  0x13   :  { %v468_v43 = vld.sshfl [vmem:[#allocation1 + $0x40] sm:$0xff pattern:$0x99999180]   ;;  %266 = vst.msk [vmem:[#allocation0 + $0x10] sm:$0x1] %vm258_vm1, %v263_v42   ;;  %s2339_s17 = smov 48  }
  0x14   :  { %v472_v46 = vsel %vm370_vm0, %v470_v44, %v468_v43  ;;  %v291_v48 = vld [vmem:[#allocation1 + $0x28] sm:$0x3]   ;;  %289 = vst.msk [vmem:[#allocation0 + $0x13f] sm:$0x2] %vm258_vm1, %v284_v47   ;;  %301 = vst.msk [vmem:[#allocation0 + $0x60] sm:$0x1] %vm258_vm1, %v298_v49  }
  0x15   :  { %v2417_v50 = vpack.i.bf16 %v489_v45, %v472_v46  ;;  %294 = vst.msk [vmem:[#allocation0 + $0x50] sm:$0x1] %vm258_vm1, %v291_v48   ;;  %296 = vst.msk [vmem:[#allocation0 + $0x14f] sm:$0x2] %vm258_vm1, %v291_v48   ;;  %v305_v51 = vld [vmem:[#allocation1 + $0x38] sm:$0x3]  }
  0x16   :  { %303 = vst.msk [vmem:[#allocation0 + $0x15f] sm:$0x2] %vm258_vm1, %v298_v49   ;;  %v340_v52 = vld [vmem:[#allocation1 + $0x60] sm:$0x3]   ;;  %v347_v53 = vld [vmem:[#allocation1 + $0x68] sm:$0x3]  }
  0x17   :  { %308 = vst.msk [vmem:[#allocation0 + $0x70] sm:$0x1] %vm258_vm1, %v305_v51   ;;  %310 = vst.msk [vmem:[#allocation0 + $0x16f] sm:$0x2] %vm258_vm1, %v305_v51   ;;  %v354_v54 = vld [vmem:[#allocation1 + $0x70] sm:$0x3]   ;;  %2196 = vrot.lane.b32.xlu1 %v2417_v50, %s2330_s0  ;;  %2186 = vrot.lane.b32.xlu0 %v2417_v50, %s2331_s9 }
  0x18   :  { %343 = vst.msk [vmem:[#allocation0 + $0xc0] sm:$0x1] %vm258_vm1, %v340_v52   ;;  %350 = vst.msk [vmem:[#allocation0 + $0xd0] sm:$0x1] %vm258_vm1, %v347_v53   ;;  %v361_v55 = vld [vmem:[#allocation1 + $0x78] sm:$0x3]  }
  0x19   :  { %345 = vst.msk [vmem:[#allocation0 + $0x1bf] sm:$0x2] %vm258_vm1, %v340_v52   ;;  %352 = vst.msk [vmem:[#allocation0 + $0x1cf] sm:$0x2] %vm258_vm1, %v347_v53   ;;  %v326_v56 = vld [vmem:[#allocation1 + $0x50] sm:$0x3]  }
  0x1a   :  { %359 = vst.msk [vmem:[#allocation0 + $0x1df] sm:$0x2] %vm258_vm1, %v354_v54   ;;  %366 = vst.msk [vmem:[#allocation0 + $0x1ef] sm:$0x2] %vm258_vm1, %v361_v55   ;;  %v333_v57 = vld [vmem:[#allocation1 + $0x58] sm:$0x3]  }
  0x1b   :  { %357 = vst.msk [vmem:[#allocation0 + $0xe0] sm:$0x1] %vm258_vm1, %v354_v54   ;;  %364 = vst.msk [vmem:[#allocation0 + $0xf0] sm:$0x1] %vm258_vm1, %v361_v55   ;;  %v312_v58 = vld [vmem:[#allocation1 + $0x40] sm:$0x3]   ;;  %2206 = vrot.lane.b32.xlu1 %v2417_v50, %s2332_s10  ;;  %2201 = vrot.lane.b32.xlu0 %v2405_v40, %s2332_s10 }
  0x1c   :  { %331 = vst.msk [vmem:[#allocation0 + $0x19f] sm:$0x2] %vm258_vm1, %v326_v56   ;;  %329 = vst.msk [vmem:[#allocation0 + $0xa0] sm:$0x1] %vm258_vm1, %v326_v56   ;;  %v319_v59 = vld [vmem:[#allocation1 + $0x48] sm:$0x3]  }
  0x1d   :  { %338 = vst.msk [vmem:[#allocation0 + $0x1af] sm:$0x2] %vm258_vm1, %v333_v57   ;;  %336 = vst.msk [vmem:[#allocation0 + $0xb0] sm:$0x1] %vm258_vm1, %v333_v57   ;;  %v270_v60 = vld [vmem:[#allocation1 + $0x10] sm:$0x3]  }
  0x1e   :  { %317 = vst.msk [vmem:[#allocation0 + $0x17f] sm:$0x2] %vm258_vm1, %v312_v58   ;;  %324 = vst.msk [vmem:[#allocation0 + $0x18f] sm:$0x2] %vm258_vm1, %v319_v59   ;;  %v277_v61 = vld [vmem:[#allocation1 + $0x18] sm:$0x3]  }
  0x1f   :  { %315 = vst.msk [vmem:[#allocation0 + $0x80] sm:$0x1] %vm258_vm1, %v312_v58   ;;  %322 = vst.msk [vmem:[#allocation0 + $0x90] sm:$0x1] %vm258_vm1, %v319_v59   ;;  %2216 = vrot.lane.b32.xlu1 %v2417_v50, %s2333_s11  ;;  %2211 = vrot.lane.b32.xlu0 %v2405_v40, %s2333_s11  ;;  %s2340_s18 = smov 40   ;;  %s2341_s19 = smov 32  }
  0x20   :  { %273 = vst.msk [vmem:[#allocation0 + $0x20] sm:$0x1] %vm258_vm1, %v270_v60   ;;  %280 = vst.msk [vmem:[#allocation0 + $0x30] sm:$0x1] %vm258_vm1, %v277_v61   ;;  %s2342_s20 = smov 24   ;;  %s2343_s21 = smov 16  }
  0x21   :  { %275 = vst.msk [vmem:[#allocation0 + $0x11f] sm:$0x2] %vm258_vm1, %v270_v60   ;;  %282 = vst.msk [vmem:[#allocation0 + $0x12f] sm:$0x2] %vm258_vm1, %v277_v61   ;;  %s2344_s22 = smov 8  }
  0x23   :  { %2226 = vrot.lane.b32.xlu1 %v2417_v50, %s2334_s12  ;;  %2221 = vrot.lane.b32.xlu0 %v2405_v40, %s2334_s12 }
  0x27   :  { %2236 = vrot.lane.b32.xlu1 %v2417_v50, %s2335_s13  ;;  %2231 = vrot.lane.b32.xlu0 %v2405_v40, %s2335_s13 }
  0x2b   :  { %2246 = vrot.lane.b32.xlu1 %v2417_v50, %s2336_s14  ;;  %2241 = vrot.lane.b32.xlu0 %v2405_v40, %s2336_s14 }
  0x2f   :  { %2256 = vrot.lane.b32.xlu1 %v2417_v50, %s2337_s15  ;;  %2251 = vrot.lane.b32.xlu0 %v2405_v40, %s2337_s15 }
  0x33   :  { %2266 = vrot.lane.b32.xlu1 %v2417_v50, %s2338_s16  ;;  %2261 = vrot.lane.b32.xlu0 %v2405_v40, %s2338_s16 }
  0x37   :  { %2276 = vrot.lane.b32.xlu1 %v2417_v50, %s2339_s17  ;;  %2271 = vrot.lane.b32.xlu0 %v2405_v40, %s2339_s17 }
  0x3b   :  { %2286 = vrot.lane.b32.xlu1 %v2417_v50, %s2340_s18  ;;  %2281 = vrot.lane.b32.xlu0 %v2405_v40, %s2340_s18 }
  0x3f   :  { %2296 = vrot.lane.b32.xlu1 %v2417_v50, %s2341_s19  ;;  %2291 = vrot.lane.b32.xlu0 %v2405_v40, %s2341_s19 }
  0x43   :  { %2306 = vrot.lane.b32.xlu1 %v2417_v50, %s2342_s20  ;;  %2301 = vrot.lane.b32.xlu0 %v2405_v40, %s2342_s20 }
  0x47   :  { %2316 = vrot.lane.b32.xlu1 %v2417_v50, %s2343_s21  ;;  %2311 = vrot.lane.b32.xlu0 %v2405_v40, %s2343_s21 }
  0x4b   :  { %2326 = vrot.lane.b32.xlu1 %v2417_v50, %s2344_s22  ;;  %2321 = vrot.lane.b32.xlu0 %v2405_v40, %s2344_s22 }
  0x84   :  { %v2192_v62 = vpop.permute.xlu1 %2191  ;;  %v2182_v63 = vpop.permute.xlu0 %2181 }
  0x85   :  { %v2194_v0 = vunpack.i.h.bf16 %v2192_v62  ;;  %v2193_v1 = vunpack.i.l.bf16 %v2192_v62  ;;  %v2184_v2 = vunpack.i.h.bf16 %v2182_v63  ;;  %v2183_v3 = vunpack.i.l.bf16 %v2182_v63 }
  0x87   :  { %460 = vst.msk [vmem:[#allocation0 + $0x42] ss:$16 sm:$0x3] %vm258_vm1, %v2194_v0   ;;  %462 = vst.msk [vmem:[#allocation0 + $0x122] ss:$16 sm:$0xc] %vm258_vm1, %v2194_v0  }
  0x88   :  { %464 = vst.msk [vmem:[#allocation0 + $0x22] ss:$16 sm:$0x30] %vm258_vm1, %v2194_v0   ;;  %466 = vst.msk [vmem:[#allocation0 + $0x102] ss:$16 sm:$0xc0] %vm258_vm1, %v2194_v0  }
  0x89   :  { %443 = vst.msk [vmem:[#allocation0 + $0x2] ss:$16 sm:$0x3] %vm258_vm1, %v2193_v1   ;;  %445 = vst.msk [vmem:[#allocation0 + $0xe2] ss:$16 sm:$0xc] %vm258_vm1, %v2193_v1   ;;  %v2197_v4 = vpop.permute.xlu1 %2196  ;;  %v2187_v5 = vpop.permute.xlu0 %2186 }
  0x8a   :  { %447 = vst.msk [vmem:[#allocation0 - $0x1e] ss:$16 sm:$0x30] %vm258_vm1, %v2193_v1   ;;  %449 = vst.msk [vmem:[#allocation0 + $0xc2] ss:$16 sm:$0xc0] %vm258_vm1, %v2193_v1   ;;  %v2199_v6 = vunpack.i.h.bf16 %v2197_v4  ;;  %v2198_v7 = vunpack.i.l.bf16 %v2197_v4  ;;  %v2189_v8 = vunpack.i.h.bf16 %v2187_v5  ;;  %v2188_v9 = vunpack.i.l.bf16 %v2187_v5 }
  0x8b   :  { %393 = vst.msk [vmem:[#allocation0 + $0x41] ss:$16 sm:$0x3] %vm258_vm1, %v2184_v2   ;;  %395 = vst.msk [vmem:[#allocation0 + $0x121] ss:$16 sm:$0xc] %vm258_vm1, %v2184_v2  }
  0x8c   :  { %397 = vst.msk [vmem:[#allocation0 + $0x21] ss:$16 sm:$0x30] %vm258_vm1, %v2184_v2   ;;  %399 = vst.msk [vmem:[#allocation0 + $0x101] ss:$16 sm:$0xc0] %vm258_vm1, %v2184_v2  }
  0x8d   :  { %376 = vst.msk [vmem:[#allocation0 + $0x1] ss:$16 sm:$0x3] %vm258_vm1, %v2183_v3   ;;  %378 = vst.msk [vmem:[#allocation0 + $0xe1] ss:$16 sm:$0xc] %vm258_vm1, %v2183_v3   ;;  %v2207_v10 = vpop.permute.xlu1 %2206  ;;  %v2202_v11 = vpop.permute.xlu0 %2201 }
  0x8e   :  { %380 = vst.msk [vmem:[#allocation0 - $0x1f] ss:$16 sm:$0x30] %vm258_vm1, %v2183_v3   ;;  %382 = vst.msk [vmem:[#allocation0 + $0xc1] ss:$16 sm:$0xc0] %vm258_vm1, %v2183_v3   ;;  %v2209_v12 = vunpack.i.h.bf16 %v2207_v10  ;;  %v2208_v13 = vunpack.i.l.bf16 %v2207_v10  ;;  %v2204_v14 = vunpack.i.h.bf16 %v2202_v11  ;;  %v2203_v15 = vunpack.i.l.bf16 %v2202_v11 }
  0x8f   :  { %494 = vst.msk [vmem:[#allocation0 + $0xc2] ss:$16 sm:$0x3] %vm258_vm1, %v2199_v6   ;;  %496 = vst.msk [vmem:[#allocation0 + $0x1a2] ss:$16 sm:$0xc] %vm258_vm1, %v2199_v6  }
  0x90   :  { %498 = vst.msk [vmem:[#allocation0 + $0xa2] ss:$16 sm:$0x30] %vm258_vm1, %v2199_v6   ;;  %500 = vst.msk [vmem:[#allocation0 + $0x182] ss:$16 sm:$0xc0] %vm258_vm1, %v2199_v6  }
  0x91   :  { %477 = vst.msk [vmem:[#allocation0 + $0x82] ss:$16 sm:$0x3] %vm258_vm1, %v2198_v7   ;;  %479 = vst.msk [vmem:[#allocation0 + $0x162] ss:$16 sm:$0xc] %vm258_vm1, %v2198_v7   ;;  %v2217_v16 = vpop.permute.xlu1 %2216  ;;  %v2212_v17 = vpop.permute.xlu0 %2211 }
  0x92   :  { %481 = vst.msk [vmem:[#allocation0 + $0x62] ss:$16 sm:$0x30] %vm258_vm1, %v2198_v7   ;;  %483 = vst.msk [vmem:[#allocation0 + $0x142] ss:$16 sm:$0xc0] %vm258_vm1, %v2198_v7   ;;  %v2219_v18 = vunpack.i.h.bf16 %v2217_v16  ;;  %v2218_v19 = vunpack.i.l.bf16 %v2217_v16  ;;  %v2214_v20 = vunpack.i.h.bf16 %v2212_v17  ;;  %v2213_v21 = vunpack.i.l.bf16 %v2212_v17 }
  0x93   :  { %427 = vst.msk [vmem:[#allocation0 + $0xc1] ss:$16 sm:$0x3] %vm258_vm1, %v2189_v8   ;;  %429 = vst.msk [vmem:[#allocation0 + $0x1a1] ss:$16 sm:$0xc] %vm258_vm1, %v2189_v8  }
  0x94   :  { %431 = vst.msk [vmem:[#allocation0 + $0xa1] ss:$16 sm:$0x30] %vm258_vm1, %v2189_v8   ;;  %433 = vst.msk [vmem:[#allocation0 + $0x181] ss:$16 sm:$0xc0] %vm258_vm1, %v2189_v8  }
  0x95   :  { %410 = vst.msk [vmem:[#allocation0 + $0x81] ss:$16 sm:$0x3] %vm258_vm1, %v2188_v9   ;;  %412 = vst.msk [vmem:[#allocation0 + $0x161] ss:$16 sm:$0xc] %vm258_vm1, %v2188_v9   ;;  %v2227_v22 = vpop.permute.xlu1 %2226  ;;  %v2222_v23 = vpop.permute.xlu0 %2221 }
  0x96   :  { %414 = vst.msk [vmem:[#allocation0 + $0x61] ss:$16 sm:$0x30] %vm258_vm1, %v2188_v9   ;;  %416 = vst.msk [vmem:[#allocation0 + $0x141] ss:$16 sm:$0xc0] %vm258_vm1, %v2188_v9   ;;  %v2229_v24 = vunpack.i.h.bf16 %v2227_v22  ;;  %v2228_v25 = vunpack.i.l.bf16 %v2227_v22  ;;  %v2224_v26 = vunpack.i.h.bf16 %v2222_v23  ;;  %v2223_v27 = vunpack.i.l.bf16 %v2222_v23 }
  0x97   :  { %561 = vst.msk [vmem:[#allocation0 + $0xc3] ss:$16 sm:$0x3] %vm258_vm1, %v2209_v12   ;;  %563 = vst.msk [vmem:[#allocation0 + $0x1a3] ss:$16 sm:$0xc] %vm258_vm1, %v2209_v12  }
  0x98   :  { %565 = vst.msk [vmem:[#allocation0 + $0xa3] ss:$16 sm:$0x30] %vm258_vm1, %v2209_v12   ;;  %567 = vst.msk [vmem:[#allocation0 + $0x183] ss:$16 sm:$0xc0] %vm258_vm1, %v2209_v12  }
  0x99   :  { %544 = vst.msk [vmem:[#allocation0 + $0x83] ss:$16 sm:$0x3] %vm258_vm1, %v2208_v13   ;;  %546 = vst.msk [vmem:[#allocation0 + $0x163] ss:$16 sm:$0xc] %vm258_vm1, %v2208_v13   ;;  %v2237_v28 = vpop.permute.xlu1 %2236  ;;  %v2232_v29 = vpop.permute.xlu0 %2231 }
  0x9a   :  { %548 = vst.msk [vmem:[#allocation0 + $0x63] ss:$16 sm:$0x30] %vm258_vm1, %v2208_v13   ;;  %550 = vst.msk [vmem:[#allocation0 + $0x143] ss:$16 sm:$0xc0] %vm258_vm1, %v2208_v13   ;;  %v2239_v30 = vunpack.i.h.bf16 %v2237_v28  ;;  %v2238_v31 = vunpack.i.l.bf16 %v2237_v28  ;;  %v2234_v32 = vunpack.i.h.bf16 %v2232_v29  ;;  %v2233_v33 = vunpack.i.l.bf16 %v2232_v29 }
  0x9b   :  { %527 = vst.msk [vmem:[#allocation0 + $0x43] ss:$16 sm:$0x3] %vm258_vm1, %v2204_v14   ;;  %529 = vst.msk [vmem:[#allocation0 + $0x123] ss:$16 sm:$0xc] %vm258_vm1, %v2204_v14  }
  0x9c   :  { %531 = vst.msk [vmem:[#allocation0 + $0x23] ss:$16 sm:$0x30] %vm258_vm1, %v2204_v14   ;;  %533 = vst.msk [vmem:[#allocation0 + $0x103] ss:$16 sm:$0xc0] %vm258_vm1, %v2204_v14  }
  0x9d   :  { %510 = vst.msk [vmem:[#allocation0 + $0x3] ss:$16 sm:$0x3] %vm258_vm1, %v2203_v15   ;;  %512 = vst.msk [vmem:[#allocation0 + $0xe3] ss:$16 sm:$0xc] %vm258_vm1, %v2203_v15   ;;  %v2247_v34 = vpop.permute.xlu1 %2246  ;;  %v2242_v35 = vpop.permute.xlu0 %2241 }
  0x9e   :  { %514 = vst.msk [vmem:[#allocation0 - $0x1d] ss:$16 sm:$0x30] %vm258_vm1, %v2203_v15   ;;  %516 = vst.msk [vmem:[#allocation0 + $0xc3] ss:$16 sm:$0xc0] %vm258_vm1, %v2203_v15   ;;  %v2249_v36 = vunpack.i.h.bf16 %v2247_v34  ;;  %v2248_v37 = vunpack.i.l.bf16 %v2247_v34  ;;  %v2244_v38 = vunpack.i.h.bf16 %v2242_v35  ;;  %v2243_v39 = vunpack.i.l.bf16 %v2242_v35 }
  0x9f   :  { %628 = vst.msk [vmem:[#allocation0 + $0xc4] ss:$16 sm:$0x3] %vm258_vm1, %v2219_v18   ;;  %630 = vst.msk [vmem:[#allocation0 + $0x1a4] ss:$16 sm:$0xc] %vm258_vm1, %v2219_v18  }
  0xa0   :  { %632 = vst.msk [vmem:[#allocation0 + $0xa4] ss:$16 sm:$0x30] %vm258_vm1, %v2219_v18   ;;  %634 = vst.msk [vmem:[#allocation0 + $0x184] ss:$16 sm:$0xc0] %vm258_vm1, %v2219_v18  }
  0xa1   :  { %611 = vst.msk [vmem:[#allocation0 + $0x84] ss:$16 sm:$0x3] %vm258_vm1, %v2218_v19   ;;  %613 = vst.msk [vmem:[#allocation0 + $0x164] ss:$16 sm:$0xc] %vm258_vm1, %v2218_v19   ;;  %v2257_v40 = vpop.permute.xlu1 %2256  ;;  %v2252_v41 = vpop.permute.xlu0 %2251 }
  0xa2   :  { %615 = vst.msk [vmem:[#allocation0 + $0x64] ss:$16 sm:$0x30] %vm258_vm1, %v2218_v19   ;;  %617 = vst.msk [vmem:[#allocation0 + $0x144] ss:$16 sm:$0xc0] %vm258_vm1, %v2218_v19   ;;  %v2259_v42 = vunpack.i.h.bf16 %v2257_v40  ;;  %v2258_v43 = vunpack.i.l.bf16 %v2257_v40  ;;  %v2254_v44 = vunpack.i.h.bf16 %v2252_v41  ;;  %v2253_v45 = vunpack.i.l.bf16 %v2252_v41 }
  0xa3   :  { %594 = vst.msk [vmem:[#allocation0 + $0x44] ss:$16 sm:$0x3] %vm258_vm1, %v2214_v20   ;;  %596 = vst.msk [vmem:[#allocation0 + $0x124] ss:$16 sm:$0xc] %vm258_vm1, %v2214_v20  }
  0xa4   :  { %598 = vst.msk [vmem:[#allocation0 + $0x24] ss:$16 sm:$0x30] %vm258_vm1, %v2214_v20   ;;  %600 = vst.msk [vmem:[#allocation0 + $0x104] ss:$16 sm:$0xc0] %vm258_vm1, %v2214_v20  }
  0xa5   :  { %577 = vst.msk [vmem:[#allocation0 + $0x4] ss:$16 sm:$0x3] %vm258_vm1, %v2213_v21   ;;  %579 = vst.msk [vmem:[#allocation0 + $0xe4] ss:$16 sm:$0xc] %vm258_vm1, %v2213_v21   ;;  %v2267_v46 = vpop.permute.xlu1 %2266  ;;  %v2262_v47 = vpop.permute.xlu0 %2261 }
  0xa6   :  { %581 = vst.msk [vmem:[#allocation0 - $0x1c] ss:$16 sm:$0x30] %vm258_vm1, %v2213_v21   ;;  %583 = vst.msk [vmem:[#allocation0 + $0xc4] ss:$16 sm:$0xc0] %vm258_vm1, %v2213_v21   ;;  %v2269_v48 = vunpack.i.h.bf16 %v2267_v46  ;;  %v2268_v49 = vunpack.i.l.bf16 %v2267_v46  ;;  %v2264_v50 = vunpack.i.h.bf16 %v2262_v47  ;;  %v2263_v51 = vunpack.i.l.bf16 %v2262_v47 }
  0xa7   :  { %695 = vst.msk [vmem:[#allocation0 + $0xc5] ss:$16 sm:$0x3] %vm258_vm1, %v2229_v24   ;;  %697 = vst.msk [vmem:[#allocation0 + $0x1a5] ss:$16 sm:$0xc] %vm258_vm1, %v2229_v24  }
  0xa8   :  { %699 = vst.msk [vmem:[#allocation0 + $0xa5] ss:$16 sm:$0x30] %vm258_vm1, %v2229_v24   ;;  %701 = vst.msk [vmem:[#allocation0 + $0x185] ss:$16 sm:$0xc0] %vm258_vm1, %v2229_v24  }
  0xa9   :  { %678 = vst.msk [vmem:[#allocation0 + $0x85] ss:$16 sm:$0x3] %vm258_vm1, %v2228_v25   ;;  %680 = vst.msk [vmem:[#allocation0 + $0x165] ss:$16 sm:$0xc] %vm258_vm1, %v2228_v25   ;;  %v2277_v52 = vpop.permute.xlu1 %2276  ;;  %v2272_v53 = vpop.permute.xlu0 %2271 }
  0xaa   :  { %682 = vst.msk [vmem:[#allocation0 + $0x65] ss:$16 sm:$0x30] %vm258_vm1, %v2228_v25   ;;  %684 = vst.msk [vmem:[#allocation0 + $0x145] ss:$16 sm:$0xc0] %vm258_vm1, %v2228_v25   ;;  %v2279_v54 = vunpack.i.h.bf16 %v2277_v52  ;;  %v2278_v55 = vunpack.i.l.bf16 %v2277_v52  ;;  %v2274_v56 = vunpack.i.h.bf16 %v2272_v53  ;;  %v2273_v57 = vunpack.i.l.bf16 %v2272_v53 }
  0xab   :  { %661 = vst.msk [vmem:[#allocation0 + $0x45] ss:$16 sm:$0x3] %vm258_vm1, %v2224_v26   ;;  %663 = vst.msk [vmem:[#allocation0 + $0x125] ss:$16 sm:$0xc] %vm258_vm1, %v2224_v26  }
  0xac   :  { %665 = vst.msk [vmem:[#allocation0 + $0x25] ss:$16 sm:$0x30] %vm258_vm1, %v2224_v26   ;;  %667 = vst.msk [vmem:[#allocation0 + $0x105] ss:$16 sm:$0xc0] %vm258_vm1, %v2224_v26  }
  0xad   :  { %644 = vst.msk [vmem:[#allocation0 + $0x5] ss:$16 sm:$0x3] %vm258_vm1, %v2223_v27   ;;  %646 = vst.msk [vmem:[#allocation0 + $0xe5] ss:$16 sm:$0xc] %vm258_vm1, %v2223_v27   ;;  %v2287_v58 = vpop.permute.xlu1 %2286  ;;  %v2282_v59 = vpop.permute.xlu0 %2281 }
  0xae   :  { %648 = vst.msk [vmem:[#allocation0 - $0x1b] ss:$16 sm:$0x30] %vm258_vm1, %v2223_v27   ;;  %650 = vst.msk [vmem:[#allocation0 + $0xc5] ss:$16 sm:$0xc0] %vm258_vm1, %v2223_v27   ;;  %v2289_v60 = vunpack.i.h.bf16 %v2287_v58  ;;  %v2288_v61 = vunpack.i.l.bf16 %v2287_v58  ;;  %v2284_v62 = vunpack.i.h.bf16 %v2282_v59  ;;  %v2283_v63 = vunpack.i.l.bf16 %v2282_v59 }
  0xaf   :  { %762 = vst.msk [vmem:[#allocation0 + $0xc6] ss:$16 sm:$0x3] %vm258_vm1, %v2239_v30   ;;  %764 = vst.msk [vmem:[#allocation0 + $0x1a6] ss:$16 sm:$0xc] %vm258_vm1, %v2239_v30  }
  0xb0   :  { %766 = vst.msk [vmem:[#allocation0 + $0xa6] ss:$16 sm:$0x30] %vm258_vm1, %v2239_v30   ;;  %768 = vst.msk [vmem:[#allocation0 + $0x186] ss:$16 sm:$0xc0] %vm258_vm1, %v2239_v30  }
  0xb1   :  { %745 = vst.msk [vmem:[#allocation0 + $0x86] ss:$16 sm:$0x3] %vm258_vm1, %v2238_v31   ;;  %747 = vst.msk [vmem:[#allocation0 + $0x166] ss:$16 sm:$0xc] %vm258_vm1, %v2238_v31   ;;  %v2297_v0 = vpop.permute.xlu1 %2296  ;;  %v2292_v1 = vpop.permute.xlu0 %2291 }
  0xb2   :  { %749 = vst.msk [vmem:[#allocation0 + $0x66] ss:$16 sm:$0x30] %vm258_vm1, %v2238_v31   ;;  %751 = vst.msk [vmem:[#allocation0 + $0x146] ss:$16 sm:$0xc0] %vm258_vm1, %v2238_v31   ;;  %v2299_v2 = vunpack.i.h.bf16 %v2297_v0  ;;  %v2298_v3 = vunpack.i.l.bf16 %v2297_v0  ;;  %v2294_v4 = vunpack.i.h.bf16 %v2292_v1  ;;  %v2293_v5 = vunpack.i.l.bf16 %v2292_v1 }
  0xb3   :  { %728 = vst.msk [vmem:[#allocation0 + $0x46] ss:$16 sm:$0x3] %vm258_vm1, %v2234_v32   ;;  %730 = vst.msk [vmem:[#allocation0 + $0x126] ss:$16 sm:$0xc] %vm258_vm1, %v2234_v32  }
  0xb4   :  { %732 = vst.msk [vmem:[#allocation0 + $0x26] ss:$16 sm:$0x30] %vm258_vm1, %v2234_v32   ;;  %734 = vst.msk [vmem:[#allocation0 + $0x106] ss:$16 sm:$0xc0] %vm258_vm1, %v2234_v32  }
  0xb5   :  { %711 = vst.msk [vmem:[#allocation0 + $0x6] ss:$16 sm:$0x3] %vm258_vm1, %v2233_v33   ;;  %713 = vst.msk [vmem:[#allocation0 + $0xe6] ss:$16 sm:$0xc] %vm258_vm1, %v2233_v33   ;;  %v2307_v6 = vpop.permute.xlu1 %2306  ;;  %v2302_v7 = vpop.permute.xlu0 %2301 }
  0xb6   :  { %715 = vst.msk [vmem:[#allocation0 - $0x1a] ss:$16 sm:$0x30] %vm258_vm1, %v2233_v33   ;;  %717 = vst.msk [vmem:[#allocation0 + $0xc6] ss:$16 sm:$0xc0] %vm258_vm1, %v2233_v33   ;;  %v2309_v8 = vunpack.i.h.bf16 %v2307_v6  ;;  %v2308_v9 = vunpack.i.l.bf16 %v2307_v6  ;;  %v2304_v10 = vunpack.i.h.bf16 %v2302_v7  ;;  %v2303_v11 = vunpack.i.l.bf16 %v2302_v7 }
  0xb7   :  { %829 = vst.msk [vmem:[#allocation0 + $0xc7] ss:$16 sm:$0x3] %vm258_vm1, %v2249_v36   ;;  %831 = vst.msk [vmem:[#allocation0 + $0x1a7] ss:$16 sm:$0xc] %vm258_vm1, %v2249_v36  }
  0xb8   :  { %833 = vst.msk [vmem:[#allocation0 + $0xa7] ss:$16 sm:$0x30] %vm258_vm1, %v2249_v36   ;;  %835 = vst.msk [vmem:[#allocation0 + $0x187] ss:$16 sm:$0xc0] %vm258_vm1, %v2249_v36  }
  0xb9   :  { %812 = vst.msk [vmem:[#allocation0 + $0x87] ss:$16 sm:$0x3] %vm258_vm1, %v2248_v37   ;;  %814 = vst.msk [vmem:[#allocation0 + $0x167] ss:$16 sm:$0xc] %vm258_vm1, %v2248_v37   ;;  %v2317_v12 = vpop.permute.xlu1 %2316  ;;  %v2312_v13 = vpop.permute.xlu0 %2311 }
  0xba   :  { %816 = vst.msk [vmem:[#allocation0 + $0x67] ss:$16 sm:$0x30] %vm258_vm1, %v2248_v37   ;;  %818 = vst.msk [vmem:[#allocation0 + $0x147] ss:$16 sm:$0xc0] %vm258_vm1, %v2248_v37   ;;  %v2319_v14 = vunpack.i.h.bf16 %v2317_v12  ;;  %v2318_v15 = vunpack.i.l.bf16 %v2317_v12  ;;  %v2314_v16 = vunpack.i.h.bf16 %v2312_v13  ;;  %v2313_v17 = vunpack.i.l.bf16 %v2312_v13 }
  0xbb   :  { %795 = vst.msk [vmem:[#allocation0 + $0x47] ss:$16 sm:$0x3] %vm258_vm1, %v2244_v38   ;;  %797 = vst.msk [vmem:[#allocation0 + $0x127] ss:$16 sm:$0xc] %vm258_vm1, %v2244_v38  }
  0xbc   :  { %799 = vst.msk [vmem:[#allocation0 + $0x27] ss:$16 sm:$0x30] %vm258_vm1, %v2244_v38   ;;  %801 = vst.msk [vmem:[#allocation0 + $0x107] ss:$16 sm:$0xc0] %vm258_vm1, %v2244_v38  }
  0xbd   :  { %778 = vst.msk [vmem:[#allocation0 + $0x7] ss:$16 sm:$0x3] %vm258_vm1, %v2243_v39   ;;  %780 = vst.msk [vmem:[#allocation0 + $0xe7] ss:$16 sm:$0xc] %vm258_vm1, %v2243_v39   ;;  %v2327_v18 = vpop.permute.xlu1 %2326  ;;  %v2322_v19 = vpop.permute.xlu0 %2321 }
  0xbe   :  { %782 = vst.msk [vmem:[#allocation0 - $0x19] ss:$16 sm:$0x30] %vm258_vm1, %v2243_v39   ;;  %784 = vst.msk [vmem:[#allocation0 + $0xc7] ss:$16 sm:$0xc0] %vm258_vm1, %v2243_v39   ;;  %v2329_v20 = vunpack.i.h.bf16 %v2327_v18  ;;  %v2328_v21 = vunpack.i.l.bf16 %v2327_v18  ;;  %v2324_v22 = vunpack.i.h.bf16 %v2322_v19  ;;  %v2323_v23 = vunpack.i.l.bf16 %v2322_v19 }
  0xbf   :  { %896 = vst.msk [vmem:[#allocation0 + $0xc8] ss:$16 sm:$0x3] %vm258_vm1, %v2259_v42   ;;  %898 = vst.msk [vmem:[#allocation0 + $0x1a8] ss:$16 sm:$0xc] %vm258_vm1, %v2259_v42  }
  0xc0   :  { %900 = vst.msk [vmem:[#allocation0 + $0xa8] ss:$16 sm:$0x30] %vm258_vm1, %v2259_v42   ;;  %902 = vst.msk [vmem:[#allocation0 + $0x188] ss:$16 sm:$0xc0] %vm258_vm1, %v2259_v42  }
  0xc1   :  { %879 = vst.msk [vmem:[#allocation0 + $0x88] ss:$16 sm:$0x3] %vm258_vm1, %v2258_v43   ;;  %881 = vst.msk [vmem:[#allocation0 + $0x168] ss:$16 sm:$0xc] %vm258_vm1, %v2258_v43  }
  0xc2   :  { %883 = vst.msk [vmem:[#allocation0 + $0x68] ss:$16 sm:$0x30] %vm258_vm1, %v2258_v43   ;;  %885 = vst.msk [vmem:[#allocation0 + $0x148] ss:$16 sm:$0xc0] %vm258_vm1, %v2258_v43  }
  0xc3   :  { %862 = vst.msk [vmem:[#allocation0 + $0x48] ss:$16 sm:$0x3] %vm258_vm1, %v2254_v44   ;;  %864 = vst.msk [vmem:[#allocation0 + $0x128] ss:$16 sm:$0xc] %vm258_vm1, %v2254_v44  }
  0xc4   :  { %866 = vst.msk [vmem:[#allocation0 + $0x28] ss:$16 sm:$0x30] %vm258_vm1, %v2254_v44   ;;  %868 = vst.msk [vmem:[#allocation0 + $0x108] ss:$16 sm:$0xc0] %vm258_vm1, %v2254_v44  }
  0xc5   :  { %845 = vst.msk [vmem:[#allocation0 + $0x8] ss:$16 sm:$0x3] %vm258_vm1, %v2253_v45   ;;  %847 = vst.msk [vmem:[#allocation0 + $0xe8] ss:$16 sm:$0xc] %vm258_vm1, %v2253_v45  }
  0xc6   :  { %849 = vst.msk [vmem:[#allocation0 - $0x18] ss:$16 sm:$0x30] %vm258_vm1, %v2253_v45   ;;  %851 = vst.msk [vmem:[#allocation0 + $0xc8] ss:$16 sm:$0xc0] %vm258_vm1, %v2253_v45  }
  0xc7   :  { %963 = vst.msk [vmem:[#allocation0 + $0xc9] ss:$16 sm:$0x3] %vm258_vm1, %v2269_v48   ;;  %965 = vst.msk [vmem:[#allocation0 + $0x1a9] ss:$16 sm:$0xc] %vm258_vm1, %v2269_v48  }
  0xc8   :  { %967 = vst.msk [vmem:[#allocation0 + $0xa9] ss:$16 sm:$0x30] %vm258_vm1, %v2269_v48   ;;  %969 = vst.msk [vmem:[#allocation0 + $0x189] ss:$16 sm:$0xc0] %vm258_vm1, %v2269_v48  }
  0xc9   :  { %946 = vst.msk [vmem:[#allocation0 + $0x89] ss:$16 sm:$0x3] %vm258_vm1, %v2268_v49   ;;  %948 = vst.msk [vmem:[#allocation0 + $0x169] ss:$16 sm:$0xc] %vm258_vm1, %v2268_v49  }
  0xca   :  { %950 = vst.msk [vmem:[#allocation0 + $0x69] ss:$16 sm:$0x30] %vm258_vm1, %v2268_v49   ;;  %952 = vst.msk [vmem:[#allocation0 + $0x149] ss:$16 sm:$0xc0] %vm258_vm1, %v2268_v49  }
  0xcb   :  { %929 = vst.msk [vmem:[#allocation0 + $0x49] ss:$16 sm:$0x3] %vm258_vm1, %v2264_v50   ;;  %931 = vst.msk [vmem:[#allocation0 + $0x129] ss:$16 sm:$0xc] %vm258_vm1, %v2264_v50  }
  0xcc   :  { %933 = vst.msk [vmem:[#allocation0 + $0x29] ss:$16 sm:$0x30] %vm258_vm1, %v2264_v50   ;;  %935 = vst.msk [vmem:[#allocation0 + $0x109] ss:$16 sm:$0xc0] %vm258_vm1, %v2264_v50  }
  0xcd   :  { %912 = vst.msk [vmem:[#allocation0 + $0x9] ss:$16 sm:$0x3] %vm258_vm1, %v2263_v51   ;;  %914 = vst.msk [vmem:[#allocation0 + $0xe9] ss:$16 sm:$0xc] %vm258_vm1, %v2263_v51  }
  0xce   :  { %916 = vst.msk [vmem:[#allocation0 - $0x17] ss:$16 sm:$0x30] %vm258_vm1, %v2263_v51   ;;  %918 = vst.msk [vmem:[#allocation0 + $0xc9] ss:$16 sm:$0xc0] %vm258_vm1, %v2263_v51  }
  0xcf   :  { %1030 = vst.msk [vmem:[#allocation0 + $0xca] ss:$16 sm:$0x3] %vm258_vm1, %v2279_v54   ;;  %1032 = vst.msk [vmem:[#allocation0 + $0x1aa] ss:$16 sm:$0xc] %vm258_vm1, %v2279_v54  }
  0xd0   :  { %1034 = vst.msk [vmem:[#allocation0 + $0xaa] ss:$16 sm:$0x30] %vm258_vm1, %v2279_v54   ;;  %1036 = vst.msk [vmem:[#allocation0 + $0x18a] ss:$16 sm:$0xc0] %vm258_vm1, %v2279_v54  }
  0xd1   :  { %1013 = vst.msk [vmem:[#allocation0 + $0x8a] ss:$16 sm:$0x3] %vm258_vm1, %v2278_v55   ;;  %1015 = vst.msk [vmem:[#allocation0 + $0x16a] ss:$16 sm:$0xc] %vm258_vm1, %v2278_v55  }
  0xd2   :  { %1017 = vst.msk [vmem:[#allocation0 + $0x6a] ss:$16 sm:$0x30] %vm258_vm1, %v2278_v55   ;;  %1019 = vst.msk [vmem:[#allocation0 + $0x14a] ss:$16 sm:$0xc0] %vm258_vm1, %v2278_v55  }
  0xd3   :  { %996 = vst.msk [vmem:[#allocation0 + $0x4a] ss:$16 sm:$0x3] %vm258_vm1, %v2274_v56   ;;  %998 = vst.msk [vmem:[#allocation0 + $0x12a] ss:$16 sm:$0xc] %vm258_vm1, %v2274_v56  }
  0xd4   :  { %1000 = vst.msk [vmem:[#allocation0 + $0x2a] ss:$16 sm:$0x30] %vm258_vm1, %v2274_v56   ;;  %1002 = vst.msk [vmem:[#allocation0 + $0x10a] ss:$16 sm:$0xc0] %vm258_vm1, %v2274_v56  }
  0xd5   :  { %979 = vst.msk [vmem:[#allocation0 + $0xa] ss:$16 sm:$0x3] %vm258_vm1, %v2273_v57   ;;  %981 = vst.msk [vmem:[#allocation0 + $0xea] ss:$16 sm:$0xc] %vm258_vm1, %v2273_v57  }
  0xd6   :  { %983 = vst.msk [vmem:[#allocation0 - $0x16] ss:$16 sm:$0x30] %vm258_vm1, %v2273_v57   ;;  %985 = vst.msk [vmem:[#allocation0 + $0xca] ss:$16 sm:$0xc0] %vm258_vm1, %v2273_v57  }
  0xd7   :  { %1097 = vst.msk [vmem:[#allocation0 + $0xcb] ss:$16 sm:$0x3] %vm258_vm1, %v2289_v60   ;;  %1099 = vst.msk [vmem:[#allocation0 + $0x1ab] ss:$16 sm:$0xc] %vm258_vm1, %v2289_v60  }
  0xd8   :  { %1101 = vst.msk [vmem:[#allocation0 + $0xab] ss:$16 sm:$0x30] %vm258_vm1, %v2289_v60   ;;  %1103 = vst.msk [vmem:[#allocation0 + $0x18b] ss:$16 sm:$0xc0] %vm258_vm1, %v2289_v60  }
  0xd9   :  { %1080 = vst.msk [vmem:[#allocation0 + $0x8b] ss:$16 sm:$0x3] %vm258_vm1, %v2288_v61   ;;  %1082 = vst.msk [vmem:[#allocation0 + $0x16b] ss:$16 sm:$0xc] %vm258_vm1, %v2288_v61  }
  0xda   :  { %1084 = vst.msk [vmem:[#allocation0 + $0x6b] ss:$16 sm:$0x30] %vm258_vm1, %v2288_v61   ;;  %1086 = vst.msk [vmem:[#allocation0 + $0x14b] ss:$16 sm:$0xc0] %vm258_vm1, %v2288_v61  }
  0xdb   :  { %1063 = vst.msk [vmem:[#allocation0 + $0x4b] ss:$16 sm:$0x3] %vm258_vm1, %v2284_v62   ;;  %1065 = vst.msk [vmem:[#allocation0 + $0x12b] ss:$16 sm:$0xc] %vm258_vm1, %v2284_v62  }
  0xdc   :  { %1067 = vst.msk [vmem:[#allocation0 + $0x2b] ss:$16 sm:$0x30] %vm258_vm1, %v2284_v62   ;;  %1069 = vst.msk [vmem:[#allocation0 + $0x10b] ss:$16 sm:$0xc0] %vm258_vm1, %v2284_v62  }
  0xdd   :  { %1046 = vst.msk [vmem:[#allocation0 + $0xb] ss:$16 sm:$0x3] %vm258_vm1, %v2283_v63   ;;  %1048 = vst.msk [vmem:[#allocation0 + $0xeb] ss:$16 sm:$0xc] %vm258_vm1, %v2283_v63  }
  0xde   :  { %1050 = vst.msk [vmem:[#allocation0 - $0x15] ss:$16 sm:$0x30] %vm258_vm1, %v2283_v63   ;;  %1052 = vst.msk [vmem:[#allocation0 + $0xcb] ss:$16 sm:$0xc0] %vm258_vm1, %v2283_v63  }
  0xdf   :  { %1164 = vst.msk [vmem:[#allocation0 + $0xcc] ss:$16 sm:$0x3] %vm258_vm1, %v2299_v2   ;;  %1166 = vst.msk [vmem:[#allocation0 + $0x1ac] ss:$16 sm:$0xc] %vm258_vm1, %v2299_v2  }
  0xe0   :  { %1168 = vst.msk [vmem:[#allocation0 + $0xac] ss:$16 sm:$0x30] %vm258_vm1, %v2299_v2   ;;  %1170 = vst.msk [vmem:[#allocation0 + $0x18c] ss:$16 sm:$0xc0] %vm258_vm1, %v2299_v2  }
  0xe1   :  { %1147 = vst.msk [vmem:[#allocation0 + $0x8c] ss:$16 sm:$0x3] %vm258_vm1, %v2298_v3   ;;  %1149 = vst.msk [vmem:[#allocation0 + $0x16c] ss:$16 sm:$0xc] %vm258_vm1, %v2298_v3  }
  0xe2   :  { %1151 = vst.msk [vmem:[#allocation0 + $0x6c] ss:$16 sm:$0x30] %vm258_vm1, %v2298_v3   ;;  %1153 = vst.msk [vmem:[#allocation0 + $0x14c] ss:$16 sm:$0xc0] %vm258_vm1, %v2298_v3  }
  0xe3   :  { %1130 = vst.msk [vmem:[#allocation0 + $0x4c] ss:$16 sm:$0x3] %vm258_vm1, %v2294_v4   ;;  %1132 = vst.msk [vmem:[#allocation0 + $0x12c] ss:$16 sm:$0xc] %vm258_vm1, %v2294_v4  }
  0xe4   :  { %1134 = vst.msk [vmem:[#allocation0 + $0x2c] ss:$16 sm:$0x30] %vm258_vm1, %v2294_v4   ;;  %1136 = vst.msk [vmem:[#allocation0 + $0x10c] ss:$16 sm:$0xc0] %vm258_vm1, %v2294_v4  }
  0xe5   :  { %1113 = vst.msk [vmem:[#allocation0 + $0xc] ss:$16 sm:$0x3] %vm258_vm1, %v2293_v5   ;;  %1115 = vst.msk [vmem:[#allocation0 + $0xec] ss:$16 sm:$0xc] %vm258_vm1, %v2293_v5  }
  0xe6   :  { %1117 = vst.msk [vmem:[#allocation0 - $0x14] ss:$16 sm:$0x30] %vm258_vm1, %v2293_v5   ;;  %1119 = vst.msk [vmem:[#allocation0 + $0xcc] ss:$16 sm:$0xc0] %vm258_vm1, %v2293_v5  }
  0xe7   :  { %1231 = vst.msk [vmem:[#allocation0 + $0xcd] ss:$16 sm:$0x3] %vm258_vm1, %v2309_v8   ;;  %1233 = vst.msk [vmem:[#allocation0 + $0x1ad] ss:$16 sm:$0xc] %vm258_vm1, %v2309_v8  }
  0xe8   :  { %1235 = vst.msk [vmem:[#allocation0 + $0xad] ss:$16 sm:$0x30] %vm258_vm1, %v2309_v8   ;;  %1237 = vst.msk [vmem:[#allocation0 + $0x18d] ss:$16 sm:$0xc0] %vm258_vm1, %v2309_v8  }
  0xe9   :  { %1214 = vst.msk [vmem:[#allocation0 + $0x8d] ss:$16 sm:$0x3] %vm258_vm1, %v2308_v9   ;;  %1216 = vst.msk [vmem:[#allocation0 + $0x16d] ss:$16 sm:$0xc] %vm258_vm1, %v2308_v9  }
  0xea   :  { %1218 = vst.msk [vmem:[#allocation0 + $0x6d] ss:$16 sm:$0x30] %vm258_vm1, %v2308_v9   ;;  %1220 = vst.msk [vmem:[#allocation0 + $0x14d] ss:$16 sm:$0xc0] %vm258_vm1, %v2308_v9  }
  0xeb   :  { %1197 = vst.msk [vmem:[#allocation0 + $0x4d] ss:$16 sm:$0x3] %vm258_vm1, %v2304_v10   ;;  %1199 = vst.msk [vmem:[#allocation0 + $0x12d] ss:$16 sm:$0xc] %vm258_vm1, %v2304_v10  }
  0xec   :  { %1201 = vst.msk [vmem:[#allocation0 + $0x2d] ss:$16 sm:$0x30] %vm258_vm1, %v2304_v10   ;;  %1203 = vst.msk [vmem:[#allocation0 + $0x10d] ss:$16 sm:$0xc0] %vm258_vm1, %v2304_v10  }
  0xed   :  { %1180 = vst.msk [vmem:[#allocation0 + $0xd] ss:$16 sm:$0x3] %vm258_vm1, %v2303_v11   ;;  %1182 = vst.msk [vmem:[#allocation0 + $0xed] ss:$16 sm:$0xc] %vm258_vm1, %v2303_v11  }
  0xee   :  { %1184 = vst.msk [vmem:[#allocation0 - $0x13] ss:$16 sm:$0x30] %vm258_vm1, %v2303_v11   ;;  %1186 = vst.msk [vmem:[#allocation0 + $0xcd] ss:$16 sm:$0xc0] %vm258_vm1, %v2303_v11  }
  0xef   :  { %1298 = vst.msk [vmem:[#allocation0 + $0xce] ss:$16 sm:$0x3] %vm258_vm1, %v2319_v14   ;;  %1300 = vst.msk [vmem:[#allocation0 + $0x1ae] ss:$16 sm:$0xc] %vm258_vm1, %v2319_v14  }
  0xf0   :  { %1302 = vst.msk [vmem:[#allocation0 + $0xae] ss:$16 sm:$0x30] %vm258_vm1, %v2319_v14   ;;  %1304 = vst.msk [vmem:[#allocation0 + $0x18e] ss:$16 sm:$0xc0] %vm258_vm1, %v2319_v14  }
  0xf1   :  { %1281 = vst.msk [vmem:[#allocation0 + $0x8e] ss:$16 sm:$0x3] %vm258_vm1, %v2318_v15   ;;  %1283 = vst.msk [vmem:[#allocation0 + $0x16e] ss:$16 sm:$0xc] %vm258_vm1, %v2318_v15  }
  0xf2   :  { %1285 = vst.msk [vmem:[#allocation0 + $0x6e] ss:$16 sm:$0x30] %vm258_vm1, %v2318_v15   ;;  %1287 = vst.msk [vmem:[#allocation0 + $0x14e] ss:$16 sm:$0xc0] %vm258_vm1, %v2318_v15  }
  0xf3   :  { %1264 = vst.msk [vmem:[#allocation0 + $0x4e] ss:$16 sm:$0x3] %vm258_vm1, %v2314_v16   ;;  %1266 = vst.msk [vmem:[#allocation0 + $0x12e] ss:$16 sm:$0xc] %vm258_vm1, %v2314_v16  }
  0xf4   :  { %1268 = vst.msk [vmem:[#allocation0 + $0x2e] ss:$16 sm:$0x30] %vm258_vm1, %v2314_v16   ;;  %1270 = vst.msk [vmem:[#allocation0 + $0x10e] ss:$16 sm:$0xc0] %vm258_vm1, %v2314_v16  }
  0xf5   :  { %1247 = vst.msk [vmem:[#allocation0 + $0xe] ss:$16 sm:$0x3] %vm258_vm1, %v2313_v17   ;;  %1249 = vst.msk [vmem:[#allocation0 + $0xee] ss:$16 sm:$0xc] %vm258_vm1, %v2313_v17  }
  0xf6   :  { %1251 = vst.msk [vmem:[#allocation0 - $0x12] ss:$16 sm:$0x30] %vm258_vm1, %v2313_v17   ;;  %1253 = vst.msk [vmem:[#allocation0 + $0xce] ss:$16 sm:$0xc0] %vm258_vm1, %v2313_v17  }
  0xf7   :  { %1365 = vst.msk [vmem:[#allocation0 + $0xcf] ss:$16 sm:$0x3] %vm258_vm1, %v2329_v20   ;;  %1367 = vst.msk [vmem:[#allocation0 + $0x1af] ss:$16 sm:$0xc] %vm258_vm1, %v2329_v20  }
  0xf8   :  { %1369 = vst.msk [vmem:[#allocation0 + $0xaf] ss:$16 sm:$0x30] %vm258_vm1, %v2329_v20   ;;  %1371 = vst.msk [vmem:[#allocation0 + $0x18f] ss:$16 sm:$0xc0] %vm258_vm1, %v2329_v20  }
  0xf9   :  { %1348 = vst.msk [vmem:[#allocation0 + $0x8f] ss:$16 sm:$0x3] %vm258_vm1, %v2328_v21   ;;  %1350 = vst.msk [vmem:[#allocation0 + $0x16f] ss:$16 sm:$0xc] %vm258_vm1, %v2328_v21  }
  0xfa   :  { %1352 = vst.msk [vmem:[#allocation0 + $0x6f] ss:$16 sm:$0x30] %vm258_vm1, %v2328_v21   ;;  %1354 = vst.msk [vmem:[#allocation0 + $0x14f] ss:$16 sm:$0xc0] %vm258_vm1, %v2328_v21  }
  0xfb   :  { %1331 = vst.msk [vmem:[#allocation0 + $0x4f] ss:$16 sm:$0x3] %vm258_vm1, %v2324_v22   ;;  %1333 = vst.msk [vmem:[#allocation0 + $0x12f] ss:$16 sm:$0xc] %vm258_vm1, %v2324_v22  }
  0xfc   :  { %1335 = vst.msk [vmem:[#allocation0 + $0x2f] ss:$16 sm:$0x30] %vm258_vm1, %v2324_v22   ;;  %1337 = vst.msk [vmem:[#allocation0 + $0x10f] ss:$16 sm:$0xc0] %vm258_vm1, %v2324_v22  }
  0xfd   :  { %1314 = vst.msk [vmem:[#allocation0 + $0xf] ss:$16 sm:$0x3] %vm258_vm1, %v2323_v23   ;;  %1316 = vst.msk [vmem:[#allocation0 + $0xef] ss:$16 sm:$0xc] %vm258_vm1, %v2323_v23  }
  0xfe   :  { %1318 = vst.msk [vmem:[#allocation0 - $0x11] ss:$16 sm:$0x30] %vm258_vm1, %v2323_v23   ;;  %1320 = vst.msk [vmem:[#allocation0 + $0xcf] ss:$16 sm:$0xc0] %vm258_vm1, %v2323_v23  }
  0xff   :  { %v1485_v24 = vld [vmem:[#allocation0 + $0x80] sm:$0xff]  ;;  %v1499_v25 = vld [vmem:[#allocation0 + $0x90] sm:$0xff]  ;;  %v1548_v43 = vld [vmem:[#allocation0 + $0xc8] sm:$0xff] }
 0x100   :  { %v1513_v26 = vld [vmem:[#allocation0 + $0xa0] sm:$0xff]  ;;  %v1527_v27 = vld [vmem:[#allocation0 + $0xb0] sm:$0xff]  ;;  %v1492_v33 = vld [vmem:[#allocation0 + $0x88] sm:$0xff] }
 0x101   :  { %v1541_v28 = vld [vmem:[#allocation0 + $0xc0] sm:$0xff]  ;;  %v1555_v29 = vld [vmem:[#allocation0 + $0xd0] sm:$0xff]  ;;  %v1506_v34 = vld [vmem:[#allocation0 + $0x98] sm:$0xff]  ;;  %v2017_v39 = vpack.c.bf16 %v1492_v33, %v1485_v24 }
 0x102   :  { %v1569_v30 = vld [vmem:[#allocation0 + $0xe0] sm:$0xff]  ;;  %v1583_v31 = vld [vmem:[#allocation0 + $0xf0] sm:$0xff]  ;;  %v1520_v35 = vld [vmem:[#allocation0 + $0xa8] sm:$0xff]  ;;  %v2022_v40 = vpack.c.bf16 %v1506_v34, %v1499_v25  ;;  %v2037_v49 = vpack.c.bf16 %v1548_v43, %v1541_v28 }
 0x103   :  { %v1709_v32 = vld [vmem:[#allocation0 + $0x180] sm:$0xff]  ;;  %v1723_v36 = vld [vmem:[#allocation0 + $0x190] sm:$0xff]  ;;  %v2027_v41 = vpack.c.bf16 %v1520_v35, %v1513_v26  ;;  %v1534_v42 = vld [vmem:[#allocation0 + $0xb8] sm:$0xff]  ;;  %2141 = vst [vmem:[%s2814_s1 + $0x40] sm:$0xff] %v2017_v39  }
 0x104   :  { %v1737_v37 = vld [vmem:[#allocation0 + $0x1a0] sm:$0xff]  ;;  %v1751_v38 = vld [vmem:[#allocation0 + $0x1b0] sm:$0xff]  ;;  %v1562_v44 = vld [vmem:[#allocation0 + $0xd8] sm:$0xff]  ;;  %v2032_v48 = vpack.c.bf16 %v1534_v42, %v1527_v27  ;;  %2142 = vst [vmem:[%s2814_s1 + $0x48] sm:$0xff] %v2022_v40  }
 0x105   :  { %v1765_v45 = vld [vmem:[#allocation0 + $0x1c0] sm:$0xff]  ;;  %v1779_v46 = vld [vmem:[#allocation0 + $0x1d0] sm:$0xff]  ;;  %v2042_v50 = vpack.c.bf16 %v1562_v44, %v1555_v29  ;;  %v1576_v51 = vld [vmem:[#allocation0 + $0xe8] sm:$0xff]  ;;  %2143 = vst [vmem:[%s2814_s1 + $0x50] sm:$0xff] %v2027_v41  }
 0x106   :  { %v1793_v47 = vld [vmem:[#allocation0 + $0x1e0] sm:$0xff]  ;;  %v1590_v52 = vld [vmem:[#allocation0 + $0xf8] sm:$0xff]  ;;  %v1716_v53 = vld [vmem:[#allocation0 + $0x188] sm:$0xff]  ;;  %v2047_v57 = vpack.c.bf16 %v1576_v51, %v1569_v30  ;;  %2144 = vst [vmem:[%s2814_s1 + $0x58] sm:$0xff] %v2032_v48  }
 0x107   :  { %v1807_v54 = vld [vmem:[#allocation0 + $0x1f0] sm:$0xff]  ;;  %v1376_v55 = vld [vmem:[#allocation0] sm:$0xff]  ;;  %v2052_v58 = vpack.c.bf16 %v1590_v52, %v1583_v31  ;;  %v2097_v59 = vpack.c.bf16 %v1716_v53, %v1709_v32  ;;  %v1730_v60 = vld [vmem:[#allocation0 + $0x198] sm:$0xff]  ;;  %2145 = vst [vmem:[%s2814_s1 + $0x60] sm:$0xff] %v2037_v49  }
 0x108   :  { %v1387_v56 = vld [vmem:[#allocation0 + $0x10] sm:$0xff]  ;;  %v1744_v61 = vld [vmem:[#allocation0 + $0x1a8] sm:$0xff]  ;;  %v1758_v62 = vld [vmem:[#allocation0 + $0x1b8] sm:$0xff]  ;;  %2146 = vst [vmem:[%s2814_s1 + $0x68] sm:$0xff] %v2042_v50   ;;  %v2102_v2 = vpack.c.bf16 %v1730_v60, %v1723_v36 }
 0x109   :  { %v1401_v63 = vld [vmem:[#allocation0 + $0x20] sm:$0xff]  ;;  %v1415_v0 = vld [vmem:[#allocation0 + $0x30] sm:$0xff]  ;;  %v2107_v3 = vpack.c.bf16 %v1744_v61, %v1737_v37  ;;  %v2112_v4 = vpack.c.bf16 %v1758_v62, %v1751_v38  ;;  %v1772_v5 = vld [vmem:[#allocation0 + $0x1c8] sm:$0xff]  ;;  %2147 = vst [vmem:[%s2814_s1 + $0x70] sm:$0xff] %v2047_v57  }
 0x10a   :  { %v1429_v1 = vld [vmem:[#allocation0 + $0x40] sm:$0xff]  ;;  %v1786_v6 = vld [vmem:[#allocation0 + $0x1d8] sm:$0xff]  ;;  %v1800_v7 = vld [vmem:[#allocation0 + $0x1e8] sm:$0xff]  ;;  %2148 = vst [vmem:[%s2814_s1 + $0x78] sm:$0xff] %v2052_v58   ;;  %v2117_v11 = vpack.c.bf16 %v1772_v5, %v1765_v45 }
 0x10b   :  { %v1443_v8 = vld [vmem:[#allocation0 + $0x50] sm:$0xff]  ;;  %v1457_v9 = vld [vmem:[#allocation0 + $0x60] sm:$0xff]  ;;  %2157 = vst [vmem:[%s2814_s1 + $0xc0] sm:$0xff] %v2097_v59   ;;  %v2122_v12 = vpack.c.bf16 %v1786_v6, %v1779_v46  ;;  %v2127_v13 = vpack.c.bf16 %v1800_v7, %v1793_v47  ;;  %v1814_v14 = vld [vmem:[#allocation0 + $0x1f8] sm:$0xff] }
 0x10c   :  { %v1471_v10 = vld [vmem:[#allocation0 + $0x70] sm:$0xff]  ;;  %v1381_v15 = vld [vmem:[#allocation0 + $0x8] sm:$0xff]  ;;  %v1394_v16 = vld [vmem:[#allocation0 + $0x18] sm:$0xff]  ;;  %2158 = vst [vmem:[%s2814_s1 + $0xc8] sm:$0xff] %v2102_v2   ;;  %v2132_v20 = vpack.c.bf16 %v1814_v14, %v1807_v54 }
 0x10d   :  { %v1597_v17 = vld [vmem:[#allocation0 + $0x100] sm:$0xff]  ;;  %v1611_v18 = vld [vmem:[#allocation0 + $0x110] sm:$0xff]  ;;  %2159 = vst [vmem:[%s2814_s1 + $0xd0] sm:$0xff] %v2107_v3   ;;  %2160 = vst [vmem:[%s2814_s1 + $0xd8] sm:$0xff] %v2112_v4   ;;  %v1977_v21 = vpack.c.bf16 %v1381_v15, %v1376_v55  ;;  %v1982_v22 = vpack.c.bf16 %v1394_v16, %v1387_v56 }
 0x10e   :  { %v1625_v19 = vld [vmem:[#allocation0 + $0x120] sm:$0xff]  ;;  %v1408_v23 = vld [vmem:[#allocation0 + $0x28] sm:$0xff]  ;;  %v1422_v24 = vld [vmem:[#allocation0 + $0x38] sm:$0xff]  ;;  %2161 = vst [vmem:[%s2814_s1 + $0xe0] sm:$0xff] %v2117_v11  }
 0x10f   :  { %v1436_v25 = vld [vmem:[#allocation0 + $0x48] sm:$0xff]  ;;  %v1639_v26 = vld [vmem:[#allocation0 + $0x130] sm:$0xff]  ;;  %v1653_v27 = vld [vmem:[#allocation0 + $0x140] sm:$0xff]  ;;  %2162 = vst [vmem:[%s2814_s1 + $0xe8] sm:$0xff] %v2122_v12   ;;  %v1987_v29 = vpack.c.bf16 %v1408_v23, %v1401_v63  ;;  %v1992_v30 = vpack.c.bf16 %v1422_v24, %v1415_v0 }
 0x110   :  { %v1667_v28 = vld [vmem:[#allocation0 + $0x150] sm:$0xff]  ;;  %2163 = vst [vmem:[%s2814_s1 + $0xf0] sm:$0xff] %v2127_v13   ;;  %v1997_v31 = vpack.c.bf16 %v1436_v25, %v1429_v1  ;;  %v1450_v32 = vld [vmem:[#allocation0 + $0x58] sm:$0xff]  ;;  %v1464_v33 = vld [vmem:[#allocation0 + $0x68] sm:$0xff] }
 0x111   :  { %v1478_v34 = vld [vmem:[#allocation0 + $0x78] sm:$0xff]  ;;  %v1681_v35 = vld [vmem:[#allocation0 + $0x160] sm:$0xff]  ;;  %2164 = vst [vmem:[%s2814_s1 + $0xf8] sm:$0xff] %v2132_v20   ;;  %1978 = vst [vmem:[%s2814_s1] sm:$0xff] %v1977_v21   ;;  %v2002_v36 = vpack.c.bf16 %v1450_v32, %v1443_v8  ;;  %v2007_v37 = vpack.c.bf16 %v1464_v33, %v1457_v9 }
 0x112   :  { %2134 = vst [vmem:[%s2814_s1 + $0x8] sm:$0xff] %v1982_v22   ;;  %v2012_v38 = vpack.c.bf16 %v1478_v34, %v1471_v10  ;;  %v1604_v39 = vld [vmem:[#allocation0 + $0x108] sm:$0xff]  ;;  %v1618_v40 = vld [vmem:[#allocation0 + $0x118] sm:$0xff]  ;;  %2135 = vst [vmem:[%s2814_s1 + $0x10] sm:$0xff] %v1987_v29  }
 0x113   :  { %v1632_v41 = vld [vmem:[#allocation0 + $0x128] sm:$0xff]  ;;  %2136 = vst [vmem:[%s2814_s1 + $0x18] sm:$0xff] %v1992_v30   ;;  %2137 = vst [vmem:[%s2814_s1 + $0x20] sm:$0xff] %v1997_v31   ;;  %v2057_v42 = vpack.c.bf16 %v1604_v39, %v1597_v17  ;;  %v2062_v43 = vpack.c.bf16 %v1618_v40, %v1611_v18  ;;  %v1646_v45 = vld [vmem:[#allocation0 + $0x138] sm:$0xff] }
 0x114   :  { %v2067_v44 = vpack.c.bf16 %v1632_v41, %v1625_v19  ;;  %v1660_v46 = vld [vmem:[#allocation0 + $0x148] sm:$0xff]  ;;  %v1674_v47 = vld [vmem:[#allocation0 + $0x158] sm:$0xff]  ;;  %v1695_v48 = vld [vmem:[#allocation0 + $0x170] sm:$0xff]  ;;  %2138 = vst [vmem:[%s2814_s1 + $0x28] sm:$0xff] %v2002_v36   ;;  %v2072_v49 = vpack.c.bf16 %v1646_v45, %v1639_v26 }
 0x115   :  { %2139 = vst [vmem:[%s2814_s1 + $0x30] sm:$0xff] %v2007_v37   ;;  %2140 = vst [vmem:[%s2814_s1 + $0x38] sm:$0xff] %v2012_v38   ;;  %v2077_v50 = vpack.c.bf16 %v1660_v46, %v1653_v27  ;;  %v2082_v51 = vpack.c.bf16 %v1674_v47, %v1667_v28  ;;  %v1688_v52 = vld [vmem:[#allocation0 + $0x168] sm:$0xff]  ;;  %v1702_v53 = vld [vmem:[#allocation0 + $0x178] sm:$0xff] }
 0x116   :  { %2149 = vst [vmem:[%s2814_s1 + $0x80] sm:$0xff] %v2057_v42   ;;  %2150 = vst [vmem:[%s2814_s1 + $0x88] sm:$0xff] %v2062_v43   ;;  %v2087_v54 = vpack.c.bf16 %v1688_v52, %v1681_v35  ;;  %v2092_v55 = vpack.c.bf16 %v1702_v53, %v1695_v48 }
 0x117   :  { %2151 = vst [vmem:[%s2814_s1 + $0x90] sm:$0xff] %v2067_v44   ;;  %2152 = vst [vmem:[%s2814_s1 + $0x98] sm:$0xff] %v2072_v49  }
 0x118   :  { %2153 = vst [vmem:[%s2814_s1 + $0xa0] sm:$0xff] %v2077_v50   ;;  %2154 = vst [vmem:[%s2814_s1 + $0xa8] sm:$0xff] %v2082_v51  }
 0x119   :  { %2155 = vst [vmem:[%s2814_s1 + $0xb0] sm:$0xff] %v2087_v54   ;;  %2156 = vst [vmem:[%s2814_s1 + $0xb8] sm:$0xff] %v2092_v55  }

// kernel: generator_forward.10
= control target key start
LH: loop header
LB: loop body
LE: loop exit
PB: predicated region body
PF: predicated region fallthrough
CT: control target
= control target key end

     0   :  { %s891_s12 = smov 0   ;;  %s984_s0 = inlined_call_operand.vmem [shape: bf16[8,96,1024], index: 0, kind: input, shape index: {}]   ;;  %s985_s1 = inlined_call_operand.vmem [shape: bf16[8,8,96], index: 1, kind: input, shape index: {}]   ;;  %s986_s2 = inlined_call_operand.vmem [shape: f32[8,1], index: 2, kind: input, shape index: {}]   ;;  %s987_s3 = inlined_call_operand.vmem [shape: bf16[8,8,1024], index: 3, kind: output, shape index: {}]  }
   0x1 LB: > { %s763_s13 = sadd.s32 4294967295, %s868_s12   ;;  %p767_p0 = scmp.ge.s32.totalorder %s868_s12, 1  ;;  %s868_s12 = sphi %s891_s12, %s13_s12  }
   0x2   : > { %p146_p1 = scmp.lt.s32.totalorder %s868_s12, 9 }
   0x4   : > { %p147_p2 = pnand %p767_p0, %p146_p1 }
   0x5   : > { %p174_p3 = scmp.lt.s32.totalorder (!%p147_p2), %s763_s13, 7  ;;  %v238_v0 = vld [vmem:[%s986_s2] sm:$0xff] (!%p147_p2)  ;;  %v870_v1 = vmov (!%p147_p2), 0   ;;  %vm484_vm0 = vcmask (!%p147_p2), 785408  }
   0x6   : > { %150 = sbr.rel (%p147_p2) target bundleno = 300 (0x12c), region = 32  ;;  %520 = vmatprep.mubr.bf16.mxu0 (!%p147_p2), %v870_v1  ;;  %561 = vmatprep.mubr.bf16.mxu1 (!%p147_p2), %v870_v1 }
   0x7   : > { %845 = vset.pattern.permute.xlu0 (!%p147_p2), %v870_v1 }
   0x8   : > { %241 = vperm.xlu0 (!%p147_p2), %845, %v238_v0  }
   0xd   : > { %s989_s13 = smov (!%p174_p3, %s763_s13), 7 }
   0xe   : > { %s835_s16 = smul.u32 384, %s989_s13  ;;  %s769_s20 = sshll.u32 %s989_s13, 2 }
   0xf   : > { %s182_s23 = scalar_lea.vmem %s985_s1, %s769_s20  ;;  %s830_s24 = sshll.u32 %s989_s13, 5 }
  0x10   : > { %s911_s19 = scalar_lea.vmem %s984_s0, %s835_s16  ;;  %v949_v60 = vld [vmem:[%s182_s23] sm:$0xf]  ;;  %s187_s27 = scalar_lea.vmem %s987_s3, %s830_s24 }
  0x11   : > { %v190_v2 = vld [vmem:[%s911_s19] sm:$0xff]  ;;  %v191_v4 = vld [vmem:[%s911_s19 + $0x8] sm:$0xff]  ;;  %v192_v48 = vld [vmem:[%s911_s19 + $0x10] sm:$0xff] }
  0x12   : > { %v194_v3 = vld [vmem:[%s911_s19 + $0x20] sm:$0xff]  ;;  %v195_v6 = vld [vmem:[%s911_s19 + $0x28] sm:$0xff]  ;;  %v196_v49 = vld [vmem:[%s911_s19 + $0x30] sm:$0xff] }
  0x13   : > { %v773_v5 = vcombine.high %v190_v2, %v194_v3  ;;  %v772_v7 = vcombine.low %v190_v2, %v194_v3  ;;  %v198_v8 = vld [vmem:[%s911_s19 + $0x40] sm:$0xff]  ;;  %v775_v10 = vcombine.high %v191_v4, %v195_v6  ;;  %v774_v11 = vcombine.low %v191_v4, %v195_v6  ;;  %v199_v13 = vld [vmem:[%s911_s19 + $0x48] sm:$0xff]  ;;  %v193_v50 = vld [vmem:[%s911_s19 + $0x18] sm:$0xff] }
  0x14   : > { %v202_v9 = vld [vmem:[%s911_s19 + $0x60] sm:$0xff]  ;;  %v203_v14 = vld [vmem:[%s911_s19 + $0x68] sm:$0xff]  ;;  %v197_v51 = vld [vmem:[%s911_s19 + $0x38] sm:$0xff]  ;;  %v777_v54 = vcombine.high %v192_v48, %v196_v49  ;;  %v776_v61 = vcombine.low %v192_v48, %v196_v49 }
  0x15   : > { %v781_v12 = vcombine.high %v198_v8, %v202_v9  ;;  %v206_v15 = vld [vmem:[%s911_s19 + $0x80] sm:$0xff]  ;;  %488 = vmatprep.subr.bf16.mxu0 %v773_v5  ;;  %v783_v16 = vcombine.high %v199_v13, %v203_v14  ;;  %v207_v18 = vld [vmem:[%s911_s19 + $0x88] sm:$0xff]  ;;  %529 = vmatprep.subr.bf16.mxu1 %v775_v10  ;;  %v780_v20 = vcombine.low %v198_v8, %v202_v9  ;;  %v200_v56 = vld [vmem:[%s911_s19 + $0x50] sm:$0xff] }
  0x16   : > { %v210_v17 = vld [vmem:[%s911_s19 + $0xa0] sm:$0xff]  ;;  %v211_v19 = vld [vmem:[%s911_s19 + $0xa8] sm:$0xff]  ;;  %489 = vmatpush1.bf16.msra.mxu0 %v772_v7  ;;  %530 = vmatpush1.bf16.msra.mxu1 %v774_v11  ;;  %v782_v21 = vcombine.low %v199_v13, %v203_v14  ;;  %v779_v55 = vcombine.high %v193_v50, %v197_v51  ;;  %v204_v57 = vld [vmem:[%s911_s19 + $0x70] sm:$0xff]  ;;  %v778_v62 = vcombine.low %v193_v50, %v197_v51 }
  0x17   : > { %490 = vmatprep.subr.bf16.mxu0 %v781_v12  ;;  %v789_v22 = vcombine.high %v206_v15, %v210_v17  ;;  %531 = vmatprep.subr.bf16.mxu1 %v783_v16  ;;  %v791_v23 = vcombine.high %v207_v18, %v211_v19  ;;  %v214_v24 = vld [vmem:[%s911_s19 + $0xc0] sm:$0xff]  ;;  %v215_v26 = vld [vmem:[%s911_s19 + $0xc8] sm:$0xff]  ;;  %v788_v28 = vcombine.low %v206_v15, %v210_v17  ;;  %v201_v58 = vld [vmem:[%s911_s19 + $0x58] sm:$0xff] }
  0x18   : > { %v218_v25 = vld [vmem:[%s911_s19 + $0xe0] sm:$0xff]  ;;  %v219_v27 = vld [vmem:[%s911_s19 + $0xe8] sm:$0xff]  ;;  %v790_v29 = vcombine.low %v207_v18, %v211_v19  ;;  %v205_v59 = vld [vmem:[%s911_s19 + $0x78] sm:$0xff]  ;;  %v785_v63 = vcombine.high %v200_v56, %v204_v57  ;;  %v784_v6 = vcombine.low %v200_v56, %v204_v57 }
  0x19   : > { %v797_v30 = vcombine.high %v214_v24, %v218_v25  ;;  %v799_v31 = vcombine.high %v215_v26, %v219_v27  ;;  %v222_v32 = vld [vmem:[%s911_s19 + $0x100] sm:$0xff]  ;;  %v223_v34 = vld [vmem:[%s911_s19 + $0x108] sm:$0xff]  ;;  %v796_v36 = vcombine.low %v214_v24, %v218_v25  ;;  %v798_v37 = vcombine.low %v215_v26, %v219_v27  ;;  %v208_v2 = vld [vmem:[%s911_s19 + $0x90] sm:$0xff] }
  0x1a   : > { %491 = vmatpush1.bf16.msra.mxu0 %v780_v20  ;;  %532 = vmatpush1.bf16.msra.mxu1 %v782_v21  ;;  %v226_v33 = vld [vmem:[%s911_s19 + $0x120] sm:$0xff]  ;;  %v227_v35 = vld [vmem:[%s911_s19 + $0x128] sm:$0xff]  ;;  %v787_v0 = vcombine.high %v201_v58, %v205_v59  ;;  %v212_v3 = vld [vmem:[%s911_s19 + $0xb0] sm:$0xff]  ;;  %v786_v7 = vcombine.low %v201_v58, %v205_v59 }
  0x1b   : > { %492 = vmatprep.subr.bf16.mxu0 %v789_v22  ;;  %533 = vmatprep.subr.bf16.mxu1 %v791_v23  ;;  %v805_v38 = vcombine.high %v222_v32, %v226_v33  ;;  %v807_v39 = vcombine.high %v223_v34, %v227_v35  ;;  %v230_v40 = vld [vmem:[%s911_s19 + $0x140] sm:$0xff]  ;;  %v231_v42 = vld [vmem:[%s911_s19 + $0x148] sm:$0xff]  ;;  %v804_v44 = vcombine.low %v222_v32, %v226_v33  ;;  %v209_v4 = vld [vmem:[%s911_s19 + $0x98] sm:$0xff] }
  0x1c   : > { %v234_v41 = vld [vmem:[%s911_s19 + $0x160] sm:$0xff]  ;;  %v235_v43 = vld [vmem:[%s911_s19 + $0x168] sm:$0xff]  ;;  %v806_v45 = vcombine.low %v223_v34, %v227_v35  ;;  %v213_v5 = vld [vmem:[%s911_s19 + $0xb8] sm:$0xff]  ;;  %v793_v8 = vcombine.high %v208_v2, %v212_v3  ;;  %v792_v14 = vcombine.low %v208_v2, %v212_v3 }
  0x1d   : > { %v813_v46 = vcombine.high %v230_v40, %v234_v41  ;;  %v815_v47 = vcombine.high %v231_v42, %v235_v43  ;;  %v812_v52 = vcombine.low %v230_v40, %v234_v41  ;;  %v814_v53 = vcombine.low %v231_v42, %v235_v43  ;;  %v216_v10 = vld [vmem:[%s911_s19 + $0xd0] sm:$0xff]  ;;  %v217_v12 = vld [vmem:[%s911_s19 + $0xd8] sm:$0xff] }
  0x1e   : > { %493 = vmatpush1.bf16.msra.mxu0 %v788_v28  ;;  %534 = vmatpush1.bf16.msra.mxu1 %v790_v29  ;;  %v795_v9 = vcombine.high %v209_v4, %v213_v5  ;;  %v220_v11 = vld [vmem:[%s911_s19 + $0xf0] sm:$0xff]  ;;  %v221_v13 = vld [vmem:[%s911_s19 + $0xf8] sm:$0xff]  ;;  %v794_v15 = vcombine.low %v209_v4, %v213_v5 }
  0x1f   : > { %494 = vmatprep.subr.bf16.mxu0 %v797_v30  ;;  %535 = vmatprep.subr.bf16.mxu1 %v799_v31  ;;  %v801_v16 = vcombine.high %v216_v10, %v220_v11  ;;  %v803_v17 = vcombine.high %v217_v12, %v221_v13  ;;  %v224_v18 = vld [vmem:[%s911_s19 + $0x110] sm:$0xff]  ;;  %v225_v20 = vld [vmem:[%s911_s19 + $0x118] sm:$0xff]  ;;  %v800_v22 = vcombine.low %v216_v10, %v220_v11 }
  0x20   : > { %v228_v19 = vld [vmem:[%s911_s19 + $0x130] sm:$0xff]  ;;  %v229_v21 = vld [vmem:[%s911_s19 + $0x138] sm:$0xff] }
  0x21   : > { %v809_v23 = vcombine.high %v224_v18, %v228_v19  ;;  %v811_v24 = vcombine.high %v225_v20, %v229_v21  ;;  %v232_v25 = vld [vmem:[%s911_s19 + $0x150] sm:$0xff]  ;;  %v233_v27 = vld [vmem:[%s911_s19 + $0x158] sm:$0xff]  ;;  %v808_v29 = vcombine.low %v224_v18, %v228_v19  ;;  %v810_v30 = vcombine.low %v225_v20, %v229_v21 }
  0x22   : > { %495 = vmatpush1.bf16.msra.mxu0 %v796_v36  ;;  %536 = vmatpush1.bf16.msra.mxu1 %v798_v37  ;;  %v236_v26 = vld [vmem:[%s911_s19 + $0x170] sm:$0xff]  ;;  %v237_v28 = vld [vmem:[%s911_s19 + $0x178] sm:$0xff] }
  0x23   : > { %496 = vmatprep.subr.bf16.mxu0 %v805_v38  ;;  %537 = vmatprep.subr.bf16.mxu1 %v807_v39  ;;  %v817_v31 = vcombine.high %v232_v25, %v236_v26  ;;  %v819_v32 = vcombine.high %v233_v27, %v237_v28  ;;  %v816_v33 = vcombine.low %v232_v25, %v236_v26 }
  0x24   : > { %v818_v34 = vcombine.low %v233_v27, %v237_v28 }
  0x26   : > { %497 = vmatpush1.bf16.msra.mxu0 %v804_v44  ;;  %538 = vmatpush1.bf16.msra.mxu1 %v806_v45 }
  0x27   : > { %498 = vmatprep.subr.bf16.mxu0 %v813_v46  ;;  %539 = vmatprep.subr.bf16.mxu1 %v815_v47 }
  0x2a   : > { %499 = vmatpush1.bf16.msra.mxu0 %v812_v52  ;;  %540 = vmatpush1.bf16.msra.mxu1 %v814_v53 }
  0x2b   : > { %570 = vmatprep.subr.bf16.mxu0 %v777_v54  ;;  %611 = vmatprep.subr.bf16.mxu1 %v779_v55 }
  0x2d   : > { %820 = vmatmul.mubr.msk.bf16.vlgmr.msra.gmra.mrb[0].mxu0 %vm484_vm0, %v949_v60  ;;  %821 = vmatmul.mubr.msk.bf16.vlgmr.msra.gmra.mrb[0].mxu1 %vm484_vm0, %v949_v60 }
  0x2e   : > { %571 = vmatpush1.bf16.msra.mxu0 %v776_v61  ;;  %612 = vmatpush1.bf16.msra.mxu1 %v778_v62 }
  0x2f   : > { %572 = vmatprep.subr.bf16.mxu0 %v785_v63  ;;  %613 = vmatprep.subr.bf16.mxu1 %v787_v0 }
  0x30   : > { %602 = vmatprep.mubr.bf16.mxu0 %v870_v1  ;;  %643 = vmatprep.mubr.bf16.mxu1 %v870_v1  ;;  %v802_v1 = vcombine.low %v217_v12, %v221_v13 }
  0x32   : > { %573 = vmatpush1.bf16.msra.mxu0 %v784_v6  ;;  %614 = vmatpush1.bf16.msra.mxu1 %v786_v7 }
  0x33   : > { %574 = vmatprep.subr.bf16.mxu0 %v793_v8  ;;  %615 = vmatprep.subr.bf16.mxu1 %v795_v9 }
  0x36   : > { %575 = vmatpush1.bf16.msra.mxu0 %v792_v14  ;;  %616 = vmatpush1.bf16.msra.mxu1 %v794_v15 }
  0x37   : > { %576 = vmatprep.subr.bf16.mxu0 %v801_v16  ;;  %617 = vmatprep.subr.bf16.mxu1 %v803_v17 }
  0x3a   : > { %577 = vmatpush1.bf16.msra.mxu0 %v800_v22  ;;  %618 = vmatpush1.bf16.msra.mxu1 %v802_v1 }
  0x3b   : > { %578 = vmatprep.subr.bf16.mxu0 %v809_v23  ;;  %619 = vmatprep.subr.bf16.mxu1 %v811_v24 }
  0x3e   : > { %579 = vmatpush1.bf16.msra.mxu0 %v808_v29  ;;  %620 = vmatpush1.bf16.msra.mxu1 %v810_v30 }
  0x3f   : > { %580 = vmatprep.subr.bf16.mxu0 %v817_v31  ;;  %621 = vmatprep.subr.bf16.mxu1 %v819_v32 }
  0x42   : > { %581 = vmatpush1.bf16.msra.mxu0 %v816_v33  ;;  %622 = vmatpush1.bf16.msra.mxu1 %v818_v34 }
  0x45   : > { %822 = vmatmul.mubr.msk.bf16.vlgmr.msra.gmra.mrb[4].mxu0 %vm484_vm0, %v949_v60  ;;  %823 = vmatmul.mubr.msk.bf16.vlgmr.msra.gmra.mrb[4].mxu1 %vm484_vm0, %v949_v60 }
  0x87   : > { %v242_v35 = vpop.permute.xlu0 %241 }
 0x100   : > { %v522_v36 = vpop.f32.mrb[0].mxu0  ;;  %v563_v37 = vpop.f32.mrb[0].mxu1 }
 0x101   : > { %v523_v38 = vadd.f32 %v522_v36, %v242_v35  ;;  %v524_v39 = vpop.f32.mrb[1].mxu0  ;;  %v564_v40 = vadd.f32 %v563_v37, %v242_v35  ;;  %v565_v42 = vpop.f32.mrb[1].mxu1 }
 0x102   : > { %v525_v41 = vadd.f32 %v524_v39, %v242_v35  ;;  %v526_v43 = vpop.f32.mrb[2].mxu0  ;;  %v566_v44 = vadd.f32 %v565_v42, %v242_v35  ;;  %v567_v45 = vpop.f32.mrb[2].mxu1 }
 0x103   : > { %846 = vtanh.f32 %v523_v38  ;;  %v527_v46 = vpop.f32.mrb[3].mxu0  ;;  %v568_v47 = vpop.f32.mrb[3].mxu1 }
 0x104   : > { %848 = vtanh.f32 %v564_v40 }
 0x105   : > { %850 = vtanh.f32 %v525_v41 }
 0x106   : > { %852 = vtanh.f32 %v566_v44 }
 0x10d   : > { %v847_v48 = vpop.eup %846 }
 0x10e   : > { %v849_v49 = vpop.eup %848 }
 0x10f   : > { %v851_v50 = vpop.eup %850 }
 0x110   : > { %v853_v51 = vpop.eup %852  ;;  %v831_v52 = vpack.c.bf16 %v851_v50, %v847_v48 }
 0x111   : > { %v832_v53 = vpack.c.bf16 %v853_v51, %v849_v49 }
 0x112   : > { %692 = vst [vmem:[%s187_s27] sm:$0xff] %v831_v52 }
 0x113   : > { %693 = vst [vmem:[%s187_s27 + $0x8] sm:$0xff] %v832_v53 }
 0x118   : > { %v604_v54 = vpop.f32.mrb[4].mxu0  ;;  %v645_v56 = vpop.f32.mrb[4].mxu1 }
 0x119   : > { %v605_v55 = vadd.f32 %v604_v54, %v242_v35  ;;  %v606_v57 = vpop.f32.mrb[5].mxu0  ;;  %v646_v58 = vadd.f32 %v645_v56, %v242_v35  ;;  %v647_v60 = vpop.f32.mrb[5].mxu1 }
 0x11a   : > { %v607_v59 = vadd.f32 %v606_v57, %v242_v35  ;;  %v608_v61 = vpop.f32.mrb[6].mxu0  ;;  %v648_v62 = vadd.f32 %v647_v60, %v242_v35  ;;  %v649_v63 = vpop.f32.mrb[6].mxu1 }
 0x11b   : > { %854 = vtanh.f32 %v605_v55  ;;  %v609_v0 = vpop.f32.mrb[7].mxu0  ;;  %v650_v2 = vpop.f32.mrb[7].mxu1 }
 0x11c   : > { %856 = vtanh.f32 %v646_v58 }
 0x11d   : > { %858 = vtanh.f32 %v607_v59 }
 0x11e   : > { %860 = vtanh.f32 %v648_v62 }
 0x125   : > { %v855_v3 = vpop.eup %854 }
 0x126   : > { %v857_v4 = vpop.eup %856 }
 0x127   : > { %v859_v5 = vpop.eup %858 }
 0x128   : > { %v861_v6 = vpop.eup %860  ;;  %v833_v7 = vpack.c.bf16 %v859_v5, %v855_v3 }
 0x129   : > { %v834_v8 = vpack.c.bf16 %v861_v6, %v857_v4 }
 0x12a   : > { %694 = vst [vmem:[%s187_s27 + $0x10] sm:$0xff] %v833_v7 }
 0x12b   : > { %695 = vst [vmem:[%s187_s27 + $0x18] sm:$0xff] %v834_v8 }
 0x12c PF: > { %s13_s12 = sadd.s32 1, %s868_s12  }
 0x12d   : > { %p10_p4 = scmp.ge.s32.totalorder %s13_s12, 10  }
 0x12f   :  { %12 = sbr.rel (!%p10_p4) target bundleno = 1 (0x1), region = 65 }

// kernel: generator_forward.11
= control target key start
LH: loop header
LB: loop body
LE: loop exit
PB: predicated region body
PF: predicated region fallthrough
CT: control target
= control target key end

     0   :  { %v3822_v22 = vmov 1966171168   ;;  %v546_v24 = vlaneseq  ;;  %vm2946_vm0 = vcmask 517120   ;;  %s4675_s1 = inlined_call_operand.vmem [shape: bf16[1,4096,64], index: 1, kind: input, shape index: {}]   ;;  %s4676_s0 = inlined_call_operand.vmem [shape: bf16[2,4096], index: 0, kind: input, shape index: {}]   ;;  %s4677_s2 = inlined_call_operand.vmem [shape: f32[1,1,64], index: 2, kind: input, shape index: {}]   ;;  %s4678_s3 = inlined_call_operand.vmem [shape: f32[1,2,64], index: 3, kind: output, shape index: {}]  }
   0x1   :  { %v3562_v0 = vld [vmem:[%s4675_s1 + $0x40] sm:$0xff]   ;;  %v3566_v4 = vld [vmem:[%s4675_s1 + $0x48] sm:$0xff]   ;;  %v3570_v8 = vld [vmem:[%s4675_s1 + $0x50] sm:$0xff]   ;;  %v544_v23 = vunpack.c.l.s4 %v3822_v22 }
   0x2   :  { %v3563_v1 = vld [vmem:[%s4675_s1 + $0xc0] sm:$0xff]   ;;  %3209 = vmatprep.subr.bf16.mxu0 %v3562_v0  ;;  %v3567_v5 = vld [vmem:[%s4675_s1 + $0xc8] sm:$0xff]   ;;  %v3571_v9 = vld [vmem:[%s4675_s1 + $0xd0] sm:$0xff]   ;;  %v547_v30 = vshrl.u32 %v546_v24, 7 }
   0x3   :  { %v3564_v2 = vld [vmem:[%s4675_s1] sm:$0xff]   ;;  %3231 = vmatprep.subr.bf16.mxu1 %v3563_v1  ;;  %v3568_v6 = vld [vmem:[%s4675_s1 + $0x8] sm:$0xff]   ;;  %v3572_v10 = vld [vmem:[%s4675_s1 + $0x10] sm:$0xff]   ;;  %v545_v29 = vunpack.c.0.s8 %v544_v23 }
   0x4   :  { %v3565_v3 = vld [vmem:[%s4675_s1 + $0x80] sm:$0xff]   ;;  %3210 = vmatpush3.bf16.msra.mxu0 %v3564_v2  ;;  %v3569_v7 = vld [vmem:[%s4675_s1 + $0x88] sm:$0xff]   ;;  %v3573_v11 = vld [vmem:[%s4675_s1 + $0x90] sm:$0xff]  }
   0x5   :  { %3232 = vmatpush3.bf16.msra.mxu1 %v3565_v3  ;;  %3211 = vmatprep.subr.bf16.mxu0 %v3566_v4  ;;  %v3574_v12 = vld [vmem:[%s4675_s1 + $0x58] sm:$0xff]   ;;  %v3578_v16 = vld [vmem:[%s4675_s1 + $0x60] sm:$0xff]   ;;  %v3582_v20 = vld [vmem:[%s4675_s1 + $0x68] sm:$0xff]   ;;  %v3933_v35 = vsub.s32 %v545_v29, %v547_v30 }
   0x6   :  { %3233 = vmatprep.subr.bf16.mxu1 %v3567_v5  ;;  %v3575_v13 = vld [vmem:[%s4675_s1 + $0xd8] sm:$0xff]   ;;  %v3579_v17 = vld [vmem:[%s4675_s1 + $0xe0] sm:$0xff]   ;;  %v3583_v21 = vld [vmem:[%s4675_s1 + $0xe8] sm:$0xff]  }
   0x7   :  { %v3576_v14 = vld [vmem:[%s4675_s1 + $0x18] sm:$0xff]   ;;  %v3580_v18 = vld [vmem:[%s4675_s1 + $0x20] sm:$0xff]   ;;  %v3584_v25 = vld [vmem:[%s4675_s1 + $0x28] sm:$0xff]  }
   0x8   :  { %3212 = vmatpush3.bf16.msra.mxu0 %v3568_v6  ;;  %v3577_v15 = vld [vmem:[%s4675_s1 + $0x98] sm:$0xff]   ;;  %v3581_v19 = vld [vmem:[%s4675_s1 + $0xa0] sm:$0xff]   ;;  %v3585_v26 = vld [vmem:[%s4675_s1 + $0xa8] sm:$0xff]  }
   0x9   :  { %3234 = vmatpush3.bf16.msra.mxu1 %v3569_v7  ;;  %3213 = vmatprep.subr.bf16.mxu0 %v3570_v8  ;;  %v3586_v27 = vld [vmem:[%s4675_s1 + $0x70] sm:$0xff]   ;;  %v3590_v33 = vld [vmem:[%s4675_s1 + $0x78] sm:$0xff]   ;;  %v15_v38 = vld [vmem:[%s4676_s0] sm:$0xff] }
   0xa   :  { %3235 = vmatprep.subr.bf16.mxu1 %v3571_v9  ;;  %v3587_v28 = vld [vmem:[%s4675_s1 + $0xf0] sm:$0xff]   ;;  %v3591_v34 = vld [vmem:[%s4675_s1 + $0xf8] sm:$0xff]   ;;  %v542_v39 = vcombine.high %v15_v38, %v15_v38  ;;  %v549_v40 = vrot.slane %v15_v38, %v3933_v35  ;;  %v3595_v41 = vld [vmem:[%s4675_s1 + $0x140] sm:$0xff]  }
   0xb   :  { %v3588_v31 = vld [vmem:[%s4675_s1 + $0x30] sm:$0xff]   ;;  %v3592_v36 = vld [vmem:[%s4675_s1 + $0x38] sm:$0xff]   ;;  %v3596_v42 = vld [vmem:[%s4675_s1 + $0x1c0] sm:$0xff]  }
   0xc   :  { %3214 = vmatpush3.bf16.msra.mxu0 %v3572_v10  ;;  %v3589_v32 = vld [vmem:[%s4675_s1 + $0xb0] sm:$0xff]   ;;  %v3593_v37 = vld [vmem:[%s4675_s1 + $0xb8] sm:$0xff]   ;;  %v557_v43 = vcombine.high %v549_v40, %v549_v40  ;;  %v565_v44 = vrot.slane %v549_v40, %v3933_v35  ;;  %v3953_v45 = vrot.slane %v542_v39, %v3933_v35  ;;  %v3597_v46 = vld [vmem:[%s4675_s1 + $0x100] sm:$0xff]  }
   0xd   :  { %3236 = vmatpush3.bf16.msra.mxu1 %v3573_v11  ;;  %3215 = vmatprep.subr.bf16.mxu0 %v3574_v12  ;;  %v3598_v48 = vld [vmem:[%s4675_s1 + $0x180] sm:$0xff]   ;;  %v3599_v51 = vld [vmem:[%s4675_s1 + $0x148] sm:$0xff]   ;;  %v3603_v58 = vld [vmem:[%s4675_s1 + $0x150] sm:$0xff]  }
   0xe   :  { %3237 = vmatprep.subr.bf16.mxu1 %v3575_v13  ;;  %v579_v47 = vrot.slane %v557_v43, %v3933_v35  ;;  %v558_v49 = vcombine.high %v3953_v45, %v3953_v45  ;;  %v587_v50 = vcombine.high %v565_v44, %v565_v44  ;;  %v3600_v53 = vld [vmem:[%s4675_s1 + $0x1c8] sm:$0xff]   ;;  %v3604_v59 = vld [vmem:[%s4675_s1 + $0x1d0] sm:$0xff]   ;;  %v3607_v62 = vld [vmem:[%s4675_s1 + $0x158] sm:$0xff]  }
   0xf   :  { %v3601_v55 = vld [vmem:[%s4675_s1 + $0x108] sm:$0xff]   ;;  %v3605_v60 = vld [vmem:[%s4675_s1 + $0x110] sm:$0xff]   ;;  %v3608_v63 = vld [vmem:[%s4675_s1 + $0x1d8] sm:$0xff]  }
  0x10   :  { %3216 = vmatpush3.bf16.msra.mxu0 %v3576_v14  ;;  %2338 = vmatprep.mubr.bf16.mxu0 %v579_v47  ;;  %v589_v52 = vcombine.high %v579_v47, %v579_v47  ;;  %v586_v54 = vrot.slane %v558_v49, %v3933_v35  ;;  %v3602_v56 = vld [vmem:[%s4675_s1 + $0x188] sm:$0xff]   ;;  %v3606_v61 = vld [vmem:[%s4675_s1 + $0x190] sm:$0xff]   ;;  %v3609_v0 = vld [vmem:[%s4675_s1 + $0x118] sm:$0xff]  }
  0x11   :  { %3238 = vmatpush3.bf16.msra.mxu1 %v3577_v15  ;;  %3217 = vmatprep.subr.bf16.mxu0 %v3578_v16  ;;  %v3610_v1 = vld [vmem:[%s4675_s1 + $0x198] sm:$0xff]   ;;  %v3611_v2 = vld [vmem:[%s4675_s1 + $0x160] sm:$0xff]   ;;  %v3615_v6 = vld [vmem:[%s4675_s1 + $0x168] sm:$0xff]  }
  0x12   :  { %3239 = vmatprep.subr.bf16.mxu1 %v3579_v17  ;;  %2378 = vmatprep.mubr.bf16.mxu1 %v589_v52  ;;  %v590_v57 = vcombine.high %v586_v54, %v586_v54  ;;  %v3612_v3 = vld [vmem:[%s4675_s1 + $0x1e0] sm:$0xff]   ;;  %v3616_v7 = vld [vmem:[%s4675_s1 + $0x1e8] sm:$0xff]   ;;  %v3619_v10 = vld [vmem:[%s4675_s1 + $0x170] sm:$0xff]  }
  0x13   :  { %v3613_v4 = vld [vmem:[%s4675_s1 + $0x120] sm:$0xff]   ;;  %v3617_v8 = vld [vmem:[%s4675_s1 + $0x128] sm:$0xff]   ;;  %v3620_v11 = vld [vmem:[%s4675_s1 + $0x1f0] sm:$0xff]  }
  0x14   :  { %3218 = vmatpush3.bf16.msra.mxu0 %v3580_v18  ;;  %v3614_v5 = vld [vmem:[%s4675_s1 + $0x1a0] sm:$0xff]   ;;  %v3618_v9 = vld [vmem:[%s4675_s1 + $0x1a8] sm:$0xff]   ;;  %v3621_v12 = vld [vmem:[%s4675_s1 + $0x130] sm:$0xff]   ;;  %v572_v18 = vrot.slane %v3953_v45, %v3933_v35 }
  0x15   :  { %3240 = vmatpush3.bf16.msra.mxu1 %v3581_v19  ;;  %3219 = vmatprep.subr.bf16.mxu0 %v3582_v20  ;;  %v3622_v13 = vld [vmem:[%s4675_s1 + $0x1b0] sm:$0xff]   ;;  %v3623_v14 = vld [vmem:[%s4675_s1 + $0x178] sm:$0xff]   ;;  %v3627_v19 = vld [vmem:[%s4675_s1 + $0x240] sm:$0xff]  }
  0x16   :  { %3241 = vmatprep.subr.bf16.mxu1 %v3583_v21  ;;  %v3624_v15 = vld [vmem:[%s4675_s1 + $0x1f8] sm:$0xff]   ;;  %v3628_v20 = vld [vmem:[%s4675_s1 + $0x2c0] sm:$0xff]   ;;  %v588_v23 = vcombine.high %v572_v18, %v572_v18  ;;  %v3631_v24 = vld [vmem:[%s4675_s1 + $0x248] sm:$0xff]  }
  0x17   :  { %v3625_v16 = vld [vmem:[%s4675_s1 + $0x138] sm:$0xff]   ;;  %v3629_v21 = vld [vmem:[%s4675_s1 + $0x200] sm:$0xff]   ;;  %v3636_v29 = vld [vmem:[%s4675_s1 + $0x2d0] sm:$0xff]  }
  0x18   :  { %3220 = vmatpush3.bf16.msra.mxu0 %v3584_v25  ;;  %v3626_v17 = vld [vmem:[%s4675_s1 + $0x1b8] sm:$0xff]   ;;  %v3630_v22 = vld [vmem:[%s4675_s1 + $0x280] sm:$0xff]   ;;  %v3632_v25 = vld [vmem:[%s4675_s1 + $0x2c8] sm:$0xff]  }
  0x19   :  { %3242 = vmatpush3.bf16.msra.mxu1 %v3585_v26  ;;  %3221 = vmatprep.subr.bf16.mxu0 %v3586_v27  ;;  %v3633_v26 = vld [vmem:[%s4675_s1 + $0x208] sm:$0xff]   ;;  %v3637_v30 = vld [vmem:[%s4675_s1 + $0x210] sm:$0xff]   ;;  %v3644_v38 = vld [vmem:[%s4675_s1 + $0x2e0] sm:$0xff]  }
  0x1a   :  { %3243 = vmatprep.subr.bf16.mxu1 %v3587_v28  ;;  %v3634_v27 = vld [vmem:[%s4675_s1 + $0x288] sm:$0xff]   ;;  %v3635_v28 = vld [vmem:[%s4675_s1 + $0x250] sm:$0xff]   ;;  %v3645_v39 = vld [vmem:[%s4675_s1 + $0x220] sm:$0xff]  }
  0x1b   :  { %v3646_v40 = vld [vmem:[%s4675_s1 + $0x2a0] sm:$0xff]   ;;  %v3649_v43 = vld [vmem:[%s4675_s1 + $0x228] sm:$0xff]   ;;  %v3651_v45 = vld [vmem:[%s4675_s1 + $0x270] sm:$0xff]  }
  0x1c   :  { %3222 = vmatpush3.bf16.msra.mxu0 %v3588_v31  ;;  %v3638_v31 = vld [vmem:[%s4675_s1 + $0x290] sm:$0xff]   ;;  %v3655_v49 = vld [vmem:[%s4675_s1 + $0x278] sm:$0xff]   ;;  %v16_v52 = vld [vmem:[%s4676_s0 + $0x8] sm:$0xff] }
  0x1d   :  { %3244 = vmatpush3.bf16.msra.mxu1 %v3589_v32  ;;  %3223 = vmatprep.subr.bf16.mxu0 %v3590_v33  ;;  %v3639_v32 = vld [vmem:[%s4675_s1 + $0x258] sm:$0xff]   ;;  %v3653_v47 = vld [vmem:[%s4675_s1 + $0x230] sm:$0xff]  }
  0x1e   :  { %3245 = vmatprep.subr.bf16.mxu1 %v3591_v34  ;;  %v3640_v33 = vld [vmem:[%s4675_s1 + $0x2d8] sm:$0xff]  }
  0x1f   :  { %v3641_v34 = vld [vmem:[%s4675_s1 + $0x218] sm:$0xff]  }
  0x20   :  { %3224 = vmatpush3.bf16.msra.mxu0 %v3592_v36  ;;  %v3642_v36 = vld [vmem:[%s4675_s1 + $0x298] sm:$0xff]  }
  0x21   :  { %3246 = vmatpush3.bf16.msra.mxu1 %v3593_v37  ;;  %3253 = vmatprep.subr.bf16.mxu0 %v3595_v41  ;;  %v3643_v37 = vld [vmem:[%s4675_s1 + $0x260] sm:$0xff]   ;;  %v3647_v41 = vld [vmem:[%s4675_s1 + $0x268] sm:$0xff]  }
  0x22   :  { %3275 = vmatprep.subr.bf16.mxu1 %v3596_v42  ;;  %v3648_v42 = vld [vmem:[%s4675_s1 + $0x2e8] sm:$0xff]  }
  0x23   :  { %2339 = vmatmul.mubr.bf16.vlgmr.msra.gmra.mrb[0].mxu0 %v565_v44  ;;  %v3650_v44 = vld [vmem:[%s4675_s1 + $0x2a8] sm:$0xff]  }
  0x24   :  { %3254 = vmatpush3.bf16.msra.mxu0 %v3597_v46  ;;  %2379 = vmatmul.mubr.bf16.vlgmr.msra.gmra.mrb[0].mxu1 %v587_v50  ;;  %v3652_v46 = vld [vmem:[%s4675_s1 + $0x2f0] sm:$0xff]   ;;  %v3656_v50 = vld [vmem:[%s4675_s1 + $0x2f8] sm:$0xff]  }
  0x25   :  { %3255 = vmatprep.subr.bf16.mxu0 %v3599_v51  ;;  %3276 = vmatpush3.bf16.msra.mxu1 %v3598_v48  ;;  %v3654_v48 = vld [vmem:[%s4675_s1 + $0x2b0] sm:$0xff]   ;;  %v3657_v51 = vld [vmem:[%s4675_s1 + $0x238] sm:$0xff]  }
  0x26   :  { %2418 = vmatprep.mubr.bf16.mxu0 %v586_v54  ;;  %3277 = vmatprep.subr.bf16.mxu1 %v3600_v53  ;;  %v3658_v53 = vld [vmem:[%s4675_s1 + $0x2b8] sm:$0xff]   ;;  %v598_v54 = vrot.slane %v16_v52, %v3933_v35 }
  0x27   :  { %2458 = vmatprep.mubr.bf16.mxu1 %v590_v57 }
  0x28   :  { %3256 = vmatpush3.bf16.msra.mxu0 %v3601_v55  ;;  %v591_v55 = vcombine.high %v16_v52, %v16_v52  ;;  %v606_v57 = vcombine.high %v598_v54, %v598_v54  ;;  %v3708_v52 = vld [vmem:[%s4675_s1 + $0x460] sm:$0xff]  }
  0x29   :  { %3257 = vmatprep.subr.bf16.mxu0 %v3603_v58  ;;  %3278 = vmatpush3.bf16.msra.mxu1 %v3602_v56  ;;  %v3659_v56 = vld [vmem:[%s4675_s1 + $0x340] sm:$0xff]   ;;  %v614_v58 = vrot.slane %v598_v54, %v3933_v35 }
  0x2a   :  { %3279 = vmatprep.subr.bf16.mxu1 %v3604_v59  ;;  %v3660_v59 = vld [vmem:[%s4675_s1 + $0x3c0] sm:$0xff]  }
  0x2b   :  { %v3710_v54 = vld [vmem:[%s4675_s1 + $0x420] sm:$0xff]  }
  0x2c   :  { %3258 = vmatpush3.bf16.msra.mxu0 %v3605_v60  ;;  %v4159_v60 = vrot.slane %v591_v55, %v3933_v35  ;;  %v3711_v55 = vld [vmem:[%s4675_s1 + $0x4a0] sm:$0xff]  }
  0x2d   :  { %3259 = vmatprep.subr.bf16.mxu0 %v3607_v62  ;;  %3280 = vmatpush3.bf16.msra.mxu1 %v3606_v61  ;;  %v3661_v61 = vld [vmem:[%s4675_s1 + $0x300] sm:$0xff]   ;;  %v628_v62 = vrot.slane %v606_v57, %v3933_v35  ;;  %v3713_v57 = vld [vmem:[%s4675_s1 + $0x4e8] sm:$0xff]  }
  0x2e   :  { %3281 = vmatprep.subr.bf16.mxu1 %v3608_v63  ;;  %v3662_v63 = vld [vmem:[%s4675_s1 + $0x380] sm:$0xff]  }
  0x30   :  { %3260 = vmatpush3.bf16.msra.mxu0 %v3609_v0  ;;  %v607_v0 = vcombine.high %v4159_v60, %v4159_v60 }
  0x31   :  { %3261 = vmatprep.subr.bf16.mxu0 %v3611_v2  ;;  %3282 = vmatpush3.bf16.msra.mxu1 %v3610_v1  ;;  %v636_v1 = vcombine.high %v614_v58, %v614_v58  ;;  %v3663_v2 = vld [vmem:[%s4675_s1 + $0x348] sm:$0xff]  }
  0x32   :  { %3283 = vmatprep.subr.bf16.mxu1 %v3612_v3  ;;  %v638_v3 = vcombine.high %v628_v62, %v628_v62 }
  0x34   :  { %3262 = vmatpush3.bf16.msra.mxu0 %v3613_v4  ;;  %v3664_v4 = vld [vmem:[%s4675_s1 + $0x3c8] sm:$0xff]  }
  0x35   :  { %3263 = vmatprep.subr.bf16.mxu0 %v3615_v6  ;;  %3284 = vmatpush3.bf16.msra.mxu1 %v3614_v5  ;;  %v635_v5 = vrot.slane %v607_v0, %v3933_v35  ;;  %v3665_v6 = vld [vmem:[%s4675_s1 + $0x308] sm:$0xff]   ;;  %v3720_v0 = vld [vmem:[%s4675_s1 + $0x478] sm:$0xff]  }
  0x36   :  { %3285 = vmatprep.subr.bf16.mxu1 %v3616_v7  ;;  %v3666_v7 = vld [vmem:[%s4675_s1 + $0x388] sm:$0xff]  }
  0x38   :  { %3264 = vmatpush3.bf16.msra.mxu0 %v3617_v8  ;;  %v639_v8 = vcombine.high %v635_v5, %v635_v5 }
  0x39   :  { %3265 = vmatprep.subr.bf16.mxu0 %v3619_v10  ;;  %3286 = vmatpush3.bf16.msra.mxu1 %v3618_v9  ;;  %v3667_v9 = vld [vmem:[%s4675_s1 + $0x350] sm:$0xff]  }
  0x3a   :  { %3287 = vmatprep.subr.bf16.mxu1 %v3620_v11  ;;  %v3668_v10 = vld [vmem:[%s4675_s1 + $0x3d0] sm:$0xff]  }
  0x3b   :  { %v3669_v11 = vld [vmem:[%s4675_s1 + $0x310] sm:$0xff]  }
  0x3c   :  { %3266 = vmatpush3.bf16.msra.mxu0 %v3621_v12  ;;  %v3670_v12 = vld [vmem:[%s4675_s1 + $0x390] sm:$0xff]  }
  0x3d   :  { %3267 = vmatprep.subr.bf16.mxu0 %v3623_v14  ;;  %3288 = vmatpush3.bf16.msra.mxu1 %v3622_v13  ;;  %v3671_v13 = vld [vmem:[%s4675_s1 + $0x358] sm:$0xff]  }
  0x3e   :  { %3289 = vmatprep.subr.bf16.mxu1 %v3624_v15  ;;  %v3672_v14 = vld [vmem:[%s4675_s1 + $0x3d8] sm:$0xff]  }
  0x3f   :  { %v3673_v15 = vld [vmem:[%s4675_s1 + $0x318] sm:$0xff]  }
  0x40   :  { %3268 = vmatpush3.bf16.msra.mxu0 %v3625_v16  ;;  %v3674_v16 = vld [vmem:[%s4675_s1 + $0x398] sm:$0xff]  }
  0x41   :  { %3297 = vmatprep.subr.bf16.mxu0 %v3627_v19  ;;  %3290 = vmatpush3.bf16.msra.mxu1 %v3626_v17  ;;  %v3675_v17 = vld [vmem:[%s4675_s1 + $0x360] sm:$0xff]  }
  0x42   :  { %3319 = vmatprep.subr.bf16.mxu1 %v3628_v20  ;;  %v3677_v19 = vld [vmem:[%s4675_s1 + $0x320] sm:$0xff]  }
  0x43   :  { %2419 = vmatmul.mubr.bf16.vlgmr.msra.gmra.mrb[4].mxu0 %v572_v18  ;;  %v3676_v18 = vld [vmem:[%s4675_s1 + $0x3e0] sm:$0xff]  }
  0x44   :  { %3298 = vmatpush3.bf16.msra.mxu0 %v3629_v21  ;;  %2459 = vmatmul.mubr.bf16.vlgmr.msra.gmra.mrb[4].mxu1 %v588_v23  ;;  %v3678_v20 = vld [vmem:[%s4675_s1 + $0x3a0] sm:$0xff]   ;;  %v3679_v21 = vld [vmem:[%s4675_s1 + $0x368] sm:$0xff]  }
  0x45   :  { %3299 = vmatprep.subr.bf16.mxu0 %v3631_v24  ;;  %3320 = vmatpush3.bf16.msra.mxu1 %v3630_v22  ;;  %v3680_v22 = vld [vmem:[%s4675_s1 + $0x3e8] sm:$0xff]  }
  0x46   :  { %3321 = vmatprep.subr.bf16.mxu1 %v3632_v25  ;;  %2498 = vmatprep.mubr.bf16.mxu0 %v628_v62  ;;  %v3681_v23 = vld [vmem:[%s4675_s1 + $0x328] sm:$0xff]   ;;  %v3683_v25 = vld [vmem:[%s4675_s1 + $0x370] sm:$0xff]  }
  0x47   :  { %2538 = vmatprep.mubr.bf16.mxu1 %v638_v3  ;;  %v3682_v24 = vld [vmem:[%s4675_s1 + $0x3a8] sm:$0xff]   ;;  %v3718_v62 = vld [vmem:[%s4675_s1 + $0x430] sm:$0xff]  }
  0x48   :  { %3300 = vmatpush3.bf16.msra.mxu0 %v3633_v26  ;;  %v3684_v26 = vld [vmem:[%s4675_s1 + $0x3f0] sm:$0xff]  }
  0x49   :  { %3301 = vmatprep.subr.bf16.mxu0 %v3635_v28  ;;  %3322 = vmatpush3.bf16.msra.mxu1 %v3634_v27  ;;  %v3685_v27 = vld [vmem:[%s4675_s1 + $0x330] sm:$0xff]  }
  0x4a   :  { %3323 = vmatprep.subr.bf16.mxu1 %v3636_v29  ;;  %v3686_v28 = vld [vmem:[%s4675_s1 + $0x3b0] sm:$0xff]   ;;  %v3687_v29 = vld [vmem:[%s4675_s1 + $0x378] sm:$0xff]  }
  0x4b   :  { %v17_v3 = vld [vmem:[%s4676_s0 + $0x10] sm:$0xff] }
  0x4c   :  { %3302 = vmatpush3.bf16.msra.mxu0 %v3637_v30  ;;  %v3688_v30 = vld [vmem:[%s4675_s1 + $0x3f8] sm:$0xff]  }
  0x4d   :  { %3303 = vmatprep.subr.bf16.mxu0 %v3639_v32  ;;  %3324 = vmatpush3.bf16.msra.mxu1 %v3638_v31  ;;  %v3689_v31 = vld [vmem:[%s4675_s1 + $0x338] sm:$0xff]  }
  0x4e   :  { %3325 = vmatprep.subr.bf16.mxu1 %v3640_v33  ;;  %v3690_v32 = vld [vmem:[%s4675_s1 + $0x3b8] sm:$0xff]   ;;  %v621_v33 = vrot.slane %v4159_v60, %v3933_v35  ;;  %v3716_v60 = vld [vmem:[%s4675_s1 + $0x470] sm:$0xff]  }
  0x50   :  { %3304 = vmatpush3.bf16.msra.mxu0 %v3641_v34  ;;  %v3692_v34 = vld [vmem:[%s4675_s1 + $0x440] sm:$0xff]  }
  0x51   :  { %3305 = vmatprep.subr.bf16.mxu0 %v3643_v37  ;;  %3326 = vmatpush3.bf16.msra.mxu1 %v3642_v36  ;;  %v3693_v36 = vld [vmem:[%s4675_s1 + $0x4c0] sm:$0xff]  }
  0x52   :  { %3327 = vmatprep.subr.bf16.mxu1 %v3644_v38  ;;  %v3694_v37 = vld [vmem:[%s4675_s1 + $0x400] sm:$0xff]  }
  0x53   :  { %v3695_v38 = vld [vmem:[%s4675_s1 + $0x480] sm:$0xff]  }
  0x54   :  { %3306 = vmatpush3.bf16.msra.mxu0 %v3645_v39  ;;  %v637_v39 = vcombine.high %v621_v33, %v621_v33 }
  0x55   :  { %3307 = vmatprep.subr.bf16.mxu0 %v3647_v41  ;;  %3328 = vmatpush3.bf16.msra.mxu1 %v3646_v40  ;;  %v3696_v40 = vld [vmem:[%s4675_s1 + $0x448] sm:$0xff]  }
  0x56   :  { %3329 = vmatprep.subr.bf16.mxu1 %v3648_v42  ;;  %v3697_v41 = vld [vmem:[%s4675_s1 + $0x4c8] sm:$0xff]  }
  0x57   :  { %v3698_v42 = vld [vmem:[%s4675_s1 + $0x408] sm:$0xff]  }
  0x58   :  { %3308 = vmatpush3.bf16.msra.mxu0 %v3649_v43  ;;  %v3699_v43 = vld [vmem:[%s4675_s1 + $0x488] sm:$0xff]  }
  0x59   :  { %3309 = vmatprep.subr.bf16.mxu0 %v3651_v45  ;;  %3330 = vmatpush3.bf16.msra.mxu1 %v3650_v44  ;;  %v3700_v44 = vld [vmem:[%s4675_s1 + $0x450] sm:$0xff]  }
  0x5a   :  { %3331 = vmatprep.subr.bf16.mxu1 %v3652_v46  ;;  %v3701_v45 = vld [vmem:[%s4675_s1 + $0x4d0] sm:$0xff]  }
  0x5b   :  { %v3702_v46 = vld [vmem:[%s4675_s1 + $0x410] sm:$0xff]  }
  0x5c   :  { %3310 = vmatpush3.bf16.msra.mxu0 %v3653_v47  ;;  %v3703_v47 = vld [vmem:[%s4675_s1 + $0x490] sm:$0xff]  }
  0x5d   :  { %3311 = vmatprep.subr.bf16.mxu0 %v3655_v49  ;;  %3332 = vmatpush3.bf16.msra.mxu1 %v3654_v48  ;;  %v3704_v48 = vld [vmem:[%s4675_s1 + $0x458] sm:$0xff]  }
  0x5e   :  { %3333 = vmatprep.subr.bf16.mxu1 %v3656_v50  ;;  %v3705_v49 = vld [vmem:[%s4675_s1 + $0x4d8] sm:$0xff]  }
  0x5f   :  { %v3706_v50 = vld [vmem:[%s4675_s1 + $0x418] sm:$0xff]  }
  0x60   :  { %3312 = vmatpush3.bf16.msra.mxu0 %v3657_v51  ;;  %v3707_v51 = vld [vmem:[%s4675_s1 + $0x498] sm:$0xff]  }
  0x61   :  { %3341 = vmatprep.subr.bf16.mxu0 %v3659_v56  ;;  %3334 = vmatpush3.bf16.msra.mxu1 %v3658_v53  ;;  %v3709_v53 = vld [vmem:[%s4675_s1 + $0x4e0] sm:$0xff]   ;;  %v3712_v56 = vld [vmem:[%s4675_s1 + $0x468] sm:$0xff]  }
  0x62   :  { %3363 = vmatprep.subr.bf16.mxu1 %v3660_v59  ;;  %v3715_v59 = vld [vmem:[%s4675_s1 + $0x4a8] sm:$0xff]  }
  0x63   :  { %2499 = vmatmul.mubr.bf16.vlgmr.msra.gmra.mrb[8].mxu0 %v614_v58  ;;  %v3714_v58 = vld [vmem:[%s4675_s1 + $0x428] sm:$0xff]  }
  0x64   :  { %3342 = vmatpush3.bf16.msra.mxu0 %v3661_v61  ;;  %2539 = vmatmul.mubr.bf16.vlgmr.msra.gmra.mrb[8].mxu1 %v636_v1  ;;  %v3717_v61 = vld [vmem:[%s4675_s1 + $0x4f0] sm:$0xff]   ;;  %v3721_v1 = vld [vmem:[%s4675_s1 + $0x4f8] sm:$0xff]  }
  0x65   :  { %3343 = vmatprep.subr.bf16.mxu0 %v3663_v2  ;;  %3364 = vmatpush3.bf16.msra.mxu1 %v3662_v63  ;;  %v3719_v63 = vld [vmem:[%s4675_s1 + $0x4b0] sm:$0xff]   ;;  %v3722_v2 = vld [vmem:[%s4675_s1 + $0x438] sm:$0xff]  }
  0x66   :  { %2578 = vmatprep.mubr.bf16.mxu0 %v635_v5  ;;  %3365 = vmatprep.subr.bf16.mxu1 %v3664_v4  ;;  %v3723_v4 = vld [vmem:[%s4675_s1 + $0x4b8] sm:$0xff]   ;;  %v647_v5 = vrot.slane %v17_v3, %v3933_v35 }
  0x67   :  { %2618 = vmatprep.mubr.bf16.mxu1 %v639_v8 }
  0x68   :  { %3344 = vmatpush3.bf16.msra.mxu0 %v3665_v6  ;;  %v640_v6 = vcombine.high %v17_v3, %v17_v3  ;;  %v655_v8 = vcombine.high %v647_v5, %v647_v5  ;;  %v3773_v3 = vld [vmem:[%s4675_s1 + $0x660] sm:$0xff]  }
  0x69   :  { %3345 = vmatprep.subr.bf16.mxu0 %v3667_v9  ;;  %3366 = vmatpush3.bf16.msra.mxu1 %v3666_v7  ;;  %v3724_v7 = vld [vmem:[%s4675_s1 + $0x540] sm:$0xff]   ;;  %v663_v9 = vrot.slane %v647_v5, %v3933_v35 }
  0x6a   :  { %3367 = vmatprep.subr.bf16.mxu1 %v3668_v10  ;;  %v3725_v10 = vld [vmem:[%s4675_s1 + $0x5c0] sm:$0xff]  }
  0x6b   :  { %v3775_v5 = vld [vmem:[%s4675_s1 + $0x620] sm:$0xff]  }
  0x6c   :  { %3346 = vmatpush3.bf16.msra.mxu0 %v3669_v11  ;;  %v4365_v11 = vrot.slane %v640_v6, %v3933_v35  ;;  %v3776_v6 = vld [vmem:[%s4675_s1 + $0x6a0] sm:$0xff]  }
  0x6d   :  { %3347 = vmatprep.subr.bf16.mxu0 %v3671_v13  ;;  %3368 = vmatpush3.bf16.msra.mxu1 %v3670_v12  ;;  %v3726_v12 = vld [vmem:[%s4675_s1 + $0x500] sm:$0xff]   ;;  %v677_v13 = vrot.slane %v655_v8, %v3933_v35  ;;  %v3778_v8 = vld [vmem:[%s4675_s1 + $0x6e8] sm:$0xff]  }
  0x6e   :  { %3369 = vmatprep.subr.bf16.mxu1 %v3672_v14  ;;  %v3727_v14 = vld [vmem:[%s4675_s1 + $0x580] sm:$0xff]  }
  0x70   :  { %3348 = vmatpush3.bf16.msra.mxu0 %v3673_v15  ;;  %v656_v15 = vcombine.high %v4365_v11, %v4365_v11 }
  0x71   :  { %3349 = vmatprep.subr.bf16.mxu0 %v3675_v17  ;;  %3370 = vmatpush3.bf16.msra.mxu1 %v3674_v16  ;;  %v685_v16 = vcombine.high %v663_v9, %v663_v9  ;;  %v3728_v17 = vld [vmem:[%s4675_s1 + $0x548] sm:$0xff]  }
  0x72   :  { %3371 = vmatprep.subr.bf16.mxu1 %v3676_v18  ;;  %v687_v18 = vcombine.high %v677_v13, %v677_v13 }
  0x74   :  { %3350 = vmatpush3.bf16.msra.mxu0 %v3677_v19  ;;  %v3729_v19 = vld [vmem:[%s4675_s1 + $0x5c8] sm:$0xff]  }
  0x75   :  { %3351 = vmatprep.subr.bf16.mxu0 %v3679_v21  ;;  %3372 = vmatpush3.bf16.msra.mxu1 %v3678_v20  ;;  %v684_v20 = vrot.slane %v656_v15, %v3933_v35  ;;  %v3730_v21 = vld [vmem:[%s4675_s1 + $0x508] sm:$0xff]   ;;  %v3785_v15 = vld [vmem:[%s4675_s1 + $0x678] sm:$0xff]  }
  0x76   :  { %3373 = vmatprep.subr.bf16.mxu1 %v3680_v22  ;;  %v3731_v22 = vld [vmem:[%s4675_s1 + $0x588] sm:$0xff]  }
  0x78   :  { %3352 = vmatpush3.bf16.msra.mxu0 %v3681_v23  ;;  %v688_v23 = vcombine.high %v684_v20, %v684_v20 }
  0x79   :  { %3353 = vmatprep.subr.bf16.mxu0 %v3683_v25  ;;  %3374 = vmatpush3.bf16.msra.mxu1 %v3682_v24  ;;  %v3732_v24 = vld [vmem:[%s4675_s1 + $0x550] sm:$0xff]  }
  0x7a   :  { %3375 = vmatprep.subr.bf16.mxu1 %v3684_v26  ;;  %v3733_v25 = vld [vmem:[%s4675_s1 + $0x5d0] sm:$0xff]  }
  0x7b   :  { %v3734_v26 = vld [vmem:[%s4675_s1 + $0x510] sm:$0xff]  }
  0x7c   :  { %3354 = vmatpush3.bf16.msra.mxu0 %v3685_v27  ;;  %v3735_v27 = vld [vmem:[%s4675_s1 + $0x590] sm:$0xff]  }
  0x7d   :  { %3355 = vmatprep.subr.bf16.mxu0 %v3687_v29  ;;  %3376 = vmatpush3.bf16.msra.mxu1 %v3686_v28  ;;  %v3736_v28 = vld [vmem:[%s4675_s1 + $0x558] sm:$0xff]  }
  0x7e   :  { %3377 = vmatprep.subr.bf16.mxu1 %v3688_v30  ;;  %v3737_v29 = vld [vmem:[%s4675_s1 + $0x5d8] sm:$0xff]  }
  0x7f   :  { %v3738_v30 = vld [vmem:[%s4675_s1 + $0x518] sm:$0xff]  }
  0x80   :  { %3356 = vmatpush3.bf16.msra.mxu0 %v3689_v31  ;;  %v3739_v31 = vld [vmem:[%s4675_s1 + $0x598] sm:$0xff]  }
  0x81   :  { %3385 = vmatprep.subr.bf16.mxu0 %v3692_v34  ;;  %3378 = vmatpush3.bf16.msra.mxu1 %v3690_v32  ;;  %v3740_v32 = vld [vmem:[%s4675_s1 + $0x560] sm:$0xff]  }
  0x82   :  { %3407 = vmatprep.subr.bf16.mxu1 %v3693_v36  ;;  %v3742_v34 = vld [vmem:[%s4675_s1 + $0x520] sm:$0xff]  }
  0x83   :  { %2579 = vmatmul.mubr.bf16.vlgmr.msra.gmra.mrb[12].mxu0 %v621_v33  ;;  %v3741_v33 = vld [vmem:[%s4675_s1 + $0x5e0] sm:$0xff]  }
  0x84   :  { %3386 = vmatpush3.bf16.msra.mxu0 %v3694_v37  ;;  %2619 = vmatmul.mubr.bf16.vlgmr.msra.gmra.mrb[12].mxu1 %v637_v39  ;;  %v3743_v36 = vld [vmem:[%s4675_s1 + $0x5a0] sm:$0xff]   ;;  %v3744_v37 = vld [vmem:[%s4675_s1 + $0x568] sm:$0xff]  }
  0x85   :  { %3387 = vmatprep.subr.bf16.mxu0 %v3696_v40  ;;  %3408 = vmatpush3.bf16.msra.mxu1 %v3695_v38  ;;  %v3745_v38 = vld [vmem:[%s4675_s1 + $0x5e8] sm:$0xff]  }
  0x86   :  { %3409 = vmatprep.subr.bf16.mxu1 %v3697_v41  ;;  %2658 = vmatprep.mubr.bf16.mxu0 %v677_v13  ;;  %v3746_v39 = vld [vmem:[%s4675_s1 + $0x528] sm:$0xff]   ;;  %v3748_v41 = vld [vmem:[%s4675_s1 + $0x570] sm:$0xff]  }
  0x87   :  { %2698 = vmatprep.mubr.bf16.mxu1 %v687_v18  ;;  %v3747_v40 = vld [vmem:[%s4675_s1 + $0x5a8] sm:$0xff]   ;;  %v3783_v13 = vld [vmem:[%s4675_s1 + $0x630] sm:$0xff]   ;;  %v18_v18 = vld [vmem:[%s4676_s0 + $0x18] sm:$0xff] }
  0x88   :  { %3388 = vmatpush3.bf16.msra.mxu0 %v3698_v42  ;;  %v3749_v42 = vld [vmem:[%s4675_s1 + $0x5f0] sm:$0xff]  }
  0x89   :  { %3389 = vmatprep.subr.bf16.mxu0 %v3700_v44  ;;  %3410 = vmatpush3.bf16.msra.mxu1 %v3699_v43  ;;  %v3750_v43 = vld [vmem:[%s4675_s1 + $0x530] sm:$0xff]  }
  0x8a   :  { %3411 = vmatprep.subr.bf16.mxu1 %v3701_v45  ;;  %v3751_v44 = vld [vmem:[%s4675_s1 + $0x5b0] sm:$0xff]   ;;  %v3752_v45 = vld [vmem:[%s4675_s1 + $0x578] sm:$0xff]  }
  0x8c   :  { %3390 = vmatpush3.bf16.msra.mxu0 %v3702_v46  ;;  %v3753_v46 = vld [vmem:[%s4675_s1 + $0x5f8] sm:$0xff]  }
  0x8d   :  { %3391 = vmatprep.subr.bf16.mxu0 %v3704_v48  ;;  %3412 = vmatpush3.bf16.msra.mxu1 %v3703_v47  ;;  %v3754_v47 = vld [vmem:[%s4675_s1 + $0x538] sm:$0xff]  }
  0x8e   :  { %3413 = vmatprep.subr.bf16.mxu1 %v3705_v49  ;;  %v3755_v48 = vld [vmem:[%s4675_s1 + $0x5b8] sm:$0xff]   ;;  %v670_v49 = vrot.slane %v4365_v11, %v3933_v35  ;;  %v3781_v11 = vld [vmem:[%s4675_s1 + $0x670] sm:$0xff]  }
  0x90   :  { %3392 = vmatpush3.bf16.msra.mxu0 %v3706_v50  ;;  %v3757_v50 = vld [vmem:[%s4675_s1 + $0x640] sm:$0xff]  }
  0x91   :  { %3393 = vmatprep.subr.bf16.mxu0 %v3708_v52  ;;  %3414 = vmatpush3.bf16.msra.mxu1 %v3707_v51  ;;  %v3758_v51 = vld [vmem:[%s4675_s1 + $0x6c0] sm:$0xff]  }
  0x92   :  { %3415 = vmatprep.subr.bf16.mxu1 %v3709_v53  ;;  %v3759_v52 = vld [vmem:[%s4675_s1 + $0x600] sm:$0xff]  }
  0x93   :  { %v3760_v53 = vld [vmem:[%s4675_s1 + $0x680] sm:$0xff]  }
  0x94   :  { %3394 = vmatpush3.bf16.msra.mxu0 %v3710_v54  ;;  %v686_v54 = vcombine.high %v670_v49, %v670_v49 }
  0x95   :  { %3395 = vmatprep.subr.bf16.mxu0 %v3712_v56  ;;  %3416 = vmatpush3.bf16.msra.mxu1 %v3711_v55  ;;  %v3761_v55 = vld [vmem:[%s4675_s1 + $0x648] sm:$0xff]  }
  0x96   :  { %3417 = vmatprep.subr.bf16.mxu1 %v3713_v57  ;;  %v3762_v56 = vld [vmem:[%s4675_s1 + $0x6c8] sm:$0xff]  }
  0x97   :  { %v3763_v57 = vld [vmem:[%s4675_s1 + $0x608] sm:$0xff]  }
  0x98   :  { %3396 = vmatpush3.bf16.msra.mxu0 %v3714_v58  ;;  %v3764_v58 = vld [vmem:[%s4675_s1 + $0x688] sm:$0xff]  }
  0x99   :  { %3397 = vmatprep.subr.bf16.mxu0 %v3716_v60  ;;  %3418 = vmatpush3.bf16.msra.mxu1 %v3715_v59  ;;  %v3765_v59 = vld [vmem:[%s4675_s1 + $0x650] sm:$0xff]  }
  0x9a   :  { %3419 = vmatprep.subr.bf16.mxu1 %v3717_v61  ;;  %v3766_v60 = vld [vmem:[%s4675_s1 + $0x6d0] sm:$0xff]  }
  0x9b   :  { %v3767_v61 = vld [vmem:[%s4675_s1 + $0x610] sm:$0xff]  }
  0x9c   :  { %3398 = vmatpush3.bf16.msra.mxu0 %v3718_v62  ;;  %v3768_v62 = vld [vmem:[%s4675_s1 + $0x690] sm:$0xff]  }
  0x9d   :  { %3399 = vmatprep.subr.bf16.mxu0 %v3720_v0  ;;  %3420 = vmatpush3.bf16.msra.mxu1 %v3719_v63  ;;  %v3769_v63 = vld [vmem:[%s4675_s1 + $0x658] sm:$0xff]  }
  0x9e   :  { %3421 = vmatprep.subr.bf16.mxu1 %v3721_v1  ;;  %v3770_v0 = vld [vmem:[%s4675_s1 + $0x6d8] sm:$0xff]  }
  0x9f   :  { %v3771_v1 = vld [vmem:[%s4675_s1 + $0x618] sm:$0xff]  }
  0xa0   :  { %3400 = vmatpush3.bf16.msra.mxu0 %v3722_v2  ;;  %v3772_v2 = vld [vmem:[%s4675_s1 + $0x698] sm:$0xff]  }
  0xa1   :  { %3429 = vmatprep.subr.bf16.mxu0 %v3724_v7  ;;  %3422 = vmatpush3.bf16.msra.mxu1 %v3723_v4  ;;  %v3774_v4 = vld [vmem:[%s4675_s1 + $0x6e0] sm:$0xff]   ;;  %v3777_v7 = vld [vmem:[%s4675_s1 + $0x668] sm:$0xff]  }
  0xa2   :  { %3451 = vmatprep.subr.bf16.mxu1 %v3725_v10  ;;  %v3780_v10 = vld [vmem:[%s4675_s1 + $0x6a8] sm:$0xff]  }
  0xa3   :  { %2659 = vmatmul.mubr.bf16.vlgmr.msra.gmra.mrb[16].mxu0 %v663_v9  ;;  %v3779_v9 = vld [vmem:[%s4675_s1 + $0x628] sm:$0xff]  }
  0xa4   :  { %3430 = vmatpush3.bf16.msra.mxu0 %v3726_v12  ;;  %2699 = vmatmul.mubr.bf16.vlgmr.msra.gmra.mrb[16].mxu1 %v685_v16  ;;  %v3782_v12 = vld [vmem:[%s4675_s1 + $0x6f0] sm:$0xff]   ;;  %v3786_v16 = vld [vmem:[%s4675_s1 + $0x6f8] sm:$0xff]  }
  0xa5   :  { %3431 = vmatprep.subr.bf16.mxu0 %v3728_v17  ;;  %3452 = vmatpush3.bf16.msra.mxu1 %v3727_v14  ;;  %v3784_v14 = vld [vmem:[%s4675_s1 + $0x6b0] sm:$0xff]   ;;  %v3787_v17 = vld [vmem:[%s4675_s1 + $0x638] sm:$0xff]  }
  0xa6   :  { %2738 = vmatprep.mubr.bf16.mxu0 %v684_v20  ;;  %3453 = vmatprep.subr.bf16.mxu1 %v3729_v19  ;;  %v696_v19 = vrot.slane %v18_v18, %v3933_v35  ;;  %v3789_v20 = vld [vmem:[%s4675_s1 + $0x740] sm:$0xff]  }
  0xa7   :  { %2778 = vmatprep.mubr.bf16.mxu1 %v688_v23 }
  0xa8   :  { %3432 = vmatpush3.bf16.msra.mxu0 %v3730_v21  ;;  %v689_v21 = vcombine.high %v18_v18, %v18_v18  ;;  %v704_v23 = vcombine.high %v696_v19, %v696_v19 }
  0xa9   :  { %3433 = vmatprep.subr.bf16.mxu0 %v3732_v24  ;;  %3454 = vmatpush3.bf16.msra.mxu1 %v3731_v22  ;;  %v3788_v22 = vld [vmem:[%s4675_s1 + $0x6b8] sm:$0xff]   ;;  %v712_v24 = vrot.slane %v696_v19, %v3933_v35 }
  0xaa   :  { %3455 = vmatprep.subr.bf16.mxu1 %v3733_v25  ;;  %v3790_v25 = vld [vmem:[%s4675_s1 + $0x7c0] sm:$0xff]  }
  0xac   :  { %3434 = vmatpush3.bf16.msra.mxu0 %v3734_v26  ;;  %v4571_v26 = vrot.slane %v689_v21, %v3933_v35 }
  0xad   :  { %3435 = vmatprep.subr.bf16.mxu0 %v3736_v28  ;;  %3456 = vmatpush3.bf16.msra.mxu1 %v3735_v27  ;;  %v726_v27 = vrot.slane %v704_v23, %v3933_v35  ;;  %v3791_v28 = vld [vmem:[%s4675_s1 + $0x700] sm:$0xff]  }
  0xae   :  { %3457 = vmatprep.subr.bf16.mxu1 %v3737_v29  ;;  %v705_v29 = vcombine.high %v4571_v26, %v4571_v26 }
  0xb0   :  { %3436 = vmatpush3.bf16.msra.mxu0 %v3738_v30  ;;  %v734_v30 = vcombine.high %v712_v24, %v712_v24 }
  0xb1   :  { %3437 = vmatprep.subr.bf16.mxu0 %v3740_v32  ;;  %3458 = vmatpush3.bf16.msra.mxu1 %v3739_v31  ;;  %v3793_v31 = vld [vmem:[%s4675_s1 + $0x748] sm:$0xff]   ;;  %v736_v32 = vcombine.high %v726_v27, %v726_v27 }
  0xb2   :  { %3459 = vmatprep.subr.bf16.mxu1 %v3741_v33  ;;  %v3792_v33 = vld [vmem:[%s4675_s1 + $0x780] sm:$0xff]  }
  0xb4   :  { %3438 = vmatpush3.bf16.msra.mxu0 %v3742_v34  ;;  %v733_v34 = vrot.slane %v705_v29, %v3933_v35 }
  0xb5   :  { %3439 = vmatprep.subr.bf16.mxu0 %v3744_v37  ;;  %3460 = vmatpush3.bf16.msra.mxu1 %v3743_v36  ;;  %v3794_v36 = vld [vmem:[%s4675_s1 + $0x7c8] sm:$0xff]  }
  0xb6   :  { %3461 = vmatprep.subr.bf16.mxu1 %v3745_v38  ;;  %v3795_v37 = vld [vmem:[%s4675_s1 + $0x708] sm:$0xff]   ;;  %v737_v38 = vcombine.high %v733_v34, %v733_v34 }
  0xb8   :  { %3440 = vmatpush3.bf16.msra.mxu0 %v3746_v39  ;;  %v3797_v39 = vld [vmem:[%s4675_s1 + $0x750] sm:$0xff]  }
  0xb9   :  { %3441 = vmatprep.subr.bf16.mxu0 %v3748_v41  ;;  %3462 = vmatpush3.bf16.msra.mxu1 %v3747_v40  ;;  %v3796_v40 = vld [vmem:[%s4675_s1 + $0x788] sm:$0xff]   ;;  %v3798_v41 = vld [vmem:[%s4675_s1 + $0x7d0] sm:$0xff]  }
  0xba   :  { %3463 = vmatprep.subr.bf16.mxu1 %v3749_v42  ;;  %v3799_v42 = vld [vmem:[%s4675_s1 + $0x710] sm:$0xff]  }
  0xbc   :  { %3442 = vmatpush3.bf16.msra.mxu0 %v3750_v43  ;;  %v3801_v43 = vld [vmem:[%s4675_s1 + $0x758] sm:$0xff]  }
  0xbd   :  { %3443 = vmatprep.subr.bf16.mxu0 %v3752_v45  ;;  %3464 = vmatpush3.bf16.msra.mxu1 %v3751_v44  ;;  %v3800_v44 = vld [vmem:[%s4675_s1 + $0x790] sm:$0xff]   ;;  %v3802_v45 = vld [vmem:[%s4675_s1 + $0x7d8] sm:$0xff]  }
  0xbe   :  { %3465 = vmatprep.subr.bf16.mxu1 %v3753_v46  ;;  %v3803_v46 = vld [vmem:[%s4675_s1 + $0x718] sm:$0xff]  }
  0xc0   :  { %3444 = vmatpush3.bf16.msra.mxu0 %v3754_v47  ;;  %v3805_v47 = vld [vmem:[%s4675_s1 + $0x760] sm:$0xff]  }
  0xc1   :  { %3473 = vmatprep.subr.bf16.mxu0 %v3757_v50  ;;  %3466 = vmatpush3.bf16.msra.mxu1 %v3755_v48  ;;  %v3804_v48 = vld [vmem:[%s4675_s1 + $0x798] sm:$0xff]   ;;  %v3807_v50 = vld [vmem:[%s4675_s1 + $0x720] sm:$0xff]  }
  0xc2   :  { %3495 = vmatprep.subr.bf16.mxu1 %v3758_v51  ;;  %v3809_v51 = vld [vmem:[%s4675_s1 + $0x768] sm:$0xff]  }
  0xc3   :  { %2739 = vmatmul.mubr.bf16.vlgmr.msra.gmra.mrb[20].mxu0 %v670_v49  ;;  %v3806_v49 = vld [vmem:[%s4675_s1 + $0x7e0] sm:$0xff]  }
  0xc4   :  { %3474 = vmatpush3.bf16.msra.mxu0 %v3759_v52  ;;  %2779 = vmatmul.mubr.bf16.vlgmr.msra.gmra.mrb[20].mxu1 %v686_v54  ;;  %v3808_v52 = vld [vmem:[%s4675_s1 + $0x7a0] sm:$0xff]  }
  0xc5   :  { %3475 = vmatprep.subr.bf16.mxu0 %v3761_v55  ;;  %3496 = vmatpush3.bf16.msra.mxu1 %v3760_v53  ;;  %v3810_v53 = vld [vmem:[%s4675_s1 + $0x7e8] sm:$0xff]   ;;  %v2952_v54 = vld [vmem:[%s4677_s2] ss:$0 sm:$0xff] }
  0xc6   :  { %3497 = vmatprep.subr.bf16.mxu1 %v3762_v56  ;;  %2818 = vmatprep.mubr.bf16.mxu0 %v726_v27  ;;  %v3811_v55 = vld [vmem:[%s4675_s1 + $0x728] sm:$0xff]  }
  0xc7   :  { %2858 = vmatprep.mubr.bf16.mxu1 %v736_v32 }
  0xc8   :  { %3476 = vmatpush3.bf16.msra.mxu0 %v3763_v57  ;;  %v3813_v57 = vld [vmem:[%s4675_s1 + $0x770] sm:$0xff]  }
  0xc9   :  { %3477 = vmatprep.subr.bf16.mxu0 %v3765_v59  ;;  %3498 = vmatpush3.bf16.msra.mxu1 %v3764_v58  ;;  %v3812_v59 = vld [vmem:[%s4675_s1 + $0x7a8] sm:$0xff]  }
  0xca   :  { %3499 = vmatprep.subr.bf16.mxu1 %v3766_v60 }
  0xcc   :  { %3478 = vmatpush3.bf16.msra.mxu0 %v3767_v61 }
  0xcd   :  { %3479 = vmatprep.subr.bf16.mxu0 %v3769_v63  ;;  %3500 = vmatpush3.bf16.msra.mxu1 %v3768_v62  ;;  %v3814_v63 = vld [vmem:[%s4675_s1 + $0x7f0] sm:$0xff]  }
  0xce   :  { %3501 = vmatprep.subr.bf16.mxu1 %v3770_v0  ;;  %v3815_v0 = vld [vmem:[%s4675_s1 + $0x730] sm:$0xff]  }
  0xd0   :  { %3480 = vmatpush3.bf16.msra.mxu0 %v3771_v1 }
  0xd1   :  { %3481 = vmatprep.subr.bf16.mxu0 %v3773_v3  ;;  %3502 = vmatpush3.bf16.msra.mxu1 %v3772_v2 }
  0xd2   :  { %3503 = vmatprep.subr.bf16.mxu1 %v3774_v4 }
  0xd4   :  { %3482 = vmatpush3.bf16.msra.mxu0 %v3775_v5 }
  0xd5   :  { %3483 = vmatprep.subr.bf16.mxu0 %v3777_v7  ;;  %3504 = vmatpush3.bf16.msra.mxu1 %v3776_v6  ;;  %v3817_v6 = vld [vmem:[%s4675_s1 + $0x778] sm:$0xff]  }
  0xd6   :  { %3505 = vmatprep.subr.bf16.mxu1 %v3778_v8  ;;  %v3816_v8 = vld [vmem:[%s4675_s1 + $0x7b0] sm:$0xff]  }
  0xd8   :  { %3484 = vmatpush3.bf16.msra.mxu0 %v3779_v9 }
  0xd9   :  { %3485 = vmatprep.subr.bf16.mxu0 %v3781_v11  ;;  %3506 = vmatpush3.bf16.msra.mxu1 %v3780_v10  ;;  %v3818_v10 = vld [vmem:[%s4675_s1 + $0x7f8] sm:$0xff]  }
  0xda   :  { %3507 = vmatprep.subr.bf16.mxu1 %v3782_v12  ;;  %v3819_v11 = vld [vmem:[%s4675_s1 + $0x738] sm:$0xff]   ;;  %v719_v12 = vrot.slane %v4571_v26, %v3933_v35 }
  0xdc   :  { %3486 = vmatpush3.bf16.msra.mxu0 %v3783_v13  ;;  %v3820_v13 = vld [vmem:[%s4675_s1 + $0x7b8] sm:$0xff]  }
  0xdd   :  { %3487 = vmatprep.subr.bf16.mxu0 %v3785_v15  ;;  %3508 = vmatpush3.bf16.msra.mxu1 %v3784_v14  ;;  %v735_v14 = vcombine.high %v719_v12, %v719_v12 }
  0xde   :  { %3509 = vmatprep.subr.bf16.mxu1 %v3786_v16 }
  0xe0   :  { %3488 = vmatpush3.bf16.msra.mxu0 %v3787_v17 }
  0xe1   :  { %3517 = vmatprep.subr.bf16.mxu0 %v3789_v20  ;;  %3510 = vmatpush3.bf16.msra.mxu1 %v3788_v22 }
  0xe2   :  { %3539 = vmatprep.subr.bf16.mxu1 %v3790_v25 }
  0xe3   :  { %2819 = vmatmul.mubr.bf16.vlgmr.msra.gmra.mrb[24].mxu0 %v712_v24 }
  0xe4   :  { %3518 = vmatpush3.bf16.msra.mxu0 %v3791_v28  ;;  %2859 = vmatmul.mubr.bf16.vlgmr.msra.gmra.mrb[24].mxu1 %v734_v30 }
  0xe5   :  { %3519 = vmatprep.subr.bf16.mxu0 %v3793_v31  ;;  %3540 = vmatpush3.bf16.msra.mxu1 %v3792_v33 }
  0xe6   :  { %2898 = vmatprep.mubr.bf16.mxu0 %v733_v34  ;;  %3541 = vmatprep.subr.bf16.mxu1 %v3794_v36 }
  0xe7   :  { %2938 = vmatprep.mubr.bf16.mxu1 %v737_v38 }
  0xe8   :  { %3520 = vmatpush3.bf16.msra.mxu0 %v3795_v37 }
  0xe9   :  { %3521 = vmatprep.subr.bf16.mxu0 %v3797_v39  ;;  %3542 = vmatpush3.bf16.msra.mxu1 %v3796_v40 }
  0xea   :  { %3543 = vmatprep.subr.bf16.mxu1 %v3798_v41 }
  0xec   :  { %3522 = vmatpush3.bf16.msra.mxu0 %v3799_v42 }
  0xed   :  { %3523 = vmatprep.subr.bf16.mxu0 %v3801_v43  ;;  %3544 = vmatpush3.bf16.msra.mxu1 %v3800_v44 }
  0xee   :  { %3545 = vmatprep.subr.bf16.mxu1 %v3802_v45 }
  0xf0   :  { %3524 = vmatpush3.bf16.msra.mxu0 %v3803_v46 }
  0xf1   :  { %3525 = vmatprep.subr.bf16.mxu0 %v3805_v47  ;;  %3546 = vmatpush3.bf16.msra.mxu1 %v3804_v48 }
  0xf2   :  { %3547 = vmatprep.subr.bf16.mxu1 %v3806_v49 }
  0xf4   :  { %3526 = vmatpush3.bf16.msra.mxu0 %v3807_v50 }
  0xf5   :  { %3527 = vmatprep.subr.bf16.mxu0 %v3809_v51  ;;  %3548 = vmatpush3.bf16.msra.mxu1 %v3808_v52 }
  0xf6   :  { %v3225_v56 = vpop.f32.mrb[0].mxu0  ;;  %3549 = vmatprep.subr.bf16.mxu1 %v3810_v53 }
  0xf7   :  { %v3226_v58 = vpop.f32.mrb[1].mxu0  ;;  %v3247_v60 = vpop.f32.mrb[0].mxu1 }
  0xf8   :  { %v3227_v61 = vadd.f32 %v3226_v58, %v3225_v56  ;;  %v3228_v62 = vpop.f32.mrb[2].mxu0  ;;  %v3248_v1 = vpop.f32.mrb[1].mxu1  ;;  %3528 = vmatpush3.bf16.msra.mxu0 %v3811_v55 }
  0xf9   :  { %v3229_v2 = vpop.f32.mrb[3].mxu0  ;;  %v3249_v4 = vadd.f32 %v3248_v1, %v3247_v60  ;;  %v3250_v5 = vpop.f32.mrb[2].mxu1  ;;  %3529 = vmatprep.subr.bf16.mxu0 %v3813_v57  ;;  %3550 = vmatpush3.bf16.msra.mxu1 %v3812_v59 }
  0xfa   :  { %v2341_v3 = vadd.f32 %v3227_v61, %v2952_v54  ;;  %v3251_v7 = vpop.f32.mrb[3].mxu1  ;;  %3551 = vmatprep.subr.bf16.mxu1 %v3814_v63 }
  0xfc   :  { %v2381_v9 = vadd.f32 %v3249_v4, %v2341_v3  ;;  %3530 = vmatpush3.bf16.msra.mxu0 %v3815_v0 }
  0xfd   :  { %3531 = vmatprep.subr.bf16.mxu0 %v3817_v6  ;;  %3552 = vmatpush3.bf16.msra.mxu1 %v3816_v8 }
  0xfe   :  { %3553 = vmatprep.subr.bf16.mxu1 %v3818_v10 }
 0x100   :  { %3532 = vmatpush3.bf16.msra.mxu0 %v3819_v11 }
 0x101   :  { %3554 = vmatpush3.bf16.msra.mxu1 %v3820_v13 }
 0x103   :  { %2899 = vmatmul.mubr.bf16.vlgmr.msra.gmra.mrb[28].mxu0 %v719_v12 }
 0x104   :  { %2939 = vmatmul.mubr.bf16.vlgmr.msra.gmra.mrb[28].mxu1 %v735_v14 }
 0x116   :  { %v3269_v15 = vpop.f32.mrb[4].mxu0 }
 0x117   :  { %v3270_v16 = vpop.f32.mrb[5].mxu0  ;;  %v3291_v17 = vpop.f32.mrb[4].mxu1 }
 0x118   :  { %v3271_v18 = vadd.f32 %v3270_v16, %v3269_v15  ;;  %v3272_v19 = vpop.f32.mrb[6].mxu0  ;;  %v3292_v20 = vpop.f32.mrb[5].mxu1 }
 0x119   :  { %v3273_v21 = vpop.f32.mrb[7].mxu0  ;;  %v3293_v35 = vadd.f32 %v3292_v20, %v3291_v17  ;;  %v3294_v23 = vpop.f32.mrb[6].mxu1 }
 0x11a   :  { %v2421_v22 = vadd.f32 %v3271_v18, %v2381_v9  ;;  %v3295_v24 = vpop.f32.mrb[7].mxu1 }
 0x11c   :  { %v2461_v25 = vadd.f32 %v3293_v35, %v2421_v22 }
 0x136   :  { %v3313_v26 = vpop.f32.mrb[8].mxu0 }
 0x137   :  { %v3314_v27 = vpop.f32.mrb[9].mxu0  ;;  %v3335_v28 = vpop.f32.mrb[8].mxu1 }
 0x138   :  { %v3315_v29 = vadd.f32 %v3314_v27, %v3313_v26  ;;  %v3316_v30 = vpop.f32.mrb[10].mxu0  ;;  %v3336_v31 = vpop.f32.mrb[9].mxu1 }
 0x139   :  { %v3317_v32 = vpop.f32.mrb[11].mxu0  ;;  %v3337_v34 = vadd.f32 %v3336_v31, %v3335_v28  ;;  %v3338_v36 = vpop.f32.mrb[10].mxu1 }
 0x13a   :  { %v2501_v33 = vadd.f32 %v3315_v29, %v2461_v25  ;;  %v3339_v37 = vpop.f32.mrb[11].mxu1 }
 0x13c   :  { %v2541_v38 = vadd.f32 %v3337_v34, %v2501_v33 }
 0x156   :  { %v3357_v39 = vpop.f32.mrb[12].mxu0 }
 0x157   :  { %v3358_v40 = vpop.f32.mrb[13].mxu0  ;;  %v3379_v41 = vpop.f32.mrb[12].mxu1 }
 0x158   :  { %v3359_v42 = vadd.f32 %v3358_v40, %v3357_v39  ;;  %v3360_v43 = vpop.f32.mrb[14].mxu0  ;;  %v3380_v44 = vpop.f32.mrb[13].mxu1 }
 0x159   :  { %v3361_v45 = vpop.f32.mrb[15].mxu0  ;;  %v3381_v47 = vadd.f32 %v3380_v44, %v3379_v41  ;;  %v3382_v48 = vpop.f32.mrb[14].mxu1 }
 0x15a   :  { %v2581_v46 = vadd.f32 %v3359_v42, %v2541_v38  ;;  %v3383_v49 = vpop.f32.mrb[15].mxu1 }
 0x15c   :  { %v2621_v50 = vadd.f32 %v3381_v47, %v2581_v46 }
 0x176   :  { %v3401_v51 = vpop.f32.mrb[16].mxu0 }
 0x177   :  { %v3402_v52 = vpop.f32.mrb[17].mxu0  ;;  %v3423_v53 = vpop.f32.mrb[16].mxu1 }
 0x178   :  { %v3403_v54 = vadd.f32 %v3402_v52, %v3401_v51  ;;  %v3404_v55 = vpop.f32.mrb[18].mxu0  ;;  %v3424_v56 = vpop.f32.mrb[17].mxu1 }
 0x179   :  { %v3405_v57 = vpop.f32.mrb[19].mxu0  ;;  %v3425_v59 = vadd.f32 %v3424_v56, %v3423_v53  ;;  %v3426_v60 = vpop.f32.mrb[18].mxu1 }
 0x17a   :  { %v2661_v58 = vadd.f32 %v3403_v54, %v2621_v50  ;;  %v3427_v61 = vpop.f32.mrb[19].mxu1 }
 0x17c   :  { %v2701_v62 = vadd.f32 %v3425_v59, %v2661_v58 }
 0x196   :  { %v3445_v63 = vpop.f32.mrb[20].mxu0 }
 0x197   :  { %v3446_v0 = vpop.f32.mrb[21].mxu0  ;;  %v3467_v1 = vpop.f32.mrb[20].mxu1 }
 0x198   :  { %v3447_v2 = vadd.f32 %v3446_v0, %v3445_v63  ;;  %v3448_v3 = vpop.f32.mrb[22].mxu0  ;;  %v3468_v4 = vpop.f32.mrb[21].mxu1 }
 0x199   :  { %v3449_v5 = vpop.f32.mrb[23].mxu0  ;;  %v3469_v7 = vadd.f32 %v3468_v4, %v3467_v1  ;;  %v3470_v8 = vpop.f32.mrb[22].mxu1 }
 0x19a   :  { %v2741_v6 = vadd.f32 %v3447_v2, %v2701_v62  ;;  %v3471_v9 = vpop.f32.mrb[23].mxu1 }
 0x19c   :  { %v2781_v10 = vadd.f32 %v3469_v7, %v2741_v6 }
 0x1b6   :  { %v3489_v11 = vpop.f32.mrb[24].mxu0 }
 0x1b7   :  { %v3490_v12 = vpop.f32.mrb[25].mxu0  ;;  %v3511_v13 = vpop.f32.mrb[24].mxu1 }
 0x1b8   :  { %v3491_v14 = vadd.f32 %v3490_v12, %v3489_v11  ;;  %v3492_v15 = vpop.f32.mrb[26].mxu0  ;;  %v3512_v16 = vpop.f32.mrb[25].mxu1 }
 0x1b9   :  { %v3493_v17 = vpop.f32.mrb[27].mxu0  ;;  %v3513_v19 = vadd.f32 %v3512_v16, %v3511_v13  ;;  %v3514_v20 = vpop.f32.mrb[26].mxu1 }
 0x1ba   :  { %v2821_v18 = vadd.f32 %v3491_v14, %v2781_v10  ;;  %v3515_v21 = vpop.f32.mrb[27].mxu1 }
 0x1bc   :  { %v2861_v22 = vadd.f32 %v3513_v19, %v2821_v18 }
 0x1d6   :  { %v3533_v35 = vpop.f32.mrb[28].mxu0 }
 0x1d7   :  { %v3534_v23 = vpop.f32.mrb[29].mxu0  ;;  %v3555_v24 = vpop.f32.mrb[28].mxu1 }
 0x1d8   :  { %v3535_v25 = vadd.f32 %v3534_v23, %v3533_v35  ;;  %v3536_v26 = vpop.f32.mrb[30].mxu0  ;;  %v3556_v27 = vpop.f32.mrb[29].mxu1 }
 0x1d9   :  { %v3537_v28 = vpop.f32.mrb[31].mxu0  ;;  %v3557_v30 = vadd.f32 %v3556_v27, %v3555_v24  ;;  %v3558_v31 = vpop.f32.mrb[30].mxu1 }
 0x1da   :  { %v2901_v29 = vadd.f32 %v3535_v25, %v2861_v22  ;;  %v3559_v32 = vpop.f32.mrb[31].mxu1 }
 0x1dc   :  { %v2941_v33 = vadd.f32 %v3557_v30, %v2901_v29 }
 0x1de   :  { %2947 = vst.msk [vmem:[%s4678_s3] sm:$0x3] %vm2946_vm0, %v2941_v33 }

// kernel: squeeze.9
= control target key start
LH: loop header
LB: loop body
LE: loop exit
PB: predicated region body
PF: predicated region fallthrough
CT: control target
= control target key end

     0   :  { %s308_s0 = inlined_call_operand.vmem [shape: f32[1,2,64], index: 0, kind: input, shape index: {}]   ;;  %s309_s1 = inlined_call_operand.hbm [shape: f32[2,4,4,4], index: 1, kind: output, shape index: {}]  }
   0x1   :  { %v5_v0 = vld [vmem:[%s308_s0] sm:$0x3] }
   0x2   :  { %6 = vst [vmem:[#allocation3] sm:$0x3] %v5_v0 }
   0x3   :  { %2 = vsyncpa [#allocation1], 0  ;;  %s235_s0 = smov 124   ;;  %s236_s8 = smov 116   ;;  %vm8_vm0 = vcmask 31744  }
   0x4   :  { %s237_s9 = smov 120   ;;  %s238_s10 = smov 112  }
   0x5   :  { %s239_s11 = smov 108   ;;  %s240_s12 = smov 104  }
   0x6   :  { %s241_s13 = smov 100   ;;  %s242_s14 = smov 96  }
   0x7   :  { %s243_s15 = smov 92   ;;  %s244_s16 = smov 88  }
   0x8   :  { %s245_s17 = smov 84   ;;  %s246_s18 = smov 80  }
   0x9   :  { %v12_v1 = vld [vmem:[#allocation3] sm:$0x3]   ;;  %s247_s19 = smov 76   ;;  %s248_s20 = smov 72  }
   0xa   :  { %v28_v2 = vld [vmem:[#allocation3] sm:$0x3]   ;;  %13 = vrot.lane.b32.xlu0 %v12_v1, %s235_s0  ;;  %s249_s21 = smov 68   ;;  %s250_s22 = smov [#allocation0]  }
   0xb   :  { %29 = vrot.lane.b32.xlu1 %v28_v2, %s236_s8  ;;  %v20_v3 = vld [vmem:[#allocation3] sm:$0x3]   ;;  %s183_s23 = sshll.u32 %s250_s22, 4  ;;  %s184_s23 = int_to_ptr.vmem [resolvable:$true] %s183_s23 }
   0xc   :  { %v36_v4 = vld [vmem:[#allocation3] sm:$0x3]   ;;  %s211_s24 = scalar_lea.vmem %s184_s23, 512  ;;  %p216_p1 = scmp.lt.s32.totalorder %s184_s23, %s184_s23 }
   0xd   :  { %v7_v5 = vld [vmem:[#allocation3] sm:$0x3]   ;;  %p212_p0 = scmp.ne.s32.totalorder %s184_s23, %s211_s24  ;;  %p217_p2 = scmp.lt.s32.totalorder %s211_s24, %s211_s24 }
   0xe   :  { %21 = vrot.lane.b32.xlu0 %v20_v3, %s237_s9  ;;  %v44_v6 = vld [vmem:[#allocation3] sm:$0x3]   ;;  %9 = vst.msk [vmem:[#allocation2] sm:$0x1] %vm8_vm0, %v7_v5   ;;  %11 = vst.msk [vmem:[#allocation2 + $0x1f] sm:$0x2] %vm8_vm0, %v7_v5  }
   0xf   :  { %37 = vrot.lane.b32.xlu1 %v36_v4, %s238_s10  ;;  %v52_v7 = vld [vmem:[#allocation3] sm:$0x3]   ;;  %p218_p3 = por %p217_p2, %p216_p1 }
  0x10   :  { %v60_v8 = vld [vmem:[#allocation3] sm:$0x3]  }
  0x11   :  { %v68_v9 = vld [vmem:[#allocation3] sm:$0x3]   ;;  %p219_p4 = pnand %p218_p3, %p212_p0 }
  0x12   :  { %45 = vrot.lane.b32.xlu0 %v44_v6, %s239_s11  ;;  %v76_v10 = vld [vmem:[#allocation3] sm:$0x3]  }
  0x13   :  { %53 = vrot.lane.b32.xlu1 %v52_v7, %s240_s12  ;;  %v84_v11 = vld [vmem:[#allocation3] sm:$0x3]  }
  0x14   :  { %v92_v12 = vld [vmem:[#allocation3] sm:$0x3]  }
  0x15   :  { %v100_v13 = vld [vmem:[#allocation3] sm:$0x3]  }
  0x16   :  { %61 = vrot.lane.b32.xlu0 %v60_v8, %s241_s13  ;;  %v108_v14 = vld [vmem:[#allocation3] sm:$0x3]  }
  0x17   :  { %69 = vrot.lane.b32.xlu1 %v68_v9, %s242_s14  ;;  %v116_v15 = vld [vmem:[#allocation3] sm:$0x3]  }
  0x18   :  { %v124_v16 = vld [vmem:[#allocation3] sm:$0x3]  }
  0x1a   :  { %77 = vrot.lane.b32.xlu0 %v76_v10, %s243_s15 }
  0x1b   :  { %85 = vrot.lane.b32.xlu1 %v84_v11, %s244_s16 }
  0x1e   :  { %93 = vrot.lane.b32.xlu0 %v92_v12, %s245_s17 }
  0x1f   :  { %101 = vrot.lane.b32.xlu1 %v100_v13, %s246_s18 }
  0x22   :  { %109 = vrot.lane.b32.xlu0 %v108_v14, %s247_s19 }
  0x23   :  { %117 = vrot.lane.b32.xlu1 %v116_v15, %s248_s20 }
  0x26   :  { %125 = vrot.lane.b32.xlu0 %v124_v16, %s249_s21 }
  0x7c   :  { %v14_v17 = vpop.permute.xlu0 %13  }
  0x7d   :  { %v30_v18 = vpop.permute.xlu1 %29   ;;  %17 = vst.msk [vmem:[#allocation2 + $0x1] sm:$0x1] %vm8_vm0, %v14_v17   ;;  %19 = vst.msk [vmem:[#allocation2 + $0x20] sm:$0x2] %vm8_vm0, %v14_v17  }
  0x7e   :  { %33 = vst.msk [vmem:[#allocation2 + $0x3] sm:$0x1] %vm8_vm0, %v30_v18   ;;  %35 = vst.msk [vmem:[#allocation2 + $0x22] sm:$0x2] %vm8_vm0, %v30_v18  }
  0x80   :  { %v22_v19 = vpop.permute.xlu0 %21  }
  0x81   :  { %v38_v20 = vpop.permute.xlu1 %37   ;;  %25 = vst.msk [vmem:[#allocation2 + $0x2] sm:$0x1] %vm8_vm0, %v22_v19   ;;  %27 = vst.msk [vmem:[#allocation2 + $0x21] sm:$0x2] %vm8_vm0, %v22_v19  }
  0x82   :  { %41 = vst.msk [vmem:[#allocation2 + $0x8] sm:$0x1] %vm8_vm0, %v38_v20   ;;  %43 = vst.msk [vmem:[#allocation2 + $0x27] sm:$0x2] %vm8_vm0, %v38_v20  }
  0x84   :  { %v46_v21 = vpop.permute.xlu0 %45  }
  0x85   :  { %v54_v22 = vpop.permute.xlu1 %53   ;;  %49 = vst.msk [vmem:[#allocation2 + $0x9] sm:$0x1] %vm8_vm0, %v46_v21   ;;  %51 = vst.msk [vmem:[#allocation2 + $0x28] sm:$0x2] %vm8_vm0, %v46_v21  }
  0x86   :  { %57 = vst.msk [vmem:[#allocation2 + $0xa] sm:$0x1] %vm8_vm0, %v54_v22   ;;  %59 = vst.msk [vmem:[#allocation2 + $0x29] sm:$0x2] %vm8_vm0, %v54_v22  }
  0x88   :  { %v62_v23 = vpop.permute.xlu0 %61   ;;  %v135_v25 = vld [vmem:[#allocation2] sm:$0xf] }
  0x89   :  { %v70_v24 = vpop.permute.xlu1 %69   ;;  %v156_v26 = vld [vmem:[#allocation2 + $0x20] sm:$0xf]  ;;  %65 = vst.msk [vmem:[#allocation2 + $0xb] sm:$0x1] %vm8_vm0, %v62_v23   ;;  %67 = vst.msk [vmem:[#allocation2 + $0x2a] sm:$0x2] %vm8_vm0, %v62_v23  }
  0x8a   :  { %73 = vst.msk [vmem:[#allocation2 + $0x10] sm:$0x1] %vm8_vm0, %v70_v24   ;;  %75 = vst.msk [vmem:[#allocation2 + $0x2f] sm:$0x2] %vm8_vm0, %v70_v24  }
  0x8b   :  { %137 = vst [vmem:[#allocation0] sm:$0xf] %v135_v25  ;;  %160 = vst [vmem:[#allocation0 + $0x10] sm:$0xf] %v156_v26 }
  0x8c   :  { %v78_v27 = vpop.permute.xlu0 %77  }
  0x8d   :  { %v86_v28 = vpop.permute.xlu1 %85   ;;  %81 = vst.msk [vmem:[#allocation2 + $0x11] sm:$0x1] %vm8_vm0, %v78_v27   ;;  %83 = vst.msk [vmem:[#allocation2 + $0x30] sm:$0x2] %vm8_vm0, %v78_v27  }
  0x8e   :  { %89 = vst.msk [vmem:[#allocation2 + $0x12] sm:$0x1] %vm8_vm0, %v86_v28   ;;  %91 = vst.msk [vmem:[#allocation2 + $0x31] sm:$0x2] %vm8_vm0, %v86_v28  }
  0x90   :  { %v94_v29 = vpop.permute.xlu0 %93   ;;  %v139_v31 = vld [vmem:[#allocation2 + $0x8] sm:$0xf] }
  0x91   :  { %v102_v30 = vpop.permute.xlu1 %101   ;;  %v162_v32 = vld [vmem:[#allocation2 + $0x28] sm:$0xf]  ;;  %97 = vst.msk [vmem:[#allocation2 + $0x13] sm:$0x1] %vm8_vm0, %v94_v29   ;;  %99 = vst.msk [vmem:[#allocation2 + $0x32] sm:$0x2] %vm8_vm0, %v94_v29  }
  0x92   :  { %105 = vst.msk [vmem:[#allocation2 + $0x18] sm:$0x1] %vm8_vm0, %v102_v30   ;;  %107 = vst.msk [vmem:[#allocation2 + $0x37] sm:$0x2] %vm8_vm0, %v102_v30  }
  0x93   :  { %142 = vst [vmem:[#allocation0 + $0x4] sm:$0xf] %v139_v31  ;;  %166 = vst [vmem:[#allocation0 + $0x14] sm:$0xf] %v162_v32 }
  0x94   :  { %v110_v33 = vpop.permute.xlu0 %109  }
  0x95   :  { %v118_v34 = vpop.permute.xlu1 %117   ;;  %113 = vst.msk [vmem:[#allocation2 + $0x19] sm:$0x1] %vm8_vm0, %v110_v33   ;;  %115 = vst.msk [vmem:[#allocation2 + $0x38] sm:$0x2] %vm8_vm0, %v110_v33  }
  0x96   :  { %121 = vst.msk [vmem:[#allocation2 + $0x1a] sm:$0x1] %vm8_vm0, %v118_v34   ;;  %123 = vst.msk [vmem:[#allocation2 + $0x39] sm:$0x2] %vm8_vm0, %v118_v34  }
  0x98   :  { %v126_v35 = vpop.permute.xlu0 %125   ;;  %v144_v36 = vld [vmem:[#allocation2 + $0x10] sm:$0xf] }
  0x99   :  { %v168_v37 = vld [vmem:[#allocation2 + $0x30] sm:$0xf]  ;;  %129 = vst.msk [vmem:[#allocation2 + $0x1b] sm:$0x1] %vm8_vm0, %v126_v35   ;;  %131 = vst.msk [vmem:[#allocation2 + $0x3a] sm:$0x2] %vm8_vm0, %v126_v35  }
  0x9a   :  { %148 = vst [vmem:[#allocation0 + $0x8] sm:$0xf] %v144_v36  ;;  %172 = vst [vmem:[#allocation0 + $0x18] sm:$0xf] %v168_v37 }
  0xa0   :  { %v150_v38 = vld [vmem:[#allocation2 + $0x18] sm:$0xf] }
  0xa1   :  { %v174_v39 = vld [vmem:[#allocation2 + $0x38] sm:$0xf]  ;;  %154 = vst [vmem:[#allocation0 + $0xc] sm:$0xf] %v150_v38 }
  0xa2   :  { %178 = vst [vmem:[#allocation0 + $0x1c] sm:$0xf] %v174_v39 }
  0xa3   :  { %222 = shalt.err (!%p219_p4)
}
  0xa4   :  { %s223_s27 = scalar_lea.hbm %s309_s1, 512 }
  0xa5   :  { %p224_p5 = scmp.ne.s32.totalorder %s309_s1, %s223_s27  ;;  %p227_p6 = scmp.lt.u32.totalorder %s223_s27, %s309_s1 }
  0xa7   :  { %p229_p7 = pnand %p227_p6, %p224_p5 }
  0xa9   :  { %232 = shalt.err (!%p229_p7)
}
  0xaa   :  { %186 = dma.vmem_to_hbm [thread:$0]  %s184_s23, 512, %s309_s1, [#allocation1]  }
  0xab   :  { %233 = dma.done.wait [#allocation1], 512  }
  0xac   :  { %234 = vsyncadd [#allocation1], 4294966784 }
  0xad   :  { %188 = vsyncpa [#allocation1], 1 }

</bundles_post_ra>
